<compile_context>
chip_gen: v5e
topology: v5e:2x2
jax: 0.10.0
libtpu: 0.0.40
codegen_flags: <defaults>
</compile_context>

<pallas_src>
import functools

import jax
import jax.numpy as jnp
from jax.experimental import pallas as pl
from jax.experimental.pallas import tpu as pltpu

_LN_EPS = 1e-5


def _layer_norm(x, gamma, beta):
    # LayerNorm over last dim, biased variance, eps=1e-5 (PyTorch default).
    mu = jnp.mean(x, axis=-1, keepdims=True)
    xc = x - mu
    var = jnp.mean(xc * xc, axis=-1, keepdims=True)
    return xc * jax.lax.rsqrt(var + _LN_EPS) * gamma + beta


def _encoder_layer_kernel(num_heads,
                          x_ref,                       # (NT, S, E*D) activations
                          rq_ref, sq_ref,              # (E, D) f32 rank-1 factors
                          wq_ref, bq_ref,              # (D, D) bf16, (1, D) f32
                          wk_ref, bk_ref,
                          wv_ref, bv_ref,
                          wo_ref, bo_ref,
                          w1_ref, b1_ref,              # (D, FF) bf16, (1, FF) f32
                          w2_ref, b2_ref,              # (FF, D) bf16, (1, D) f32
                          g1_ref, beta1_ref,           # (1, D) f32 LayerNorm params
                          g2_ref, beta2_ref,
                          o_ref):                      # (NT, S, E*D)
    f32 = jnp.float32
    bf16 = jnp.bfloat16
    E, D = rq_ref.shape
    NT, S, _ = x_ref.shape
    H = num_heads
    hd = D // H
    PT = NT * E                                        # (batch, ensemble) pairs
    M = PT * S
    inv_sqrt_hd = 1.0 / (hd ** 0.5)

    # (NT, S, E, D) -> (NT, E, S, D): a single in-VMEM sublane permutation replaces
    # the two wrapper-side HBM transposes of the previous revision.
    x = x_ref[...].astype(f32).reshape(NT, S, E, D)
    x = jnp.transpose(x, (0, 2, 1, 3))                 # (NT, E, S, D)

    # Rank-1 BatchEnsemble factors applied by broadcast (no concatenate copies).
    r = rq_ref[...].astype(f32)[None, :, None, :]      # (1, E, 1, D)
    s = sq_ref[...].astype(f32)[None, :, None, :]

    xf = x.reshape(M, D)
    xr = (x * r).reshape(M, D)

    # --- projections: single (M, D) matmuls, bf16 operands / f32 accumulation ---
    q = jnp.dot(xr.astype(bf16), wq_ref[...], preferred_element_type=f32)
    q = (q.reshape(NT, E, S, D) * s).reshape(M, D) + bq_ref[...]
    k = jnp.dot(xf.astype(bf16), wk_ref[...], preferred_element_type=f32) + bk_ref[...]
    v = jnp.dot(xf.astype(bf16), wv_ref[...], preferred_element_type=f32) + bv_ref[...]

    # --- multi-head attention: all (pair, head) batches in one einsum pair ------
    def to_heads(t):                                   # (M, D) -> (PT*H, S, hd)
        t = t.reshape(PT, S, H, hd)
        return jnp.transpose(t, (0, 2, 1, 3)).reshape(PT * H, S, hd)

    qh = to_heads(q).astype(bf16)
    kh = to_heads(k).astype(bf16)
    vh = to_heads(v).astype(bf16)

    # TODO(synk): for deployment-scale S, tile keys with an online-softmax loop
    # instead of materializing the full (PT*H, S, S) score tensor.
    sc = jnp.einsum('bqd,bkd->bqk', qh, kh,
                    preferred_element_type=f32) * inv_sqrt_hd     # (PT*H, S, S)
    sc = sc - jnp.max(sc, axis=-1, keepdims=True)
    p = jnp.exp(sc)
    p = p * pl.reciprocal(jnp.sum(p, axis=-1, keepdims=True), approx=True)
    ctx = jnp.einsum('bqk,bkd->bqd', p.astype(bf16), vh,
                     preferred_element_type=f32)                  # (PT*H, S, hd)
    ctx = jnp.transpose(ctx.reshape(PT, H, S, hd), (0, 2, 1, 3)).reshape(M, D)

    # Single K=D output projection (un-folded from the old per-head K=hd loop).
    attn = jnp.dot(ctx.astype(bf16), wo_ref[...], preferred_element_type=f32) + bo_ref[...]

    # --- residual + norm1 --------------------------------------------------------
    h1 = _layer_norm(xf + attn, g1_ref[...], beta1_ref[...])       # (M, D)

    # --- shared feed-forward (ReLU) ----------------------------------------------
    ff = jnp.dot(h1.astype(bf16), w1_ref[...], preferred_element_type=f32) + b1_ref[...]
    ff = jnp.maximum(ff, 0.0)
    ff = jnp.dot(ff.astype(bf16), w2_ref[...], preferred_element_type=f32) + b2_ref[...]

    # --- residual + norm2 --------------------------------------------------------
    out = _layer_norm(h1 + ff, g2_ref[...], beta2_ref[...])

    # back to the HBM layout: (NT, E, S, D) -> (NT, S, E*D)
    out = jnp.transpose(out.reshape(NT, E, S, D), (0, 2, 1, 3)).reshape(NT, S, E * D)
    o_ref[...] = out.astype(o_ref.dtype)


def _pick_batches_per_program(N, E, S, D, H, FF,
                              temp_budget_bytes=20 * 2 ** 20,
                              min_rows_for_split=256):
    """Largest NT dividing N whose in-kernel temporaries fit the VMEM budget.

    A >=2-step grid is only preferred when each step still gets a fat block
    (>= min_rows_for_split rows): v7x's two TensorCores then both get work, while
    single-core v5e/v6e never pay per-step overhead for skinny blocks.
    """
    def temp_bytes(nt):
        rows = nt * E * S
        # ~12 f32 row-slabs of width D, 2 of width FF, scores+probs (PT*H, S, S).
        return 4 * (12 * rows * D + 2 * rows * FF + 2 * nt * E * H * S * S)

    feasible = [nt for nt in range(1, N + 1)
                if N % nt == 0 and temp_bytes(nt) <= temp_budget_bytes]
    if not feasible:
        return 1
    split = [nt for nt in feasible
             if N // nt >= 2 and nt * E * S >= min_rows_for_split]
    return max(split) if split else max(feasible)


def batch_ensemble_encoder_layer(src, params, *, num_heads):
    """src: (N, S, E, D) -> (N, S, E, D)."""
    N, S, E, D = src.shape
    FF = params["w1_t"].shape[1]
    assert D % num_heads == 0, "embed_dim must be divisible by num_heads"
    # TODO(synk): for deployment pad D to a multiple of 128 so activation rows and
    # per-head slabs are fully lane-dense.

    # Contiguous-collapse reshape only (free): no HBM transpose in the wrapper.
    x3 = src.reshape(N, S, E * D)

    NT = _pick_batches_per_program(N, E, S, D, num_heads, FF)
    grid = (N // NT,)

    bf16 = jnp.bfloat16
    operands = (
        x3,
        params["r_q"], params["s_q"],
        params["wq_t"].astype(bf16), params["bq"],
        params["wk_t"].astype(bf16), params["bk"],
        params["wv_t"].astype(bf16), params["bv"],
        params["wo_t"].astype(bf16), params["bo"],
        params["w1_t"].astype(bf16), params["b1"],
        params["w2_t"].astype(bf16), params["b2"],
        params["ln1_g"], params["ln1_b"],
        params["ln2_g"], params["ln2_b"],
    )

    # --- scheduler hints: roofline estimate -------------------------------------
    P = N * E
    weight_bytes = 2 * (4 * D * D + 2 * D * FF)        # bf16 resident weights
    small_bytes = 4 * (2 * E * D + 8 * D + FF)         # f32 biases / LN / rank-1
    flops = 2 * P * S * (4 * D * D + 2 * D * FF) + 4 * P * S * S * D
    transcendentals = P * num_heads * S * (S + 1) + 2 * P * S
    bytes_accessed = 2 * 4 * P * S * D + weight_bytes + small_bytes
    cost = pl.CostEstimate(flops=int(flops), transcendentals=int(transcendentals),
                           bytes_accessed=int(bytes_accessed))

    rows = NT * E * S
    io_block = 4 * NT * S * E * D
    temps = 4 * (12 * rows * D + 2 * rows * FF + 2 * NT * E * num_heads * S * S)

    def call(single_buffer_residents):
        res_mode = pl.Buffered(1) if single_buffer_residents else None
        res_copies = 1 if single_buffer_residents else 2

        def resident_spec(arr):                        # constant index -> fetched once
            nd = arr.ndim
            idx = lambda i, _nd=nd: (0,) * _nd
            if res_mode is None:
                return pl.BlockSpec(arr.shape, idx)
            return pl.BlockSpec(arr.shape, idx, pipeline_mode=res_mode)

        in_specs = [pl.BlockSpec((NT, S, E * D), lambda i: (i, 0, 0))]
        in_specs += [resident_spec(a) for a in operands[1:]]

        # Actual live buffers: double-buffered in/out blocks, residents once when
        # single-buffered, f32 temporaries + batched scores counted once.
        vmem_needed = (2 * 2 * io_block
                       + res_copies * (weight_bytes + small_bytes)
                       + temps)
        vmem_limit = int(min(max(int(vmem_needed * 1.25), 8 * 2 ** 20), 32 * 2 ** 20))

        return pl.pallas_call(
            functools.partial(_encoder_layer_kernel, num_heads),
            out_shape=jax.ShapeDtypeStruct((N, S, E * D), src.dtype),
            grid=grid,
            in_specs=in_specs,
            out_specs=pl.BlockSpec((NT, S, E * D), lambda i: (i, 0, 0)),
            compiler_params=pltpu.CompilerParams(
                dimension_semantics=("parallel",),
                vmem_limit_bytes=vmem_limit),
            cost_estimate=cost,
        )(*operands)

    try:
        # Single-buffer the resident parameter blocks (halves their VMEM footprint,
        # matters under v7x's 64 MiB ceiling).
        out3 = call(single_buffer_residents=True)
    except Exception:
        # Older jax without Buffered(1) support on resident blocks: default
        # double-buffering (costs ~weight_bytes extra VMEM, otherwise identical).
        out3 = call(single_buffer_residents=False)

    return out3.reshape(N, S, E, D)


def _reference_forward(src, params, *, num_heads):
    """Pure-JAX f32 forward (non-Pallas), used only as a numerical cross-check."""
    N, S, E, D = src.shape
    H, hd = num_heads, D // num_heads
    x = src.astype(jnp.float32)

    q = (jnp.einsum('nsed,df->nsef', x * params["r_q"][None, None], params["wq_t"])
         * params["s_q"][None, None] + params["bq"])
    k = jnp.einsum('nsed,df->nsef', x, params["wk_t"]) + params["bk"]
    v = jnp.einsum('nsed,df->nsef', x, params["wv_t"]) + params["bv"]

    qh = q.reshape(N, S, E, H, hd)
    kh = k.reshape(N, S, E, H, hd)
    vh = v.reshape(N, S, E, H, hd)
    sc = jnp.einsum('nsehd,ntehd->nehst', qh, kh) / (hd ** 0.5)
    p = jax.nn.softmax(sc, axis=-1)
    ctx = jnp.einsum('nehst,ntehd->nsehd', p, vh).reshape(N, S, E, D)
    attn = jnp.einsum('nsed,df->nsef', ctx, params["wo_t"]) + params["bo"]

    h1 = _layer_norm(x + attn, params["ln1_g"], params["ln1_b"])
    ff = jnp.maximum(jnp.einsum('nsed,df->nsef', h1, params["w1_t"]) + params["b1"], 0.0)
    ff = jnp.einsum('nsed,df->nsef', ff, params["w2_t"]) + params["b2"]
    return _layer_norm(h1 + ff, params["ln2_g"], params["ln2_b"])


def init_params(key, embed_dim, dim_feedforward, ensemble_size):
    """Deterministic synthetic parameters (PyTorch-Linear-style uniform init)."""
    keys = jax.random.split(key, 8)

    def linear(k, fan_in, fan_out):
        bound = 1.0 / (fan_in ** 0.5)
        kw, kb = jax.random.split(k)
        w = jax.random.uniform(kw, (fan_out, fan_in), jnp.float32, -bound, bound)
        b = jax.random.uniform(kb, (fan_out,), jnp.float32, -bound, bound)
        # store transposed (in, out) so the kernel computes x @ W^T as x @ w_t
        return w.T, b.reshape(1, fan_out)

    wq_t, bq = linear(keys[0], embed_dim, embed_dim)
    wk_t, bk = linear(keys[1], embed_dim, embed_dim)
    wv_t, bv = linear(keys[2], embed_dim, embed_dim)
    wo_t, bo = linear(keys[3], embed_dim, embed_dim)
    w1_t, b1 = linear(keys[4], embed_dim, dim_feedforward)
    w2_t, b2 = linear(keys[5], dim_feedforward, embed_dim)

    # BatchEnsemble rank-1 factors for the query projection
    # (scaling_init='normal' so ensemble members actually differ in the demo).
    r_q = jax.random.normal(keys[6], (ensemble_size, embed_dim), jnp.float32)
    s_q = jax.random.normal(keys[7], (ensemble_size, embed_dim), jnp.float32)

    return dict(
        wq_t=wq_t, bq=bq, wk_t=wk_t, bk=bk, wv_t=wv_t, bv=bv, wo_t=wo_t, bo=bo,
        w1_t=w1_t, b1=b1, w2_t=w2_t, b2=b2,
        r_q=r_q, s_q=s_q,
        ln1_g=jnp.ones((1, embed_dim), jnp.float32),
        ln1_b=jnp.zeros((1, embed_dim), jnp.float32),
        ln2_g=jnp.ones((1, embed_dim), jnp.float32),
        ln2_b=jnp.zeros((1, embed_dim), jnp.float32),
    )


if __name__ == "__main__":
    # Small shapes consistent with the module's (N, S, E, D) forward contract.
    N, S, E, D = 2, 8, 2, 32
    NUM_HEADS = 4
    DIM_FF = 64

    key = jax.random.PRNGKey(0)
    k_src, k_par = jax.random.split(key)
    src = jax.random.normal(k_src, (N, S, E, D), jnp.float32)
    params = init_params(k_par, D, DIM_FF, E)

    out = jax.block_until_ready(
        batch_ensemble_encoder_layer(src, params, num_heads=NUM_HEADS))

    assert out.shape == (N, S, E, D), out.shape
    assert bool(jnp.all(jnp.isfinite(out)))

    # Numerical cross-check against an all-f32 pure-JAX reference.  The kernel uses
    # bf16 MXU operands (f32 accumulation) plus the EUP approximate softmax
    # reciprocal, so allow a loose absolute tolerance.
    ref = jax.block_until_ready(_reference_forward(src, params, num_heads=NUM_HEADS))
    max_err = float(jnp.max(jnp.abs(out - ref)))
    mean_err = float(jnp.mean(jnp.abs(out - ref)))
    assert max_err < 1e-1 and mean_err < 2e-2, (max_err, mean_err)

    print("KERNEL_OK")
</pallas_src>

<mosaic_0001>
module attributes {stable_mosaic.version = 11 : i64} {
  func.func @_encoder_layer_kernel(%arg0: i32, %arg1: memref<2x8x64xf32, #tpu.memory_space<vmem>>, %arg2: memref<2x32xf32, #tpu.memory_space<vmem>>, %arg3: memref<2x32xf32, #tpu.memory_space<vmem>>, %arg4: memref<32x32xbf16, #tpu.memory_space<vmem>>, %arg5: memref<1x32xf32, #tpu.memory_space<vmem>>, %arg6: memref<32x32xbf16, #tpu.memory_space<vmem>>, %arg7: memref<1x32xf32, #tpu.memory_space<vmem>>, %arg8: memref<32x32xbf16, #tpu.memory_space<vmem>>, %arg9: memref<1x32xf32, #tpu.memory_space<vmem>>, %arg10: memref<32x32xbf16, #tpu.memory_space<vmem>>, %arg11: memref<1x32xf32, #tpu.memory_space<vmem>>, %arg12: memref<32x64xbf16, #tpu.memory_space<vmem>>, %arg13: memref<1x64xf32, #tpu.memory_space<vmem>>, %arg14: memref<64x32xbf16, #tpu.memory_space<vmem>>, %arg15: memref<1x32xf32, #tpu.memory_space<vmem>>, %arg16: memref<1x32xf32, #tpu.memory_space<vmem>>, %arg17: memref<1x32xf32, #tpu.memory_space<vmem>>, %arg18: memref<1x32xf32, #tpu.memory_space<vmem>>, %arg19: memref<1x32xf32, #tpu.memory_space<vmem>>, %arg20: memref<2x8x64xf32, #tpu.memory_space<vmem>>) attributes {dimension_semantics = [#tpu.dimension_semantics<parallel>], iteration_bounds = array<i64: 1>, scalar_prefetch = 0 : i64, scratch_operands = 0 : i64, tpu.core_type = #tpu.core_type<tc>, window_params = [{transform_indices = @transform_0, window_bounds = array<i64: 2, 8, 64>}, {pipeline_mode = #tpu.pipeline_mode<synchronous>, transform_indices = @transform_1, window_bounds = array<i64: 2, 32>}, {pipeline_mode = #tpu.pipeline_mode<synchronous>, transform_indices = @transform_2, window_bounds = array<i64: 2, 32>}, {pipeline_mode = #tpu.pipeline_mode<synchronous>, transform_indices = @transform_3, window_bounds = array<i64: 32, 32>}, {pipeline_mode = #tpu.pipeline_mode<synchronous>, transform_indices = @transform_4, window_bounds = array<i64: 1, 32>}, {pipeline_mode = #tpu.pipeline_mode<synchronous>, transform_indices = @transform_5, window_bounds = array<i64: 32, 32>}, {pipeline_mode = #tpu.pipeline_mode<synchronous>, transform_indices = @transform_6, window_bounds = array<i64: 1, 32>}, {pipeline_mode = #tpu.pipeline_mode<synchronous>, transform_indices = @transform_7, window_bounds = array<i64: 32, 32>}, {pipeline_mode = #tpu.pipeline_mode<synchronous>, transform_indices = @transform_8, window_bounds = array<i64: 1, 32>}, {pipeline_mode = #tpu.pipeline_mode<synchronous>, transform_indices = @transform_9, window_bounds = array<i64: 32, 32>}, {pipeline_mode = #tpu.pipeline_mode<synchronous>, transform_indices = @transform_10, window_bounds = array<i64: 1, 32>}, {pipeline_mode = #tpu.pipeline_mode<synchronous>, transform_indices = @transform_11, window_bounds = array<i64: 32, 64>}, {pipeline_mode = #tpu.pipeline_mode<synchronous>, transform_indices = @transform_12, window_bounds = array<i64: 1, 64>}, {pipeline_mode = #tpu.pipeline_mode<synchronous>, transform_indices = @transform_13, window_bounds = array<i64: 64, 32>}, {pipeline_mode = #tpu.pipeline_mode<synchronous>, transform_indices = @transform_14, window_bounds = array<i64: 1, 32>}, {pipeline_mode = #tpu.pipeline_mode<synchronous>, transform_indices = @transform_15, window_bounds = array<i64: 1, 32>}, {pipeline_mode = #tpu.pipeline_mode<synchronous>, transform_indices = @transform_16, window_bounds = array<i64: 1, 32>}, {pipeline_mode = #tpu.pipeline_mode<synchronous>, transform_indices = @transform_17, window_bounds = array<i64: 1, 32>}, {pipeline_mode = #tpu.pipeline_mode<synchronous>, transform_indices = @transform_18, window_bounds = array<i64: 1, 32>}, {transform_indices = @transform_19, window_bounds = array<i64: 2, 8, 64>}]} {
    %c0 = arith.constant 0 : index
    %c0_0 = arith.constant 0 : index
    %c0_1 = arith.constant 0 : index
    %0 = vector.load %arg1[%c0, %c0_0, %c0_1] : memref<2x8x64xf32, #tpu.memory_space<vmem>>, vector<2x8x64xf32>
    %1 = vector.shape_cast %0 : vector<2x8x64xf32> to vector<2x8x2x32xf32>
    %2 = tpu.transpose %1, [0, 2, 1, 3] : vector<2x8x2x32xf32> -> vector<2x2x8x32xf32>
    %c0_2 = arith.constant 0 : index
    %c0_3 = arith.constant 0 : index
    %3 = vector.load %arg2[%c0_2, %c0_3] : memref<2x32xf32, #tpu.memory_space<vmem>>, vector<2x32xf32>
    %4 = vector.shape_cast %3 : vector<2x32xf32> to vector<1x2x1x32xf32>
    %c0_4 = arith.constant 0 : index
    %c0_5 = arith.constant 0 : index
    %5 = vector.load %arg3[%c0_4, %c0_5] : memref<2x32xf32, #tpu.memory_space<vmem>>, vector<2x32xf32>
    %6 = vector.shape_cast %5 : vector<2x32xf32> to vector<1x2x1x32xf32>
    %7 = vector.shape_cast %2 : vector<2x2x8x32xf32> to vector<32x32xf32>
    %8 = vector.broadcast %4 : vector<1x2x1x32xf32> to vector<2x2x8x32xf32>
    %9 = arith.mulf %2, %8 : vector<2x2x8x32xf32>
    %10 = vector.shape_cast %9 : vector<2x2x8x32xf32> to vector<32x32xf32>
    %11 = arith.truncf %10 : vector<32x32xf32> to vector<32x32xbf16>
    %c0_6 = arith.constant 0 : index
    %c0_7 = arith.constant 0 : index
    %12 = vector.load %arg4[%c0_6, %c0_7] : memref<32x32xbf16, #tpu.memory_space<vmem>>, vector<32x32xbf16>
    %cst = arith.constant dense<0.000000e+00> : vector<32x32xf32>
    %13 = tpu.matmul %11, %12, %cst {dimension_numbers = #tpu.dot_dimension_numbers<[1], [0], [0], [1], [0, 0, 1, 1], [], []>} : vector<32x32xbf16>, vector<32x32xbf16>, vector<32x32xf32> -> vector<32x32xf32>
    %14 = vector.shape_cast %13 : vector<32x32xf32> to vector<2x2x8x32xf32>
    %15 = vector.broadcast %6 : vector<1x2x1x32xf32> to vector<2x2x8x32xf32>
    %16 = arith.mulf %14, %15 : vector<2x2x8x32xf32>
    %17 = vector.shape_cast %16 : vector<2x2x8x32xf32> to vector<32x32xf32>
    %c0_8 = arith.constant 0 : index
    %c0_9 = arith.constant 0 : index
    %18 = vector.load %arg5[%c0_8, %c0_9] : memref<1x32xf32, #tpu.memory_space<vmem>>, vector<1x32xf32>
    %19 = vector.broadcast %18 : vector<1x32xf32> to vector<32x32xf32>
    %20 = arith.addf %17, %19 : vector<32x32xf32>
    %21 = arith.truncf %7 : vector<32x32xf32> to vector<32x32xbf16>
    %c0_10 = arith.constant 0 : index
    %c0_11 = arith.constant 0 : index
    %22 = vector.load %arg6[%c0_10, %c0_11] : memref<32x32xbf16, #tpu.memory_space<vmem>>, vector<32x32xbf16>
    %cst_12 = arith.constant dense<0.000000e+00> : vector<32x32xf32>
    %23 = tpu.matmul %21, %22, %cst_12 {dimension_numbers = #tpu.dot_dimension_numbers<[1], [0], [0], [1], [0, 0, 1, 1], [], []>} : vector<32x32xbf16>, vector<32x32xbf16>, vector<32x32xf32> -> vector<32x32xf32>
    %c0_13 = arith.constant 0 : index
    %c0_14 = arith.constant 0 : index
    %24 = vector.load %arg7[%c0_13, %c0_14] : memref<1x32xf32, #tpu.memory_space<vmem>>, vector<1x32xf32>
    %25 = vector.broadcast %24 : vector<1x32xf32> to vector<32x32xf32>
    %26 = arith.addf %23, %25 : vector<32x32xf32>
    %27 = arith.truncf %7 : vector<32x32xf32> to vector<32x32xbf16>
    %c0_15 = arith.constant 0 : index
    %c0_16 = arith.constant 0 : index
    %28 = vector.load %arg8[%c0_15, %c0_16] : memref<32x32xbf16, #tpu.memory_space<vmem>>, vector<32x32xbf16>
    %cst_17 = arith.constant dense<0.000000e+00> : vector<32x32xf32>
    %29 = tpu.matmul %27, %28, %cst_17 {dimension_numbers = #tpu.dot_dimension_numbers<[1], [0], [0], [1], [0, 0, 1, 1], [], []>} : vector<32x32xbf16>, vector<32x32xbf16>, vector<32x32xf32> -> vector<32x32xf32>
    %c0_18 = arith.constant 0 : index
    %c0_19 = arith.constant 0 : index
    %30 = vector.load %arg9[%c0_18, %c0_19] : memref<1x32xf32, #tpu.memory_space<vmem>>, vector<1x32xf32>
    %31 = vector.broadcast %30 : vector<1x32xf32> to vector<32x32xf32>
    %32 = arith.addf %29, %31 : vector<32x32xf32>
    %33 = vector.shape_cast %20 : vector<32x32xf32> to vector<4x8x4x8xf32>
    %34 = tpu.transpose %33, [0, 2, 1, 3] : vector<4x8x4x8xf32> -> vector<4x4x8x8xf32>
    %35 = vector.shape_cast %34 : vector<4x4x8x8xf32> to vector<16x8x8xf32>
    %36 = arith.truncf %35 : vector<16x8x8xf32> to vector<16x8x8xbf16>
    %37 = vector.shape_cast %26 : vector<32x32xf32> to vector<4x8x4x8xf32>
    %38 = tpu.transpose %37, [0, 2, 1, 3] : vector<4x8x4x8xf32> -> vector<4x4x8x8xf32>
    %39 = vector.shape_cast %38 : vector<4x4x8x8xf32> to vector<16x8x8xf32>
    %40 = arith.truncf %39 : vector<16x8x8xf32> to vector<16x8x8xbf16>
    %41 = vector.shape_cast %32 : vector<32x32xf32> to vector<4x8x4x8xf32>
    %42 = tpu.transpose %41, [0, 2, 1, 3] : vector<4x8x4x8xf32> -> vector<4x4x8x8xf32>
    %43 = vector.shape_cast %42 : vector<4x4x8x8xf32> to vector<16x8x8xf32>
    %44 = arith.truncf %43 : vector<16x8x8xf32> to vector<16x8x8xbf16>
    "tpu.trace_start"() <{level = 10 : i32, message = "bqd,bkd->bqk"}> : () -> ()
    %cst_20 = arith.constant dense<0.000000e+00> : vector<16x8x8xf32>
    %45 = tpu.matmul %36, %40, %cst_20 {dimension_numbers = #tpu.dot_dimension_numbers<[2], [2], [1], [1], [0, 0, 0, 1, 1, 1], [0], [0]>} : vector<16x8x8xbf16>, vector<16x8x8xbf16>, vector<16x8x8xf32> -> vector<16x8x8xf32>
    "tpu.trace_stop"() : () -> ()
    %cst_21 = arith.constant 0.353553385 : f32
    %46 = vector.broadcast %cst_21 : f32 to vector<16x8x8xf32>
    %47 = arith.mulf %45, %46 : vector<16x8x8xf32>
    %cst_22 = arith.constant dense<0xFF800000> : vector<16x8xf32>
    %48 = vector.multi_reduction <maximumf>, %47, %cst_22 [2] : vector<16x8x8xf32> to vector<16x8xf32>
    %49 = vector.shape_cast %48 : vector<16x8xf32> to vector<16x8x1xf32>
    %50 = vector.broadcast %49 : vector<16x8x1xf32> to vector<16x8x8xf32>
    %51 = arith.subf %47, %50 : vector<16x8x8xf32>
    %52 = math.exp %51 : vector<16x8x8xf32>
    %cst_23 = arith.constant dense<0.000000e+00> : vector<16x8xf32>
    %53 = vector.multi_reduction <add>, %52, %cst_23 [2] : vector<16x8x8xf32> to vector<16x8xf32>
    %54 = vector.shape_cast %53 : vector<16x8xf32> to vector<16x8x1xf32>
    %55 = tpu.reciprocal %54 {approx = true} : vector<16x8x1xf32> -> vector<16x8x1xf32>
    %56 = vector.broadcast %55 : vector<16x8x1xf32> to vector<16x8x8xf32>
    %57 = arith.mulf %52, %56 : vector<16x8x8xf32>
    %58 = arith.truncf %57 : vector<16x8x8xf32> to vector<16x8x8xbf16>
    "tpu.trace_start"() <{level = 10 : i32, message = "bqk,bkd->bqd"}> : () -> ()
    %cst_24 = arith.constant dense<0.000000e+00> : vector<16x8x8xf32>
    %59 = tpu.matmul %58, %44, %cst_24 {dimension_numbers = #tpu.dot_dimension_numbers<[2], [1], [1], [2], [0, 0, 0, 1, 1, 2], [0], [0]>} : vector<16x8x8xbf16>, vector<16x8x8xbf16>, vector<16x8x8xf32> -> vector<16x8x8xf32>
    "tpu.trace_stop"() : () -> ()
    %60 = vector.shape_cast %59 : vector<16x8x8xf32> to vector<4x4x8x8xf32>
    %61 = tpu.transpose %60, [0, 2, 1, 3] : vector<4x4x8x8xf32> -> vector<4x8x4x8xf32>
    %62 = vector.shape_cast %61 : vector<4x8x4x8xf32> to vector<32x32xf32>
    %63 = arith.truncf %62 : vector<32x32xf32> to vector<32x32xbf16>
    %c0_25 = arith.constant 0 : index
    %c0_26 = arith.constant 0 : index
    %64 = vector.load %arg10[%c0_25, %c0_26] : memref<32x32xbf16, #tpu.memory_space<vmem>>, vector<32x32xbf16>
    %cst_27 = arith.constant dense<0.000000e+00> : vector<32x32xf32>
    %65 = tpu.matmul %63, %64, %cst_27 {dimension_numbers = #tpu.dot_dimension_numbers<[1], [0], [0], [1], [0, 0, 1, 1], [], []>} : vector<32x32xbf16>, vector<32x32xbf16>, vector<32x32xf32> -> vector<32x32xf32>
    %c0_28 = arith.constant 0 : index
    %c0_29 = arith.constant 0 : index
    %66 = vector.load %arg11[%c0_28, %c0_29] : memref<1x32xf32, #tpu.memory_space<vmem>>, vector<1x32xf32>
    %67 = vector.broadcast %66 : vector<1x32xf32> to vector<32x32xf32>
    %68 = arith.addf %65, %67 : vector<32x32xf32>
    %69 = arith.addf %7, %68 : vector<32x32xf32>
    %c0_30 = arith.constant 0 : index
    %c0_31 = arith.constant 0 : index
    %70 = vector.load %arg16[%c0_30, %c0_31] : memref<1x32xf32, #tpu.memory_space<vmem>>, vector<1x32xf32>
    %c0_32 = arith.constant 0 : index
    %c0_33 = arith.constant 0 : index
    %71 = vector.load %arg17[%c0_32, %c0_33] : memref<1x32xf32, #tpu.memory_space<vmem>>, vector<1x32xf32>
    %cst_34 = arith.constant dense<0.000000e+00> : vector<32xf32>
    %72 = vector.multi_reduction <add>, %69, %cst_34 [1] : vector<32x32xf32> to vector<32xf32>
    %73 = vector.shape_cast %72 : vector<32xf32> to vector<32x1xf32>
    %cst_35 = arith.constant 3.200000e+01 : f32
    %74 = vector.broadcast %cst_35 : f32 to vector<32x1xf32>
    %75 = arith.divf %73, %74 : vector<32x1xf32>
    %76 = vector.broadcast %75 : vector<32x1xf32> to vector<32x32xf32>
    %77 = arith.subf %69, %76 : vector<32x32xf32>
    %78 = arith.mulf %77, %77 : vector<32x32xf32>
    %cst_36 = arith.constant dense<0.000000e+00> : vector<32xf32>
    %79 = vector.multi_reduction <add>, %78, %cst_36 [1] : vector<32x32xf32> to vector<32xf32>
    %80 = vector.shape_cast %79 : vector<32xf32> to vector<32x1xf32>
    %cst_37 = arith.constant 3.200000e+01 : f32
    %81 = vector.broadcast %cst_37 : f32 to vector<32x1xf32>
    %82 = arith.divf %80, %81 : vector<32x1xf32>
    %cst_38 = arith.constant 9.99999974E-6 : f32
    %83 = vector.broadcast %cst_38 : f32 to vector<32x1xf32>
    %84 = arith.addf %82, %83 : vector<32x1xf32>
    %85 = math.rsqrt %84 : vector<32x1xf32>
    %86 = vector.broadcast %85 : vector<32x1xf32> to vector<32x32xf32>
    %87 = arith.mulf %77, %86 : vector<32x32xf32>
    %88 = vector.broadcast %70 : vector<1x32xf32> to vector<32x32xf32>
    %89 = arith.mulf %87, %88 : vector<32x32xf32>
    %90 = vector.broadcast %71 : vector<1x32xf32> to vector<32x32xf32>
    %91 = arith.addf %89, %90 : vector<32x32xf32>
    %92 = arith.truncf %91 : vector<32x32xf32> to vector<32x32xbf16>
    %c0_39 = arith.constant 0 : index
    %c0_40 = arith.constant 0 : index
    %93 = vector.load %arg12[%c0_39, %c0_40] : memref<32x64xbf16, #tpu.memory_space<vmem>>, vector<32x64xbf16>
    %cst_41 = arith.constant dense<0.000000e+00> : vector<32x64xf32>
    %94 = tpu.matmul %92, %93, %cst_41 {dimension_numbers = #tpu.dot_dimension_numbers<[1], [0], [0], [1], [0, 0, 1, 1], [], []>} : vector<32x32xbf16>, vector<32x64xbf16>, vector<32x64xf32> -> vector<32x64xf32>
    %c0_42 = arith.constant 0 : index
    %c0_43 = arith.constant 0 : index
    %95 = vector.load %arg13[%c0_42, %c0_43] : memref<1x64xf32, #tpu.memory_space<vmem>>, vector<1x64xf32>
    %96 = vector.broadcast %95 : vector<1x64xf32> to vector<32x64xf32>
    %97 = arith.addf %94, %96 : vector<32x64xf32>
    %cst_44 = arith.constant 0.000000e+00 : f32
    %98 = vector.broadcast %cst_44 : f32 to vector<32x64xf32>
    %99 = arith.maximumf %97, %98 : vector<32x64xf32>
    %100 = arith.truncf %99 : vector<32x64xf32> to vector<32x64xbf16>
    %c0_45 = arith.constant 0 : index
    %c0_46 = arith.constant 0 : index
    %101 = vector.load %arg14[%c0_45, %c0_46] : memref<64x32xbf16, #tpu.memory_space<vmem>>, vector<64x32xbf16>
    %cst_47 = arith.constant dense<0.000000e+00> : vector<32x32xf32>
    %102 = tpu.matmul %100, %101, %cst_47 {dimension_numbers = #tpu.dot_dimension_numbers<[1], [0], [0], [1], [0, 0, 1, 1], [], []>} : vector<32x64xbf16>, vector<64x32xbf16>, vector<32x32xf32> -> vector<32x32xf32>
    %c0_48 = arith.constant 0 : index
    %c0_49 = arith.constant 0 : index
    %103 = vector.load %arg15[%c0_48, %c0_49] : memref<1x32xf32, #tpu.memory_space<vmem>>, vector<1x32xf32>
    %104 = vector.broadcast %103 : vector<1x32xf32> to vector<32x32xf32>
    %105 = arith.addf %102, %104 : vector<32x32xf32>
    %106 = arith.addf %91, %105 : vector<32x32xf32>
    %c0_50 = arith.constant 0 : index
    %c0_51 = arith.constant 0 : index
    %107 = vector.load %arg18[%c0_50, %c0_51] : memref<1x32xf32, #tpu.memory_space<vmem>>, vector<1x32xf32>
    %c0_52 = arith.constant 0 : index
    %c0_53 = arith.constant 0 : index
    %108 = vector.load %arg19[%c0_52, %c0_53] : memref<1x32xf32, #tpu.memory_space<vmem>>, vector<1x32xf32>
    %cst_54 = arith.constant dense<0.000000e+00> : vector<32xf32>
    %109 = vector.multi_reduction <add>, %106, %cst_54 [1] : vector<32x32xf32> to vector<32xf32>
    %110 = vector.shape_cast %109 : vector<32xf32> to vector<32x1xf32>
    %cst_55 = arith.constant 3.200000e+01 : f32
    %111 = vector.broadcast %cst_55 : f32 to vector<32x1xf32>
    %112 = arith.divf %110, %111 : vector<32x1xf32>
    %113 = vector.broadcast %112 : vector<32x1xf32> to vector<32x32xf32>
    %114 = arith.subf %106, %113 : vector<32x32xf32>
    %115 = arith.mulf %114, %114 : vector<32x32xf32>
    %cst_56 = arith.constant dense<0.000000e+00> : vector<32xf32>
    %116 = vector.multi_reduction <add>, %115, %cst_56 [1] : vector<32x32xf32> to vector<32xf32>
    %117 = vector.shape_cast %116 : vector<32xf32> to vector<32x1xf32>
    %cst_57 = arith.constant 3.200000e+01 : f32
    %118 = vector.broadcast %cst_57 : f32 to vector<32x1xf32>
    %119 = arith.divf %117, %118 : vector<32x1xf32>
    %cst_58 = arith.constant 9.99999974E-6 : f32
    %120 = vector.broadcast %cst_58 : f32 to vector<32x1xf32>
    %121 = arith.addf %119, %120 : vector<32x1xf32>
    %122 = math.rsqrt %121 : vector<32x1xf32>
    %123 = vector.broadcast %122 : vector<32x1xf32> to vector<32x32xf32>
    %124 = arith.mulf %114, %123 : vector<32x32xf32>
    %125 = vector.broadcast %107 : vector<1x32xf32> to vector<32x32xf32>
    %126 = arith.mulf %124, %125 : vector<32x32xf32>
    %127 = vector.broadcast %108 : vector<1x32xf32> to vector<32x32xf32>
    %128 = arith.addf %126, %127 : vector<32x32xf32>
    %129 = vector.shape_cast %128 : vector<32x32xf32> to vector<2x2x8x32xf32>
    %130 = tpu.transpose %129, [0, 2, 1, 3] : vector<2x2x8x32xf32> -> vector<2x8x2x32xf32>
    %131 = vector.shape_cast %130 : vector<2x8x2x32xf32> to vector<2x8x64xf32>
    %c0_59 = arith.constant 0 : index
    %c0_60 = arith.constant 0 : index
    %c0_61 = arith.constant 0 : index
    %132 = vector.load %arg20[%c0_59, %c0_60, %c0_61] : memref<2x8x64xf32, #tpu.memory_space<vmem>>, vector<2x8x64xf32>
    tpu.vector_store %arg20[%c0_59, %c0_60, %c0_61], %131 {strides = array<i32>} : memref<2x8x64xf32, #tpu.memory_space<vmem>>, vector<2x8x64xf32>,
    return
  }
  func.func @transform_0(%arg0: i32) -> (i32, i32, i32) {
    %c0_i32 = arith.constant 0 : i32
    %c0_i32_0 = arith.constant 0 : i32
    %c0_i32_1 = arith.constant 0 : i32
    return %arg0, %c0_i32, %c0_i32_0 : i32, i32, i32
  }
  func.func @transform_1(%arg0: i32) -> (i32, i32) {
    %c0_i32 = arith.constant 0 : i32
    %c0_i32_0 = arith.constant 0 : i32
    %c0_i32_1 = arith.constant 0 : i32
    return %c0_i32, %c0_i32_0 : i32, i32
  }
  func.func @transform_2(%arg0: i32) -> (i32, i32) {
    %c0_i32 = arith.constant 0 : i32
    %c0_i32_0 = arith.constant 0 : i32
    %c0_i32_1 = arith.constant 0 : i32
    return %c0_i32, %c0_i32_0 : i32, i32
  }
  func.func @transform_3(%arg0: i32) -> (i32, i32) {
    %c0_i32 = arith.constant 0 : i32
    %c0_i32_0 = arith.constant 0 : i32
    %c0_i32_1 = arith.constant 0 : i32
    return %c0_i32, %c0_i32_0 : i32, i32
  }
  func.func @transform_4(%arg0: i32) -> (i32, i32) {
    %c0_i32 = arith.constant 0 : i32
    %c0_i32_0 = arith.constant 0 : i32
    %c0_i32_1 = arith.constant 0 : i32
    return %c0_i32, %c0_i32_0 : i32, i32
  }
  func.func @transform_5(%arg0: i32) -> (i32, i32) {
    %c0_i32 = arith.constant 0 : i32
    %c0_i32_0 = arith.constant 0 : i32
    %c0_i32_1 = arith.constant 0 : i32
    return %c0_i32, %c0_i32_0 : i32, i32
  }
  func.func @transform_6(%arg0: i32) -> (i32, i32) {
    %c0_i32 = arith.constant 0 : i32
    %c0_i32_0 = arith.constant 0 : i32
    %c0_i32_1 = arith.constant 0 : i32
    return %c0_i32, %c0_i32_0 : i32, i32
  }
  func.func @transform_7(%arg0: i32) -> (i32, i32) {
    %c0_i32 = arith.constant 0 : i32
    %c0_i32_0 = arith.constant 0 : i32
    %c0_i32_1 = arith.constant 0 : i32
    return %c0_i32, %c0_i32_0 : i32, i32
  }
  func.func @transform_8(%arg0: i32) -> (i32, i32) {
    %c0_i32 = arith.constant 0 : i32
    %c0_i32_0 = arith.constant 0 : i32
    %c0_i32_1 = arith.constant 0 : i32
    return %c0_i32, %c0_i32_0 : i32, i32
  }
  func.func @transform_9(%arg0: i32) -> (i32, i32) {
    %c0_i32 = arith.constant 0 : i32
    %c0_i32_0 = arith.constant 0 : i32
    %c0_i32_1 = arith.constant 0 : i32
    return %c0_i32, %c0_i32_0 : i32, i32
  }
  func.func @transform_10(%arg0: i32) -> (i32, i32) {
    %c0_i32 = arith.constant 0 : i32
    %c0_i32_0 = arith.constant 0 : i32
    %c0_i32_1 = arith.constant 0 : i32
    return %c0_i32, %c0_i32_0 : i32, i32
  }
  func.func @transform_11(%arg0: i32) -> (i32, i32) {
    %c0_i32 = arith.constant 0 : i32
    %c0_i32_0 = arith.constant 0 : i32
    %c0_i32_1 = arith.constant 0 : i32
    return %c0_i32, %c0_i32_0 : i32, i32
  }
  func.func @transform_12(%arg0: i32) -> (i32, i32) {
    %c0_i32 = arith.constant 0 : i32
    %c0_i32_0 = arith.constant 0 : i32
    %c0_i32_1 = arith.constant 0 : i32
    return %c0_i32, %c0_i32_0 : i32, i32
  }
  func.func @transform_13(%arg0: i32) -> (i32, i32) {
    %c0_i32 = arith.constant 0 : i32
    %c0_i32_0 = arith.constant 0 : i32
    %c0_i32_1 = arith.constant 0 : i32
    return %c0_i32, %c0_i32_0 : i32, i32
  }
  func.func @transform_14(%arg0: i32) -> (i32, i32) {
    %c0_i32 = arith.constant 0 : i32
    %c0_i32_0 = arith.constant 0 : i32
    %c0_i32_1 = arith.constant 0 : i32
    return %c0_i32, %c0_i32_0 : i32, i32
  }
  func.func @transform_15(%arg0: i32) -> (i32, i32) {
    %c0_i32 = arith.constant 0 : i32
    %c0_i32_0 = arith.constant 0 : i32
    %c0_i32_1 = arith.constant 0 : i32
    return %c0_i32, %c0_i32_0 : i32, i32
  }
  func.func @transform_16(%arg0: i32) -> (i32, i32) {
    %c0_i32 = arith.constant 0 : i32
    %c0_i32_0 = arith.constant 0 : i32
    %c0_i32_1 = arith.constant 0 : i32
    return %c0_i32, %c0_i32_0 : i32, i32
  }
  func.func @transform_17(%arg0: i32) -> (i32, i32) {
    %c0_i32 = arith.constant 0 : i32
    %c0_i32_0 = arith.constant 0 : i32
    %c0_i32_1 = arith.constant 0 : i32
    return %c0_i32, %c0_i32_0 : i32, i32
  }
  func.func @transform_18(%arg0: i32) -> (i32, i32) {
    %c0_i32 = arith.constant 0 : i32
    %c0_i32_0 = arith.constant 0 : i32
    %c0_i32_1 = arith.constant 0 : i32
    return %c0_i32, %c0_i32_0 : i32, i32
  }
  func.func @transform_19(%arg0: i32) -> (i32, i32, i32) {
    %c0_i32 = arith.constant 0 : i32
    %c0_i32_0 = arith.constant 0 : i32
    %c0_i32_1 = arith.constant 0 : i32
    return %arg0, %c0_i32, %c0_i32_0 : i32, i32, i32
  }
}

module attributes {stable_mosaic.version = 11 : i64} {
  func.func @_encoder_layer_kernel(%arg0: i32, %arg1: memref<2x8x64xf32, #tpu.memory_space<vmem>>, %arg2: memref<2x32xf32, #tpu.memory_space<vmem>>, %arg3: memref<2x32xf32, #tpu.memory_space<vmem>>, %arg4: memref<32x32xbf16, #tpu.memory_space<vmem>>, %arg5: memref<1x32xf32, #tpu.memory_space<vmem>>, %arg6: memref<32x32xbf16, #tpu.memory_space<vmem>>, %arg7: memref<1x32xf32, #tpu.memory_space<vmem>>, %arg8: memref<32x32xbf16, #tpu.memory_space<vmem>>, %arg9: memref<1x32xf32, #tpu.memory_space<vmem>>, %arg10: memref<32x32xbf16, #tpu.memory_space<vmem>>, %arg11: memref<1x32xf32, #tpu.memory_space<vmem>>, %arg12: memref<32x64xbf16, #tpu.memory_space<vmem>>, %arg13: memref<1x64xf32, #tpu.memory_space<vmem>>, %arg14: memref<64x32xbf16, #tpu.memory_space<vmem>>, %arg15: memref<1x32xf32, #tpu.memory_space<vmem>>, %arg16: memref<1x32xf32, #tpu.memory_space<vmem>>, %arg17: memref<1x32xf32, #tpu.memory_space<vmem>>, %arg18: memref<1x32xf32, #tpu.memory_space<vmem>>, %arg19: memref<1x32xf32, #tpu.memory_space<vmem>>, %arg20: memref<2x8x64xf32, #tpu.memory_space<vmem>>) attributes {dimension_semantics = [#tpu.dimension_semantics<parallel>], iteration_bounds = array<i64: 1>, scalar_prefetch = 0 : i64, scratch_operands = 0 : i64, tpu.core_type = #tpu.core_type<tc>, window_params = [{transform_indices = @transform_0, window_bounds = array<i64: 2, 8, 64>}, {pipeline_mode = #tpu.pipeline_mode<synchronous>, transform_indices = @transform_1, window_bounds = array<i64: 2, 32>}, {pipeline_mode = #tpu.pipeline_mode<synchronous>, transform_indices = @transform_2, window_bounds = array<i64: 2, 32>}, {pipeline_mode = #tpu.pipeline_mode<synchronous>, transform_indices = @transform_3, window_bounds = array<i64: 32, 32>}, {pipeline_mode = #tpu.pipeline_mode<synchronous>, transform_indices = @transform_4, window_bounds = array<i64: 1, 32>}, {pipeline_mode = #tpu.pipeline_mode<synchronous>, transform_indices = @transform_5, window_bounds = array<i64: 32, 32>}, {pipeline_mode = #tpu.pipeline_mode<synchronous>, transform_indices = @transform_6, window_bounds = array<i64: 1, 32>}, {pipeline_mode = #tpu.pipeline_mode<synchronous>, transform_indices = @transform_7, window_bounds = array<i64: 32, 32>}, {pipeline_mode = #tpu.pipeline_mode<synchronous>, transform_indices = @transform_8, window_bounds = array<i64: 1, 32>}, {pipeline_mode = #tpu.pipeline_mode<synchronous>, transform_indices = @transform_9, window_bounds = array<i64: 32, 32>}, {pipeline_mode = #tpu.pipeline_mode<synchronous>, transform_indices = @transform_10, window_bounds = array<i64: 1, 32>}, {pipeline_mode = #tpu.pipeline_mode<synchronous>, transform_indices = @transform_11, window_bounds = array<i64: 32, 64>}, {pipeline_mode = #tpu.pipeline_mode<synchronous>, transform_indices = @transform_12, window_bounds = array<i64: 1, 64>}, {pipeline_mode = #tpu.pipeline_mode<synchronous>, transform_indices = @transform_13, window_bounds = array<i64: 64, 32>}, {pipeline_mode = #tpu.pipeline_mode<synchronous>, transform_indices = @transform_14, window_bounds = array<i64: 1, 32>}, {pipeline_mode = #tpu.pipeline_mode<synchronous>, transform_indices = @transform_15, window_bounds = array<i64: 1, 32>}, {pipeline_mode = #tpu.pipeline_mode<synchronous>, transform_indices = @transform_16, window_bounds = array<i64: 1, 32>}, {pipeline_mode = #tpu.pipeline_mode<synchronous>, transform_indices = @transform_17, window_bounds = array<i64: 1, 32>}, {pipeline_mode = #tpu.pipeline_mode<synchronous>, transform_indices = @transform_18, window_bounds = array<i64: 1, 32>}, {transform_indices = @transform_19, window_bounds = array<i64: 2, 8, 64>}]} {
    %c0 = arith.constant 0 : index
    %c0_0 = arith.constant 0 : index
    %c0_1 = arith.constant 0 : index
    %0 = vector.load %arg1[%c0, %c0_0, %c0_1] : memref<2x8x64xf32, #tpu.memory_space<vmem>>, vector<2x8x64xf32>
    %1 = vector.shape_cast %0 : vector<2x8x64xf32> to vector<2x8x2x32xf32>
    %2 = tpu.transpose %1, [0, 2, 1, 3] : vector<2x8x2x32xf32> -> vector<2x2x8x32xf32>
    %c0_2 = arith.constant 0 : index
    %c0_3 = arith.constant 0 : index
    %3 = vector.load %arg2[%c0_2, %c0_3] : memref<2x32xf32, #tpu.memory_space<vmem>>, vector<2x32xf32>
    %4 = vector.shape_cast %3 : vector<2x32xf32> to vector<1x2x1x32xf32>
    %c0_4 = arith.constant 0 : index
    %c0_5 = arith.constant 0 : index
    %5 = vector.load %arg3[%c0_4, %c0_5] : memref<2x32xf32, #tpu.memory_space<vmem>>, vector<2x32xf32>
    %6 = vector.shape_cast %5 : vector<2x32xf32> to vector<1x2x1x32xf32>
    %7 = vector.shape_cast %2 : vector<2x2x8x32xf32> to vector<32x32xf32>
    %8 = vector.broadcast %4 : vector<1x2x1x32xf32> to vector<2x2x8x32xf32>
    %9 = arith.mulf %2, %8 : vector<2x2x8x32xf32>
    %10 = vector.shape_cast %9 : vector<2x2x8x32xf32> to vector<32x32xf32>
    %11 = arith.truncf %10 : vector<32x32xf32> to vector<32x32xbf16>
    %c0_6 = arith.constant 0 : index
    %c0_7 = arith.constant 0 : index
    %12 = vector.load %arg4[%c0_6, %c0_7] : memref<32x32xbf16, #tpu.memory_space<vmem>>, vector<32x32xbf16>
    %cst = arith.constant dense<0.000000e+00> : vector<32x32xf32>
    %13 = tpu.matmul %11, %12, %cst {dimension_numbers = #tpu.dot_dimension_numbers<[1], [0], [0], [1], [0, 0, 1, 1], [], []>} : vector<32x32xbf16>, vector<32x32xbf16>, vector<32x32xf32> -> vector<32x32xf32>
    %14 = vector.shape_cast %13 : vector<32x32xf32> to vector<2x2x8x32xf32>
    %15 = vector.broadcast %6 : vector<1x2x1x32xf32> to vector<2x2x8x32xf32>
    %16 = arith.mulf %14, %15 : vector<2x2x8x32xf32>
    %17 = vector.shape_cast %16 : vector<2x2x8x32xf32> to vector<32x32xf32>
    %c0_8 = arith.constant 0 : index
    %c0_9 = arith.constant 0 : index
    %18 = vector.load %arg5[%c0_8, %c0_9] : memref<1x32xf32, #tpu.memory_space<vmem>>, vector<1x32xf32>
    %19 = vector.broadcast %18 : vector<1x32xf32> to vector<32x32xf32>
    %20 = arith.addf %17, %19 : vector<32x32xf32>
    %21 = arith.truncf %7 : vector<32x32xf32> to vector<32x32xbf16>
    %c0_10 = arith.constant 0 : index
    %c0_11 = arith.constant 0 : index
    %22 = vector.load %arg6[%c0_10, %c0_11] : memref<32x32xbf16, #tpu.memory_space<vmem>>, vector<32x32xbf16>
    %cst_12 = arith.constant dense<0.000000e+00> : vector<32x32xf32>
    %23 = tpu.matmul %21, %22, %cst_12 {dimension_numbers = #tpu.dot_dimension_numbers<[1], [0], [0], [1], [0, 0, 1, 1], [], []>} : vector<32x32xbf16>, vector<32x32xbf16>, vector<32x32xf32> -> vector<32x32xf32>
    %c0_13 = arith.constant 0 : index
    %c0_14 = arith.constant 0 : index
    %24 = vector.load %arg7[%c0_13, %c0_14] : memref<1x32xf32, #tpu.memory_space<vmem>>, vector<1x32xf32>
    %25 = vector.broadcast %24 : vector<1x32xf32> to vector<32x32xf32>
    %26 = arith.addf %23, %25 : vector<32x32xf32>
    %27 = arith.truncf %7 : vector<32x32xf32> to vector<32x32xbf16>
    %c0_15 = arith.constant 0 : index
    %c0_16 = arith.constant 0 : index
    %28 = vector.load %arg8[%c0_15, %c0_16] : memref<32x32xbf16, #tpu.memory_space<vmem>>, vector<32x32xbf16>
    %cst_17 = arith.constant dense<0.000000e+00> : vector<32x32xf32>
    %29 = tpu.matmul %27, %28, %cst_17 {dimension_numbers = #tpu.dot_dimension_numbers<[1], [0], [0], [1], [0, 0, 1, 1], [], []>} : vector<32x32xbf16>, vector<32x32xbf16>, vector<32x32xf32> -> vector<32x32xf32>
    %c0_18 = arith.constant 0 : index
    %c0_19 = arith.constant 0 : index
    %30 = vector.load %arg9[%c0_18, %c0_19] : memref<1x32xf32, #tpu.memory_space<vmem>>, vector<1x32xf32>
    %31 = vector.broadcast %30 : vector<1x32xf32> to vector<32x32xf32>
    %32 = arith.addf %29, %31 : vector<32x32xf32>
    %33 = vector.shape_cast %20 : vector<32x32xf32> to vector<4x8x4x8xf32>
    %34 = tpu.transpose %33, [0, 2, 1, 3] : vector<4x8x4x8xf32> -> vector<4x4x8x8xf32>
    %35 = vector.shape_cast %34 : vector<4x4x8x8xf32> to vector<16x8x8xf32>
    %36 = arith.truncf %35 : vector<16x8x8xf32> to vector<16x8x8xbf16>
    %37 = vector.shape_cast %26 : vector<32x32xf32> to vector<4x8x4x8xf32>
    %38 = tpu.transpose %37, [0, 2, 1, 3] : vector<4x8x4x8xf32> -> vector<4x4x8x8xf32>
    %39 = vector.shape_cast %38 : vector<4x4x8x8xf32> to vector<16x8x8xf32>
    %40 = arith.truncf %39 : vector<16x8x8xf32> to vector<16x8x8xbf16>
    %41 = vector.shape_cast %32 : vector<32x32xf32> to vector<4x8x4x8xf32>
    %42 = tpu.transpose %41, [0, 2, 1, 3] : vector<4x8x4x8xf32> -> vector<4x4x8x8xf32>
    %43 = vector.shape_cast %42 : vector<4x4x8x8xf32> to vector<16x8x8xf32>
    %44 = arith.truncf %43 : vector<16x8x8xf32> to vector<16x8x8xbf16>
    "tpu.trace_start"() <{level = 10 : i32, message = "bqd,bkd->bqk"}> : () -> ()
    %cst_20 = arith.constant dense<0.000000e+00> : vector<16x8x8xf32>
    %45 = tpu.matmul %36, %40, %cst_20 {dimension_numbers = #tpu.dot_dimension_numbers<[2], [2], [1], [1], [0, 0, 0, 1, 1, 1], [0], [0]>} : vector<16x8x8xbf16>, vector<16x8x8xbf16>, vector<16x8x8xf32> -> vector<16x8x8xf32>
    "tpu.trace_stop"() : () -> ()
    %cst_21 = arith.constant 0.353553385 : f32
    %46 = vector.broadcast %cst_21 : f32 to vector<16x8x8xf32>
    %47 = arith.mulf %45, %46 : vector<16x8x8xf32>
    %cst_22 = arith.constant dense<0xFF800000> : vector<16x8xf32>
    %48 = vector.multi_reduction <maximumf>, %47, %cst_22 [2] : vector<16x8x8xf32> to vector<16x8xf32>
    %49 = vector.shape_cast %48 : vector<16x8xf32> to vector<16x8x1xf32>
    %50 = vector.broadcast %49 : vector<16x8x1xf32> to vector<16x8x8xf32>
    %51 = arith.subf %47, %50 : vector<16x8x8xf32>
    %52 = math.exp %51 : vector<16x8x8xf32>
    %cst_23 = arith.constant dense<0.000000e+00> : vector<16x8xf32>
    %53 = vector.multi_reduction <add>, %52, %cst_23 [2] : vector<16x8x8xf32> to vector<16x8xf32>
    %54 = vector.shape_cast %53 : vector<16x8xf32> to vector<16x8x1xf32>
    %55 = tpu.reciprocal %54 {approx = true} : vector<16x8x1xf32> -> vector<16x8x1xf32>
    %56 = vector.broadcast %55 : vector<16x8x1xf32> to vector<16x8x8xf32>
    %57 = arith.mulf %52, %56 : vector<16x8x8xf32>
    %58 = arith.truncf %57 : vector<16x8x8xf32> to vector<16x8x8xbf16>
    "tpu.trace_start"() <{level = 10 : i32, message = "bqk,bkd->bqd"}> : () -> ()
    %cst_24 = arith.constant dense<0.000000e+00> : vector<16x8x8xf32>
    %59 = tpu.matmul %58, %44, %cst_24 {dimension_numbers = #tpu.dot_dimension_numbers<[2], [1], [1], [2], [0, 0, 0, 1, 1, 2], [0], [0]>} : vector<16x8x8xbf16>, vector<16x8x8xbf16>, vector<16x8x8xf32> -> vector<16x8x8xf32>
    "tpu.trace_stop"() : () -> ()
    %60 = vector.shape_cast %59 : vector<16x8x8xf32> to vector<4x4x8x8xf32>
    %61 = tpu.transpose %60, [0, 2, 1, 3] : vector<4x4x8x8xf32> -> vector<4x8x4x8xf32>
    %62 = vector.shape_cast %61 : vector<4x8x4x8xf32> to vector<32x32xf32>
    %63 = arith.truncf %62 : vector<32x32xf32> to vector<32x32xbf16>
    %c0_25 = arith.constant 0 : index
    %c0_26 = arith.constant 0 : index
    %64 = vector.load %arg10[%c0_25, %c0_26] : memref<32x32xbf16, #tpu.memory_space<vmem>>, vector<32x32xbf16>
    %cst_27 = arith.constant dense<0.000000e+00> : vector<32x32xf32>
    %65 = tpu.matmul %63, %64, %cst_27 {dimension_numbers = #tpu.dot_dimension_numbers<[1], [0], [0], [1], [0, 0, 1, 1], [], []>} : vector<32x32xbf16>, vector<32x32xbf16>, vector<32x32xf32> -> vector<32x32xf32>
    %c0_28 = arith.constant 0 : index
    %c0_29 = arith.constant 0 : index
    %66 = vector.load %arg11[%c0_28, %c0_29] : memref<1x32xf32, #tpu.memory_space<vmem>>, vector<1x32xf32>
    %67 = vector.broadcast %66 : vector<1x32xf32> to vector<32x32xf32>
    %68 = arith.addf %65, %67 : vector<32x32xf32>
    %69 = arith.addf %7, %68 : vector<32x32xf32>
    %c0_30 = arith.constant 0 : index
    %c0_31 = arith.constant 0 : index
    %70 = vector.load %arg16[%c0_30, %c0_31] : memref<1x32xf32, #tpu.memory_space<vmem>>, vector<1x32xf32>
    %c0_32 = arith.constant 0 : index
    %c0_33 = arith.constant 0 : index
    %71 = vector.load %arg17[%c0_32, %c0_33] : memref<1x32xf32, #tpu.memory_space<vmem>>, vector<1x32xf32>
    %cst_34 = arith.constant dense<0.000000e+00> : vector<32xf32>
    %72 = vector.multi_reduction <add>, %69, %cst_34 [1] : vector<32x32xf32> to vector<32xf32>
    %73 = vector.shape_cast %72 : vector<32xf32> to vector<32x1xf32>
    %cst_35 = arith.constant 3.200000e+01 : f32
    %74 = vector.broadcast %cst_35 : f32 to vector<32x1xf32>
    %75 = arith.divf %73, %74 : vector<32x1xf32>
    %76 = vector.broadcast %75 : vector<32x1xf32> to vector<32x32xf32>
    %77 = arith.subf %69, %76 : vector<32x32xf32>
    %78 = arith.mulf %77, %77 : vector<32x32xf32>
    %cst_36 = arith.constant dense<0.000000e+00> : vector<32xf32>
    %79 = vector.multi_reduction <add>, %78, %cst_36 [1] : vector<32x32xf32> to vector<32xf32>
    %80 = vector.shape_cast %79 : vector<32xf32> to vector<32x1xf32>
    %cst_37 = arith.constant 3.200000e+01 : f32
    %81 = vector.broadcast %cst_37 : f32 to vector<32x1xf32>
    %82 = arith.divf %80, %81 : vector<32x1xf32>
    %cst_38 = arith.constant 9.99999974E-6 : f32
    %83 = vector.broadcast %cst_38 : f32 to vector<32x1xf32>
    %84 = arith.addf %82, %83 : vector<32x1xf32>
    %85 = math.rsqrt %84 : vector<32x1xf32>
    %86 = vector.broadcast %85 : vector<32x1xf32> to vector<32x32xf32>
    %87 = arith.mulf %77, %86 : vector<32x32xf32>
    %88 = vector.broadcast %70 : vector<1x32xf32> to vector<32x32xf32>
    %89 = arith.mulf %87, %88 : vector<32x32xf32>
    %90 = vector.broadcast %71 : vector<1x32xf32> to vector<32x32xf32>
    %91 = arith.addf %89, %90 : vector<32x32xf32>
    %92 = arith.truncf %91 : vector<32x32xf32> to vector<32x32xbf16>
    %c0_39 = arith.constant 0 : index
    %c0_40 = arith.constant 0 : index
    %93 = vector.load %arg12[%c0_39, %c0_40] : memref<32x64xbf16, #tpu.memory_space<vmem>>, vector<32x64xbf16>
    %cst_41 = arith.constant dense<0.000000e+00> : vector<32x64xf32>
    %94 = tpu.matmul %92, %93, %cst_41 {dimension_numbers = #tpu.dot_dimension_numbers<[1], [0], [0], [1], [0, 0, 1, 1], [], []>} : vector<32x32xbf16>, vector<32x64xbf16>, vector<32x64xf32> -> vector<32x64xf32>
    %c0_42 = arith.constant 0 : index
    %c0_43 = arith.constant 0 : index
    %95 = vector.load %arg13[%c0_42, %c0_43] : memref<1x64xf32, #tpu.memory_space<vmem>>, vector<1x64xf32>
    %96 = vector.broadcast %95 : vector<1x64xf32> to vector<32x64xf32>
    %97 = arith.addf %94, %96 : vector<32x64xf32>
    %cst_44 = arith.constant 0.000000e+00 : f32
    %98 = vector.broadcast %cst_44 : f32 to vector<32x64xf32>
    %99 = arith.maximumf %97, %98 : vector<32x64xf32>
    %100 = arith.truncf %99 : vector<32x64xf32> to vector<32x64xbf16>
    %c0_45 = arith.constant 0 : index
    %c0_46 = arith.constant 0 : index
    %101 = vector.load %arg14[%c0_45, %c0_46] : memref<64x32xbf16, #tpu.memory_space<vmem>>, vector<64x32xbf16>
    %cst_47 = arith.constant dense<0.000000e+00> : vector<32x32xf32>
    %102 = tpu.matmul %100, %101, %cst_47 {dimension_numbers = #tpu.dot_dimension_numbers<[1], [0], [0], [1], [0, 0, 1, 1], [], []>} : vector<32x64xbf16>, vector<64x32xbf16>, vector<32x32xf32> -> vector<32x32xf32>
    %c0_48 = arith.constant 0 : index
    %c0_49 = arith.constant 0 : index
    %103 = vector.load %arg15[%c0_48, %c0_49] : memref<1x32xf32, #tpu.memory_space<vmem>>, vector<1x32xf32>
    %104 = vector.broadcast %103 : vector<1x32xf32> to vector<32x32xf32>
    %105 = arith.addf %102, %104 : vector<32x32xf32>
    %106 = arith.addf %91, %105 : vector<32x32xf32>
    %c0_50 = arith.constant 0 : index
    %c0_51 = arith.constant 0 : index
    %107 = vector.load %arg18[%c0_50, %c0_51] : memref<1x32xf32, #tpu.memory_space<vmem>>, vector<1x32xf32>
    %c0_52 = arith.constant 0 : index
    %c0_53 = arith.constant 0 : index
    %108 = vector.load %arg19[%c0_52, %c0_53] : memref<1x32xf32, #tpu.memory_space<vmem>>, vector<1x32xf32>
    %cst_54 = arith.constant dense<0.000000e+00> : vector<32xf32>
    %109 = vector.multi_reduction <add>, %106, %cst_54 [1] : vector<32x32xf32> to vector<32xf32>
    %110 = vector.shape_cast %109 : vector<32xf32> to vector<32x1xf32>
    %cst_55 = arith.constant 3.200000e+01 : f32
    %111 = vector.broadcast %cst_55 : f32 to vector<32x1xf32>
    %112 = arith.divf %110, %111 : vector<32x1xf32>
    %113 = vector.broadcast %112 : vector<32x1xf32> to vector<32x32xf32>
    %114 = arith.subf %106, %113 : vector<32x32xf32>
    %115 = arith.mulf %114, %114 : vector<32x32xf32>
    %cst_56 = arith.constant dense<0.000000e+00> : vector<32xf32>
    %116 = vector.multi_reduction <add>, %115, %cst_56 [1] : vector<32x32xf32> to vector<32xf32>
    %117 = vector.shape_cast %116 : vector<32xf32> to vector<32x1xf32>
    %cst_57 = arith.constant 3.200000e+01 : f32
    %118 = vector.broadcast %cst_57 : f32 to vector<32x1xf32>
    %119 = arith.divf %117, %118 : vector<32x1xf32>
    %cst_58 = arith.constant 9.99999974E-6 : f32
    %120 = vector.broadcast %cst_58 : f32 to vector<32x1xf32>
    %121 = arith.addf %119, %120 : vector<32x1xf32>
    %122 = math.rsqrt %121 : vector<32x1xf32>
    %123 = vector.broadcast %122 : vector<32x1xf32> to vector<32x32xf32>
    %124 = arith.mulf %114, %123 : vector<32x32xf32>
    %125 = vector.broadcast %107 : vector<1x32xf32> to vector<32x32xf32>
    %126 = arith.mulf %124, %125 : vector<32x32xf32>
    %127 = vector.broadcast %108 : vector<1x32xf32> to vector<32x32xf32>
    %128 = arith.addf %126, %127 : vector<32x32xf32>
    %129 = vector.shape_cast %128 : vector<32x32xf32> to vector<2x2x8x32xf32>
    %130 = tpu.transpose %129, [0, 2, 1, 3] : vector<2x2x8x32xf32> -> vector<2x8x2x32xf32>
    %131 = vector.shape_cast %130 : vector<2x8x2x32xf32> to vector<2x8x64xf32>
    %c0_59 = arith.constant 0 : index
    %c0_60 = arith.constant 0 : index
    %c0_61 = arith.constant 0 : index
    %132 = vector.load %arg20[%c0_59, %c0_60, %c0_61] : memref<2x8x64xf32, #tpu.memory_space<vmem>>, vector<2x8x64xf32>
    tpu.vector_store %arg20[%c0_59, %c0_60, %c0_61], %131 {strides = array<i32>} : memref<2x8x64xf32, #tpu.memory_space<vmem>>, vector<2x8x64xf32>,
    return
  }
  func.func @transform_0(%arg0: i32) -> (i32, i32, i32) {
    %c0_i32 = arith.constant 0 : i32
    %c0_i32_0 = arith.constant 0 : i32
    %c0_i32_1 = arith.constant 0 : i32
    return %arg0, %c0_i32, %c0_i32_0 : i32, i32, i32
  }
  func.func @transform_1(%arg0: i32) -> (i32, i32) {
    %c0_i32 = arith.constant 0 : i32
    %c0_i32_0 = arith.constant 0 : i32
    %c0_i32_1 = arith.constant 0 : i32
    return %c0_i32, %c0_i32_0 : i32, i32
  }
  func.func @transform_2(%arg0: i32) -> (i32, i32) {
    %c0_i32 = arith.constant 0 : i32
    %c0_i32_0 = arith.constant 0 : i32
    %c0_i32_1 = arith.constant 0 : i32
    return %c0_i32, %c0_i32_0 : i32, i32
  }
  func.func @transform_3(%arg0: i32) -> (i32, i32) {
    %c0_i32 = arith.constant 0 : i32
    %c0_i32_0 = arith.constant 0 : i32
    %c0_i32_1 = arith.constant 0 : i32
    return %c0_i32, %c0_i32_0 : i32, i32
  }
  func.func @transform_4(%arg0: i32) -> (i32, i32) {
    %c0_i32 = arith.constant 0 : i32
    %c0_i32_0 = arith.constant 0 : i32
    %c0_i32_1 = arith.constant 0 : i32
    return %c0_i32, %c0_i32_0 : i32, i32
  }
  func.func @transform_5(%arg0: i32) -> (i32, i32) {
    %c0_i32 = arith.constant 0 : i32
    %c0_i32_0 = arith.constant 0 : i32
    %c0_i32_1 = arith.constant 0 : i32
    return %c0_i32, %c0_i32_0 : i32, i32
  }
  func.func @transform_6(%arg0: i32) -> (i32, i32) {
    %c0_i32 = arith.constant 0 : i32
    %c0_i32_0 = arith.constant 0 : i32
    %c0_i32_1 = arith.constant 0 : i32
    return %c0_i32, %c0_i32_0 : i32, i32
  }
  func.func @transform_7(%arg0: i32) -> (i32, i32) {
    %c0_i32 = arith.constant 0 : i32
    %c0_i32_0 = arith.constant 0 : i32
    %c0_i32_1 = arith.constant 0 : i32
    return %c0_i32, %c0_i32_0 : i32, i32
  }
  func.func @transform_8(%arg0: i32) -> (i32, i32) {
    %c0_i32 = arith.constant 0 : i32
    %c0_i32_0 = arith.constant 0 : i32
    %c0_i32_1 = arith.constant 0 : i32
    return %c0_i32, %c0_i32_0 : i32, i32
  }
  func.func @transform_9(%arg0: i32) -> (i32, i32) {
    %c0_i32 = arith.constant 0 : i32
    %c0_i32_0 = arith.constant 0 : i32
    %c0_i32_1 = arith.constant 0 : i32
    return %c0_i32, %c0_i32_0 : i32, i32
  }
  func.func @transform_10(%arg0: i32) -> (i32, i32) {
    %c0_i32 = arith.constant 0 : i32
    %c0_i32_0 = arith.constant 0 : i32
    %c0_i32_1 = arith.constant 0 : i32
    return %c0_i32, %c0_i32_0 : i32, i32
  }
  func.func @transform_11(%arg0: i32) -> (i32, i32) {
    %c0_i32 = arith.constant 0 : i32
    %c0_i32_0 = arith.constant 0 : i32
    %c0_i32_1 = arith.constant 0 : i32
    return %c0_i32, %c0_i32_0 : i32, i32
  }
  func.func @transform_12(%arg0: i32) -> (i32, i32) {
    %c0_i32 = arith.constant 0 : i32
    %c0_i32_0 = arith.constant 0 : i32
    %c0_i32_1 = arith.constant 0 : i32
    return %c0_i32, %c0_i32_0 : i32, i32
  }
  func.func @transform_13(%arg0: i32) -> (i32, i32) {
    %c0_i32 = arith.constant 0 : i32
    %c0_i32_0 = arith.constant 0 : i32
    %c0_i32_1 = arith.constant 0 : i32
    return %c0_i32, %c0_i32_0 : i32, i32
  }
  func.func @transform_14(%arg0: i32) -> (i32, i32) {
    %c0_i32 = arith.constant 0 : i32
    %c0_i32_0 = arith.constant 0 : i32
    %c0_i32_1 = arith.constant 0 : i32
    return %c0_i32, %c0_i32_0 : i32, i32
  }
  func.func @transform_15(%arg0: i32) -> (i32, i32) {
    %c0_i32 = arith.constant 0 : i32
    %c0_i32_0 = arith.constant 0 : i32
    %c0_i32_1 = arith.constant 0 : i32
    return %c0_i32, %c0_i32_0 : i32, i32
  }
  func.func @transform_16(%arg0: i32) -> (i32, i32) {
    %c0_i32 = arith.constant 0 : i32
    %c0_i32_0 = arith.constant 0 : i32
    %c0_i32_1 = arith.constant 0 : i32
    return %c0_i32, %c0_i32_0 : i32, i32
  }
  func.func @transform_17(%arg0: i32) -> (i32, i32) {
    %c0_i32 = arith.constant 0 : i32
    %c0_i32_0 = arith.constant 0 : i32
    %c0_i32_1 = arith.constant 0 : i32
    return %c0_i32, %c0_i32_0 : i32, i32
  }
  func.func @transform_18(%arg0: i32) -> (i32, i32) {
    %c0_i32 = arith.constant 0 : i32
    %c0_i32_0 = arith.constant 0 : i32
    %c0_i32_1 = arith.constant 0 : i32
    return %c0_i32, %c0_i32_0 : i32, i32
  }
  func.func @transform_19(%arg0: i32) -> (i32, i32, i32) {
    %c0_i32 = arith.constant 0 : i32
    %c0_i32_0 = arith.constant 0 : i32
    %c0_i32_1 = arith.constant 0 : i32
    return %arg0, %c0_i32, %c0_i32_0 : i32, i32, i32
  }
}

</mosaic_0001>

<bundles_post_ra>
// kernel: tpu_custom_call.1
= control target key start
LH: loop header
LB: loop body
LE: loop exit
PB: predicated region body
PF: predicated region fallthrough
CT: control target
= control target key end

     0   :  { %s6250_s0 = inlined_call_operand.vmem [shape: f32[2,8,64], index: 0, kind: input, shape index: {}]   ;;  %s6251_s1 = inlined_call_operand.hbm [shape: f32[2,32], index: 1, kind: input, shape index: {}]   ;;  %s6252_s2 = inlined_call_operand.hbm [shape: f32[2,32], index: 2, kind: input, shape index: {}]   ;;  %s6253_s3 = inlined_call_operand.vmem [shape: bf16[32,32], index: 3, kind: input, shape index: {}]   ;;  %s6254_s4 = inlined_call_operand.vmem [shape: f32[1,32], index: 4, kind: input, shape index: {}]   ;;  %s6255_s5 = inlined_call_operand.vmem [shape: bf16[32,32], index: 5, kind: input, shape index: {}]   ;;  %s6256_s6 = inlined_call_operand.vmem [shape: f32[1,32], index: 6, kind: input, shape index: {}]   ;;  %s6257_s7 = inlined_call_operand.hbm [shape: bf16[32,32], index: 7, kind: input, shape index: {}]   ;;  %s6258_s8 = inlined_call_operand.vmem [shape: f32[1,32], index: 8, kind: input, shape index: {}]   ;;  %s6259_s9 = inlined_call_operand.hbm [shape: bf16[32,32], index: 9, kind: input, shape index: {}]   ;;  %s6260_s10 = inlined_call_operand.vmem [shape: f32[1,32], index: 10, kind: input, shape index: {}]   ;;  %s6261_s11 = inlined_call_operand.hbm [shape: bf16[32,64], index: 11, kind: input, shape index: {}]   ;;  %s6262_s12 = inlined_call_operand.vmem [shape: f32[1,64], index: 12, kind: input, shape index: {}]   ;;  %s6263_s13 = inlined_call_operand.vmem [shape: bf16[64,32], index: 13, kind: input, shape index: {}]   ;;  %s6264_s14 = inlined_call_operand.vmem [shape: f32[1,32], index: 14, kind: input, shape index: {}]   ;;  %s6265_s15 = inlined_call_operand.vmem [shape: f32[1,32], index: 15, kind: input, shape index: {}]   ;;  %s6266_s16 = inlined_call_operand.vmem [shape: f32[1,32], index: 16, kind: input, shape index: {}]   ;;  %s6267_s17 = inlined_call_operand.vmem [shape: f32[1,32], index: 17, kind: input, shape index: {}]   ;;  %s6268_s18 = inlined_call_operand.vmem [shape: f32[1,32], index: 18, kind: input, shape index: {}]   ;;  %s6269_s19 = inlined_call_operand.hbm [shape: f32[2,8,64], index: 19, kind: output, shape index: {}]  }
   0x1   :  { %6273 = sst [smem:[#allocation16_spill]] %s6250_s0 }
   0x2   :  { %6274 = sst [smem:[#allocation17_spill]] %s6251_s1 }
   0x3   :  { %6275 = sst [smem:[#allocation18_spill]] %s6252_s2 }
   0x4   :  { %6276 = sst [smem:[#allocation19_spill]] %s6253_s3 }
   0x5   :  { %6277 = sst [smem:[#allocation20_spill]] %s6269_s19 }
   0x6   :  { %24 = vsyncpa [#allocation3], 0 }
   0x7   :  { %25 = vsyncpa [#allocation6], 0 }
   0x8   :  { %26 = vsyncpa [#allocation9], 0  ;;  %s6278_s20 = sld [smem:[#allocation18_spill]] }
   0xe   :  { %s46_s21 = sshll.u32 %s6278_s20, 4  ;;  %s47_s21 = int_to_ptr.hbm [resolvable:$true] %s46_s21 }
   0xf   :  { %27 = vsyncpa [#allocation4], 0  ;;  %s4346_s1 = smov [#allocation5]   ;;  %s79_s24 = sshll.u32 %s6259_s9, 4  ;;  %s80_s24 = int_to_ptr.hbm [resolvable:$true] %s79_s24 }
  0x10   :  { %s48_s22 = sshll.u32 %s4346_s1, 4  ;;  %s4347_s25 = smov [#allocation8]   ;;  %s49_s22 = int_to_ptr.vmem [resolvable:$true] %s48_s22 }
  0x11   :  { %51 = dma.hbm_to_vmem [thread:$0]  %s47_s21, 32, %s49_s22, [#allocation6]  }
  0x12   :  { %s81_s3 = sshll.u32 %s4347_s25, 4  ;;  %s6279_s28 = sld [smem:[#allocation17_spill]]  ;;  %s82_s3 = int_to_ptr.vmem [resolvable:$true] %s81_s3 }
  0x13   :  { %s4348_s0 = smov 64   ;;  %s4349_s30 = smov 4  }
  0x14   :  { %87 = dma.hbm_to_vmem [thread:$0]  %s80_s24, 256, %s82_s3, [#allocation9], %s4348_s0, %s4348_s0, %s4349_s30  }
  0x15   :  { %s64_s21 = sshll.u32 %s6257_s7, 4  ;;  %s4350_s22 = smov [#allocation2]   ;;  %s65_s21 = int_to_ptr.hbm [resolvable:$true] %s64_s21 }
  0x16   :  { %s37_s19 = sshll.u32 %s4350_s22, 4  ;;  %s4351_s9 = smov [#allocation7]   ;;  %s38_s19 = int_to_ptr.vmem [resolvable:$true] %s37_s19 }
  0x17   :  { %s66_s2 = sshll.u32 %s4351_s9, 4  ;;  %s94_s26 = sshll.u32 %s6261_s11, 4  ;;  %s67_s2 = int_to_ptr.vmem [resolvable:$true] %s66_s2  ;;  %s95_s26 = int_to_ptr.hbm [resolvable:$true] %s94_s26 }
  0x18   :  { %s35_s29 = sshll.u32 %s6279_s28, 4  ;;  %s4352_s27 = smov [#allocation10]   ;;  %s36_s29 = int_to_ptr.hbm [resolvable:$true] %s35_s29 }
  0x19   :  { %40 = dma.hbm_to_vmem [thread:$0]  %s36_s29, 32, %s38_s19, [#allocation3]  }
  0x1a   :  { %72 = dma.hbm_to_vmem [thread:$0]  %s65_s21, 256, %s67_s2, [#allocation6], %s4348_s0, %s4348_s0, %s4349_s30  }
  0x1b   :  { %s96_s24 = sshll.u32 %s4352_s27, 4  ;;  %s97_s24 = int_to_ptr.vmem [resolvable:$true] %s96_s24 }
  0x1c   :  { %102 = dma.hbm_to_vmem [thread:$0]  %s95_s26, 256, %s97_s24, [#allocation9], %s4348_s0, %s4348_s0, %s4349_s30  }
  0x1d   :  { %4338 = dma.done.wait [#allocation3], 32  }
  0x1e   :  { %4339 = vsyncadd [#allocation3], 4294967264 }
  0x1f   :  { %4340 = dma.done.wait [#allocation6], 288  }
  0x20   :  { %4341 = vsyncadd [#allocation6], 4294967008 }
  0x21   :  { %4342 = dma.done.wait [#allocation9], 512  }
  0x22   :  { %4343 = vsyncadd [#allocation9], 4294966784  ;;  %s6280_s3 = sld [smem:[#allocation16_spill]]  ;;  %s4353_s28 = smov 96   ;;  %v4354_v2 = vmov 1983009808  }
  0x23   :  { %v152_v3 = vunpack.c.l.s4 %v4354_v2  ;;  %s6281_s20 = sld [smem:[#allocation19_spill]]  ;;  %vm149_vm0 = vcmask 1047556   ;;  %v4000_v8 = vld [vmem:[#allocation7 + $0x8] sm:$0xff]  ;;  %v4355_v11 = vmov 1934713408   ;;  %v3999_v16 = vld [vmem:[#allocation7] sm:$0xff] }
  0x24   :  { %476 = vmatpush.bf16.msra.mxu2 %v4000_v8  ;;  %v174_v12 = vunpack.c.l.s4 %v4355_v11  ;;  %v3998_v15 = vld [vmem:[%s6255_s5 + $0x8] sm:$0xff]  ;;  %v3997_v36 = vld [vmem:[%s6255_s5] sm:$0xff]  ;;  %vm361_vm1 = vcmask 261120   ;;  %s4356_s26 = smov 112   ;;  %s4357_s7 = smov 104   ;;  %vm1977_vm2 = vcmask 64512  }
  0x25   :  { %v4490_v5 = vunpack.c.0.s8 %v152_v3  ;;  %v4520_v43 = vld [vmem:[#allocation2] sm:$0x3]  ;;  %vm2493_vm3 = vcmask 1043456   ;;  %s4360_s11 = smov 16   ;;  %s4361_s29 = smov 8   ;;  %vm3287_vm4 = vcmask 130048  }
  0x26   :  { %v4501_v18 = vunpack.c.0.s8 %v174_v12  ;;  %v331_v55 = vrot.slane %v4520_v43, 1  ;;  %vm3292_vm5 = vcmask 195584  }
  0x28   :  { %v139_v0 = vld [vmem:[%s6280_s3 + $0x8] sm:$0xff]  ;;  %v138_v1 = vld [vmem:[%s6280_s3] sm:$0xff]  ;;  %477 = vmatpush.bf16.msra.mxu2 %v3999_v16 }
  0x29   :  { %144 = vrot.lane.b32.xlu0 %v139_v0, %s4353_s28  ;;  %v3996_v4 = vld [vmem:[%s6281_s20 + $0x8] sm:$0xff]  ;;  %v201_v6 = vrot.slane %v139_v0, 4  ;;  %v3995_v7 = vld [vmem:[%s6281_s20] sm:$0xff]  ;;  %v206_v10 = vperm.slane %v139_v0, %v4490_v5  ;;  %v148_v14 = vrot.slane %v138_v1, 4  ;;  %v154_v27 = vperm.slane %v138_v1, %v4490_v5 }
  0x2a   :  { %4009 = vmatpush.bf16.msra.mxu1 %v3996_v4  ;;  %374 = vmatpush.bf16.msra.mxu0 %v3996_v4 }
  0x2b   :  { %v202_v9 = vsel %vm149_vm0, 0.0, %v201_v6  ;;  %v223_v17 = vrot.slane %v206_v10, 4  ;;  %v150_v23 = vsel %vm149_vm0, 0.0, %v148_v14  ;;  %v171_v38 = vrot.slane %v154_v27, 4 }
  0x2c   :  { %v210_v13 = vperm.slane %v202_v9, %v4490_v5  ;;  %v158_v30 = vperm.slane %v150_v23, %v4490_v5 }
  0x2e   :  { %4010 = vmatpush.bf16.msra.mxu1 %v3995_v7  ;;  %375 = vmatpush.bf16.msra.mxu0 %v3995_v7  ;;  %v235_v22 = vrot.slane %v210_v13, 4  ;;  %v183_v48 = vrot.slane %v158_v30, 4 }
  0x31   :  { %142 = vrot.lane.b32.xlu0 %v138_v1, %s4353_s28  ;;  %s4364_s28 = smov [#allocation11]  }
  0x32   :  { %437 = vmatpush.bf16.msrb.mxu1 %v3998_v15 }
  0x36   :  { %438 = vmatpush.bf16.msrb.mxu1 %v3997_v36 }
  0x9b   :  { %v145_v19 = vpop.permute.xlu0 %144 }
  0x9c   :  { %v211_v20 = vrot.slane %v145_v19, 4  ;;  %v216_v21 = vperm.slane %v145_v19, %v4490_v5 }
  0x9e   :  { %v212_v24 = vsel %vm149_vm0, 0.0, %v211_v20  ;;  %v221_v25 = vrot.slane %v216_v21, 4  ;;  %v224_v26 = vsel %vm149_vm0, %v216_v21, %v223_v17 }
  0x9f   :  { %v220_v28 = vperm.slane %v212_v24, %v4490_v5  ;;  %v232_v29 = vperm.slane %v224_v26, %v4501_v18 }
  0xa0   :  { %v222_v31 = vsel %vm149_vm0, %v221_v25, %v206_v10 }
  0xa1   :  { %v228_v32 = vperm.slane %v222_v31, %v4501_v18  ;;  %v233_v33 = vrot.slane %v220_v28, 4  ;;  %v236_v34 = vsel %vm149_vm0, %v220_v28, %v235_v22  ;;  %v247_v35 = vrot.slane %v232_v29, 4 }
  0xa2   :  { %v244_v37 = vperm.slane %v236_v34, %v4501_v18  ;;  %v336_v29 = vperm.slane %v331_v55, 0 }
  0xa3   :  { %v234_v39 = vsel %vm149_vm0, %v233_v33, %v210_v13  ;;  %v245_v40 = vrot.slane %v228_v32, 4  ;;  %v248_v41 = vsel %vm149_vm0, 0.0, %v247_v35  ;;  %v143_v42 = vpop.permute.xlu0 %142  ;;  %v291_v46 = vsel %vm149_vm0, %v247_v35, %v228_v32 }
  0xa4   :  { %v240_v44 = vperm.slane %v234_v39, %v4501_v18  ;;  %v251_v45 = vrot.slane %v244_v37, 4  ;;  %v296_v47 = vrot.slane %v248_v41, 4  ;;  %v159_v50 = vrot.slane %v143_v42, 4 }
  0xa5   :  { %v246_v49 = vsel %vm149_vm0, 0.0, %v245_v40  ;;  %v164_v51 = vperm.slane %v143_v42, %v4490_v5  ;;  %v295_v56 = vperm.slane %v291_v46, %v4490_v5  ;;  %v335_v37 = vperm.slane %v4520_v43, 0 }
  0xa6   :  { %v249_v52 = vrot.slane %v240_v44, 4  ;;  %v252_v53 = vsel %vm149_vm0, 0.0, %v251_v45  ;;  %v297_v54 = vsel %vm149_vm0, %v296_v47, %v246_v49  ;;  %v160_v59 = vsel %vm149_vm0, 0.0, %v159_v50 }
  0xa7   :  { %v301_v57 = vperm.slane %v297_v54, %v4490_v5  ;;  %v307_v58 = vrot.slane %v252_v53, 4  ;;  %v168_v61 = vperm.slane %v160_v59, %v4490_v5  ;;  %v169_v62 = vrot.slane %v164_v51, 4 }
  0xa8   :  { %v250_v60 = vsel %vm149_vm0, 0.0, %v249_v52  ;;  %v172_v63 = vsel %vm149_vm0, %v164_v51, %v171_v38  ;;  %v302_v0 = vsel %vm149_vm0, %v251_v45, %v240_v44 }
  0xa9   :  { %v308_v1 = vsel %vm149_vm0, %v307_v58, %v250_v60  ;;  %v313_v2 = vrot.slane %v301_v57, 4  ;;  %v180_v3 = vperm.slane %v172_v63, %v4501_v18  ;;  %v170_v6 = vsel %vm149_vm0, %v169_v62, %v154_v27  ;;  %v332_v63 = vld [vmem:[#allocation5] sm:$0x3] }
  0xaa   :  { %v312_v4 = vperm.slane %v308_v1, %v4490_v5  ;;  %v181_v7 = vrot.slane %v168_v61, 4  ;;  %v184_v8 = vsel %vm149_vm0, %v168_v61, %v183_v48  ;;  %v176_v9 = vperm.slane %v170_v6, %v4501_v18 }
  0xab   :  { %v192_v10 = vperm.slane %v184_v8, %v4501_v18  ;;  %v195_v11 = vrot.slane %v180_v3, 4  ;;  %v314_v12 = vsel %vm149_vm0, %v313_v2, %v295_v56  ;;  %v306_v13 = vperm.slane %v302_v0, %v4490_v5  ;;  %v4101_v3 = vld [vmem:[%s6254_s4] ss:$0 sm:$0xff]  ;;  %s4358_s4 = smov 120  }
  0xac   :  { %v182_v14 = vsel %vm149_vm0, %v181_v7, %v158_v30  ;;  %v318_v15 = vperm.slane %v314_v12, %v4501_v18  ;;  %v319_v16 = vrot.slane %v312_v4, 4  ;;  %v193_v19 = vrot.slane %v176_v9, 4  ;;  %v4103_v8 = vld [vmem:[%s6256_s6] ss:$0 sm:$0xff]  ;;  %s6303_s6 = sld [smem:[#allocation20_spill]] }
  0xad   :  { %v188_v17 = vperm.slane %v182_v14, %v4501_v18  ;;  %v196_v20 = vsel %vm149_vm0, 0.0, %v195_v11  ;;  %v199_v21 = vrot.slane %v192_v10, 4  ;;  %v253_v22 = vsel %vm149_vm0, %v195_v11, %v176_v9 }
  0xae   :  { %v258_v23 = vrot.slane %v196_v20, 4  ;;  %v320_v24 = vsel %vm149_vm0, %v319_v16, %v306_v13  ;;  %v327_v25 = vrot.slane %v318_v15, 4  ;;  %v194_v26 = vsel %vm149_vm0, 0.0, %v193_v19 }
  0xaf   :  { %v197_v27 = vrot.slane %v188_v17, 4  ;;  %v200_v28 = vsel %vm149_vm0, 0.0, %v199_v21  ;;  %v264_v31 = vsel %vm149_vm0, %v199_v21, %v188_v17  ;;  %v324_v33 = vperm.slane %v320_v24, %v4501_v18  ;;  %v4102_v17 = vld [vmem:[%s6258_s8] ss:$0 sm:$0xff] }
  0xb0   :  { %v259_v30 = vsel %vm149_vm0, %v258_v23, %v194_v26  ;;  %v269_v32 = vrot.slane %v200_v28, 4  ;;  %v257_v35 = vperm.slane %v253_v22, %v4490_v5  ;;  %v268_v42 = vperm.slane %v264_v31, %v4490_v5 }
  0xb1   :  { %v198_v34 = vsel %vm149_vm0, 0.0, %v197_v27  ;;  %v263_v36 = vperm.slane %v259_v30, %v4490_v5  ;;  %v325_v39 = vrot.slane %v324_v33, 4  ;;  %v4562_v40 = vsel %vm149_vm0, %v324_v33, %v327_v25 }
  0xb2   :  { %v270_v38 = vsel %vm149_vm0, %v269_v32, %v198_v34  ;;  %v342_v47 = vmul.f32 %v336_v29, %v4562_v40  ;;  %v387_v0 = vperm.slane %v332_v63, 0  ;;  %v334_v12 = vrot.slane %v332_v63, 1  ;;  %s3880_s3 = sshll.u32 %s6303_s6, 4  ;;  %s3881_s3 = int_to_ptr.hbm [resolvable:$true] %s3880_s3 }
  0xb3   :  { %v275_v41 = vrot.slane %v263_v36, 4  ;;  %v274_v44 = vperm.slane %v270_v38, %v4490_v5  ;;  %v4567_v45 = vsel %vm149_vm0, %v325_v39, %v318_v15 }
  0xb4   :  { %v341_v46 = vmul.f32 %v335_v37, %v4567_v45  ;;  %v404_v61 = vpack.c.bf16 %v4562_v40, %v4567_v45  ;;  %v388_v16 = vperm.slane %v334_v12, 0 }
  0xb5   :  { %v276_v43 = vsel %vm149_vm0, %v275_v41, %v257_v35  ;;  %v281_v48 = vrot.slane %v274_v44, 4 }
  0xb6   :  { %v280_v49 = vperm.slane %v276_v43, %v4501_v18  ;;  %v344_v50 = vpack.c.bf16 %v342_v47, %v341_v46 }
  0xb7   :  { %v282_v51 = vsel %vm149_vm0, %v281_v48, %v268_v42 }
  0xb8   :  { %v286_v52 = vperm.slane %v282_v51, %v4501_v18  ;;  %v289_v53 = vrot.slane %v280_v49, 4  ;;  %3904 = vmatmul.msk.bf16.vlgmr.msra.gmra.mxu1 %vm361_vm1, %v344_v50 }
  0xba   :  { %v287_v54 = vrot.slane %v286_v52, 4  ;;  %v4577_v55 = vsel %vm149_vm0, %v286_v52, %v289_v53 }
  0xbb   :  { %v340_v56 = vmul.f32 %v336_v29, %v4577_v55 }
  0xbc   :  { %v4581_v57 = vsel %vm149_vm0, %v287_v54, %v280_v49 }
  0xbd   :  { %v403_v58 = vpack.c.bf16 %v4577_v55, %v4581_v57  ;;  %v339_v59 = vmul.f32 %v335_v37, %v4581_v57 }
  0xbf   :  { %3923 = vmatmul.msk.bf16.vlgmr.msra.gmra.mxu2 %vm361_vm1, %v403_v58  ;;  %v343_v60 = vpack.c.bf16 %v340_v56, %v339_v59 }
  0xc1   :  { %3903 = vmatmul.msk.bf16.vlgmr.msra.gmra.mxu0 %vm361_vm1, %v343_v60 }
  0xc8   :  { %3913 = vmatmul.msk.bf16.vlgmr.msrb.gmra.mxu1 %vm361_vm1, %v403_v58 }
  0xcf   :  { %3924 = vmatmul.msk.bf16.gmra.mxu2 %vm361_vm1, %v404_v61 }
  0xd8   :  { %3914 = vmatmul.msk.bf16.gmra.mxu1 %vm361_vm1, %v404_v61 }
 0x135   :  { %v382_v62 = vpop.f32.mrf.mxu1 }
 0x136   :  { %v393_v26 = vmul.f32 %v387_v0, %v382_v62 }
 0x138   :  { %v4639_v28 = vadd.f32 %v4101_v3, %v393_v26 }
 0x13a   :  { %v643_v51 = vrot.slane %v4639_v28, 4 }
 0x13d   :  { %v384_v2 = vpop.f32.mrf.mxu1 }
 0x13e   :  { %v377_v1 = vpop.f32.mrf.mxu0  ;;  %v394_v31 = vmul.f32 %v388_v16, %v384_v2 }
 0x13f   :  { %v391_v4 = vmul.f32 %v387_v0, %v377_v1 }
 0x140   :  { %v4650_v32 = vadd.f32 %v4101_v3, %v394_v31 }
 0x141   :  { %v4596_v6 = vadd.f32 %v4101_v3, %v391_v4 }
 0x142   :  { %v479_v7 = vpop.f32.mrf.mxu2 }
 0x143   :  { %505 = vrot.lane.b32.xlu0 %v4596_v6, %s4356_s26  ;;  %v4660_v34 = vadd.f32 %v4102_v17, %v479_v7  ;;  %v531_v42 = vrot.slane %v4596_v6, 4 }
 0x145   :  { %v440_v9 = vpop.f32.mrf.mxu1 }
 0x146   :  { %v4603_v10 = vadd.f32 %v4103_v8, %v440_v9  ;;  %v379_v14 = vpop.f32.mrf.mxu0 }
 0x147   :  { %v392_v19 = vmul.f32 %v388_v16, %v379_v14 }
 0x148   :  { %1013 = vrot.lane.b32.xlu2 %v4603_v10, %s4357_s7  ;;  %989 = vrot.lane.b32.xlu1 %v4603_v10, %s4358_s4  ;;  %v1027_v50 = vrot.slane %v4603_v10, 4 }
 0x149   :  { %v4622_v22 = vadd.f32 %v4101_v3, %v392_v19 }
 0x14a   :  { %v481_v11 = vpop.f32.mrf.mxu2 }
 0x14b   :  { %v4658_v33 = vadd.f32 %v4102_v17, %v481_v11  ;;  %v587_v56 = vrot.slane %v4622_v22, 4 }
 0x14d   :  { %v442_v13 = vpop.f32.mrf.mxu1  ;;  %v4046_v35 = vpack.i.bf16 %v4658_v33, %v4660_v34 }
 0x14e   :  { %v4609_v15 = vadd.f32 %v4103_v8, %v442_v13 }
 0x150   :  { %1001 = vrot.lane.b32.xlu1 %v4603_v10, %s4356_s26  ;;  %1003 = vrot.lane.b32.xlu0 %v4609_v15, %s4356_s26  ;;  %v4031_v23 = vpack.i.bf16 %v4622_v22, %v4609_v15  ;;  %v1083_v63 = vrot.slane %v4609_v15, 4 }
 0x151   :  { %493 = vrot.lane.b32.xlu2 %v4596_v6, %s4358_s4 }
 0x152   :  { %v484_v20 = vpop.f32.mrf.mxu2 }
 0x153   :  { %v4620_v21 = vadd.f32 %v4102_v17, %v484_v20 }
 0x155   :  { %v445_v24 = vpop.f32.mrf.mxu1 }
 0x156   :  { %v4631_v25 = vadd.f32 %v4103_v8, %v445_v24 }
 0x158   :  { %517 = vrot.lane.b32.xlu1 %v4596_v6, %s4357_s7  ;;  %519 = vrot.lane.b32.xlu0 %v4622_v22, %s4357_s7  ;;  %v4036_v30 = vpack.i.bf16 %v4639_v28, %v4631_v25  ;;  %v1139_v0 = vrot.slane %v4631_v25, 4 }
 0x159   :  { %4032 = vrot.lane.b32.xlu2 %v4031_v23, %s4358_s4 }
 0x15d   :  { %v447_v27 = vpop.f32.mrf.mxu1 }
 0x15e   :  { %v4641_v29 = vadd.f32 %v4103_v8, %v447_v27 }
 0x160   :  { %1015 = vrot.lane.b32.xlu1 %v4609_v15, %s4357_s7  ;;  %1017 = vrot.lane.b32.xlu0 %v4631_v25, %s4357_s7  ;;  %v1195_v3 = vrot.slane %v4641_v29, 4 }
 0x161   :  { %507 = vrot.lane.b32.xlu2 %v4622_v22, %s4356_s26 }
 0x168   :  { %4037 = vrot.lane.b32.xlu1 %v4036_v30, %s4358_s4  ;;  %995 = vrot.lane.b32.xlu0 %v4641_v29, %s4358_s4 }
 0x169   :  { %1005 = vrot.lane.b32.xlu2 %v4631_v25, %s4356_s26 }
 0x170   :  { %509 = vrot.lane.b32.xlu1 %v4639_v28, %s4356_s26  ;;  %499 = vrot.lane.b32.xlu0 %v4650_v32, %s4358_s4 }
 0x171   :  { %521 = vrot.lane.b32.xlu2 %v4639_v28, %s4357_s7 }
 0x178   :  { %1007 = vrot.lane.b32.xlu1 %v4641_v29, %s4356_s26  ;;  %4047 = vrot.lane.b32.xlu0 %v4046_v35, %s4356_s26 }
 0x179   :  { %1019 = vrot.lane.b32.xlu2 %v4641_v29, %s4357_s7 }
 0x180   :  { %511 = vrot.lane.b32.xlu1 %v4650_v32, %s4356_s26 }
 0x181   :  { %523 = vrot.lane.b32.xlu2 %v4650_v32, %s4357_s7 }
 0x188   :  { %4052 = vrot.lane.b32.xlu1 %v4046_v35, %s4357_s7 }
 0x189   :  { %4042 = vrot.lane.b32.xlu2 %v4046_v35, %s4358_s4 }
 0x1a2   :  { %v1014_v36 = vpop.permute.xlu2 %1013 }
 0x1a3   :  { %v1037_v41 = vrot.slane %v1014_v36, 4 }
 0x1ab   :  { %v4675_v37 = vpop.permute.xlu2 %493 }
 0x1ac   :  { %v543_v7 = vrot.slane %v4675_v37, 4 }
 0x1b3   :  { %v4677_v38 = vpop.permute.xlu2 %4032 }
 0x1b4   :  { %v4035_v52 = vunpack.i.h.bf16 %v4677_v38  ;;  %v4034_v53 = vunpack.i.l.bf16 %v4677_v38 }
 0x1b5   :  { %v506_v39 = vpop.permute.xlu0 %505 }
 0x1b6   :  { %v529_v44 = vrot.slane %v506_v39, 4  ;;  %v532_v47 = vsel %vm149_vm0, %v506_v39, %v531_v42  ;;  %v4705_v8 = vrot.slane %v4035_v52, 4  ;;  %v4709_v9 = vrot.slane %v4034_v53, 4 }
 0x1b7   :  { %v4691_v59 = vperm.slane %v532_v47, %v4490_v5 }
 0x1b8   :  { %v530_v58 = vsel %vm149_vm0, %v529_v44, %v4596_v6 }
 0x1b9   :  { %v4712_v11 = vperm.slane %v530_v58, %v4490_v5  ;;  %v567_v12 = vrot.slane %v4691_v59, 4 }
 0x1ba   :  { %v990_v46 = vpop.permute.xlu1 %989 }
 0x1bb   :  { %v1038_v43 = vsel %vm149_vm0, %v1037_v41, %v990_v46  ;;  %v1039_v48 = vrot.slane %v990_v46, 4  ;;  %v508_v49 = vpop.permute.xlu2 %507 }
 0x1bc   :  { %v1044_v60 = vperm.slane %v1038_v43, %v4490_v5  ;;  %v585_v61 = vrot.slane %v508_v49, 4  ;;  %v588_v62 = vsel %vm149_vm0, %v508_v49, %v587_v56 }
 0x1bd   :  { %v1040_v54 = vsel %vm149_vm0, %v1014_v36, %v1039_v48  ;;  %v4718_v16 = vperm.slane %v588_v62, %v4490_v5  ;;  %v555_v48 = vrot.slane %v4712_v11, 4 }
 0x1be   :  { %v1048_v2 = vperm.slane %v1040_v54, %v4490_v5  ;;  %v1049_v13 = vrot.slane %v1044_v60, 4  ;;  %v586_v14 = vsel %vm149_vm0, %v585_v61, %v4622_v22 }
 0x1bf   :  { %v4725_v22 = vperm.slane %v586_v14, %v4490_v5 }
 0x1c0   :  { %v1061_v30 = vrot.slane %v1048_v2, 4 }
 0x1c1   :  { %v611_v61 = vrot.slane %v4725_v22, 4 }
 0x1c2   :  { %v1002_v17 = vpop.permute.xlu1 %1001  ;;  %v1004_v19 = vpop.permute.xlu0 %1003 }
 0x1c3   :  { %v1025_v20 = vrot.slane %v1002_v17, 4  ;;  %v1028_v23 = vsel %vm149_vm0, %v1002_v17, %v1027_v50  ;;  %v1081_v24 = vrot.slane %v1004_v19, 4  ;;  %v1084_v26 = vsel %vm149_vm0, %v1004_v19, %v1083_v63  ;;  %v1006_v27 = vpop.permute.xlu2 %1005 }
 0x1c4   :  { %v1036_v31 = vperm.slane %v1028_v23, %v4490_v5  ;;  %v1137_v35 = vrot.slane %v1006_v27, 4  ;;  %v1140_v36 = vsel %vm149_vm0, %v1006_v27, %v1139_v0  ;;  %v4732_v42 = vperm.slane %v1084_v26, %v4490_v5 }
 0x1c5   :  { %v1026_v39 = vsel %vm149_vm0, %v1025_v20, %v4603_v10  ;;  %v1082_v41 = vsel %vm149_vm0, %v1081_v24, %v4609_v15  ;;  %v4737_v43 = vperm.slane %v1140_v36, %v4490_v5  ;;  %v623_v50 = vrot.slane %v4718_v16, 4 }
 0x1c6   :  { %v1032_v44 = vperm.slane %v1026_v39, %v4490_v5  ;;  %v1062_v46 = vsel %vm149_vm0, %v1061_v30, %v1036_v31  ;;  %v1063_v47 = vrot.slane %v1036_v31, 4  ;;  %v4742_v10 = vperm.slane %v1082_v41, %v4490_v5 }
 0x1c7   :  { %v1068_v49 = vperm.slane %v1062_v46, %v4501_v18  ;;  %v1138_v15 = vsel %vm149_vm0, %v1137_v35, %v4631_v25  ;;  %v1119_v17 = vrot.slane %v4732_v42, 4 }
 0x1c8   :  { %v1050_v54 = vsel %vm149_vm0, %v1049_v13, %v1032_v44  ;;  %v1051_v56 = vrot.slane %v1032_v44, 4  ;;  %v1064_v58 = vsel %vm149_vm0, %v1048_v2, %v1063_v47  ;;  %v4757_v25 = vperm.slane %v1138_v15, %v4490_v5 }
 0x1c9   :  { %v4751_v62 = vperm.slane %v1050_v54, %v4501_v18  ;;  %v1072_v63 = vperm.slane %v1064_v58, %v4501_v18  ;;  %v1077_v0 = vrot.slane %v1068_v49, 4  ;;  %v1175_v13 = vrot.slane %v4737_v43, 4 }
 0x1ca   :  { %v1052_v14 = vsel %vm149_vm0, %v1044_v60, %v1051_v56  ;;  %v518_v19 = vpop.permute.xlu1 %517  ;;  %v520_v20 = vpop.permute.xlu0 %519  ;;  %v1107_v26 = vrot.slane %v4742_v10, 4  ;;  %v1163_v46 = vrot.slane %v4757_v25, 4 }
 0x1cb   :  { %v1060_v2 = vperm.slane %v1052_v14, %v4501_v18  ;;  %v1073_v23 = vrot.slane %v4751_v62, 4  ;;  %v1079_v24 = vrot.slane %v1072_v63, 4  ;;  %v1078_v27 = vsel %vm149_vm0, 0.0, %v1077_v0 }
 0x1cc   :  { %v541_v30 = vrot.slane %v518_v19, 4  ;;  %v544_v60 = vsel %vm149_vm0, %v518_v19, %v543_v7  ;;  %v597_v31 = vrot.slane %v520_v20, 4  ;;  %v600_v0 = vsel %vm149_vm0, %v520_v20, %v4705_v8 }
 0x1cd   :  { %v4765_v35 = vrot.slane %v1060_v2, 4  ;;  %v1080_v36 = vsel %vm149_vm0, 0.0, %v1079_v24  ;;  %v1260_v39 = vsel %vm149_vm0, %v1079_v24, %v1068_v49  ;;  %v552_v41 = vperm.slane %v544_v60, %v4490_v5  ;;  %v4793_v24 = vpop.permute.xlu2 %521 }
 0x1ce   :  { %v1265_v44 = vrot.slane %v1080_v36, 4  ;;  %v542_v47 = vsel %vm149_vm0, %v541_v30, %v4675_v37  ;;  %v598_v15 = vsel %vm149_vm0, %v597_v31, %v4035_v52  ;;  %v4784_v63 = vperm.slane %v1260_v39, %v4490_v5 }
 0x1cf   :  { %v4778_v7 = vsel %vm149_vm0, 0.0, %v4765_v35  ;;  %v548_v54 = vperm.slane %v542_v47, %v4490_v5  ;;  %v565_v56 = vrot.slane %v552_v41, 4  ;;  %v568_v49 = vsel %vm149_vm0, %v552_v41, %v567_v12 }
 0x1d0   :  { %v1254_v58 = vrot.slane %v4778_v7, 4  ;;  %v576_v37 = vperm.slane %v568_v49, %v4501_v18  ;;  %v604_v2 = vperm.slane %v598_v15, %v4490_v5  ;;  %v4796_v12 = vsel %vm149_vm0, %v1265_v44, %v1078_v27 }
 0x1d1   :  { %v553_v52 = vrot.slane %v548_v54, 4  ;;  %v556_v14 = vsel %vm149_vm0, %v548_v54, %v555_v48  ;;  %v566_v19 = vsel %vm149_vm0, %v565_v56, %v4691_v59  ;;  %v608_v48 = vperm.slane %v600_v0, %v4490_v5 }
 0x1d2   :  { %v564_v30 = vperm.slane %v556_v14, %v4501_v18  ;;  %v572_v60 = vperm.slane %v566_v19, %v4501_v18  ;;  %v583_v31 = vrot.slane %v576_v37, 4  ;;  %v609_v20 = vrot.slane %v604_v2, 4 }
 0x1d3   :  { %v554_v8 = vsel %vm149_vm0, %v553_v52, %v4712_v11  ;;  %v612_v59 = vsel %vm149_vm0, %v604_v2, %v611_v61  ;;  %v1016_v11 = vpop.permute.xlu1 %1015  ;;  %v1270_v7 = vperm.slane %v4796_v12, %v4490_v5 }
 0x1d4   :  { %v560_v36 = vperm.slane %v554_v8, %v4501_v18  ;;  %v579_v39 = vrot.slane %v564_v30, 4  ;;  %v581_v41 = vrot.slane %v572_v60, 4  ;;  %v584_v27 = vsel %vm149_vm0, 0.0, %v583_v31 }
 0x1d5   :  { %v764_v44 = vsel %vm149_vm0, %v583_v31, %v572_v60  ;;  %v769_v47 = vrot.slane %v584_v27, 4  ;;  %v610_v15 = vsel %vm149_vm0, %v609_v20, %v4725_v22  ;;  %v620_v54 = vperm.slane %v612_v59, %v4501_v18 }
 0x1d6   :  { %v577_v56 = vrot.slane %v560_v36, 4  ;;  %v4811_v49 = vsel %vm149_vm0, 0.0, %v579_v39  ;;  %v582_v61 = vsel %vm149_vm0, 0.0, %v581_v41  ;;  %v753_v37 = vsel %vm149_vm0, %v579_v39, %v560_v36 }
 0x1d7   :  { %v4816_v0 = vperm.slane %v753_v37, %v4490_v5  ;;  %v4819_v52 = vperm.slane %v764_v44, %v4490_v5  ;;  %v770_v14 = vsel %vm149_vm0, %v769_v47, %v582_v61  ;;  %v653_v22 = vrot.slane %v4793_v24, 4  ;;  %v4839_v44 = vpop.permute.xlu0 %1017 }
 0x1d8   :  { %v4824_v19 = vsel %vm149_vm0, 0.0, %v577_v56  ;;  %v758_v2 = vrot.slane %v4811_v49, 4  ;;  %v616_v30 = vperm.slane %v610_v15, %v4501_v18  ;;  %v621_v60 = vrot.slane %v608_v48, 4 }
 0x1d9   :  { %v4829_v31 = vperm.slane %v770_v14, %v4490_v5  ;;  %v624_v8 = vsel %vm149_vm0, %v608_v48, %v623_v50  ;;  %v635_v20 = vrot.slane %v620_v54, 4  ;;  %v1093_v59 = vrot.slane %v1016_v11, 4  ;;  %v4847_v48 = vpop.permute.xlu2 %1019 }
 0x1da   :  { %v622_v36 = vsel %vm149_vm0, %v621_v60, %v4718_v16  ;;  %v632_v39 = vperm.slane %v624_v8, %v4501_v18  ;;  %v633_v41 = vrot.slane %v616_v30, 4  ;;  %v1096_v27 = vsel %vm149_vm0, %v1016_v11, %v4709_v9 }
 0x1db   :  { %v789_v47 = vrot.slane %v4819_v52, 4  ;;  %v628_v15 = vperm.slane %v622_v36, %v4501_v18  ;;  %v636_v56 = vsel %vm149_vm0, 0.0, %v635_v20  ;;  %v1094_v50 = vsel %vm149_vm0, %v1093_v59, %v4034_v53 }
 0x1dc   :  { %v634_v16 = vsel %vm149_vm0, 0.0, %v633_v41  ;;  %v639_v54 = vrot.slane %v632_v39, 4  ;;  %v4851_v61 = vsel %vm149_vm0, %v635_v20, %v616_v30  ;;  %v1100_v9 = vperm.slane %v1094_v50, %v4490_v5  ;;  %v4038_v41 = vpop.permute.xlu1 %4037 }
 0x1dd   :  { %v637_v11 = vrot.slane %v628_v15, 4  ;;  %v812_v37 = vrot.slane %v636_v56, 4  ;;  %v1104_v14 = vperm.slane %v1096_v27, %v4490_v5  ;;  %v1149_v60 = vrot.slane %v4839_v44, 4 }
 0x1de   :  { %v640_v38 = vsel %vm149_vm0, 0.0, %v639_v54  ;;  %v818_v53 = vsel %vm149_vm0, %v639_v54, %v628_v15  ;;  %v1105_v8 = vrot.slane %v1100_v9, 4  ;;  %v1205_v59 = vrot.slane %v4847_v48, 4 }
 0x1df   :  { %v638_v36 = vsel %vm149_vm0, 0.0, %v637_v11  ;;  %v4861_v30 = vperm.slane %v818_v53, %v4490_v5  ;;  %v823_v20 = vrot.slane %v640_v38, 4  ;;  %v1108_v39 = vsel %vm149_vm0, %v1100_v9, %v1107_v26 }
 0x1e0   :  { %v1106_v27 = vsel %vm149_vm0, %v1105_v8, %v4742_v10  ;;  %v1116_v56 = vperm.slane %v1108_v39, %v4501_v18  ;;  %v1117_v15 = vrot.slane %v1104_v14, 4  ;;  %v1120_v50 = vsel %vm149_vm0, %v1104_v14, %v1119_v17 }
 0x1e1   :  { %v4873_v54 = vsel %vm149_vm0, %v812_v37, %v634_v16  ;;  %v824_v11 = vsel %vm149_vm0, %v823_v20, %v638_v36  ;;  %v1112_v38 = vperm.slane %v1106_v27, %v4501_v18  ;;  %v1128_v26 = vperm.slane %v1120_v50, %v4501_v18 }
 0x1e2   :  { %v4879_v9 = vperm.slane %v824_v11, %v4490_v5  ;;  %v1118_v10 = vsel %vm149_vm0, %v1117_v15, %v4732_v42  ;;  %v1131_v53 = vrot.slane %v1116_v56, 4  ;;  %v4040_v8 = vunpack.i.h.bf16 %v4038_v41  ;;  %v996_v15 = vpop.permute.xlu0 %995 }
 0x1e3   :  { %v1124_v17 = vperm.slane %v1118_v10, %v4501_v18  ;;  %v1129_v16 = vrot.slane %v1112_v38, 4  ;;  %v1135_v37 = vrot.slane %v1128_v26, 4  ;;  %v4039_v27 = vunpack.i.l.bf16 %v4038_v41 }
 0x1e4   :  { %v4887_v36 = vsel %vm149_vm0, 0.0, %v1131_v53  ;;  %v655_v20 = vrot.slane %v4040_v8, 4  ;;  %v4894_v56 = vsel %vm149_vm0, %v1131_v53, %v1112_v38  ;;  %v654_v39 = vsel %vm149_vm0, %v653_v22, %v4040_v8  ;;  %v4915_v8 = vpop.permute.xlu2 %523 }
 0x1e5   :  { %v4890_v50 = vsel %vm149_vm0, 0.0, %v1129_v16  ;;  %v1133_v11 = vrot.slane %v1124_v17, 4  ;;  %v1136_v42 = vsel %vm149_vm0, 0.0, %v1135_v37  ;;  %v1314_v10 = vsel %vm149_vm0, %v1135_v37, %v1124_v17 }
 0x1e6   :  { %v1319_v26 = vrot.slane %v1136_v42, 4  ;;  %v656_v41 = vsel %vm149_vm0, %v4793_v24, %v655_v20  ;;  %v4904_v14 = vperm.slane %v1314_v10, %v4490_v5  ;;  %v4907_v6 = vperm.slane %v654_v39, %v4490_v5 }
 0x1e7   :  { %v1134_v16 = vsel %vm149_vm0, 0.0, %v1133_v11  ;;  %v4910_v38 = vperm.slane %v656_v41, %v4490_v5  ;;  %v1150_v17 = vsel %vm149_vm0, %v1149_v60, %v4039_v27  ;;  %v1151_v37 = vrot.slane %v4039_v27, 4 }
 0x1e8   :  { %v1320_v53 = vsel %vm149_vm0, %v1319_v26, %v1134_v16  ;;  %v1206_v22 = vsel %vm149_vm0, %v1205_v59, %v996_v15  ;;  %v665_v11 = vrot.slane %v4907_v6, 4  ;;  %v1156_v60 = vperm.slane %v1150_v17, %v4490_v5 }
 0x1e9   :  { %v4919_v20 = vperm.slane %v1320_v53, %v4490_v5  ;;  %v677_v42 = vrot.slane %v4910_v38, 4  ;;  %v1152_v10 = vsel %vm149_vm0, %v4839_v44, %v1151_v37  ;;  %v1207_v27 = vrot.slane %v996_v15, 4 }
 0x1ea   :  { %v1160_v59 = vperm.slane %v1152_v10, %v4490_v5  ;;  %v4929_v26 = vperm.slane %v1206_v22, %v4490_v5  ;;  %v709_v41 = vrot.slane %v4915_v8, 4  ;;  %v1249_v16 = vsel %vm149_vm0, %v4765_v35, %v4751_v62  ;;  %v500_v12 = vpop.permute.xlu0 %499 }
 0x1eb   :  { %v1161_v53 = vrot.slane %v1156_v60, 4  ;;  %v1164_v39 = vsel %vm149_vm0, %v1156_v60, %v1163_v46  ;;  %v1208_v44 = vsel %vm149_vm0, %v4847_v48, %v1207_v27  ;;  %v1074_v15 = vsel %vm149_vm0, 0.0, %v1073_v23 }
 0x1ec   :  { %v1172_v17 = vperm.slane %v1164_v39, %v4501_v18  ;;  %v1173_v37 = vrot.slane %v1160_v59, 4  ;;  %v1176_v22 = vsel %vm149_vm0, %v1160_v59, %v1175_v13  ;;  %v4948_v35 = vperm.slane %v1208_v44, %v4490_v5 }
 0x1ed   :  { %v1162_v46 = vsel %vm149_vm0, %v1161_v53, %v4757_v25  ;;  %v1184_v10 = vperm.slane %v1176_v22, %v4501_v18  ;;  %v1253_v48 = vperm.slane %v1249_v16, %v4490_v5  ;;  %v1255_v62 = vsel %vm149_vm0, %v1254_v58, %v1074_v15  ;;  %v510_v22 = vpop.permute.xlu1 %509 }
 0x1ee   :  { %v1168_v23 = vperm.slane %v1162_v46, %v4501_v18  ;;  %v1174_v39 = vsel %vm149_vm0, %v1173_v37, %v4737_v43  ;;  %v1187_v13 = vrot.slane %v1172_v17, 4  ;;  %v1259_v59 = vperm.slane %v1255_v62, %v4490_v5 }
 0x1ef   :  { %v4962_v27 = vperm.slane %v1174_v39, %v4501_v18  ;;  %v4964_v25 = vrot.slane %v1184_v10, 4  ;;  %v1273_v43 = vrot.slane %v1253_v48, 4  ;;  %v1283_v44 = vrot.slane %v1270_v7, 4 }
 0x1f0   :  { %v1185_v16 = vrot.slane %v1168_v23, 4  ;;  %v4970_v58 = vsel %vm149_vm0, 0.0, %v1187_v13  ;;  %v1357_v53 = vsel %vm149_vm0, %v1187_v13, %v1168_v23  ;;  %v1285_v23 = vrot.slane %v4784_v63, 4 }
 0x1f1   :  { %v4976_v15 = vsel %vm149_vm0, 0.0, %v4964_v25  ;;  %v4979_v17 = vperm.slane %v1357_v53, %v4490_v5  ;;  %v1274_v62 = vsel %vm149_vm0, %v1259_v59, %v1273_v43  ;;  %v1271_v13 = vrot.slane %v1259_v59, 4 }
 0x1f2   :  { %v4983_v46 = vsel %vm149_vm0, 0.0, %v1185_v16  ;;  %v1282_v39 = vperm.slane %v1274_v62, %v4501_v18  ;;  %v1286_v53 = vsel %vm149_vm0, %v1270_v7, %v1285_v23  ;;  %v641_v24 = vrot.slane %v510_v22, 4 }
 0x1f3   :  { %v644_v1 = vsel %vm149_vm0, %v510_v22, %v643_v51  ;;  %v710_v16 = vsel %vm149_vm0, %v709_v41, %v500_v12  ;;  %v1294_v10 = vperm.slane %v1286_v53, %v4501_v18  ;;  %v1272_v43 = vsel %vm149_vm0, %v1271_v13, %v1253_v48 }
 0x1f4   :  { %v1301_v4 = vrot.slane %v1282_v39, 4  ;;  %v1284_v62 = vsel %vm149_vm0, %v1283_v44, %v4784_v63  ;;  %v1278_v59 = vperm.slane %v1272_v43, %v4501_v18  ;;  %v642_v7 = vsel %vm149_vm0, %v641_v24, %v4639_v28 }
 0x1f5   :  { %v1290_v37 = vperm.slane %v1284_v62, %v4501_v18  ;;  %v652_v23 = vperm.slane %v644_v1, %v4490_v5  ;;  %v1299_v51 = vrot.slane %v1294_v10, 4  ;;  %v648_v22 = vperm.slane %v642_v7, %v4490_v5 }
 0x1f6   :  { %v1302_v41 = vsel %vm149_vm0, %v1294_v10, %v1301_v4  ;;  %v711_v53 = vrot.slane %v500_v12, 4  ;;  %v1297_v13 = vrot.slane %v1278_v59, 4  ;;  %v790_v49 = vsel %vm149_vm0, %v4829_v31, %v789_v47 }
 0x1f7   :  { %v1295_v60 = vrot.slane %v1290_v37, 4  ;;  %v1468_v48 = vpack.c.bf16 %v1302_v41, %v1302_v41  ;;  %v678_v63 = vsel %vm149_vm0, %v677_v42, %v652_v23  ;;  %v1300_v44 = vsel %vm149_vm0, %v1299_v51, %v1282_v39 }
 0x1f8   :  { %v666_v28 = vsel %vm149_vm0, %v665_v11, %v648_v22  ;;  %v667_v1 = vrot.slane %v648_v22, 4  ;;  %v679_v24 = vrot.slane %v652_v23, 4  ;;  %v1467_v43 = vpack.c.bf16 %v1300_v44, %v1300_v44 }
 0x1f9   :  { %v1296_v4 = vsel %vm149_vm0, %v1295_v60, %v1278_v59  ;;  %v2039_v12 = vsel %vm1977_vm2, %v1468_v48, 0  ;;  %v1298_v10 = vsel %vm149_vm0, %v1290_v37, %v1297_v13  ;;  %v672_v39 = vperm.slane %v666_v28, %v4501_v18  ;;  %v5023_v59 = vpop.permute.xlu2 %4042 }
 0x1fa   :  { %v1465_v62 = vpack.c.bf16 %v1296_v4, %v1296_v4  ;;  %2048 = vmatpush.bf16.xpose.msra.mxu1 %v2039_v12  ;;  %v1466_v7 = vpack.c.bf16 %v1298_v10, %v1298_v10  ;;  %v668_v42 = vsel %vm149_vm0, %v4907_v6, %v667_v1  ;;  %v2020_v51 = vsel %vm1977_vm2, %v1467_v43, 0 }
 0x1fb   :  { %v676_v11 = vperm.slane %v668_v42, %v4501_v18  ;;  %v680_v23 = vsel %vm149_vm0, %v4910_v38, %v679_v24  ;;  %v684_v60 = vperm.slane %v678_v63, %v4501_v18  ;;  %2029 = vmatpush.bf16.xpose.msrb.mxu0 %v2020_v51  ;;  %v689_v22 = vrot.slane %v672_v39, 4 }
 0x1fc   :  { %v1982_v37 = vsel %vm1977_vm2, %v1465_v62, 0  ;;  %v2001_v41 = vsel %vm1977_vm2, %v1466_v7, 0  ;;  %v688_v6 = vperm.slane %v680_v23, %v4501_v18  ;;  %v712_v44 = vsel %vm149_vm0, %v4915_v8, %v711_v53 }
 0x1fd   :  { %1991 = vmatpush.bf16.xpose.msra.mxu3 %v1982_v37  ;;  %v691_v48 = vrot.slane %v676_v11, 4  ;;  %v693_v13 = vrot.slane %v684_v60, 4  ;;  %v5031_v38 = vperm.slane %v710_v16, %v4490_v5  ;;  %v1373_v63 = vrot.slane %v4976_v15, 4 }
 0x1fe   :  { %v695_v28 = vrot.slane %v688_v6, 4  ;;  %v5035_v1 = vperm.slane %v712_v44, %v4490_v5  ;;  %v4045_v24 = vunpack.i.h.bf16 %v5023_v59  ;;  %v690_v43 = vsel %vm149_vm0, 0.0, %v689_v22 }
 0x1ff   :  { %v692_v4 = vsel %vm149_vm0, 0.0, %v691_v48  ;;  %v694_v12 = vsel %vm149_vm0, 0.0, %v693_v13  ;;  %v861_v8 = vsel %vm149_vm0, %v691_v48, %v672_v39  ;;  %v721_v51 = vrot.slane %v5031_v38, 4  ;;  %v1008_v13 = vpop.permute.xlu1 %1007 }
 0x200   :  { %v696_v16 = vsel %vm149_vm0, 0.0, %v695_v28  ;;  %v5044_v53 = vperm.slane %v861_v8, %v4490_v5  ;;  %v866_v10 = vrot.slane %v692_v4, 4  ;;  %v872_v62 = vsel %vm149_vm0, %v695_v28, %v684_v60 }
 0x201   :  { %v5048_v7 = vperm.slane %v872_v62, %v4490_v5  ;;  %v877_v42 = vrot.slane %v696_v16, 4  ;;  %v733_v11 = vrot.slane %v5035_v1, 4  ;;  %v5055_v39 = vrot.slane %v4045_v24, 4 }
 0x202   :  { %v867_v23 = vsel %vm149_vm0, %v866_v10, %v690_v43  ;;  %v6272_v37 = vunpack.i.l.bf16 %v5023_v59  ;;  %v759_v60 = vsel %vm149_vm0, %v758_v2, %v4824_v19  ;;  %v777_v43 = vrot.slane %v4816_v0, 4 }
 0x203   :  { %v878_v6 = vsel %vm149_vm0, %v877_v42, %v694_v12  ;;  %v763_v48 = vperm.slane %v759_v60, %v4490_v5  ;;  %v798_v2 = vperm.slane %v790_v49, %v4501_v18  ;;  %v787_v12 = vrot.slane %v4829_v31, 4 }
 0x204   :  { %v5069_v44 = vperm.slane %v878_v6, %v4490_v5  ;;  %v5079_v19 = vrot.slane %v6272_v37, 4  ;;  %v1193_v10 = vrot.slane %v1008_v13, 4  ;;  %v1196_v62 = vsel %vm149_vm0, %v1008_v13, %v1195_v3  ;;  %v4048_v6 = vpop.permute.xlu0 %4047 }
 0x205   :  { %2010 = vmatpush.bf16.xpose.msrb.mxu3 %v2001_v41  ;;  %v5063_v41 = vperm.slane %v867_v23, %v4490_v5  ;;  %v775_v4 = vrot.slane %v763_v48, 4  ;;  %v778_v16 = vsel %vm149_vm0, %v763_v48, %v777_v43  ;;  %v803_v42 = vrot.slane %v798_v2, 4 }
 0x206   :  { %v895_v8 = vrot.slane %v5069_v44, 4  ;;  %v786_v47 = vperm.slane %v778_v16, %v4501_v18  ;;  %v788_v60 = vsel %vm149_vm0, %v787_v12, %v4819_v52  ;;  %v1194_v3 = vsel %vm149_vm0, %v1193_v10, %v4641_v29 }
 0x207   :  { %v776_v23 = vsel %vm149_vm0, %v775_v4, %v4816_v0  ;;  %v5098_v48 = vperm.slane %v788_v60, %v4501_v18  ;;  %v1200_v0 = vperm.slane %v1194_v3, %v4490_v5  ;;  %v1204_v4 = vperm.slane %v1196_v62, %v4490_v5 }
 0x208   :  { %v5095_v49 = vperm.slane %v776_v23, %v4501_v18  ;;  %v804_v13 = vsel %vm149_vm0, %v803_v42, %v786_v47  ;;  %v805_v43 = vrot.slane %v786_v47, 4  ;;  %v5107_v52 = vsel %vm149_vm0, %v895_v8, %v5048_v7 }
 0x209   :  { %v971_v12 = vpack.c.bf16 %v804_v13, %v804_v13  ;;  %v799_v16 = vrot.slane %v5098_v48, 4  ;;  %v4050_v23 = vunpack.i.h.bf16 %v4048_v6  ;;  %v6282_v28 = vrot.slane %v4929_v26, 4 }
 0x20a   :  { %v806_v60 = vsel %vm149_vm0, %v798_v2, %v805_v43  ;;  %v1219_v10 = vrot.slane %v1200_v0, 4  ;;  %v6283_v47 = vrot.slane %v4948_v35, 4  ;;  %v1231_v13 = vrot.slane %v1204_v4, 4 }
 0x20b   :  { %v1218_v29 = vsel %vm149_vm0, %v6282_v28, %v1200_v0  ;;  %3927 = vmatmul.msk.bf16.vlgmr.msrb.gmra.mxu0 %vm1977_vm2, %v971_v12  ;;  %v800_v8 = vsel %vm149_vm0, %v799_v16, %v5095_v49  ;;  %v972_v62 = vpack.c.bf16 %v806_v60, %v806_v60  ;;  %v1577_v43 = vrot.slane %v4050_v23, 4 }
 0x20c   :  { %v1230_v42 = vsel %vm149_vm0, %v6283_v47, %v1204_v4  ;;  %v1224_v3 = vperm.slane %v1218_v29, %v4501_v18  ;;  %v969_v22 = vpack.c.bf16 %v800_v8, %v800_v8  ;;  %v1220_v2 = vsel %vm149_vm0, %v4929_v26, %v1219_v10 }
 0x20d   :  { %v1236_v28 = vperm.slane %v1230_v42, %v4501_v18  ;;  %3928 = vmatmul.msk.bf16.vlgmr.msra.gmra.mxu1 %vm1977_vm2, %v972_v62  ;;  %v1228_v0 = vperm.slane %v1220_v2, %v4501_v18  ;;  %v1232_v12 = vsel %vm149_vm0, %v4948_v35, %v1231_v13  ;;  %v6284_v16 = vrot.slane %v4658_v33, 4 }
 0x20e   :  { %v1241_v47 = vrot.slane %v1224_v3, 4  ;;  %3925 = vmatmul.msk.bf16.vlgmr.msra.gmra.mxu3 %vm1977_vm2, %v969_v22  ;;  %v1240_v4 = vperm.slane %v1232_v12, %v4501_v18  ;;  %v1578_v29 = vsel %vm149_vm0, %v1577_v43, %v4658_v33  ;;  %v801_v42 = vrot.slane %v5095_v49, 4 }
 0x20f   :  { %v1580_v60 = vsel %vm149_vm0, %v4050_v23, %v6284_v16  ;;  %v1245_v26 = vrot.slane %v1236_v28, 4  ;;  %v1243_v8 = vrot.slane %v1228_v0, 4  ;;  %v5140_v35 = vperm.slane %v1578_v29, %v4490_v5 }
 0x210   :  { %v5136_v10 = vperm.slane %v1580_v60, %v4490_v5  ;;  %v4049_v62 = vunpack.i.l.bf16 %v4048_v6  ;;  %v5143_v23 = vsel %vm149_vm0, 0.0, %v1241_v47  ;;  %v1247_v13 = vrot.slane %v1240_v4, 4 }
 0x211   :  { %v1246_v22 = vsel %vm149_vm0, 0.0, %v1245_v26  ;;  %v1307_v2 = vperm.slane %v4894_v56, %v4490_v5  ;;  %v5149_v33 = vsel %vm149_vm0, 0.0, %v1243_v8  ;;  %v5152_v43 = vsel %vm149_vm0, %v1243_v8, %v1224_v3 }
 0x212   :  { %v1521_v12 = vrot.slane %v4049_v62, 4  ;;  %v1248_v6 = vsel %vm149_vm0, 0.0, %v1247_v13  ;;  %v1422_v47 = vsel %vm149_vm0, %v1247_v13, %v1236_v28  ;;  %v6285_v60 = vrot.slane %v4660_v34, 4 }
 0x213   :  { %v5162_v56 = vperm.slane %v1422_v47, %v4490_v5  ;;  %v1427_v26 = vrot.slane %v1248_v6, 4  ;;  %v6286_v28 = vrot.slane %v4887_v36, 4  ;;  %v1327_v31 = vrot.slane %v1307_v2, 4  ;;  %v512_v47 = vpop.permute.xlu1 %511 }
 0x214   :  { %v1524_v4 = vsel %vm149_vm0, %v4049_v62, %v6285_v60  ;;  %v1522_v3 = vsel %vm149_vm0, %v1521_v12, %v4660_v34  ;;  %v6287_v62 = vrot.slane %v4904_v14, 4  ;;  %v697_v16 = vrot.slane %v512_v47, 4 }
 0x215   :  { %v5167_v29 = vperm.slane %v1524_v4, %v4490_v5  ;;  %v5170_v8 = vperm.slane %v1522_v3, %v4490_v5  ;;  %v1309_v13 = vsel %vm149_vm0, %v6286_v28, %v4890_v50  ;;  %v1428_v12 = vsel %vm149_vm0, %v1427_v26, %v1246_v22 }
 0x216   :  { %v1340_v6 = vsel %vm149_vm0, %v4919_v20, %v6287_v62  ;;  %v1313_v4 = vperm.slane %v1309_v13, %v4490_v5  ;;  %v5185_v3 = vperm.slane %v1428_v12, %v4490_v5  ;;  %v1337_v28 = vrot.slane %v4919_v20, 4 }
 0x217   :  { %v1348_v50 = vperm.slane %v1340_v6, %v4501_v18  ;;  %v6288_v34 = vrot.slane %v4650_v32, 4 }
 0x218   :  { %v1328_v62 = vsel %vm149_vm0, %v1313_v4, %v1327_v31  ;;  %v1325_v0 = vrot.slane %v1313_v4, 4  ;;  %v1338_v60 = vsel %vm149_vm0, %v1337_v28, %v4904_v14  ;;  %v698_v31 = vsel %vm149_vm0, %v697_v16, %v4650_v32 }
 0x219   :  { %v700_v22 = vsel %vm149_vm0, %v512_v47, %v6288_v34  ;;  %v1336_v13 = vperm.slane %v1328_v62, %v4501_v18  ;;  %v1353_v12 = vrot.slane %v1348_v50, 4  ;;  %v1344_v20 = vperm.slane %v1338_v60, %v4501_v18 }
 0x21a   :  { %v1326_v6 = vsel %vm149_vm0, %v1325_v0, %v1307_v2  ;;  %v708_v4 = vperm.slane %v700_v22, %v4490_v5  ;;  %v704_v62 = vperm.slane %v698_v31, %v4490_v5 }
 0x21b   :  { %v1354_v36 = vsel %vm149_vm0, %v1353_v12, %v1336_v13  ;;  %v1332_v47 = vperm.slane %v1326_v6, %v4501_v18  ;;  %v1355_v34 = vrot.slane %v1336_v13, 4  ;;  %v1349_v37 = vrot.slane %v1344_v20, 4 }
 0x21c   :  { %v1471_v26 = vpack.c.bf16 %v1354_v36, %v1354_v36  ;;  %v734_v14 = vsel %vm149_vm0, %v733_v11, %v708_v4  ;;  %v735_v2 = vrot.slane %v708_v4, 4  ;;  %v722_v32 = vsel %vm149_vm0, %v721_v51, %v704_v62 }
 0x21d   :  { %v1351_v0 = vrot.slane %v1332_v47, 4  ;;  %v1356_v60 = vsel %vm149_vm0, %v1348_v50, %v1355_v34  ;;  %v723_v16 = vrot.slane %v704_v62, 4  ;;  %v1350_v22 = vsel %vm149_vm0, %v1349_v37, %v1332_v47 }
 0x21e   :  { %v2096_v28 = vsel %vm1977_vm2, %v1471_v26, 0  ;;  %v1472_v13 = vpack.c.bf16 %v1356_v60, %v1356_v60  ;;  %v728_v36 = vperm.slane %v722_v32, %v4501_v18  ;;  %v1469_v12 = vpack.c.bf16 %v1350_v22, %v1350_v22 }
 0x21f   :  { %2105 = vmatpush.bf16.xpose.msra.mxu0 %v2096_v28  ;;  %v1352_v11 = vsel %vm149_vm0, %v1344_v20, %v1351_v0  ;;  %v724_v6 = vsel %vm149_vm0, %v5031_v38, %v723_v16  ;;  %v736_v50 = vsel %vm149_vm0, %v5035_v1, %v735_v2  ;;  %v740_v37 = vperm.slane %v734_v14, %v4501_v18 }
 0x220   :  { %v2115_v51 = vsel %vm1977_vm2, %v1472_v13, 0  ;;  %v1470_v31 = vpack.c.bf16 %v1352_v11, %v1352_v11  ;;  %v732_v26 = vperm.slane %v724_v6, %v4501_v18  ;;  %v2058_v4 = vsel %vm1977_vm2, %v1469_v12, 0 }
 0x221   :  { %2124 = vmatpush.bf16.xpose.msrb.mxu1 %v2115_v51  ;;  %v744_v47 = vperm.slane %v736_v50, %v4501_v18  ;;  %v745_v34 = vrot.slane %v728_v36, 4  ;;  %v811_v20 = vperm.slane %v4851_v61, %v4490_v5  ;;  %v1445_v38 = vrot.slane %v5185_v3, 4  ;;  %2067 = vmatpush.bf16.xpose.msrb.mxu2 %v2058_v4 }
 0x222   :  { %v2077_v1 = vsel %vm1977_vm2, %v1470_v31, 0  ;;  %v747_v62 = vrot.slane %v732_v26, 4  ;;  %v817_v2 = vperm.slane %v4873_v54, %v4490_v5  ;;  %v749_v14 = vrot.slane %v740_v37, 4 }
 0x223   :  { %2086 = vmatpush.bf16.xpose.msra.mxu3 %v2077_v1  ;;  %v751_v0 = vrot.slane %v744_v47, 4  ;;  %v831_v60 = vrot.slane %v811_v20, 4  ;;  %v6289_v32 = vrot.slane %v4879_v9, 4  ;;  %v746_v61 = vsel %vm149_vm0, 0.0, %v745_v34 }
 0x224   :  { %v748_v28 = vsel %vm149_vm0, 0.0, %v747_v62  ;;  %v915_v22 = vsel %vm149_vm0, %v747_v62, %v728_v36  ;;  %v829_v13 = vrot.slane %v817_v2, 4  ;;  %v750_v36 = vsel %vm149_vm0, 0.0, %v749_v14 }
 0x225   :  { %v842_v16 = vsel %vm149_vm0, %v6289_v32, %v4861_v30  ;;  %v752_v12 = vsel %vm149_vm0, 0.0, %v751_v0  ;;  %v5241_v54 = vperm.slane %v915_v22, %v4490_v5  ;;  %v920_v11 = vrot.slane %v748_v28, 4 }
 0x226   :  { %v926_v6 = vsel %vm149_vm0, %v751_v0, %v740_v37  ;;  %v931_v51 = vrot.slane %v752_v12, 4  ;;  %v830_v31 = vsel %vm149_vm0, %v829_v13, %v811_v20  ;;  %v5249_v26 = vperm.slane %v842_v16, %v4501_v18 }
 0x227   :  { %v5245_v50 = vperm.slane %v926_v6, %v4490_v5  ;;  %v921_v4 = vsel %vm149_vm0, %v920_v11, %v746_v61  ;;  %v5254_v47 = vperm.slane %v830_v31, %v4501_v18  ;;  %v832_v34 = vsel %vm149_vm0, %v817_v2, %v831_v60 }
 0x228   :  { %v5258_v37 = vperm.slane %v921_v4, %v4490_v5  ;;  %v932_v1 = vsel %vm149_vm0, %v931_v51, %v750_v36  ;;  %v939_v62 = vrot.slane %v5241_v54, 4  ;;  %v853_v20 = vrot.slane %v5249_v26, 4 }
 0x229   :  { %v5264_v0 = vperm.slane %v932_v1, %v4490_v5  ;;  %v951_v14 = vrot.slane %v5245_v50, 4  ;;  %v855_v32 = vrot.slane %v5254_v47, 4  ;;  %v6290_v16 = vrot.slane %v4861_v30, 4 }
 0x22a   :  { %v854_v60 = vsel %vm149_vm0, %v853_v20, %v5254_v47  ;;  %v840_v61 = vperm.slane %v832_v34, %v4501_v18  ;;  %v6291_v22 = vrot.slane %v4962_v27, 4  ;;  %v937_v12 = vrot.slane %v5258_v37, 4 }
 0x22b   :  { %v844_v2 = vsel %vm149_vm0, %v4879_v9, %v6290_v16  ;;  %v973_v11 = vpack.c.bf16 %v854_v60, %v854_v60  ;;  %v6292_v30 = vrot.slane %v4970_v58, 4  ;;  %v1368_v9 = vsel %vm149_vm0, %v4964_v25, %v4962_v27  ;;  %v4053_v25 = vpop.permute.xlu1 %4052 }
 0x22c   :  { %v852_v28 = vperm.slane %v844_v2, %v4501_v18  ;;  %v1190_v13 = vsel %vm149_vm0, 0.0, %v6291_v22  ;;  %v1372_v36 = vperm.slane %v1368_v9, %v4490_v5  ;;  %v949_v34 = vrot.slane %v5264_v0, 4 }
 0x22d   :  { %v1363_v6 = vsel %vm149_vm0, %v6292_v30, %v4983_v46  ;;  %v1374_v4 = vsel %vm149_vm0, %v1373_v63, %v1190_v13  ;;  %3929 = vmatmul.msk.bf16.vlgmr.msrb.gmra.mxu2 %vm1977_vm2, %v973_v11  ;;  %v1381_v46 = vrot.slane %v4979_v17, 4  ;;  %v802_v27 = vsel %vm149_vm0, %v5098_v48, %v801_v42 }
 0x22e   :  { %v857_v51 = vrot.slane %v852_v28, 4  ;;  %v1367_v31 = vperm.slane %v1363_v6, %v4490_v5  ;;  %v1378_v58 = vperm.slane %v1374_v4, %v4490_v5  ;;  %v1393_v20 = vrot.slane %v1372_v36, 4 }
 0x22f   :  { %v970_v15 = vpack.c.bf16 %v802_v27, %v802_v27  ;;  %v859_v16 = vrot.slane %v840_v61, 4  ;;  %v4055_v48 = vunpack.i.h.bf16 %v4053_v25 }
 0x230   :  { %v858_v1 = vsel %vm149_vm0, %v857_v51, %v840_v61  ;;  %v1382_v2 = vsel %vm149_vm0, %v1367_v31, %v1381_v46  ;;  %v1379_v60 = vrot.slane %v1367_v31, 4  ;;  %v1391_v22 = vrot.slane %v1378_v58, 4 }
 0x231   :  { %v975_v63 = vpack.c.bf16 %v858_v1, %v858_v1  ;;  %v1390_v13 = vperm.slane %v1382_v2, %v4501_v18  ;;  %v1394_v11 = vsel %vm149_vm0, %v1378_v58, %v1393_v20  ;;  %3926 = vmatmul.msk.bf16.vlgmr.msrb.gmra.mxu3 %vm1977_vm2, %v970_v15  ;;  %v860_v49 = vsel %vm149_vm0, %v852_v28, %v859_v16 }
 0x232   :  { %v1402_v42 = vperm.slane %v1394_v11, %v4501_v18  ;;  %v976_v30 = vpack.c.bf16 %v860_v49, %v860_v49  ;;  %v1380_v61 = vsel %vm149_vm0, %v1379_v60, %v4979_v17  ;;  %v1392_v6 = vsel %vm149_vm0, %v1391_v22, %v1372_v36 }
 0x233   :  { %3931 = vmatmul.msk.bf16.vlgmr.msra.gmra.mxu0 %vm1977_vm2, %v975_v63  ;;  %v1409_v9 = vrot.slane %v1390_v13, 4  ;;  %v1386_v51 = vperm.slane %v1380_v61, %v4501_v18  ;;  %v1398_v31 = vperm.slane %v1392_v6, %v4501_v18  ;;  %v1589_v4 = vrot.slane %v4055_v48, 4 }
 0x234   :  { %v5315_v28 = vsel %vm149_vm0, %v949_v34, %v5245_v50  ;;  %3932 = vmatmul.msk.bf16.vlgmr.msrb.gmra.mxu1 %vm1977_vm2, %v976_v30  ;;  %v1407_v58 = vrot.slane %v1402_v42, 4  ;;  %v4054_v46 = vunpack.i.l.bf16 %v4053_v25  ;;  %v1592_v27 = vsel %vm149_vm0, %v4055_v48, %v5055_v39 }
 0x235   :  { %v1410_v17 = vsel %vm149_vm0, %v1402_v42, %v1409_v9  ;;  %v1405_v36 = vrot.slane %v1386_v51, 4  ;;  %v1403_v1 = vrot.slane %v1398_v31, 4  ;;  %v1590_v20 = vsel %vm149_vm0, %v1589_v4, %v4045_v24 }
 0x236   :  { %v1476_v15 = vpack.c.bf16 %v1410_v17, %v1410_v17  ;;  %v1408_v16 = vsel %vm149_vm0, %v1407_v58, %v1390_v13  ;;  %v1533_v34 = vrot.slane %v4054_v46, 4  ;;  %v1536_v63 = vsel %vm149_vm0, %v4054_v46, %v5079_v19 }
 0x237   :  { %v1406_v25 = vsel %vm149_vm0, %v1398_v31, %v1405_v36  ;;  %v1475_v2 = vpack.c.bf16 %v1408_v16, %v1408_v16  ;;  %v1404_v39 = vsel %vm149_vm0, %v1403_v1, %v1386_v51  ;;  %v1544_v60 = vperm.slane %v1536_v63, %v4490_v5 }
 0x238   :  { %v2191_v22 = vsel %vm1977_vm2, %v1476_v15, 0  ;;  %v1474_v11 = vpack.c.bf16 %v1406_v25, %v1406_v25  ;;  %v1473_v49 = vpack.c.bf16 %v1404_v39, %v1404_v39  ;;  %v6293_v24 = vunpack.i.l.bf16 %v5023_v59 }
 0x239   :  { %2200 = vmatpush.bf16.xpose.msra.mxu1 %v2191_v22  ;;  %v2172_v13 = vsel %vm1977_vm2, %v1475_v2, 0  ;;  %v1557_v42 = vrot.slane %v1544_v60, 4  ;;  %v6294_v30 = vrot.slane %v5167_v29, 4  ;;  %v1596_v59 = vperm.slane %v1590_v20, %v4490_v5 }
 0x23a   :  { %v1534_v48 = vsel %vm149_vm0, %v1533_v34, %v6293_v24  ;;  %v2153_v6 = vsel %vm1977_vm2, %v1474_v11, 0  ;;  %2181 = vmatpush.bf16.xpose.msrb.mxu0 %v2172_v13  ;;  %v2134_v9 = vsel %vm1977_vm2, %v1473_v49, 0  ;;  %v6295_v4 = vrot.slane %v5170_v8, 4 }
 0x23b   :  { %v1540_v19 = vperm.slane %v1534_v48, %v4490_v5  ;;  %v1560_v61 = vsel %vm149_vm0, %v1544_v60, %v6294_v30  ;;  %2162 = vmatpush.bf16.xpose.msrb.mxu3 %v2153_v6  ;;  %2143 = vmatpush.bf16.xpose.msra.mxu2 %v2134_v9  ;;  %v1558_v46 = vsel %vm149_vm0, %v1557_v42, %v5167_v29  ;;  %v1601_v16 = vrot.slane %v1596_v59, 4 }
 0x23c   :  { %v1568_v51 = vperm.slane %v1560_v61, %v4501_v18  ;;  %v1600_v17 = vperm.slane %v1592_v27, %v4490_v5  ;;  %v1564_v1 = vperm.slane %v1558_v46, %v4501_v18  ;;  %v6296_v34 = vrot.slane %v5140_v35, 4 }
 0x23d   :  { %v1545_v31 = vrot.slane %v1540_v19, 4  ;;  %v1548_v58 = vsel %vm149_vm0, %v1540_v19, %v6295_v4  ;;  %v6297_v2 = vrot.slane %v5136_v10, 4  ;;  %v6298_v42 = vrot.slane %v5063_v41, 4 }
 0x23e   :  { %v1556_v36 = vperm.slane %v1548_v58, %v4501_v18  ;;  %v1575_v15 = vrot.slane %v1568_v51, 4  ;;  %v1604_v63 = vsel %vm149_vm0, %v1596_v59, %v6296_v34  ;;  %v1613_v25 = vrot.slane %v1600_v17, 4 }
 0x23f   :  { %v1546_v20 = vsel %vm149_vm0, %v1545_v31, %v5170_v8  ;;  %v1616_v29 = vsel %vm149_vm0, %v1600_v17, %v6297_v2  ;;  %v1573_v60 = vrot.slane %v1564_v1, 4  ;;  %v1602_v8 = vsel %vm149_vm0, %v1601_v16, %v5140_v35 }
 0x240   :  { %v5360_v27 = vperm.slane %v1546_v20, %v4501_v18  ;;  %v5362_v39 = vrot.slane %v1556_v36, 4  ;;  %v5365_v22 = vsel %vm149_vm0, 0.0, %v1575_v15  ;;  %v1612_v11 = vperm.slane %v1604_v63, %v4501_v18 }
 0x241   :  { %v1614_v49 = vsel %vm149_vm0, %v1613_v25, %v5136_v10  ;;  %v1624_v24 = vperm.slane %v1616_v29, %v4501_v18  ;;  %v5379_v19 = vperm.slane %v1602_v8, %v4501_v18  ;;  %v884_v35 = vsel %vm149_vm0, %v6298_v42, %v5044_v53 }
 0x242   :  { %v1569_v48 = vrot.slane %v5360_v27, 4  ;;  %v5376_v13 = vsel %vm149_vm0, 0.0, %v5362_v39  ;;  %v5386_v30 = vsel %vm149_vm0, 0.0, %v1573_v60  ;;  %v1620_v10 = vperm.slane %v1614_v49, %v4501_v18 }
 0x243   :  { %v5389_v61 = vrot.slane %v1612_v11, 4  ;;  %v1631_v6 = vrot.slane %v1624_v24, 4  ;;  %v1625_v9 = vrot.slane %v5379_v19, 4  ;;  %v1750_v51 = vrot.slane %v5376_v13, 4 }
 0x244   :  { %v1756_v59 = vsel %vm149_vm0, %v1575_v15, %v1564_v1  ;;  %v1761_v31 = vrot.slane %v5365_v22, 4  ;;  %v1629_v58 = vrot.slane %v1620_v10, 4  ;;  %v5403_v17 = vperm.slane %v884_v35, %v4501_v18 }
 0x245   :  { %v5397_v4 = vsel %vm149_vm0, 0.0, %v5389_v61  ;;  %v5400_v46 = vsel %vm149_vm0, 0.0, %v1631_v6  ;;  %v5406_v36 = vperm.slane %v1756_v59, %v4490_v5  ;;  %v5410_v1 = vsel %vm149_vm0, %v1631_v6, %v1620_v10 }
 0x246   :  { %v1804_v16 = vrot.slane %v5397_v4, 4  ;;  %v5414_v15 = vperm.slane %v5107_v52, %v4501_v18  ;;  %v5417_v20 = vsel %vm149_vm0, 0.0, %v1629_v58  ;;  %v1815_v34 = vrot.slane %v5400_v46, 4 }
 0x247   :  { %v6299_v63 = vrot.slane %v5044_v53, 4  ;;  %v6300_v2 = vrot.slane %v5048_v7, 4  ;;  %v1415_v11 = vperm.slane %v5152_v43, %v4490_v5  ;;  %v6301_v53 = vrot.slane %v5149_v33, 4 }
 0x248   :  { %v907_v60 = vrot.slane %v5414_v15, 4  ;;  %v1446_v43 = vsel %vm149_vm0, %v1445_v38, %v5162_v56 }
 0x249   :  { %v886_v25 = vsel %vm149_vm0, %v5063_v41, %v6299_v63  ;;  %v898_v29 = vsel %vm149_vm0, %v5069_v44, %v6300_v2  ;;  %v1417_v49 = vsel %vm149_vm0, %v6301_v53, %v5143_v23  ;;  %v6302_v41 = vrot.slane %v5162_v56, 4 }
 0x24a   :  { %v894_v52 = vperm.slane %v886_v25, %v4501_v18  ;;  %v906_v8 = vperm.slane %v898_v29, %v4501_v18  ;;  %v856_v44 = vsel %vm149_vm0, %v5249_v26, %v855_v32  ;;  %v908_v33 = vsel %vm149_vm0, %v907_v60, %v5403_v17 }
 0x24b   :  { %v1448_v7 = vsel %vm149_vm0, %v5185_v3, %v6302_v41  ;;  %v1421_v23 = vperm.slane %v1417_v49, %v4490_v5  ;;  %v1435_v42 = vrot.slane %v1415_v11, 4  ;;  %v977_v35 = vpack.c.bf16 %v908_v33, %v908_v33 }
 0x24c   :  { %v911_v24 = vrot.slane %v906_v8, 4  ;;  %v1456_v10 = vperm.slane %v1448_v7, %v4501_v18  ;;  %v974_v6 = vpack.c.bf16 %v856_v44, %v856_v44  ;;  %v913_v47 = vrot.slane %v894_v52, 4 }
 0x24d   :  { %v1436_v26 = vsel %vm149_vm0, %v1421_v23, %v1435_v42  ;;  %v1433_v32 = vrot.slane %v1421_v23, 4  ;;  %v1452_v3 = vperm.slane %v1446_v43, %v4501_v18  ;;  %3933 = vmatmul.msk.bf16.vlgmr.msra.gmra.mxu2 %vm1977_vm2, %v977_v35  ;;  %v938_v60 = vsel %vm149_vm0, %v937_v12, %v5241_v54 }
 0x24e   :  { %v912_v59 = vsel %vm149_vm0, %v911_v24, %v894_v52  ;;  %v1444_v38 = vperm.slane %v1436_v26, %v4501_v18  ;;  %v1461_v58 = vrot.slane %v1456_v10, 4  ;;  %3930 = vmatmul.msk.bf16.vlgmr.msra.gmra.mxu3 %vm1977_vm2, %v974_v6  ;;  %v914_v63 = vsel %vm149_vm0, %v906_v8, %v913_v47 }
 0x24f   :  { %v979_v56 = vpack.c.bf16 %v912_v59, %v912_v59  ;;  %v980_v25 = vpack.c.bf16 %v914_v63, %v914_v63  ;;  %v1434_v2 = vsel %vm149_vm0, %v1433_v32, %v1415_v11  ;;  %v1457_v29 = vrot.slane %v1452_v3, 4 }
 0x250   :  { %v1462_v52 = vsel %vm149_vm0, %v1461_v58, %v1444_v38  ;;  %v1440_v53 = vperm.slane %v1434_v2, %v4501_v18  ;;  %v1463_v49 = vrot.slane %v1444_v38, 4  ;;  %v5469_v41 = vperm.slane %v938_v60, %v4501_v18 }
 0x251   :  { %3935 = vmatmul.msk.bf16.vlgmr.msrb.gmra.mxu0 %vm1977_vm2, %v979_v56  ;;  %v1479_v8 = vpack.c.bf16 %v1462_v52, %v1462_v52  ;;  %3936 = vmatmul.msk.bf16.vlgmr.msra.gmra.mxu1 %vm1977_vm2, %v980_v25  ;;  %v5474_v11 = vperm.slane %v5315_v28, %v4501_v18  ;;  %v940_v12 = vsel %vm149_vm0, %v5258_v37, %v939_v62  ;;  %v1570_v62 = vsel %vm149_vm0, 0.0, %v1569_v48 }
 0x252   :  { %v952_v7 = vsel %vm149_vm0, %v5264_v0, %v951_v14  ;;  %v1458_v44 = vsel %vm149_vm0, %v1457_v29, %v1440_v53  ;;  %v1464_v43 = vsel %vm149_vm0, %v1456_v10, %v1463_v49  ;;  %v1459_v33 = vrot.slane %v1440_v53, 4 }
 0x253   :  { %v948_v24 = vperm.slane %v940_v12, %v4501_v18  ;;  %v2248_v28 = vsel %vm1977_vm2, %v1479_v8, 0  ;;  %v1477_v23 = vpack.c.bf16 %v1458_v44, %v1458_v44  ;;  %v1480_v42 = vpack.c.bf16 %v1464_v43, %v1464_v43 }
 0x254   :  { %v961_v54 = vrot.slane %v5474_v11, 4  ;;  %2257 = vmatpush.bf16.xpose.msra.mxu0 %v2248_v28  ;;  %v1460_v37 = vsel %vm149_vm0, %v1452_v3, %v1459_v33  ;;  %v960_v50 = vperm.slane %v952_v7, %v4501_v18  ;;  %v1745_v0 = vsel %vm149_vm0, %v5362_v39, %v5360_v27 }
 0x255   :  { %v2210_v14 = vsel %vm1977_vm2, %v1477_v23, 0  ;;  %v2267_v35 = vsel %vm1977_vm2, %v1480_v42, 0  ;;  %v1478_v10 = vpack.c.bf16 %v1460_v37, %v1460_v37  ;;  %v5503_v47 = vperm.slane %v5410_v1, %v4490_v5 }
 0x256   :  { %v962_v6 = vsel %vm149_vm0, %v961_v54, %v5469_v41  ;;  %2219 = vmatpush.bf16.xpose.msrb.mxu2 %v2210_v14  ;;  %2276 = vmatpush.bf16.xpose.msrb.mxu1 %v2267_v35  ;;  %v965_v59 = vrot.slane %v960_v50, 4  ;;  %v1749_v48 = vperm.slane %v1745_v0, %v4490_v5  ;;  %v1751_v27 = vsel %vm149_vm0, %v1750_v51, %v1570_v62 }
 0x257   :  { %v2229_v39 = vsel %vm1977_vm2, %v1478_v10, 0  ;;  %v1755_v26 = vperm.slane %v1751_v27, %v4490_v5  ;;  %v1762_v32 = vsel %vm149_vm0, %v1761_v31, %v5386_v30  ;;  %v1781_v1 = vrot.slane %v5406_v36, 4 }
 0x258   :  { %2238 = vmatpush.bf16.xpose.msra.mxu3 %v2229_v39  ;;  %v981_v3 = vpack.c.bf16 %v962_v6, %v962_v6  ;;  %v966_v56 = vsel %vm149_vm0, %v965_v59, %v948_v24  ;;  %v1766_v38 = vperm.slane %v1762_v32, %v4490_v5  ;;  %v1769_v13 = vrot.slane %v1749_v48, 4 }
 0x259   :  { %v909_v51 = vrot.slane %v5403_v17, 4  ;;  %v967_v58 = vrot.slane %v948_v24, 4  ;;  %v1626_v63 = vsel %vm149_vm0, 0.0, %v1625_v9  ;;  %v1799_v31 = vsel %vm149_vm0, %v5389_v61, %v5379_v19 }
 0x25a   :  { %v1770_v22 = vsel %vm149_vm0, %v1755_v26, %v1769_v13  ;;  %v1782_v30 = vsel %vm149_vm0, %v1766_v38, %v1781_v1  ;;  %v1805_v25 = vsel %vm149_vm0, %v1804_v16, %v1626_v63  ;;  %v983_v2 = vpack.c.bf16 %v966_v56, %v966_v56 }
 0x25b   :  { %v1778_v17 = vperm.slane %v1770_v22, %v4501_v18  ;;  %v1790_v29 = vperm.slane %v1782_v30, %v4501_v18  ;;  %v910_v9 = vsel %vm149_vm0, %v5414_v15, %v909_v51  ;;  %v968_v52 = vsel %vm149_vm0, %v960_v50, %v967_v58 }
 0x25c   :  { %v978_v60 = vpack.c.bf16 %v910_v9, %v910_v9  ;;  %v1803_v53 = vperm.slane %v1799_v31, %v4490_v5  ;;  %v1809_v49 = vperm.slane %v1805_v25, %v4490_v5  ;;  %v1816_v61 = vsel %vm149_vm0, %v1815_v34, %v5417_v20 }
 0x25d   :  { %v1795_v19 = vrot.slane %v1790_v29, 4  ;;  %v1835_v4 = vrot.slane %v5503_v47, 4  ;;  %v1767_v16 = vrot.slane %v1755_v26, 4  ;;  %3937 = vmatmul.msk.bf16.vlgmr.msrb.gmra.mxu2 %vm1977_vm2, %v981_v3  ;;  %v1820_v15 = vperm.slane %v1816_v61, %v4490_v5 }
 0x25e   :  { %3934 = vmatmul.msk.bf16.vlgmr.msrb.gmra.mxu3 %vm1977_vm2, %v978_v60  ;;  %v1823_v8 = vrot.slane %v1803_v53, 4  ;;  %v1779_v12 = vrot.slane %v1766_v38, 4  ;;  %v1797_v7 = vrot.slane %v1778_v17, 4  ;;  %v984_v43 = vpack.c.bf16 %v968_v52, %v968_v52 }
 0x25f   :  { %v1796_v44 = vsel %vm149_vm0, %v1795_v19, %v1778_v17  ;;  %v1768_v33 = vsel %vm149_vm0, %v1767_v16, %v1749_v48  ;;  %v1821_v46 = vrot.slane %v1809_v49, 4  ;;  %v1836_v24 = vsel %vm149_vm0, %v1820_v15, %v1835_v4 }
 0x260   :  { %v1963_v20 = vpack.c.bf16 %v1796_v44, %v1796_v44  ;;  %v1824_v34 = vsel %vm149_vm0, %v1809_v49, %v1823_v8  ;;  %v1774_v28 = vperm.slane %v1768_v33, %v4501_v18  ;;  %v1844_v42 = vperm.slane %v1836_v24, %v4501_v18 }
 0x261   :  { %3939 = vmatmul.msk.bf16.vlgmr.msra.gmra.mxu0 %vm1977_vm2, %v983_v2  ;;  %3940 = vmatmul.msk.bf16.vlgmr.msrb.gmra.mxu1 %vm1977_vm2, %v984_v43  ;;  %v1832_v23 = vperm.slane %v1824_v34, %v4501_v18  ;;  %v1780_v54 = vsel %vm149_vm0, %v1779_v12, %v5406_v36  ;;  %v1798_v37 = vsel %vm149_vm0, %v1790_v29, %v1797_v7  ;;  %v1833_v6 = vrot.slane %v1820_v15, 4 }
 0x262   :  { %v2533_v50 = vsel %vm2493_vm3, %v1963_v20, 0  ;;  %v1786_v62 = vperm.slane %v1780_v54, %v4501_v18  ;;  %v1964_v0 = vpack.c.bf16 %v1798_v37, %v1798_v37  ;;  %v1822_v14 = vsel %vm149_vm0, %v1821_v46, %v1803_v53  ;;  %v5593_v46 = vpop.f32.mrf.mxu2 }
 0x263   :  { %2542 = vmatpush.bf16.msrb.mxu0 %v2533_v50  ;;  %v1849_v35 = vrot.slane %v1844_v42, 4  ;;  %v1828_v10 = vperm.slane %v1822_v14, %v4501_v18  ;;  %v1851_v59 = vrot.slane %v1832_v23, 4  ;;  %v1793_v39 = vrot.slane %v1774_v28, 4 }
 0x264   :  { %v1791_v48 = vrot.slane %v1786_v62, 4  ;;  %v2552_v27 = vsel %vm2493_vm3, %v1964_v0, 0  ;;  %v1834_v26 = vsel %vm149_vm0, %v1833_v6, %v5503_v47  ;;  %v963_v1 = vrot.slane %v5469_v41, 4 }
 0x265   :  { %v1850_v36 = vsel %vm149_vm0, %v1849_v35, %v1832_v23  ;;  %2561 = vmatpush.bf16.msra.mxu1 %v2552_v27  ;;  %v1852_v32 = vsel %vm149_vm0, %v1844_v42, %v1851_v59  ;;  %v1840_v38 = vperm.slane %v1834_v26, %v4501_v18  ;;  %v1794_v58 = vsel %vm149_vm0, %v1786_v62, %v1793_v39 }
 0x266   :  { %v1967_v3 = vpack.c.bf16 %v1850_v36, %v1850_v36  ;;  %v1792_v56 = vsel %vm149_vm0, %v1791_v48, %v1774_v28  ;;  %v1968_v13 = vpack.c.bf16 %v1852_v32, %v1852_v32  ;;  %v1847_v63 = vrot.slane %v1828_v10, 4 }
 0x267   :  { %v1961_v51 = vpack.c.bf16 %v1792_v56, %v1792_v56  ;;  %v1845_v30 = vrot.slane %v1840_v38, 4  ;;  %v1962_v47 = vpack.c.bf16 %v1794_v58, %v1794_v58  ;;  %v964_v41 = vsel %vm149_vm0, %v5474_v11, %v963_v1 }
 0x268   :  { %v2609_v22 = vsel %vm2493_vm3, %v1967_v3, 0  ;;  %v2628_v31 = vsel %vm2493_vm3, %v1968_v13, 0  ;;  %v1848_v2 = vsel %vm149_vm0, %v1840_v38, %v1847_v63  ;;  %v982_v52 = vpack.c.bf16 %v964_v41, %v964_v41 }
 0x269   :  { %2618 = vmatpush.bf16.msra.mxu0 %v2609_v22  ;;  %v2495_v25 = vsel %vm2493_vm3, %v1961_v51, 0  ;;  %2637 = vmatpush.bf16.msrb.mxu1 %v2628_v31  ;;  %v1846_v17 = vsel %vm149_vm0, %v1845_v30, %v1828_v10  ;;  %v2514_v29 = vsel %vm2493_vm3, %v1962_v47, 0  ;;  %v1966_v9 = vpack.c.bf16 %v1848_v2, %v1848_v2 }
 0x26a   :  { %2504 = vmatpush.bf16.msra.mxu2 %v2495_v25  ;;  %v1965_v60 = vpack.c.bf16 %v1846_v17, %v1846_v17  ;;  %2523 = vmatpush.bf16.msrb.mxu3 %v2514_v29 }
 0x26b   :  { %v2590_v49 = vsel %vm2493_vm3, %v1966_v9, 0 }
 0x26c   :  { %v2571_v53 = vsel %vm2493_vm3, %v1965_v60, 0 }
 0x26e   :  { %2580 = vmatpush.bf16.msrb.mxu2 %v2571_v53  ;;  %3938 = vmatmul.msk.bf16.vlgmr.msra.gmra.mxu3 %vm1977_vm2, %v982_v52 }
 0x26f   :  { %2599 = vmatpush.bf16.msra.mxu3 %v2590_v49 }
 0x288   :  { %v2031_v11 = vpop.f32.mrf.mxu0 }
 0x289   :  { %v5581_v19 = vmul.f32 0.35355338, %v2031_v11 }
 0x28a   :  { %v2050_v61 = vpop.f32.mrf.mxu1 }
 0x28b   :  { %v2304_v4 = vsel %vm1977_vm2, %v5581_v19, -inf  ;;  %v5585_v16 = vmul.f32 0.35355338, %v2050_v61 }
 0x28c   :  { %2305 = vmax.xlane.f32.xlu2 %v2304_v4 }
 0x28d   :  { %v2307_v44 = vsel %vm1977_vm2, %v5585_v16, -inf }
 0x290   :  { %v2033_v15 = vpop.f32.mrf.mxu0 }
 0x291   :  { %v1993_v8 = vpop.f32.mrf.mxu3 }
 0x292   :  { %v5587_v12 = vmul.f32 0.35355338, %v1993_v8  ;;  %v2052_v7 = vpop.f32.mrf.mxu1 }
 0x294   :  { %v2298_v43 = vsel %vm1977_vm2, %v5587_v12, -inf  ;;  %2308 = vmax.xlane.f32.xlu2 %v2307_v44 }
 0x295   :  { %2299 = vmax.xlane.f32.xlu0 %v2298_v43 }
 0x299   :  { %v1995_v33 = vpop.f32.mrf.mxu3 }
 0x2b0   :  { %v2107_v20 = vpop.f32.mrf.mxu0  ;;  %v2069_v28 = vpop.f32.mrf.mxu2 }
 0x2b1   :  { %v5595_v34 = vmul.f32 0.35355338, %v2107_v20  ;;  %v2126_v24 = vpop.f32.mrf.mxu1  ;;  %v5599_v42 = vmul.f32 0.35355338, %v2069_v28 }
 0x2b2   :  { %v5607_v14 = vmul.f32 0.35355338, %v2126_v24 }
 0x2b3   :  { %v2316_v23 = vsel %vm1977_vm2, %v5595_v34, -inf  ;;  %v2310_v37 = vsel %vm1977_vm2, %v5599_v42, -inf }
 0x2b4   :  { %2317 = vmax.xlane.f32.xlu2 %v2316_v23  ;;  %v2012_v54 = vpop.f32.mrf.mxu3  ;;  %2311 = vmax.xlane.f32.xlu0 %v2310_v37  ;;  %v2319_v59 = vsel %vm1977_vm2, %v5607_v14, -inf }
 0x2b5   :  { %v5603_v50 = vmul.f32 0.35355338, %v2012_v54 }
 0x2b7   :  { %v2301_v0 = vsel %vm1977_vm2, %v5603_v50, -inf }
 0x2b8   :  { %v2109_v62 = vpop.f32.mrf.mxu0  ;;  %2302 = vmax.xlane.f32.xlu1 %v2301_v0  ;;  %v2071_v10 = vpop.f32.mrf.mxu2 }
 0x2b9   :  { %v2128_v35 = vpop.f32.mrf.mxu1 }
 0x2bc   :  { %v2014_v6 = vpop.f32.mrf.mxu3  ;;  %2320 = vmax.xlane.f32.xlu0 %v2319_v59 }
 0x2ce   :  { %v2183_v48 = vpop.f32.mrf.mxu0  ;;  %v2202_v39 = vpop.f32.mrf.mxu1 }
 0x2cf   :  { %v5611_v27 = vmul.f32 0.35355338, %v2183_v48  ;;  %v5613_v36 = vmul.f32 0.35355338, %v2202_v39 }
 0x2d0   :  { %v2145_v1 = vpop.f32.mrf.mxu2 }
 0x2d1   :  { %v2328_v26 = vsel %vm1977_vm2, %v5611_v27, -inf  ;;  %v2331_v32 = vsel %vm1977_vm2, %v5613_v36, -inf  ;;  %v2088_v3 = vpop.f32.mrf.mxu3  ;;  %v5619_v56 = vmul.f32 0.35355338, %v2145_v1 }
 0x2d2   :  { %2329 = vmax.xlane.f32.xlu0 %v2328_v26  ;;  %2332 = vmax.xlane.f32.xlu2 %v2331_v32  ;;  %v5623_v58 = vmul.f32 0.35355338, %v2088_v3 }
 0x2d3   :  { %v2322_v38 = vsel %vm1977_vm2, %v5619_v56, -inf }
 0x2d4   :  { %2323 = vmax.xlane.f32.xlu1 %v2322_v38  ;;  %v2313_v30 = vsel %vm1977_vm2, %v5623_v58, -inf }
 0x2d6   :  { %v2185_v13 = vpop.f32.mrf.mxu0  ;;  %v2204_v51 = vpop.f32.mrf.mxu1 }
 0x2d8   :  { %v2147_v63 = vpop.f32.mrf.mxu2 }
 0x2d9   :  { %v2090_v22 = vpop.f32.mrf.mxu3 }
 0x2dc   :  { %2314 = vmax.xlane.f32.xlu1 %v2313_v30 }
 0x2de   :  { %v2259_v31 = vpop.f32.mrf.mxu0  ;;  %v2278_v25 = vpop.f32.mrf.mxu1 }
 0x2df   :  { %v5627_v47 = vmul.f32 0.35355338, %v2259_v31  ;;  %v5633_v9 = vmul.f32 0.35355338, %v2278_v25 }
 0x2e0   :  { %v2221_v2 = vpop.f32.mrf.mxu2 }
 0x2e1   :  { %v2340_v41 = vsel %vm1977_vm2, %v5627_v47, -inf  ;;  %v2164_v17 = vpop.f32.mrf.mxu3  ;;  %v5631_v29 = vmul.f32 0.35355338, %v2221_v2  ;;  %v2343_v11 = vsel %vm1977_vm2, %v5633_v9, -inf }
 0x2e2   :  { %2341 = vmax.xlane.f32.xlu2 %v2340_v41  ;;  %v5637_v49 = vmul.f32 0.35355338, %v2164_v17 }
 0x2e3   :  { %v2334_v60 = vsel %vm1977_vm2, %v5631_v29, -inf }
 0x2e4   :  { %2335 = vmax.xlane.f32.xlu1 %v2334_v60  ;;  %v2325_v15 = vsel %vm1977_vm2, %v5637_v49, -inf }
 0x2e6   :  { %v2261_v52 = vpop.f32.mrf.mxu0  ;;  %v2280_v53 = vpop.f32.mrf.mxu1 }
 0x2e8   :  { %v2223_v61 = vpop.f32.mrf.mxu2 }
 0x2e9   :  { %v2166_v4 = vpop.f32.mrf.mxu3 }
 0x2ea   :  { %2344 = vmax.xlane.f32.xlu2 %v2343_v11 }
 0x2ec   :  { %2326 = vmax.xlane.f32.xlu1 %v2325_v15 }
 0x2f1   :  { %v2240_v8 = vpop.f32.mrf.mxu3 }
 0x2f2   :  { %v5643_v7 = vmul.f32 0.35355338, %v2240_v8 }
 0x2f4   :  { %v2337_v44 = vsel %vm1977_vm2, %v5643_v7, -inf }
 0x2f5   :  { %2338 = vmax.xlane.f32.xlu0 %v2337_v44 }
 0x2f9   :  { %v2242_v43 = vpop.f32.mrf.mxu3 }
 0x2ff   :  { %v2306_v33 = vpop.xlane.xlu2 %2305 }
 0x300   :  { %v2348_v20 = vsub.f32 %v5581_v19, %v2306_v33 }
 0x302   :  { %v2366_v24 = vmul.f32 1.442695, %v2348_v20 }
 0x304   :  { %4111 = vpow2.f32 %v2366_v24 }
 0x307   :  { %v2309_v28 = vpop.xlane.xlu2 %2308 }
 0x308   :  { %v2300_v23 = vpop.xlane.xlu0 %2299  ;;  %v2349_v54 = vsub.f32 %v5585_v16, %v2309_v28 }
 0x309   :  { %v2346_v37 = vsub.f32 %v5587_v12, %v2300_v23  ;;  %v4193_v12 = vld [vmem:[%s6258_s8] ss:$0 sm:$0xff]  ;;  %s4359_s8 = smov 24  }
 0x30a   :  { %v5650_v62 = vpop.eup %4111  ;;  %v2368_v0 = vmul.f32 1.442695, %v2349_v54  ;;  %v5666_v48 = vadd.f32 %v4193_v12, %v5593_v46 }
 0x30b   :  { %v2362_v35 = vmul.f32 1.442695, %v2346_v37  ;;  %v2400_v10 = vsel %vm1977_vm2, %v5650_v62, 0.0 }
 0x30c   :  { %4113 = vpow2.f32 %v2368_v0  ;;  %2401 = vadd.xlane.f32.xlu0 %v2400_v10  ;;  %v4061_v39 = vpack.i.bf16 %v5666_v48, %v4620_v21 }
 0x30d   :  { %4115 = vpow2.f32 %v2362_v35 }
 0x312   :  { %v5654_v6 = vpop.eup %4113 }
 0x313   :  { %v5656_v19 = vpop.eup %4115  ;;  %v2403_v59 = vsel %vm1977_vm2, %v5654_v6, 0.0 }
 0x314   :  { %2404 = vadd.xlane.f32.xlu2 %v2403_v59  ;;  %v2394_v16 = vsel %vm1977_vm2, %v5656_v19, 0.0 }
 0x315   :  { %2395 = vadd.xlane.f32.xlu0 %v2394_v16 }
 0x327   :  { %v2312_v46 = vpop.xlane.xlu0 %2311  ;;  %v2318_v13 = vpop.xlane.xlu2 %2317 }
 0x328   :  { %v2350_v51 = vsub.f32 %v5599_v42, %v2312_v46  ;;  %v2352_v63 = vsub.f32 %v5595_v34, %v2318_v13 }
 0x329   :  { %4062 = vrot.lane.b32.xlu0 %v4061_v39, %s4356_s26 }
 0x32a   :  { %v2370_v31 = vmul.f32 1.442695, %v2350_v51 }
 0x32b   :  { %v2303_v26 = vpop.xlane.xlu1 %2302 }
 0x32c   :  { %v2347_v32 = vsub.f32 %v5603_v50, %v2303_v26  ;;  %4067 = vrot.lane.b32.xlu2 %v4061_v39, %s4357_s7  ;;  %v2374_v50 = vmul.f32 1.442695, %v2352_v63 }
 0x32e   :  { %v2364_v1 = vmul.f32 1.442695, %v2347_v32 }
 0x32f   :  { %v2321_v30 = vpop.xlane.xlu0 %2320 }
 0x330   :  { %4117 = vpow2.f32 %v2364_v1  ;;  %v2353_v25 = vsub.f32 %v5607_v14, %v2321_v30 }
 0x331   :  { %4119 = vpow2.f32 %v2370_v31 }
 0x332   :  { %4121 = vpow2.f32 %v2374_v50  ;;  %v2376_v2 = vmul.f32 1.442695, %v2353_v25 }
 0x334   :  { %4123 = vpow2.f32 %v2376_v2 }
 0x336   :  { %v5673_v3 = vpop.eup %4117 }
 0x337   :  { %v2397_v38 = vsel %vm1977_vm2, %v5673_v3, 0.0  ;;  %v5680_v60 = vpop.eup %4119 }
 0x338   :  { %2398 = vadd.xlane.f32.xlu1 %v2397_v38  ;;  %v5683_v52 = vpop.eup %4121  ;;  %v2406_v53 = vsel %vm1977_vm2, %v5680_v60, 0.0 }
 0x339   :  { %v2412_v14 = vsel %vm1977_vm2, %v5683_v52, 0.0 }
 0x33a   :  { %v5690_v4 = vpop.eup %4123 }
 0x33b   :  { %v2415_v8 = vsel %vm1977_vm2, %v5690_v4, 0.0 }
 0x345   :  { %v2330_v17 = vpop.xlane.xlu0 %2329  ;;  %v2333_v42 = vpop.xlane.xlu2 %2332 }
 0x346   :  { %v2356_v34 = vsub.f32 %v5611_v27, %v2330_v17  ;;  %v2357_v38 = vsub.f32 %v5613_v36, %v2333_v42 }
 0x347   :  { %v2324_v22 = vpop.xlane.xlu1 %2323 }
 0x348   :  { %v2382_v61 = vmul.f32 1.442695, %v2356_v34  ;;  %v2384_v13 = vmul.f32 1.442695, %v2357_v38 }
 0x34a   :  { %4125 = vpow2.f32 %v2382_v61 }
 0x34f   :  { %v2315_v41 = vpop.xlane.xlu1 %2314 }
 0x350   :  { %v5696_v20 = vpop.eup %4125 }
 0x351   :  { %4057 = vrot.lane.b32.xlu1 %v4061_v39, %s4358_s4  ;;  %v2424_v28 = vsel %vm1977_vm2, %v5696_v20, 0.0 }
 0x353   :  { %2407 = vadd.xlane.f32.xlu0 %v2406_v53 }
 0x355   :  { %2413 = vadd.xlane.f32.xlu2 %v2412_v14  ;;  %v2342_v15 = vpop.xlane.xlu2 %2341 }
 0x356   :  { %v2360_v63 = vsub.f32 %v5627_v47, %v2342_v15 }
 0x357   :  { %v2336_v11 = vpop.xlane.xlu1 %2335 }
 0x358   :  { %v2358_v43 = vsub.f32 %v5631_v29, %v2336_v11  ;;  %v2351_v29 = vsub.f32 %v5623_v58, %v2315_v41  ;;  %v2390_v36 = vmul.f32 1.442695, %v2360_v63 }
 0x35a   :  { %v2386_v24 = vmul.f32 1.442695, %v2358_v43  ;;  %v2372_v16 = vmul.f32 1.442695, %v2351_v29 }
 0x35b   :  { %2416 = vadd.xlane.f32.xlu0 %v2415_v8 }
 0x35d   :  { %v2345_v23 = vpop.xlane.xlu2 %2344 }
 0x35f   :  { %v2327_v44 = vpop.xlane.xlu1 %2326 }
 0x360   :  { %v2355_v27 = vsub.f32 %v5637_v49, %v2327_v44  ;;  %v2361_v49 = vsub.f32 %v5633_v9, %v2345_v23 }
 0x362   :  { %v2380_v33 = vmul.f32 1.442695, %v2355_v27  ;;  %v2392_v59 = vmul.f32 1.442695, %v2361_v49 }
 0x363   :  { %2425 = vadd.xlane.f32.xlu0 %v2424_v28 }
 0x364   :  { %4127 = vpow2.f32 %v2380_v33 }
 0x365   :  { %4129 = vpow2.f32 %v2386_v24 }
 0x368   :  { %v2339_v54 = vpop.xlane.xlu0 %2338 }
 0x369   :  { %v2359_v37 = vsub.f32 %v5643_v7, %v2339_v54  ;;  %v2354_v7 = vsub.f32 %v5619_v56, %v2324_v22  ;;  %v1691_v54 = vrot.slane %v5666_v48, 4 }
 0x36a   :  { %v5701_v0 = vpop.eup %4127 }
 0x36b   :  { %v2388_v35 = vmul.f32 1.442695, %v2359_v37  ;;  %v2421_v10 = vsel %vm1977_vm2, %v5701_v0, 0.0  ;;  %v5707_v12 = vpop.eup %4129  ;;  %v2378_v26 = vmul.f32 1.442695, %v2354_v7 }
 0x36c   :  { %2422 = vadd.xlane.f32.xlu2 %v2421_v10  ;;  %v2430_v9 = vsel %vm1977_vm2, %v5707_v12, 0.0 }
 0x36d   :  { %4131 = vpow2.f32 %v2388_v35  ;;  %v1635_v35 = vrot.slane %v4620_v21, 4 }
 0x36e   :  { %4133 = vpow2.f32 %v2392_v59 }
 0x36f   :  { %4135 = vpow2.f32 %v2372_v16 }
 0x370   :  { %4137 = vpow2.f32 %v2378_v26 }
 0x371   :  { %4139 = vpow2.f32 %v2384_v13 }
 0x373   :  { %v5709_v39 = vpop.eup %4131 }
 0x374   :  { %v2433_v58 = vsel %vm1977_vm2, %v5709_v39, 0.0  ;;  %2431 = vadd.xlane.f32.xlu2 %v2430_v9  ;;  %v5716_v32 = vpop.eup %4133 }
 0x375   :  { %2434 = vadd.xlane.f32.xlu0 %v2433_v58  ;;  %v5718_v1 = vpop.eup %4135  ;;  %v2439_v56 = vsel %vm1977_vm2, %v5716_v32, 0.0 }
 0x376   :  { %v2409_v46 = vsel %vm1977_vm2, %v5718_v1, 0.0  ;;  %v5725_v51 = vpop.eup %4137 }
 0x377   :  { %v2418_v30 = vsel %vm1977_vm2, %v5725_v51, 0.0  ;;  %v5730_v31 = vpop.eup %4139 }
 0x378   :  { %v2427_v2 = vsel %vm1977_vm2, %v5730_v31, 0.0 }
 0x37b   :  { %2410 = vadd.xlane.f32.xlu1 %v2409_v46 }
 0x37c   :  { %2440 = vadd.xlane.f32.xlu2 %v2439_v56 }
 0x37f   :  { %v2402_v22 = vpop.xlane.xlu0 %2401 }
 0x380   :  { %4141 = vrcp.f32 %v2402_v22 }
 0x381   :  { %4143 = vpow2.f32 %v2390_v36 }
 0x383   :  { %2419 = vadd.xlane.f32.xlu1 %v2418_v30 }
 0x386   :  { %v4142_v50 = vpop.eup %4141 }
 0x387   :  { %v2460_v25 = vmul.f32 %v4142_v50, %v5650_v62  ;;  %v2405_v41 = vpop.xlane.xlu2 %2404  ;;  %v5736_v42 = vpop.eup %4143 }
 0x388   :  { %4145 = vrcp.f32 %v2405_v41  ;;  %v2396_v17 = vpop.xlane.xlu0 %2395  ;;  %v2436_v62 = vsel %vm1977_vm2, %v5736_v42, 0.0 }
 0x389   :  { %v2476_v47 = vpack.c.bf16 %v2460_v25, %v2460_v25  ;;  %4147 = vrcp.f32 %v2396_v17 }
 0x38b   :  { %2428 = vadd.xlane.f32.xlu1 %v2427_v2  ;;  %3943 = vmatmul.msk.bf16.vlgmr.msrb.gmra.mxu0 %vm1977_vm2, %v2476_v47 }
 0x38e   :  { %v4146_v34 = vpop.eup %4145 }
 0x38f   :  { %v4148_v53 = vpop.eup %4147  ;;  %v2461_v11 = vmul.f32 %v4146_v34, %v5654_v6  ;;  %v4068_v28 = vpop.permute.xlu2 %4067 }
 0x390   :  { %v2458_v14 = vmul.f32 %v4148_v53, %v5656_v19  ;;  %v4070_v37 = vunpack.i.h.bf16 %v4068_v28  ;;  %v4069_v49 = vunpack.i.l.bf16 %v4068_v28 }
 0x391   :  { %v2477_v61 = vpack.c.bf16 %v2461_v11, %v2461_v11 }
 0x392   :  { %v2474_v15 = vpack.c.bf16 %v2458_v14, %v2458_v14  ;;  %v1701_v16 = vrot.slane %v4070_v37, 4  ;;  %v1645_v7 = vrot.slane %v4069_v49, 4 }
 0x393   :  { %2437 = vadd.xlane.f32.xlu1 %v2436_v62  ;;  %3944 = vmatmul.msk.bf16.vlgmr.msra.gmra.mxu1 %vm1977_vm2, %v2477_v61 }
 0x394   :  { %3941 = vmatmul.msk.bf16.vlgmr.msra.gmra.mxu2 %vm1977_vm2, %v2474_v15 }
 0x39b   :  { %v4063_v33 = vpop.permute.xlu0 %4062 }
 0x39c   :  { %v4065_v6 = vunpack.i.h.bf16 %v4063_v33  ;;  %v4064_v24 = vunpack.i.l.bf16 %v4063_v33 }
 0x39e   :  { %v1689_v19 = vrot.slane %v4065_v6, 4  ;;  %v1633_v23 = vrot.slane %v4064_v24, 4  ;;  %v1636_v59 = vsel %vm149_vm0, %v4064_v24, %v1635_v35 }
 0x39f   :  { %v1644_v56 = vperm.slane %v1636_v59, %v4490_v5 }
 0x3a0   :  { %v1690_v29 = vsel %vm149_vm0, %v1689_v19, %v5666_v48  ;;  %v1634_v10 = vsel %vm149_vm0, %v1633_v23, %v4620_v21 }
 0x3a1   :  { %v1696_v9 = vperm.slane %v1690_v29, %v4490_v5  ;;  %v1640_v38 = vperm.slane %v1634_v10, %v4490_v5  ;;  %v1671_v2 = vrot.slane %v1644_v56, 4 }
 0x3a3   :  { %v1715_v30 = vrot.slane %v1696_v9, 4  ;;  %v1659_v41 = vrot.slane %v1640_v38, 4 }
 0x3ab   :  { %v2399_v8 = vpop.xlane.xlu1 %2398 }
 0x3ac   :  { %4149 = vrcp.f32 %v2399_v8 }
 0x3b2   :  { %v4150_v44 = vpop.eup %4149 }
 0x3b3   :  { %v2459_v27 = vmul.f32 %v4150_v44, %v5673_v3  ;;  %v1692_v3 = vsel %vm149_vm0, %v4065_v6, %v1691_v54 }
 0x3b4   :  { %v1700_v58 = vperm.slane %v1692_v3, %v4490_v5 }
 0x3b5   :  { %v2475_v43 = vpack.c.bf16 %v2459_v27, %v2459_v27 }
 0x3b6   :  { %v1727_v36 = vrot.slane %v1700_v58, 4 }
 0x3b7   :  { %3942 = vmatmul.msk.bf16.vlgmr.msrb.gmra.mxu3 %vm1977_vm2, %v2475_v43 }
 0x3c3   :  { %v4058_v26 = vpop.permute.xlu1 %4057 }
 0x3c4   :  { %v4060_v46 = vunpack.i.h.bf16 %v4058_v26  ;;  %v4059_v48 = vunpack.i.l.bf16 %v4058_v26 }
 0x3c6   :  { %v1702_v13 = vsel %vm149_vm0, %v1701_v16, %v4060_v46  ;;  %v1703_v63 = vrot.slane %v4060_v46, 4  ;;  %v1646_v21 = vsel %vm149_vm0, %v1645_v7, %v4059_v48  ;;  %v1647_v22 = vrot.slane %v4059_v48, 4  ;;  %v2408_v34 = vpop.xlane.xlu0 %2407 }
 0x3c7   :  { %v1708_v50 = vperm.slane %v1702_v13, %v4490_v5  ;;  %v1652_v25 = vperm.slane %v1646_v21, %v4490_v5  ;;  %4151 = vrcp.f32 %v2408_v34 }
 0x3c8   :  { %v1704_v17 = vsel %vm149_vm0, %v4070_v37, %v1703_v63  ;;  %v1648_v47 = vsel %vm149_vm0, %v4069_v49, %v1647_v22  ;;  %v2414_v26 = vpop.xlane.xlu2 %2413 }
 0x3c9   :  { %v1712_v53 = vperm.slane %v1704_v17, %v4490_v5  ;;  %v1713_v11 = vrot.slane %v1708_v50, 4  ;;  %v1716_v62 = vsel %vm149_vm0, %v1708_v50, %v1715_v30  ;;  %v1656_v14 = vperm.slane %v1648_v47, %v4490_v5 }
 0x3ca   :  { %v1724_v61 = vperm.slane %v1716_v62, %v4501_v18  ;;  %v1657_v15 = vrot.slane %v1652_v25, 4  ;;  %v1660_v8 = vsel %vm149_vm0, %v1652_v25, %v1659_v41  ;;  %4153 = vrcp.f32 %v2414_v26 }
 0x3cb   :  { %v1714_v44 = vsel %vm149_vm0, %v1713_v11, %v1696_v9  ;;  %v1725_v27 = vrot.slane %v1712_v53, 4  ;;  %v1728_v43 = vsel %vm149_vm0, %v1712_v53, %v1727_v36  ;;  %v1668_v33 = vperm.slane %v1660_v8, %v4501_v18 }
 0x3cc   :  { %v1720_v6 = vperm.slane %v1714_v44, %v4501_v18  ;;  %v1736_v24 = vperm.slane %v1728_v43, %v4501_v18  ;;  %v1739_v28 = vrot.slane %v1724_v61, 4  ;;  %v1658_v19 = vsel %vm149_vm0, %v1657_v15, %v1640_v38 }
 0x3cd   :  { %v1726_v23 = vsel %vm149_vm0, %v1725_v27, %v1700_v58  ;;  %v1664_v54 = vperm.slane %v1658_v19, %v4501_v18  ;;  %v1669_v37 = vrot.slane %v1656_v14, 4  ;;  %v1672_v49 = vsel %vm149_vm0, %v1656_v14, %v1671_v2  ;;  %v4152_v38 = vpop.eup %4151 }
 0x3ce   :  { %v1732_v35 = vperm.slane %v1726_v23, %v4501_v18  ;;  %v1737_v29 = vrot.slane %v1720_v6, 4  ;;  %v1740_v3 = vsel %vm149_vm0, 0.0, %v1739_v28  ;;  %v1743_v10 = vrot.slane %v1736_v24, 4  ;;  %v2417_v25 = vpop.xlane.xlu0 %2416 }
 0x3cf   :  { %v1912_v59 = vrot.slane %v1740_v3, 4  ;;  %v1670_v16 = vsel %vm149_vm0, %v1669_v37, %v1644_v56  ;;  %v1680_v7 = vperm.slane %v1672_v49, %v4501_v18  ;;  %v1681_v9 = vrot.slane %v1664_v54, 4 }
 0x3d0   :  { %v1738_v58 = vsel %vm149_vm0, 0.0, %v1737_v29  ;;  %v1741_v46 = vrot.slane %v1732_v35, 4  ;;  %v1744_v48 = vsel %vm149_vm0, 0.0, %v1743_v10  ;;  %v1676_v13 = vperm.slane %v1670_v16, %v4501_v18  ;;  %v4154_v23 = vpop.eup %4153 }
 0x3d1   :  { %v1923_v63 = vrot.slane %v1744_v48, 4  ;;  %v1682_v21 = vsel %vm149_vm0, 0.0, %v1681_v9  ;;  %v1683_v22 = vrot.slane %v1668_v33, 4  ;;  %v1687_v30 = vrot.slane %v1680_v7, 4 }
 0x3d2   :  { %v1742_v36 = vsel %vm149_vm0, 0.0, %v1741_v46  ;;  %v1685_v56 = vrot.slane %v1676_v13, 4  ;;  %v2462_v50 = vmul.f32 %v4152_v38, %v5680_v60  ;;  %4155 = vrcp.f32 %v2417_v25 }
 0x3d3   :  { %v1684_v41 = vsel %vm149_vm0, 0.0, %v1683_v22  ;;  %v1688_v2 = vsel %vm149_vm0, 0.0, %v1687_v30  ;;  %v1853_v17 = vsel %vm149_vm0, %v1683_v22, %v1664_v54  ;;  %v1864_v47 = vsel %vm149_vm0, %v1687_v30, %v1676_v13 }
 0x3d4   :  { %v1857_v34 = vperm.slane %v1853_v17, %v4490_v5  ;;  %v1858_v53 = vrot.slane %v1684_v41, 4  ;;  %v1869_v11 = vrot.slane %v1688_v2, 4  ;;  %v2478_v62 = vpack.c.bf16 %v2462_v50, %v2462_v50 }
 0x3d5   :  { %v1686_v14 = vsel %vm149_vm0, 0.0, %v1685_v56  ;;  %v1868_v61 = vperm.slane %v1864_v47, %v4490_v5  ;;  %v1907_v60 = vsel %vm149_vm0, %v1739_v28, %v1720_v6  ;;  %v1913_v19 = vsel %vm149_vm0, %v1912_v59, %v1738_v58 }
 0x3d6   :  { %v1859_v15 = vsel %vm149_vm0, %v1858_v53, %v1682_v21  ;;  %v1870_v8 = vsel %vm149_vm0, %v1869_v11, %v1686_v14  ;;  %v1877_v44 = vrot.slane %v1857_v34, 4  ;;  %3945 = vmatmul.msk.bf16.vlgmr.msrb.gmra.mxu2 %vm1977_vm2, %v2478_v62  ;;  %v1911_v27 = vperm.slane %v1907_v60, %v4490_v5  ;;  %v2426_v11 = vpop.xlane.xlu0 %2425 }
 0x3d7   :  { %v1863_v43 = vperm.slane %v1859_v15, %v4490_v5  ;;  %v1874_v33 = vperm.slane %v1870_v8, %v4490_v5  ;;  %v1889_v24 = vrot.slane %v1868_v61, 4  ;;  %v1917_v54 = vperm.slane %v1913_v19, %v4490_v5 }
 0x3d8   :  { %v1918_v6 = vsel %vm149_vm0, %v1743_v10, %v1732_v35  ;;  %v1924_v28 = vsel %vm149_vm0, %v1923_v63, %v1742_v36  ;;  %v2464_v37 = vmul.f32 %v4154_v23, %v5683_v52  ;;  %v1931_v59 = vrot.slane %v1911_v27, 4  ;;  %v4156_v26 = vpop.eup %4155 }
 0x3d9   :  { %v1878_v49 = vsel %vm149_vm0, %v1863_v43, %v1877_v44  ;;  %v1890_v29 = vsel %vm149_vm0, %v1874_v33, %v1889_v24  ;;  %v1875_v3 = vrot.slane %v1863_v43, 4  ;;  %v1887_v9 = vrot.slane %v1874_v33, 4 }
 0x3da   :  { %v1886_v16 = vperm.slane %v1878_v49, %v4501_v18  ;;  %v1898_v7 = vperm.slane %v1890_v29, %v4501_v18  ;;  %v2480_v38 = vpack.c.bf16 %v2464_v37, %v2464_v37  ;;  %v1928_v35 = vperm.slane %v1924_v28, %v4490_v5 }
 0x3db   :  { %v1876_v58 = vsel %vm149_vm0, %v1875_v3, %v1857_v34  ;;  %v1929_v10 = vrot.slane %v1917_v54, 4  ;;  %v1888_v48 = vsel %vm149_vm0, %v1887_v9, %v1868_v61  ;;  %v2465_v21 = vmul.f32 %v4156_v26, %v5690_v4 }
 0x3dc   :  { %v1905_v46 = vrot.slane %v1886_v16, 4  ;;  %v1882_v52 = vperm.slane %v1876_v58, %v4501_v18  ;;  %v1903_v13 = vrot.slane %v1898_v7, 4  ;;  %v1894_v63 = vperm.slane %v1888_v48, %v4501_v18  ;;  %3947 = vmatmul.msk.bf16.vlgmr.msra.gmra.mxu0 %vm1977_vm2, %v2480_v38 }
 0x3dd   :  { %v1941_v22 = vrot.slane %v1928_v35, 4  ;;  %v1922_v50 = vperm.slane %v1918_v6, %v4490_v5  ;;  %v2481_v2 = vpack.c.bf16 %v2465_v21, %v2465_v21  ;;  %v1930_v34 = vsel %vm149_vm0, %v1929_v10, %v1911_v27 }
 0x3de   :  { %v1906_v30 = vsel %vm149_vm0, %v1898_v7, %v1905_v46  ;;  %v1901_v36 = vrot.slane %v1882_v52, 4  ;;  %v1904_v56 = vsel %vm149_vm0, %v1903_v13, %v1886_v16  ;;  %v1899_v17 = vrot.slane %v1894_v63, 4 }
 0x3df   :  { %v1972_v25 = vpack.c.bf16 %v1906_v30, %v1906_v30  ;;  %v1971_v41 = vpack.c.bf16 %v1904_v56, %v1904_v56  ;;  %v1942_v4 = vsel %vm149_vm0, %v1941_v22, %v1922_v50  ;;  %v1932_v53 = vsel %vm149_vm0, %v1917_v54, %v1931_v59  ;;  %3948 = vmatmul.msk.bf16.vlgmr.msrb.gmra.mxu1 %vm1977_vm2, %v2481_v2  ;;  %v2423_v48 = vpop.xlane.xlu2 %2422 }
 0x3e0   :  { %v1902_v47 = vsel %vm149_vm0, %v1894_v63, %v1901_v36  ;;  %v1900_v60 = vsel %vm149_vm0, %v1899_v17, %v1882_v52  ;;  %v1948_v8 = vperm.slane %v1942_v4, %v4501_v18  ;;  %v1940_v44 = vperm.slane %v1932_v53, %v4501_v18 }
 0x3e1   :  { %v2704_v62 = vsel %vm2493_vm3, %v1972_v25, 0  ;;  %v1970_v14 = vpack.c.bf16 %v1902_v47, %v1902_v47  ;;  %v2685_v61 = vsel %vm2493_vm3, %v1971_v41, 0  ;;  %v1969_v15 = vpack.c.bf16 %v1900_v60, %v1900_v60 }
 0x3e2   :  { %2713 = vmatpush.bf16.msra.mxu1 %v2704_v62  ;;  %2694 = vmatpush.bf16.msrb.mxu0 %v2685_v61  ;;  %v1943_v27 = vrot.slane %v1922_v50, 4  ;;  %v1936_v33 = vperm.slane %v1930_v34, %v4501_v18  ;;  %4157 = vrcp.f32 %v2426_v11  ;;  %v1953_v19 = vrot.slane %v1948_v8, 4 }
 0x3e3   :  { %v2666_v43 = vsel %vm2493_vm3, %v1970_v14, 0  ;;  %v2647_v24 = vsel %vm2493_vm3, %v1969_v15, 0  ;;  %v1959_v54 = vrot.slane %v1940_v44, 4 }
 0x3e4   :  { %2675 = vmatpush.bf16.msrb.mxu3 %v2666_v43  ;;  %v1944_v23 = vsel %vm149_vm0, %v1928_v35, %v1943_v27  ;;  %2656 = vmatpush.bf16.msra.mxu2 %v2647_v24  ;;  %v1954_v28 = vsel %vm149_vm0, %v1953_v19, %v1936_v33  ;;  %v1955_v46 = vrot.slane %v1936_v33, 4 }
 0x3e5   :  { %v1952_v6 = vperm.slane %v1944_v23, %v4501_v18  ;;  %v1973_v37 = vpack.c.bf16 %v1954_v28, %v1954_v28 }
 0x3e6   :  { %v1956_v52 = vsel %vm149_vm0, %v1948_v8, %v1955_v46 }
 0x3e7   :  { %v1957_v49 = vrot.slane %v1952_v6, 4  ;;  %v1960_v29 = vsel %vm149_vm0, %v1952_v6, %v1959_v54  ;;  %v2723_v7 = vsel %vm2493_vm3, %v1973_v37, 0  ;;  %v2432_v56 = vpop.xlane.xlu2 %2431 }
 0x3e8   :  { %v1976_v3 = vpack.c.bf16 %v1960_v29, %v1960_v29  ;;  %v4158_v16 = vpop.eup %4157  ;;  %2732 = vmatpush.bf16.msrb.mxu2 %v2723_v7  ;;  %v2435_v4 = vpop.xlane.xlu0 %2434 }
 0x3e9   :  { %v1958_v9 = vsel %vm149_vm0, %v1957_v49, %v1940_v44  ;;  %v2468_v26 = vmul.f32 %v4158_v16, %v5696_v20  ;;  %v1974_v20 = vpack.c.bf16 %v1956_v52, %v1956_v52 }
 0x3ea   :  { %v1975_v59 = vpack.c.bf16 %v1958_v9, %v1958_v9  ;;  %v2780_v38 = vsel %vm2493_vm3, %v1976_v3, 0 }
 0x3eb   :  { %2789 = vmatpush.bf16.msrb.mxu1 %v2780_v38  ;;  %v2484_v35 = vpack.c.bf16 %v2468_v26, %v2468_v26  ;;  %v2742_v30 = vsel %vm2493_vm3, %v1974_v20, 0 }
 0x3ec   :  { %v2761_v58 = vsel %vm2493_vm3, %v1975_v59, 0 }
 0x3ed   :  { %2770 = vmatpush.bf16.msra.mxu0 %v2761_v58 }
 0x3ee   :  { %v2411_v10 = vpop.xlane.xlu1 %2410  ;;  %3951 = vmatmul.msk.bf16.vlgmr.msrb.gmra.mxu0 %vm1977_vm2, %v2484_v35 }
 0x3ef   :  { %4159 = vrcp.f32 %v2411_v10  ;;  %v2441_v11 = vpop.xlane.xlu2 %2440 }
 0x3f5   :  { %v4160_v13 = vpop.eup %4159 }
 0x3f6   :  { %v2463_v63 = vmul.f32 %v4160_v13, %v5718_v1  ;;  %v2420_v21 = vpop.xlane.xlu1 %2419 }
 0x3f7   :  { %4161 = vrcp.f32 %v2420_v21 }
 0x3f8   :  { %v2479_v22 = vpack.c.bf16 %v2463_v63, %v2463_v63  ;;  %4163 = vrcp.f32 %v2423_v48 }
 0x3fa   :  { %3946 = vmatmul.msk.bf16.vlgmr.msra.gmra.mxu3 %vm1977_vm2, %v2479_v22 }
 0x3fb   :  { %2751 = vmatpush.bf16.msra.mxu3 %v2742_v30 }
 0x3fd   :  { %v4162_v36 = vpop.eup %4161 }
 0x3fe   :  { %v2466_v50 = vmul.f32 %v4162_v36, %v5725_v51  ;;  %v2429_v25 = vpop.xlane.xlu1 %2428  ;;  %v4164_v2 = vpop.eup %4163 }
 0x3ff   :  { %4165 = vrcp.f32 %v2429_v25  ;;  %v2467_v1 = vmul.f32 %v4164_v2, %v5701_v0 }
 0x400   :  { %v2482_v41 = vpack.c.bf16 %v2466_v50, %v2466_v50  ;;  %4167 = vrcp.f32 %v2432_v56 }
 0x401   :  { %v2483_v53 = vpack.c.bf16 %v2467_v1, %v2467_v1 }
 0x402   :  { %3949 = vmatmul.msk.bf16.vlgmr.msra.gmra.mxu2 %vm1977_vm2, %v2482_v41 }
 0x405   :  { %v4166_v17 = vpop.eup %4165 }
 0x406   :  { %v2469_v47 = vmul.f32 %v4166_v17, %v5730_v31  ;;  %v2438_v34 = vpop.xlane.xlu1 %2437  ;;  %v4168_v14 = vpop.eup %4167 }
 0x407   :  { %4169 = vrcp.f32 %v2438_v34  ;;  %v2470_v61 = vmul.f32 %v4168_v14, %v5707_v12 }
 0x408   :  { %v2485_v62 = vpack.c.bf16 %v2469_v47, %v2469_v47  ;;  %4171 = vrcp.f32 %v2435_v4  ;;  %v2544_v51 = vpop.f32.mrf.mxu0 }
 0x409   :  { %4173 = vrcp.f32 %v2441_v11  ;;  %v2486_v15 = vpack.c.bf16 %v2470_v61, %v2470_v61  ;;  %v2795_v12 = vrot.slane %v2544_v51, 4 }
 0x40a   :  { %3950 = vmatmul.msk.bf16.vlgmr.msrb.gmra.mxu3 %vm1977_vm2, %v2483_v53  ;;  %3952 = vmatmul.msk.bf16.vlgmr.msra.gmra.mxu1 %vm1977_vm2, %v2485_v62 }
 0x40d   :  { %v4170_v0 = vpop.eup %4169 }
 0x40e   :  { %v2472_v60 = vmul.f32 %v4170_v0, %v5736_v42  ;;  %v4172_v31 = vpop.eup %4171 }
 0x40f   :  { %v4174_v44 = vpop.eup %4173  ;;  %v2471_v33 = vmul.f32 %v4172_v31, %v5709_v39 }
 0x410   :  { %v2488_v8 = vpack.c.bf16 %v2472_v60, %v2472_v60  ;;  %v2546_v27 = vpop.f32.mrf.mxu0  ;;  %v2563_v43 = vpop.f32.mrf.mxu1  ;;  %v2473_v24 = vmul.f32 %v4174_v44, %v5716_v32 }
 0x411   :  { %v2487_v19 = vpack.c.bf16 %v2471_v33, %v2471_v33  ;;  %v2807_v39 = vrot.slane %v2563_v43, 4 }
 0x412   :  { %3953 = vmatmul.msk.bf16.vlgmr.msrb.gmra.mxu2 %vm1977_vm2, %v2486_v15  ;;  %3955 = vmatmul.msk.bf16.vlgmr.msra.gmra.mxu0 %vm1977_vm2, %v2488_v8  ;;  %v2489_v23 = vpack.c.bf16 %v2473_v24, %v2473_v24 }
 0x417   :  { %v2506_v54 = vpop.f32.mrf.mxu2 }
 0x418   :  { %v2796_v42 = vsel %vm149_vm0, %v2795_v12, %v2506_v54  ;;  %v2797_v6 = vrot.slane %v2506_v54, 4  ;;  %v2565_v28 = vpop.f32.mrf.mxu1 }
 0x419   :  { %v2802_v29 = vperm.slane %v2796_v42, %v4490_v5 }
 0x41a   :  { %3954 = vmatmul.msk.bf16.vlgmr.msra.gmra.mxu3 %vm1977_vm2, %v2487_v19  ;;  %3956 = vmatmul.msk.bf16.vlgmr.msrb.gmra.mxu1 %vm1977_vm2, %v2489_v23  ;;  %v2798_v37 = vsel %vm149_vm0, %v2544_v51, %v2797_v6 }
 0x41b   :  { %v2806_v32 = vperm.slane %v2798_v37, %v4490_v5  ;;  %v2821_v9 = vrot.slane %v2802_v29, 4 }
 0x41d   :  { %v2833_v38 = vrot.slane %v2806_v32, 4 }
 0x41f   :  { %v2508_v49 = vpop.f32.mrf.mxu2 }
 0x43a   :  { %v2525_v3 = vpop.f32.mrf.mxu3 }
 0x43b   :  { %v2808_v16 = vsel %vm149_vm0, %v2807_v39, %v2525_v3  ;;  %v2809_v7 = vrot.slane %v2525_v3, 4 }
 0x43c   :  { %v2814_v59 = vperm.slane %v2808_v16, %v4490_v5 }
 0x43d   :  { %v2810_v26 = vsel %vm149_vm0, %v2563_v43, %v2809_v7 }
 0x43e   :  { %v2818_v58 = vperm.slane %v2810_v26, %v4490_v5  ;;  %v2819_v35 = vrot.slane %v2814_v59, 4  ;;  %v2822_v10 = vsel %vm149_vm0, %v2814_v59, %v2821_v9 }
 0x43f   :  { %v2830_v46 = vperm.slane %v2822_v10, %v4501_v18 }
 0x440   :  { %v2820_v52 = vsel %vm149_vm0, %v2819_v35, %v2802_v29  ;;  %v2831_v48 = vrot.slane %v2818_v58, 4  ;;  %v2834_v13 = vsel %vm149_vm0, %v2818_v58, %v2833_v38 }
 0x441   :  { %v2826_v63 = vperm.slane %v2820_v52, %v4501_v18  ;;  %v2842_v21 = vperm.slane %v2834_v13, %v4501_v18  ;;  %v2845_v20 = vrot.slane %v2830_v46, 4 }
 0x442   :  { %v2832_v22 = vsel %vm149_vm0, %v2831_v48, %v2806_v32  ;;  %v2527_v30 = vpop.f32.mrf.mxu3 }
 0x443   :  { %v2838_v36 = vperm.slane %v2832_v22, %v4501_v18  ;;  %v2843_v56 = vrot.slane %v2826_v63, 4  ;;  %v2846_v50 = vsel %vm149_vm0, 0.0, %v2845_v20  ;;  %v2849_v25 = vrot.slane %v2842_v21, 4 }
 0x444   :  { %v3019_v41 = vsel %vm149_vm0, %v2845_v20, %v2826_v63  ;;  %v3024_v2 = vrot.slane %v2846_v50, 4 }
 0x445   :  { %v2844_v1 = vsel %vm149_vm0, 0.0, %v2843_v56  ;;  %v3030_v47 = vsel %vm149_vm0, %v2849_v25, %v2838_v36  ;;  %v2850_v34 = vsel %vm149_vm0, 0.0, %v2849_v25  ;;  %v3023_v4 = vperm.slane %v3019_v41, %v4490_v5 }
 0x446   :  { %v3025_v17 = vsel %vm149_vm0, %v3024_v2, %v2844_v1  ;;  %v2847_v53 = vrot.slane %v2838_v36, 4  ;;  %v3035_v11 = vrot.slane %v2850_v34, 4  ;;  %v3034_v51 = vperm.slane %v3030_v47, %v4490_v5 }
 0x447   :  { %v3029_v62 = vperm.slane %v3025_v17, %v4490_v5  ;;  %v3043_v14 = vrot.slane %v3023_v4, 4 }
 0x448   :  { %v2848_v61 = vsel %vm149_vm0, 0.0, %v2847_v53  ;;  %v3055_v60 = vrot.slane %v3034_v51, 4 }
 0x449   :  { %v3036_v0 = vsel %vm149_vm0, %v3035_v11, %v2848_v61  ;;  %v3044_v15 = vsel %vm149_vm0, %v3029_v62, %v3043_v14  ;;  %v3041_v8 = vrot.slane %v3029_v62, 4 }
 0x44a   :  { %v3040_v31 = vperm.slane %v3036_v0, %v4490_v5  ;;  %v3052_v44 = vperm.slane %v3044_v15, %v4501_v18 }
 0x44b   :  { %v3042_v43 = vsel %vm149_vm0, %v3041_v8, %v3023_v4 }
 0x44c   :  { %v3056_v27 = vsel %vm149_vm0, %v3040_v31, %v3055_v60  ;;  %v3053_v33 = vrot.slane %v3040_v31, 4  ;;  %v3071_v19 = vrot.slane %v3052_v44, 4  ;;  %v3048_v23 = vperm.slane %v3042_v43, %v4501_v18 }
 0x44d   :  { %v3064_v24 = vperm.slane %v3056_v27, %v4501_v18 }
 0x44e   :  { %v3054_v12 = vsel %vm149_vm0, %v3053_v33, %v3034_v51  ;;  %v3067_v28 = vrot.slane %v3048_v23, 4 }
 0x44f   :  { %v5898_v54 = vsel %vm149_vm0, %v3064_v24, %v3071_v19  ;;  %v3069_v42 = vrot.slane %v3064_v24, 4  ;;  %v3060_v6 = vperm.slane %v3054_v12, %v4501_v18 }
 0x451   :  { %v5902_v29 = vsel %vm149_vm0, %v3069_v42, %v3052_v44  ;;  %v3065_v39 = vrot.slane %v3060_v6, 4  ;;  %v5905_v32 = vsel %vm149_vm0, %v3060_v6, %v3067_v28 }
 0x453   :  { %v5908_v3 = vsel %vm149_vm0, %v3065_v39, %v3048_v23 }
 0x459   :  { %v2582_v37 = vpop.f32.mrf.mxu2  ;;  %v2620_v49 = vpop.f32.mrf.mxu0 }
 0x45a   :  { %v2851_v58 = vrot.slane %v2620_v49, 4  ;;  %v2853_v35 = vrot.slane %v2582_v37, 4 }
 0x45c   :  { %v2639_v16 = vpop.f32.mrf.mxu1  ;;  %v2852_v10 = vsel %vm149_vm0, %v2851_v58, %v2582_v37  ;;  %v2854_v46 = vsel %vm149_vm0, %v2620_v49, %v2853_v35 }
 0x45d   :  { %v2858_v52 = vperm.slane %v2852_v10, %v4490_v5  ;;  %v2863_v48 = vrot.slane %v2639_v16, 4  ;;  %v2862_v13 = vperm.slane %v2854_v46, %v4490_v5 }
 0x45f   :  { %v2877_v22 = vrot.slane %v2858_v52, 4  ;;  %v2889_v56 = vrot.slane %v2862_v13, 4 }
 0x461   :  { %v2584_v7 = vpop.f32.mrf.mxu2  ;;  %v2622_v9 = vpop.f32.mrf.mxu0 }
 0x464   :  { %v2641_v59 = vpop.f32.mrf.mxu1 }
 0x46b   :  { %v2696_v26 = vpop.f32.mrf.mxu0 }
 0x46c   :  { %v2907_v11 = vrot.slane %v2696_v26, 4 }
 0x473   :  { %v2698_v38 = vpop.f32.mrf.mxu0 }
 0x47d   :  { %v2601_v63 = vpop.f32.mrf.mxu3 }
 0x47e   :  { %v2864_v21 = vsel %vm149_vm0, %v2863_v48, %v2601_v63  ;;  %v2865_v20 = vrot.slane %v2601_v63, 4 }
 0x47f   :  { %v2870_v30 = vperm.slane %v2864_v21, %v4490_v5 }
 0x480   :  { %v2866_v36 = vsel %vm149_vm0, %v2639_v16, %v2865_v20 }
 0x481   :  { %v2874_v50 = vperm.slane %v2866_v36, %v4490_v5  ;;  %v2875_v25 = vrot.slane %v2870_v30, 4  ;;  %v2878_v41 = vsel %vm149_vm0, %v2870_v30, %v2877_v22 }
 0x482   :  { %v2886_v2 = vperm.slane %v2878_v41, %v4501_v18 }
 0x483   :  { %v2876_v1 = vsel %vm149_vm0, %v2875_v25, %v2858_v52  ;;  %v2887_v17 = vrot.slane %v2874_v50, 4  ;;  %v2890_v47 = vsel %vm149_vm0, %v2874_v50, %v2889_v56 }
 0x484   :  { %v2882_v34 = vperm.slane %v2876_v1, %v4501_v18  ;;  %v2898_v4 = vperm.slane %v2890_v47, %v4501_v18  ;;  %v2901_v53 = vrot.slane %v2886_v2, 4 }
 0x485   :  { %v2888_v62 = vsel %vm149_vm0, %v2887_v17, %v2862_v13  ;;  %v2603_v14 = vpop.f32.mrf.mxu3  ;;  %v2658_v51 = vpop.f32.mrf.mxu2 }
 0x486   :  { %v2894_v61 = vperm.slane %v2888_v62, %v4501_v18  ;;  %v2899_v0 = vrot.slane %v2882_v34, 4  ;;  %v2902_v60 = vsel %vm149_vm0, 0.0, %v2901_v53  ;;  %v2905_v31 = vrot.slane %v2898_v4, 4 }
 0x487   :  { %v3073_v15 = vsel %vm149_vm0, %v2901_v53, %v2882_v34  ;;  %v3078_v8 = vrot.slane %v2902_v60, 4  ;;  %v2908_v44 = vsel %vm149_vm0, %v2907_v11, %v2658_v51  ;;  %v2909_v27 = vrot.slane %v2658_v51, 4  ;;  %v2715_v43 = vpop.f32.mrf.mxu1 }
 0x488   :  { %v2900_v33 = vsel %vm149_vm0, 0.0, %v2899_v0  ;;  %v2903_v24 = vrot.slane %v2894_v61, 4  ;;  %v2906_v19 = vsel %vm149_vm0, 0.0, %v2905_v31  ;;  %v3077_v23 = vperm.slane %v3073_v15, %v4490_v5 }
 0x489   :  { %v3079_v12 = vsel %vm149_vm0, %v3078_v8, %v2900_v33  ;;  %v3084_v42 = vsel %vm149_vm0, %v2905_v31, %v2894_v61  ;;  %v3089_v6 = vrot.slane %v2906_v19, 4  ;;  %v2910_v28 = vsel %vm149_vm0, %v2696_v26, %v2909_v27 }
 0x48a   :  { %v3083_v37 = vperm.slane %v3079_v12, %v4490_v5  ;;  %v3097_v49 = vrot.slane %v3077_v23, 4  ;;  %v2914_v39 = vperm.slane %v2908_v44, %v4490_v5  ;;  %v2904_v16 = vsel %vm149_vm0, 0.0, %v2903_v24 }
 0x48b   :  { %v3088_v7 = vperm.slane %v3084_v42, %v4490_v5  ;;  %v2918_v9 = vperm.slane %v2910_v28, %v4490_v5  ;;  %v2919_v59 = vrot.slane %v2715_v43, 4  ;;  %v3090_v38 = vsel %vm149_vm0, %v3089_v6, %v2904_v16 }
 0x48c   :  { %v3098_v58 = vsel %vm149_vm0, %v3083_v37, %v3097_v49  ;;  %v3094_v26 = vperm.slane %v3090_v38, %v4490_v5  ;;  %v3095_v48 = vrot.slane %v3083_v37, 4  ;;  %v2933_v21 = vrot.slane %v2914_v39, 4 }
 0x48d   :  { %v2660_v35 = vpop.f32.mrf.mxu2  ;;  %v2677_v10 = vpop.f32.mrf.mxu3  ;;  %v3106_v46 = vperm.slane %v3098_v58, %v4501_v18  ;;  %v3109_v52 = vrot.slane %v3088_v7, 4  ;;  %v2945_v50 = vrot.slane %v2918_v9, 4 }
 0x48e   :  { %v2920_v13 = vsel %vm149_vm0, %v2919_v59, %v2677_v10  ;;  %v2921_v63 = vrot.slane %v2677_v10, 4  ;;  %v3096_v47 = vsel %vm149_vm0, %v3095_v48, %v3077_v23  ;;  %v3107_v11 = vrot.slane %v3094_v26, 4 }
 0x48f   :  { %v2926_v20 = vperm.slane %v2920_v13, %v4490_v5  ;;  %v2717_v22 = vpop.f32.mrf.mxu1  ;;  %v2772_v30 = vpop.f32.mrf.mxu0  ;;  %v3110_v36 = vsel %vm149_vm0, %v3094_v26, %v3109_v52  ;;  %v3125_v56 = vrot.slane %v3106_v46, 4  ;;  %v5964_v24 = vperm.slane %v3096_v47, %v4501_v18 }
 0x490   :  { %v2922_v25 = vsel %vm149_vm0, %v2715_v43, %v2921_v63  ;;  %v3118_v41 = vperm.slane %v3110_v36, %v4501_v18  ;;  %v2963_v44 = vrot.slane %v2772_v30, 4  ;;  %v3108_v28 = vsel %vm149_vm0, %v3107_v11, %v3088_v7 }
 0x491   :  { %v2930_v2 = vperm.slane %v2922_v25, %v4490_v5  ;;  %v2931_v1 = vrot.slane %v2926_v20, 4  ;;  %v2934_v17 = vsel %vm149_vm0, %v2926_v20, %v2933_v21  ;;  %v3121_v35 = vrot.slane %v5964_v24, 4 }
 0x492   :  { %v2942_v34 = vperm.slane %v2934_v17, %v4501_v18  ;;  %v3126_v4 = vsel %vm149_vm0, %v3118_v41, %v3125_v56  ;;  %v3123_v53 = vrot.slane %v3118_v41, 4  ;;  %v3114_v52 = vperm.slane %v3108_v28, %v4501_v18 }
 0x493   :  { %v2932_v62 = vsel %vm149_vm0, %v2931_v1, %v2914_v39  ;;  %v2943_v14 = vrot.slane %v2930_v2, 4  ;;  %v2946_v51 = vsel %vm149_vm0, %v2930_v2, %v2945_v50  ;;  %v4081_v61 = vpack.i.bf16 %v3126_v4, %v5898_v54 }
 0x494   :  { %v2938_v0 = vperm.slane %v2932_v62, %v4501_v18  ;;  %v2954_v60 = vperm.slane %v2946_v51, %v4501_v18  ;;  %v2957_v31 = vrot.slane %v2942_v34, 4  ;;  %v3124_v15 = vsel %vm149_vm0, %v3123_v53, %v3106_v46 }
 0x495   :  { %v2944_v8 = vsel %vm149_vm0, %v2943_v14, %v2918_v9  ;;  %4082 = vrot.lane.b32.xlu2 %v4081_v61, %s4359_s8  ;;  %v2679_v27 = vpop.f32.mrf.mxu3  ;;  %v2734_v43 = vpop.f32.mrf.mxu2  ;;  %v4076_v33 = vpack.i.bf16 %v3124_v15, %v5902_v29  ;;  %v3122_v22 = vsel %vm149_vm0, %v3114_v52, %v3121_v35 }
 0x496   :  { %v2950_v54 = vperm.slane %v2944_v8, %v4501_v18  ;;  %v2955_v19 = vrot.slane %v2938_v0, 4  ;;  %v2958_v23 = vsel %vm149_vm0, 0.0, %v2957_v31  ;;  %v2961_v12 = vrot.slane %v2954_v60, 4 }
 0x497   :  { %v3132_v42 = vrot.slane %v2958_v23, 4  ;;  %v2965_v6 = vrot.slane %v2734_v43, 4  ;;  %4077 = vrot.lane.b32.xlu1 %v4076_v33, %s4360_s11  ;;  %v2774_v37 = vpop.f32.mrf.mxu0  ;;  %v2791_v49 = vpop.f32.mrf.mxu1  ;;  %v2964_v9 = vsel %vm149_vm0, %v2963_v44, %v2734_v43  ;;  %v3127_v26 = vsel %vm149_vm0, %v2957_v31, %v2938_v0 }
 0x498   :  { %v2956_v29 = vsel %vm149_vm0, 0.0, %v2955_v19  ;;  %v2959_v39 = vrot.slane %v2950_v54, 4  ;;  %v2962_v16 = vsel %vm149_vm0, 0.0, %v2961_v12  ;;  %v3138_v59 = vsel %vm149_vm0, %v2961_v12, %v2950_v54 }
 0x499   :  { %v3143_v38 = vrot.slane %v2962_v16, 4  ;;  %v2966_v58 = vsel %vm149_vm0, %v2772_v30, %v2965_v6  ;;  %v3133_v7 = vsel %vm149_vm0, %v3132_v42, %v2956_v29  ;;  %v2970_v46 = vperm.slane %v2964_v9, %v4490_v5 }
 0x49a   :  { %v2960_v10 = vsel %vm149_vm0, 0.0, %v2959_v39  ;;  %v3142_v13 = vperm.slane %v3138_v59, %v4490_v5  ;;  %v2974_v63 = vperm.slane %v2966_v58, %v4490_v5  ;;  %v2975_v21 = vrot.slane %v2791_v49, 4 }
 0x49b   :  { %v3144_v48 = vsel %vm149_vm0, %v3143_v38, %v2960_v10  ;;  %v3137_v56 = vperm.slane %v3133_v7, %v4490_v5  ;;  %v4071_v50 = vpack.i.bf16 %v3122_v22, %v5905_v32  ;;  %v3131_v2 = vperm.slane %v3127_v26, %v4490_v5 }
 0x49c   :  { %v3148_v20 = vperm.slane %v3144_v48, %v4490_v5  ;;  %v2989_v1 = vrot.slane %v2970_v46, 4  ;;  %v3001_v34 = vrot.slane %v2974_v63, 4  ;;  %v3163_v53 = vrot.slane %v3142_v13, 4 }
 0x49d   :  { %v2736_v30 = vpop.f32.mrf.mxu2  ;;  %v2753_v36 = vpop.f32.mrf.mxu3  ;;  %4072 = vrot.lane.b32.xlu0 %v4071_v50, %s4361_s29  ;;  %v3149_v51 = vrot.slane %v3137_v56, 4  ;;  %v3119_v0 = vrot.slane %v3114_v52, 4  ;;  %v3151_v19 = vrot.slane %v3131_v2, 4 }
 0x49e   :  { %v2976_v25 = vsel %vm149_vm0, %v2975_v21, %v2753_v36  ;;  %v2977_v41 = vrot.slane %v2753_v36, 4  ;;  %v3161_v11 = vrot.slane %v3148_v20, 4  ;;  %v3164_v23 = vsel %vm149_vm0, %v3148_v20, %v3163_v53 }
 0x49f   :  { %v2982_v17 = vperm.slane %v2976_v25, %v4490_v5  ;;  %v2793_v47 = vpop.f32.mrf.mxu1  ;;  %v3150_v12 = vsel %vm149_vm0, %v3149_v51, %v3131_v2  ;;  %v6010_v16 = vsel %vm149_vm0, %v3119_v0, %v5964_v24  ;;  %v3172_v26 = vperm.slane %v3164_v23, %v4501_v18  ;;  %v4002_v23 = vld [vmem:[#allocation8 + $0x8] sm:$0xff] }
 0x4a0   :  { %v2978_v4 = vsel %vm149_vm0, %v2791_v49, %v2977_v41  ;;  %v3162_v43 = vsel %vm149_vm0, %v3161_v11, %v3142_v13  ;;  %v3152_v36 = vsel %vm149_vm0, %v3137_v56, %v3151_v19  ;;  %3331 = vmatpush.bf16.msra.mxu2 %v4002_v23 }
 0x4a1   :  { %v2986_v62 = vperm.slane %v2978_v4, %v4490_v5  ;;  %v2987_v32 = vrot.slane %v2982_v17, 4  ;;  %v2990_v14 = vsel %vm149_vm0, %v2982_v17, %v2989_v1  ;;  %v3168_v39 = vperm.slane %v3162_v43, %v4501_v18 }
 0x4a2   :  { %v2998_v61 = vperm.slane %v2990_v14, %v4501_v18  ;;  %v3177_v50 = vrot.slane %v3172_v26, 4  ;;  %v3160_v53 = vperm.slane %v3152_v36, %v4501_v18 }
 0x4a3   :  { %v2988_v60 = vsel %vm149_vm0, %v2987_v32, %v2970_v46  ;;  %v2999_v31 = vrot.slane %v2986_v62, 4  ;;  %v3002_v15 = vsel %vm149_vm0, %v2986_v62, %v3001_v34  ;;  %v3173_v21 = vrot.slane %v3168_v39, 4 }
 0x4a4   :  { %v2994_v8 = vperm.slane %v2988_v60, %v4501_v18  ;;  %v3010_v44 = vperm.slane %v3002_v15, %v4501_v18  ;;  %v3013_v27 = vrot.slane %v2998_v61, 4  ;;  %v3178_v51 = vsel %vm149_vm0, %v3177_v50, %v3160_v53 }
 0x4a5   :  { %v3000_v33 = vsel %vm149_vm0, %v2999_v31, %v2974_v63  ;;  %v2755_v54 = vpop.f32.mrf.mxu3  ;;  %v3156_v63 = vperm.slane %v3150_v12, %v4501_v18  ;;  %v4001_v12 = vld [vmem:[#allocation8] sm:$0xff] }
 0x4a6   :  { %v3006_v42 = vperm.slane %v3000_v33, %v4501_v18  ;;  %v3011_v6 = vrot.slane %v2994_v8, 4  ;;  %v3014_v28 = vsel %vm149_vm0, 0.0, %v3013_v27  ;;  %v3017_v37 = vrot.slane %v3010_v44, 4  ;;  %3332 = vmatpush.bf16.msra.mxu2 %v4001_v12 }
 0x4a7   :  { %v3181_v49 = vsel %vm149_vm0, %v3013_v27, %v2994_v8  ;;  %v3186_v29 = vrot.slane %v3014_v28, 4  ;;  %v3175_v47 = vrot.slane %v3156_v63, 4  ;;  %v3174_v4 = vsel %vm149_vm0, %v3173_v21, %v3156_v63 }
 0x4a8   :  { %v3012_v9 = vsel %vm149_vm0, 0.0, %v3011_v6  ;;  %v3015_v59 = vrot.slane %v3006_v42, 4  ;;  %v3018_v38 = vsel %vm149_vm0, 0.0, %v3017_v37  ;;  %v3185_v58 = vperm.slane %v3181_v49, %v4490_v5 }
 0x4a9   :  { %v3187_v35 = vsel %vm149_vm0, %v3186_v29, %v3012_v9  ;;  %v3192_v10 = vsel %vm149_vm0, %v3017_v37, %v3006_v42  ;;  %v3197_v7 = vrot.slane %v3018_v38, 4  ;;  %v3176_v0 = vsel %vm149_vm0, %v3168_v39, %v3175_v47 }
 0x4aa   :  { %v3016_v46 = vsel %vm149_vm0, 0.0, %v3015_v59  ;;  %v3196_v52 = vperm.slane %v3192_v10, %v4490_v5  ;;  %v3191_v24 = vperm.slane %v3187_v35, %v4490_v5  ;;  %v3205_v48 = vrot.slane %v3185_v58, 4 }
 0x4ab   :  { %v3198_v13 = vsel %vm149_vm0, %v3197_v7, %v3016_v46  ;;  %v3179_v44 = vrot.slane %v3160_v53, 4 }
 0x4ac   :  { %v3202_v20 = vperm.slane %v3198_v13, %v4490_v5  ;;  %v3217_v22 = vrot.slane %v3196_v52, 4  ;;  %v3203_v30 = vrot.slane %v3191_v24, 4  ;;  %v3206_v25 = vsel %vm149_vm0, %v3191_v24, %v3205_v48 }
 0x4ad   :  { %v3214_v56 = vperm.slane %v3206_v25, %v4501_v18  ;;  %v3180_v33 = vsel %vm149_vm0, %v3172_v26, %v3179_v44 }
 0x4ae   :  { %v3218_v41 = vsel %vm149_vm0, %v3202_v20, %v3217_v22  ;;  %v3204_v2 = vsel %vm149_vm0, %v3203_v30, %v3185_v58  ;;  %v3215_v1 = vrot.slane %v3202_v20, 4 }
 0x4af   :  { %v3226_v17 = vperm.slane %v3218_v41, %v4501_v18  ;;  %v3210_v34 = vperm.slane %v3204_v2, %v4501_v18  ;;  %v3233_v8 = vrot.slane %v3214_v56, 4 }
 0x4b0   :  { %v3216_v11 = vsel %vm149_vm0, %v3215_v1, %v3196_v52  ;;  %v4104_v1 = vld [vmem:[%s6260_s10] ss:$0 sm:$0xff] }
 0x4b1   :  { %v3231_v62 = vrot.slane %v3226_v17, 4  ;;  %v3222_v32 = vperm.slane %v3216_v11, %v4501_v18  ;;  %v3229_v14 = vrot.slane %v3210_v34, 4  ;;  %v3234_v27 = vsel %vm149_vm0, %v3226_v17, %v3233_v8 }
 0x4b2   :  { %v4096_v54 = vpack.i.bf16 %v3234_v27, %v3180_v33 }
 0x4b3   :  { %v3232_v61 = vsel %vm149_vm0, %v3231_v62, %v3214_v56  ;;  %v3230_v60 = vsel %vm149_vm0, %v3222_v32, %v3229_v14  ;;  %v3227_v43 = vrot.slane %v3222_v32, 4 }
 0x4b4   :  { %v4091_v31 = vpack.i.bf16 %v3232_v61, %v3178_v51  ;;  %v4086_v15 = vpack.i.bf16 %v3230_v60, %v3176_v0 }
 0x4b5   :  { %v3228_v19 = vsel %vm149_vm0, %v3227_v43, %v3210_v34 }
 0x4b6   :  { %4092 = vrot.lane.b32.xlu1 %v4091_v31, %s4360_s11  ;;  %4087 = vrot.lane.b32.xlu0 %v4086_v15, %s4361_s29  ;;  %v4362_v15 = vmov 32.0   ;;  %s4365_s11 = smov 128  }
 0x4b7   :  { %4175 = vrcp.f32 %v4362_v15 }
 0x4be   :  { %4097 = vrot.lane.b32.xlu0 %v4096_v54, %s4359_s8  ;;  %s3878_s8 = sshll.u32 %s4364_s28, 4  ;;  %s3879_s8 = int_to_ptr.vmem [resolvable:$true] %s3878_s8 }
 0x4ef   :  { %v4083_v6 = vpop.permute.xlu2 %4082 }
 0x4f0   :  { %v4085_v9 = vunpack.i.h.bf16 %v4083_v6  ;;  %v4084_v59 = vunpack.i.l.bf16 %v4083_v6 }
 0x509   :  { %v4078_v42 = vpop.permute.xlu1 %4077 }
 0x50a   :  { %v4080_v28 = vunpack.i.h.bf16 %v4078_v42  ;;  %v4079_v37 = vunpack.i.l.bf16 %v4078_v42 }
 0x50f   :  { %v4073_v49 = vpop.permute.xlu0 %4072 }
 0x510   :  { %v4075_v29 = vunpack.i.h.bf16 %v4073_v49  ;;  %v4074_v39 = vunpack.i.l.bf16 %v4073_v49 }
 0x512   :  { %v3283_v38 = vsel %vm1977_vm2, %v5908_v3, %v4074_v39  ;;  %v3284_v58 = vsel %vm1977_vm2, %v6010_v16, %v4075_v29 }
 0x513   :  { %v3288_v35 = vsel %vm3287_vm4, %v3283_v38, %v4079_v37  ;;  %v3289_v10 = vsel %vm3287_vm4, %v3284_v58, %v4080_v28 }
 0x514   :  { %v3293_v7 = vsel %vm3292_vm5, %v3288_v35, %v4084_v59  ;;  %v3294_v26 = vsel %vm3292_vm5, %v3289_v10, %v4085_v9 }
 0x515   :  { %v3297_v46 = vpack.c.bf16 %v3294_v26, %v3293_v7 }
 0x517   :  { %3965 = vmatmul.msk.bf16.vlgmr.msra.gmra.mxu2 %vm361_vm1, %v3297_v46 }
 0x528   :  { %v4088_v52 = vpop.permute.xlu0 %4087  ;;  %v4093_v24 = vpop.permute.xlu1 %4092 }
 0x529   :  { %v4090_v48 = vunpack.i.h.bf16 %v4088_v52  ;;  %v4089_v13 = vunpack.i.l.bf16 %v4088_v52  ;;  %v4095_v63 = vunpack.i.h.bf16 %v4093_v24  ;;  %v4094_v3 = vunpack.i.l.bf16 %v4093_v24  ;;  %v4004_v24 = vld [vmem:[#allocation10 + $0x8] sm:$0xff] }
 0x52a   :  { %3493 = vmatpush.bf16.msrb.mxu3 %v4004_v24 }
 0x52b   :  { %v3285_v21 = vsel %vm1977_vm2, %v3174_v4, %v4089_v13  ;;  %v3286_v16 = vsel %vm1977_vm2, %v3228_v19, %v4090_v48  ;;  %v4003_v48 = vld [vmem:[#allocation10] sm:$0xff] }
 0x52c   :  { %v3290_v36 = vsel %vm3287_vm4, %v3285_v21, %v4094_v3  ;;  %v3291_v50 = vsel %vm3287_vm4, %v3286_v16, %v4095_v63 }
 0x52e   :  { %3494 = vmatpush.bf16.msrb.mxu3 %v4003_v48 }
 0x530   :  { %v4098_v20 = vpop.permute.xlu0 %4097 }
 0x531   :  { %v4100_v22 = vunpack.i.h.bf16 %v4098_v20  ;;  %v4099_v30 = vunpack.i.l.bf16 %v4098_v20 }
 0x533   :  { %v3295_v25 = vsel %vm3292_vm5, %v3290_v36, %v4099_v30  ;;  %v3296_v41 = vsel %vm3292_vm5, %v3291_v50, %v4100_v22  ;;  %vm3548_vm5 = vcmask 523264  }
 0x534   :  { %v3298_v2 = vpack.c.bf16 %v3296_v41, %v3295_v25 }
 0x536   :  { %3966 = vmatmul.msk.bf16.gmra.mxu2 %vm361_vm1, %v3298_v2 }
 0x59a   :  { %v3334_v17 = vpop.f32.mrf.mxu2 }
 0x59b   :  { %v3335_v47 = vadd.f32 %v4104_v1, %v3334_v17 }
 0x59d   :  { %v3344_v34 = vadd.f32 %v3335_v47, %v4581_v57  ;;  %v4105_v47 = vld [vmem:[%s6265_s15] ss:$0 sm:$0xff] }
 0x59f   :  { %v3350_v4 = vsel %vm361_vm1, %v3344_v34, 0.0 }
 0x5a0   :  { %3351 = vadd.xlane.f32.xlu2 %v3350_v4 }
 0x5a2   :  { %v3336_v53 = vpop.f32.mrf.mxu2 }
 0x5a3   :  { %v3337_v11 = vadd.f32 %v4104_v1, %v3336_v53 }
 0x5a5   :  { %v3345_v56 = vadd.f32 %v3337_v11, %v4577_v55  ;;  %v4176_v55 = vpop.eup %4175 }
 0x5a6   :  { %v3363_v8 = vmul.f32 32.0, %v4176_v55  ;;  %vm3367_vm6 = vweird.f32 %v4176_v55 }
 0x5a7   :  { %v3353_v62 = vsel %vm361_vm1, %v3345_v56, 0.0 }
 0x5a8   :  { %3354 = vadd.xlane.f32.xlu1 %v3353_v62  ;;  %v3364_v44 = vsub.f32 1.0, %v3363_v8  ;;  %v4106_v62 = vld [vmem:[%s6266_s16] ss:$0 sm:$0xff] }
 0x5aa   :  { %v3365_v27 = vmul.f32 %v4176_v55, %v3364_v44 }
 0x5ac   :  { %v3366_v43 = vadd.f32 %v4176_v55, %v3365_v27 }
 0x5ae   :  { %v6072_v33 = vsel %vm3367_vm6, %v4176_v55, %v3366_v43 }
 0x5b9   :  { %v3339_v32 = vpop.f32.mrf.mxu2 }
 0x5ba   :  { %v3340_v14 = vadd.f32 %v4104_v1, %v3339_v32 }
 0x5bc   :  { %v3346_v51 = vadd.f32 %v3340_v14, %v4567_v45 }
 0x5be   :  { %v3356_v61 = vsel %vm361_vm1, %v3346_v51, 0.0 }
 0x5bf   :  { %3357 = vadd.xlane.f32.xlu0 %v3356_v61 }
 0x5c1   :  { %v3341_v0 = vpop.f32.mrf.mxu2 }
 0x5c2   :  { %v3342_v60 = vadd.f32 %v4104_v1, %v3341_v0 }
 0x5c4   :  { %v3347_v57 = vadd.f32 %v3342_v60, %v4562_v40 }
 0x5c6   :  { %v3359_v31 = vsel %vm361_vm1, %v3347_v57, 0.0 }
 0x5c7   :  { %3360 = vadd.xlane.f32.xlu2 %v3359_v31 }
 0x613   :  { %v3352_v45 = vpop.xlane.xlu2 %3351 }
 0x614   :  { %v3369_v54 = vmul.f32 %v6072_v33, %v3352_v45 }
 0x616   :  { %v3373_v19 = vsub.f32 %v3344_v34, %v3369_v54 }
 0x618   :  { %v3377_v23 = vmul.f32 %v3373_v19, %v3373_v19 }
 0x61a   :  { %v3381_v40 = vsel %vm361_vm1, %v3377_v23, 0.0 }
 0x61b   :  { %v3355_v12 = vpop.xlane.xlu1 %3354  ;;  %3382 = vadd.xlane.f32.xlu1 %v3381_v40 }
 0x61c   :  { %v3370_v42 = vmul.f32 %v6072_v33, %v3355_v12 }
 0x61e   :  { %v3374_v6 = vsub.f32 %v3345_v56, %v3370_v42 }
 0x620   :  { %v3378_v28 = vmul.f32 %v3374_v6, %v3374_v6 }
 0x622   :  { %v3384_v37 = vsel %vm361_vm1, %v3378_v28, 0.0 }
 0x623   :  { %3385 = vadd.xlane.f32.xlu0 %v3384_v37 }
 0x632   :  { %v3358_v49 = vpop.xlane.xlu0 %3357 }
 0x633   :  { %v3371_v29 = vmul.f32 %v6072_v33, %v3358_v49 }
 0x635   :  { %v6079_v39 = vsub.f32 %v3346_v51, %v3371_v29 }
 0x637   :  { %v3379_v9 = vmul.f32 %v6079_v39, %v6079_v39 }
 0x639   :  { %v3387_v59 = vsel %vm361_vm1, %v3379_v9, 0.0 }
 0x63a   :  { %3388 = vadd.xlane.f32.xlu2 %v3387_v59  ;;  %v3361_v38 = vpop.xlane.xlu2 %3360 }
 0x63b   :  { %v3372_v58 = vmul.f32 %v6072_v33, %v3361_v38 }
 0x63d   :  { %v6085_v35 = vsub.f32 %v3347_v57, %v3372_v58 }
 0x63f   :  { %v3380_v10 = vmul.f32 %v6085_v35, %v6085_v35 }
 0x641   :  { %v3390_v7 = vsel %vm361_vm1, %v3380_v10, 0.0 }
 0x642   :  { %3391 = vadd.xlane.f32.xlu1 %v3390_v7  ;;  %v4008_v7 = vld [vmem:[%s6263_s13 + $0x18] sm:$0xff] }
 0x643   :  { %3559 = vmatpush.bf16.msrb.mxu0 %v4008_v7 }
 0x68e   :  { %v3383_v26 = vpop.xlane.xlu1 %3382 }
 0x68f   :  { %v3393_v46 = vmul.f32 %v3383_v26, %v6072_v33  ;;  %v4005_v26 = vld [vmem:[%s6263_s13] sm:$0xff] }
 0x691   :  { %v3397_v52 = vadd.f32 1e-05, %v3393_v46 }
 0x693   :  { %4177 = vrsqrt.f32 %v3397_v52  ;;  %vm3407_vm8 = vweird.f32 %v3397_v52 }
 0x696   :  { %v3386_v13 = vpop.xlane.xlu0 %3385 }
 0x697   :  { %v3394_v63 = vmul.f32 %v3386_v13, %v6072_v33 }
 0x699   :  { %v4178_v3 = vpop.eup %4177  ;;  %v3398_v21 = vadd.f32 1e-05, %v3394_v63 }
 0x69a   :  { %v3402_v16 = vmul.f32 %v4178_v3, %v3397_v52  ;;  %vm3408_vm7 = vweird.f32 %v4178_v3  ;;  %v4107_v52 = vld [vmem:[%s6262_s12] ss:$0 sm:$0xff] }
 0x69b   :  { %4179 = vrsqrt.f32 %v3398_v21  ;;  %vm3409_vm9 = vmor %vm3407_vm8, %vm3408_vm7  ;;  %vm3417_vm11 = vweird.f32 %v3398_v21 }
 0x69c   :  { %v3403_v20 = vmul.f32 %v4178_v3, %v3402_v16 }
 0x69e   :  { %v3404_v22 = vmul.f32 0.5, %v3403_v20 }
 0x6a0   :  { %v3405_v30 = vsub.f32 1.5, %v3404_v22 }
 0x6a1   :  { %v4180_v36 = vpop.eup %4179 }
 0x6a2   :  { %v3406_v50 = vmul.f32 %v4178_v3, %v3405_v30  ;;  %v3412_v25 = vmul.f32 %v4180_v36, %v3398_v21  ;;  %vm3418_vm10 = vweird.f32 %v4180_v36 }
 0x6a3   :  { %vm3419_vm12 = vmor %vm3417_vm11, %vm3418_vm10 }
 0x6a4   :  { %v3413_v41 = vmul.f32 %v4180_v36, %v3412_v25  ;;  %v3410_v2 = vsel %vm3409_vm9, %v4178_v3, %v3406_v50 }
 0x6a5   :  { %v3441_v34 = vmul.f32 %v3410_v2, %v3373_v19 }
 0x6a6   :  { %v3414_v1 = vmul.f32 0.5, %v3413_v41  ;;  %v4108_v41 = vld [vmem:[%s6264_s14] ss:$0 sm:$0xff] }
 0x6a7   :  { %v3448_v32 = vmul.f32 %v4105_v47, %v3441_v34 }
 0x6a8   :  { %v3415_v17 = vsub.f32 1.5, %v3414_v1 }
 0x6a9   :  { %v6099_v0 = vadd.f32 %v4106_v62, %v3448_v32 }
 0x6aa   :  { %v3416_v4 = vmul.f32 %v4180_v36, %v3415_v17 }
 0x6ac   :  { %v3420_v56 = vsel %vm3419_vm12, %v4180_v36, %v3416_v4 }
 0x6ad   :  { %v3389_v53 = vpop.xlane.xlu2 %3388  ;;  %v3442_v14 = vmul.f32 %v3420_v56, %v3374_v6 }
 0x6ae   :  { %v3395_v11 = vmul.f32 %v3389_v53, %v6072_v33 }
 0x6af   :  { %v3449_v61 = vmul.f32 %v4105_v47, %v3442_v14 }
 0x6b0   :  { %v3399_v51 = vadd.f32 1e-05, %v3395_v11 }
 0x6b1   :  { %v6101_v60 = vadd.f32 %v4106_v62, %v3449_v61 }
 0x6b2   :  { %4181 = vrsqrt.f32 %v3399_v51  ;;  %vm3427_vm14 = vweird.f32 %v3399_v51 }
 0x6b3   :  { %v3459_v31 = vpack.c.bf16 %v6101_v60, %v6099_v0 }
 0x6b5   :  { %v3392_v57 = vpop.xlane.xlu1 %3391  ;;  %3975 = vmatmul.msk.bf16.vlgmr.msrb.gmra.mxu3 %vm361_vm1, %v3459_v31 }
 0x6b6   :  { %v3396_v15 = vmul.f32 %v3392_v57, %v6072_v33 }
 0x6b8   :  { %v4182_v55 = vpop.eup %4181  ;;  %v3400_v8 = vadd.f32 1e-05, %v3396_v15 }
 0x6b9   :  { %v3422_v44 = vmul.f32 %v4182_v55, %v3399_v51  ;;  %vm3428_vm13 = vweird.f32 %v4182_v55 }
 0x6ba   :  { %4183 = vrsqrt.f32 %v3400_v8  ;;  %vm3429_vm15 = vmor %vm3427_vm14, %vm3428_vm13  ;;  %vm3437_vm3 = vweird.f32 %v3400_v8 }
 0x6bb   :  { %v3423_v27 = vmul.f32 %v4182_v55, %v3422_v44 }
 0x6bd   :  { %v3424_v43 = vmul.f32 0.5, %v3423_v27 }
 0x6bf   :  { %v3425_v45 = vsub.f32 1.5, %v3424_v43 }
 0x6c0   :  { %v4184_v54 = vpop.eup %4183 }
 0x6c1   :  { %v3426_v19 = vmul.f32 %v4182_v55, %v3425_v45  ;;  %v3432_v23 = vmul.f32 %v4184_v54, %v3400_v8  ;;  %vm3438_vm2 = vweird.f32 %v4184_v54 }
 0x6c2   :  { %vm3439_vm4 = vmor %vm3437_vm3, %vm3438_vm2 }
 0x6c3   :  { %v3433_v40 = vmul.f32 %v4184_v54, %v3432_v23  ;;  %v3430_v12 = vsel %vm3429_vm15, %v4182_v55, %v3426_v19 }
 0x6c4   :  { %v3443_v28 = vmul.f32 %v3430_v12, %v6079_v39  ;;  %v4007_v39 = vld [vmem:[%s6263_s13 + $0x10] sm:$0xff] }
 0x6c5   :  { %v3434_v42 = vmul.f32 0.5, %v3433_v40  ;;  %3560 = vmatpush.bf16.msrb.mxu0 %v4007_v39 }
 0x6c6   :  { %v3450_v9 = vmul.f32 %v4105_v47, %v3443_v28 }
 0x6c7   :  { %v3435_v6 = vsub.f32 1.5, %v3434_v42 }
 0x6c8   :  { %v3457_v38 = vadd.f32 %v4106_v62, %v3450_v9 }
 0x6c9   :  { %v3436_v37 = vmul.f32 %v4184_v54, %v3435_v6 }
 0x6cb   :  { %v3440_v49 = vsel %vm3439_vm4, %v4184_v54, %v3436_v37 }
 0x6cc   :  { %v3444_v29 = vmul.f32 %v3440_v49, %v6085_v35  ;;  %v4006_v35 = vld [vmem:[%s6263_s13 + $0x8] sm:$0xff] }
 0x6cd   :  { %3561 = vmatpush.bf16.msrb.mxu0 %v4006_v35 }
 0x6ce   :  { %v3451_v59 = vmul.f32 %v4105_v47, %v3444_v29 }
 0x6d0   :  { %v3458_v58 = vadd.f32 %v4106_v62, %v3451_v59 }
 0x6d1   :  { %3562 = vmatpush.bf16.msrb.mxu0 %v4005_v26 }
 0x6d2   :  { %v3460_v10 = vpack.c.bf16 %v3458_v58, %v3457_v38 }
 0x6d4   :  { %3976 = vmatmul.msk.bf16.gmra.mxu3 %vm361_vm1, %v3460_v10 }
 0x738   :  { %v3496_v46 = vpop.f32.mrf.mxu3 }
 0x739   :  { %v3497_v24 = vadd.f32 %v4107_v52, %v3496_v46 }
 0x73b   :  { %v3506_v63 = vmax.f32 %v3497_v24, 0.0 }
 0x740   :  { %v3498_v48 = vpop.f32.mrf.mxu3 }
 0x741   :  { %v3499_v13 = vadd.f32 %v4107_v52, %v3498_v48 }
 0x743   :  { %v3507_v3 = vmax.f32 %v3499_v13, 0.0 }
 0x745   :  { %v3510_v21 = vpack.c.bf16 %v3507_v3, %v3506_v63  ;;  %v6157_v63 = vld [vmem:[%s6267_s17] ss:$0 sm:$0xff]  ;;  %s4363_s17 = smov 32  }
 0x747   :  { %3993 = vmatmul.msk.bf16.vlgmr.msrb.gmra.mxu0 %vm3548_vm5, %v3510_v21 }
 0x757   :  { %v3501_v16 = vpop.f32.mrf.mxu3 }
 0x758   :  { %v3502_v20 = vadd.f32 %v4107_v52, %v3501_v16  ;;  %v6162_v16 = vld [vmem:[%s6268_s18] ss:$0 sm:$0xff] }
 0x75a   :  { %v3508_v36 = vmax.f32 %v3502_v20, 0.0 }
 0x75f   :  { %v3503_v22 = vpop.f32.mrf.mxu3 }
 0x760   :  { %v3504_v30 = vadd.f32 %v4107_v52, %v3503_v22 }
 0x762   :  { %v3509_v50 = vmax.f32 %v3504_v30, 0.0 }
 0x764   :  { %v3511_v25 = vpack.c.bf16 %v3509_v50, %v3508_v36 }
 0x766   :  { %3994 = vmatmul.msk.bf16.gmra.mxu0 %vm3548_vm5, %v3511_v25 }
 0x7c4   :  { %v3564_v2 = vpop.f32.mrf.mxu0 }
 0x7c5   :  { %v3565_v1 = vadd.f32 %v4108_v41, %v3564_v2 }
 0x7c7   :  { %v3574_v17 = vadd.f32 %v3565_v1, %v6099_v0 }
 0x7c9   :  { %v3580_v47 = vsel %vm361_vm1, %v3574_v17, 0.0 }
 0x7ca   :  { %3581 = vadd.xlane.f32.xlu0 %v3580_v47 }
 0x7cc   :  { %v3566_v34 = vpop.f32.mrf.mxu0 }
 0x7cd   :  { %v3567_v4 = vadd.f32 %v4108_v41, %v3566_v34 }
 0x7cf   :  { %v3575_v53 = vadd.f32 %v3567_v4, %v6101_v60 }
 0x7d1   :  { %v3583_v11 = vsel %vm361_vm1, %v3575_v53, 0.0 }
 0x7d2   :  { %3584 = vadd.xlane.f32.xlu1 %v3583_v11 }
 0x7e3   :  { %v3569_v56 = vpop.f32.mrf.mxu0 }
 0x7e4   :  { %v3570_v62 = vadd.f32 %v4108_v41, %v3569_v56 }
 0x7e6   :  { %v3576_v32 = vadd.f32 %v3570_v62, %v3457_v38 }
 0x7e8   :  { %v3586_v14 = vsel %vm361_vm1, %v3576_v32, 0.0 }
 0x7e9   :  { %3587 = vadd.xlane.f32.xlu2 %v3586_v14 }
 0x7eb   :  { %v3571_v51 = vpop.f32.mrf.mxu0 }
 0x7ec   :  { %v3572_v61 = vadd.f32 %v4108_v41, %v3571_v51 }
 0x7ee   :  { %v3577_v57 = vadd.f32 %v3572_v61, %v3458_v58 }
 0x7f0   :  { %v3589_v0 = vsel %vm361_vm1, %v3577_v57, 0.0 }
 0x7f1   :  { %3590 = vadd.xlane.f32.xlu0 %v3589_v0 }
 0x83d   :  { %v3582_v31 = vpop.xlane.xlu0 %3581 }
 0x83e   :  { %v3592_v15 = vmul.f32 %v3582_v31, %v6072_v33 }
 0x840   :  { %v3596_v55 = vsub.f32 %v3574_v17, %v3592_v15 }
 0x842   :  { %v3600_v60 = vmul.f32 %v3596_v55, %v3596_v55 }
 0x844   :  { %v3604_v8 = vsel %vm361_vm1, %v3600_v60, 0.0 }
 0x845   :  { %v3585_v44 = vpop.xlane.xlu1 %3584  ;;  %3605 = vadd.xlane.f32.xlu2 %v3604_v8 }
 0x846   :  { %v3593_v27 = vmul.f32 %v3585_v44, %v6072_v33 }
 0x848   :  { %v3597_v43 = vsub.f32 %v3575_v53, %v3593_v27 }
 0x84a   :  { %v3601_v45 = vmul.f32 %v3597_v43, %v3597_v43 }
 0x84c   :  { %v3607_v54 = vsel %vm361_vm1, %v3601_v45, 0.0 }
 0x84d   :  { %3608 = vadd.xlane.f32.xlu0 %v3607_v54 }
 0x85c   :  { %v3588_v19 = vpop.xlane.xlu2 %3587 }
 0x85d   :  { %v3594_v23 = vmul.f32 %v3588_v19, %v6072_v33 }
 0x85f   :  { %v6141_v40 = vsub.f32 %v3576_v32, %v3594_v23 }
 0x861   :  { %v3602_v12 = vmul.f32 %v6141_v40, %v6141_v40 }
 0x863   :  { %v3610_v42 = vsel %vm361_vm1, %v3602_v12, 0.0 }
 0x864   :  { %v3591_v6 = vpop.xlane.xlu0 %3590  ;;  %3611 = vadd.xlane.f32.xlu1 %v3610_v42 }
 0x865   :  { %v3595_v28 = vmul.f32 %v3591_v6, %v6072_v33 }
 0x867   :  { %v6147_v37 = vsub.f32 %v3577_v57, %v3595_v28 }
 0x869   :  { %v3603_v49 = vmul.f32 %v6147_v37, %v6147_v37 }
 0x86b   :  { %v3613_v29 = vsel %vm361_vm1, %v3603_v49, 0.0 }
 0x86c   :  { %3614 = vadd.xlane.f32.xlu2 %v3613_v29 }
 0x8b8   :  { %v3606_v9 = vpop.xlane.xlu2 %3605 }
 0x8b9   :  { %v3616_v59 = vmul.f32 %v3606_v9, %v6072_v33 }
 0x8bb   :  { %v3620_v38 = vadd.f32 1e-05, %v3616_v59 }
 0x8bd   :  { %4185 = vrsqrt.f32 %v3620_v38  ;;  %vm3630_vm7 = vweird.f32 %v3620_v38 }
 0x8c0   :  { %v3609_v58 = vpop.xlane.xlu0 %3608 }
 0x8c1   :  { %v3617_v10 = vmul.f32 %v3609_v58, %v6072_v33 }
 0x8c3   :  { %v4186_v7 = vpop.eup %4185  ;;  %v3621_v39 = vadd.f32 1e-05, %v3617_v10 }
 0x8c4   :  { %v3625_v35 = vmul.f32 %v4186_v7, %v3620_v38  ;;  %vm3631_vm6 = vweird.f32 %v4186_v7 }
 0x8c5   :  { %4187 = vrsqrt.f32 %v3621_v39  ;;  %vm3632_vm8 = vmor %vm3630_vm7, %vm3631_vm6  ;;  %vm3640_vm10 = vweird.f32 %v3621_v39 }
 0x8c6   :  { %v3626_v26 = vmul.f32 %v4186_v7, %v3625_v35 }
 0x8c8   :  { %v3627_v46 = vmul.f32 0.5, %v3626_v26 }
 0x8ca   :  { %v3628_v52 = vsub.f32 1.5, %v3627_v46 }
 0x8cb   :  { %v4188_v24 = vpop.eup %4187 }
 0x8cc   :  { %v3629_v48 = vmul.f32 %v4186_v7, %v3628_v52  ;;  %v3635_v13 = vmul.f32 %v4188_v24, %v3621_v39  ;;  %vm3641_vm9 = vweird.f32 %v4188_v24 }
 0x8cd   :  { %vm3642_vm11 = vmor %vm3640_vm10, %vm3641_vm9 }
 0x8ce   :  { %v3633_v3 = vsel %vm3632_vm8, %v4186_v7, %v3629_v48  ;;  %v3636_v21 = vmul.f32 %v4188_v24, %v3635_v13 }
 0x8cf   :  { %v3664_v20 = vmul.f32 %v3633_v3, %v3596_v55 }
 0x8d0   :  { %v3637_v22 = vmul.f32 0.5, %v3636_v21 }
 0x8d1   :  { %v3671_v30 = vmul.f32 %v6157_v63, %v3664_v20 }
 0x8d2   :  { %v3638_v36 = vsub.f32 1.5, %v3637_v22 }
 0x8d3   :  { %v3678_v50 = vadd.f32 %v6162_v16, %v3671_v30 }
 0x8d4   :  { %v3639_v25 = vmul.f32 %v4188_v24, %v3638_v36 }
 0x8d5   :  { %v3682_v2 = vrot.slane %v3678_v50, 4  ;;  %v3687_v53 = vperm.slane %v3678_v50, %v4490_v5 }
 0x8d6   :  { %v3643_v17 = vsel %vm3642_vm11, %v4188_v24, %v3639_v25 }
 0x8d7   :  { %v3612_v41 = vpop.xlane.xlu1 %3611  ;;  %v3665_v47 = vmul.f32 %v3643_v17, %v3597_v43  ;;  %v3683_v4 = vsel %vm149_vm0, 0.0, %v3682_v2  ;;  %v3704_v14 = vrot.slane %v3687_v53, 4 }
 0x8d8   :  { %v3618_v1 = vmul.f32 %v3612_v41, %v6072_v33  ;;  %v3691_v62 = vperm.slane %v3683_v4, %v4490_v5 }
 0x8d9   :  { %v3672_v11 = vmul.f32 %v6157_v63, %v3665_v47 }
 0x8da   :  { %v3622_v34 = vadd.f32 1e-05, %v3618_v1  ;;  %v3716_v8 = vrot.slane %v3691_v62, 4 }
 0x8db   :  { %v3679_v56 = vadd.f32 %v6162_v16, %v3672_v11 }
 0x8dc   :  { %4189 = vrsqrt.f32 %v3622_v34  ;;  %vm3650_vm13 = vweird.f32 %v3622_v34 }
 0x8dd   :  { %v3692_v51 = vrot.slane %v3679_v56, 4  ;;  %v3697_v61 = vperm.slane %v3679_v56, %v4490_v5 }
 0x8df   :  { %v3615_v32 = vpop.xlane.xlu2 %3614  ;;  %v3693_v31 = vsel %vm149_vm0, 0.0, %v3692_v51  ;;  %v3702_v15 = vrot.slane %v3697_v61, 4  ;;  %v3705_v55 = vsel %vm149_vm0, %v3697_v61, %v3704_v14 }
 0x8e0   :  { %v3619_v57 = vmul.f32 %v3615_v32, %v6072_v33  ;;  %v3701_v44 = vperm.slane %v3693_v31, %v4490_v5  ;;  %v3713_v43 = vperm.slane %v3705_v55, %v4501_v18 }
 0x8e1   :  { %v3703_v45 = vsel %vm149_vm0, %v3702_v15, %v3687_v53 }
 0x8e2   :  { %v4190_v0 = vpop.eup %4189  ;;  %v3623_v60 = vadd.f32 1e-05, %v3619_v57  ;;  %v3714_v54 = vrot.slane %v3701_v44, 4  ;;  %v3709_v33 = vperm.slane %v3703_v45, %v4501_v18  ;;  %v3717_v23 = vsel %vm149_vm0, %v3701_v44, %v3716_v8 }
 0x8e3   :  { %v3645_v27 = vmul.f32 %v4190_v0, %v3622_v34  ;;  %v3725_v12 = vperm.slane %v3717_v23, %v4501_v18  ;;  %v3728_v42 = vrot.slane %v3713_v43, 4  ;;  %vm3651_vm12 = vweird.f32 %v4190_v0 }
 0x8e4   :  { %4191 = vrsqrt.f32 %v3623_v60  ;;  %v3715_v28 = vsel %vm149_vm0, %v3714_v54, %v3691_v62  ;;  %v3726_v49 = vrot.slane %v3709_v33, 4  ;;  %vm3652_vm14 = vmor %vm3650_vm13, %vm3651_vm12  ;;  %vm3660_vm2 = vweird.f32 %v3623_v60 }
 0x8e5   :  { %v3646_v19 = vmul.f32 %v4190_v0, %v3645_v27  ;;  %v3721_v29 = vperm.slane %v3715_v28, %v4501_v18  ;;  %v3729_v9 = vsel %vm149_vm0, 0.0, %v3728_v42  ;;  %v3732_v59 = vrot.slane %v3725_v12, 4 }
 0x8e6   :  { %v3727_v58 = vsel %vm149_vm0, 0.0, %v3726_v49  ;;  %v3791_v10 = vrot.slane %v3729_v9, 4  ;;  %v3786_v26 = vsel %vm149_vm0, %v3728_v42, %v3709_v33 }
 0x8e7   :  { %v3647_v6 = vmul.f32 0.5, %v3646_v19  ;;  %v3730_v39 = vrot.slane %v3721_v29, 4  ;;  %v3733_v35 = vsel %vm149_vm0, 0.0, %v3732_v59  ;;  %v3790_v22 = vperm.slane %v3786_v26, %v4490_v5 }
 0x8e8   :  { %v3792_v24 = vsel %vm149_vm0, %v3791_v10, %v3727_v58  ;;  %v3802_v3 = vrot.slane %v3733_v35, 4  ;;  %v3797_v36 = vsel %vm149_vm0, %v3732_v59, %v3721_v29 }
 0x8e9   :  { %v3648_v38 = vsub.f32 1.5, %v3647_v6  ;;  %v3731_v48 = vsel %vm149_vm0, 0.0, %v3730_v39  ;;  %v3796_v13 = vperm.slane %v3792_v24, %v4490_v5  ;;  %v3801_v34 = vperm.slane %v3797_v36, %v4490_v5 }
 0x8ea   :  { %v4192_v7 = vpop.eup %4191  ;;  %v3803_v50 = vsel %vm149_vm0, %v3802_v3, %v3731_v48 }
 0x8eb   :  { %v3649_v46 = vmul.f32 %v4190_v0, %v3648_v38  ;;  %v3655_v52 = vmul.f32 %v4192_v7, %v3623_v60  ;;  %v3808_v25 = vrot.slane %v3796_v13, 4  ;;  %v3807_v2 = vperm.slane %v3803_v50, %v4490_v5 }
 0x8ec   :  { %vm3661_vm15 = vweird.f32 %v4192_v7 }
 0x8ed   :  { %v3653_v21 = vsel %vm3652_vm14, %v4190_v0, %v3649_v46  ;;  %v3656_v20 = vmul.f32 %v4192_v7, %v3655_v52  ;;  %v3809_v17 = vsel %vm149_vm0, %v3808_v25, %v3790_v22  ;;  %v3814_v53 = vrot.slane %v3807_v2, 4  ;;  %vm3662_vm3 = vmor %vm3660_vm2, %vm3661_vm15 }
 0x8ee   :  { %v3666_v30 = vmul.f32 %v3653_v21, %v6141_v40  ;;  %v3813_v4 = vperm.slane %v3809_v17, %v4501_v18 }
 0x8ef   :  { %v3657_v41 = vmul.f32 0.5, %v3656_v20  ;;  %v3815_v56 = vsel %vm149_vm0, %v3814_v53, %v3801_v34 }
 0x8f0   :  { %v3673_v1 = vmul.f32 %v6157_v63, %v3666_v30  ;;  %v3822_v62 = vrot.slane %v3813_v4, 4  ;;  %v3819_v14 = vperm.slane %v3815_v56, %v4501_v18 }
 0x8f1   :  { %v3658_v47 = vsub.f32 1.5, %v3657_v41 }
 0x8f2   :  { %v3680_v40 = vadd.f32 %v6162_v16, %v3673_v1  ;;  %v3823_v57 = vsel %vm149_vm0, %v3819_v14, %v3822_v62  ;;  %v3820_v0 = vrot.slane %v3819_v14, 4 }
 0x8f3   :  { %v3659_v11 = vmul.f32 %v4192_v7, %v3658_v47  ;;  %3864 = vrot.lane.b32.xlu1 %v3823_v57, %s4363_s17 }
 0x8f4   :  { %v3734_v32 = vrot.slane %v3680_v40, 4  ;;  %v3739_v15 = vperm.slane %v3680_v40, %v4490_v5  ;;  %v3821_v60 = vsel %vm149_vm0, %v3820_v0, %v3813_v4 }
 0x8f5   :  { %v3663_v51 = vsel %vm3662_vm3, %v4192_v7, %v3659_v11 }
 0x8f6   :  { %v3667_v61 = vmul.f32 %v3663_v51, %v6147_v37  ;;  %v3735_v31 = vsel %vm149_vm0, 0.0, %v3734_v32  ;;  %v3756_v27 = vrot.slane %v3739_v15, 4 }
 0x8f7   :  { %v3743_v44 = vperm.slane %v3735_v31, %v4490_v5 }
 0x8f8   :  { %v3674_v55 = vmul.f32 %v6157_v63, %v3667_v61 }
 0x8f9   :  { %v3768_v33 = vrot.slane %v3743_v44, 4 }
 0x8fa   :  { %v3681_v8 = vadd.f32 %v6162_v16, %v3674_v55 }
 0x8fc   :  { %v3744_v37 = vrot.slane %v3681_v8, 4  ;;  %v3749_v43 = vperm.slane %v3681_v8, %v4490_v5 }
 0x8fe   :  { %v3745_v45 = vsel %vm149_vm0, 0.0, %v3744_v37  ;;  %v3754_v54 = vrot.slane %v3749_v43, 4  ;;  %v3757_v19 = vsel %vm149_vm0, %v3749_v43, %v3756_v27 }
 0x8ff   :  { %v3753_v23 = vperm.slane %v3745_v45, %v4490_v5  ;;  %v3765_v63 = vperm.slane %v3757_v19, %v4501_v18 }
 0x900   :  { %v3755_v12 = vsel %vm149_vm0, %v3754_v54, %v3739_v15 }
 0x901   :  { %v3766_v42 = vrot.slane %v3753_v23, 4  ;;  %v3761_v16 = vperm.slane %v3755_v12, %v4501_v18  ;;  %v3769_v6 = vsel %vm149_vm0, %v3753_v23, %v3768_v33  ;;  %v3780_v28 = vrot.slane %v3765_v63, 4 }
 0x902   :  { %v3777_v49 = vperm.slane %v3769_v6, %v4501_v18 }
 0x903   :  { %v3767_v29 = vsel %vm149_vm0, %v3766_v42, %v3743_v44  ;;  %v3778_v9 = vrot.slane %v3761_v16, 4  ;;  %v3781_v59 = vsel %vm149_vm0, 0.0, %v3780_v28  ;;  %v3824_v26 = vsel %vm149_vm0, %v3780_v28, %v3761_v16 }
 0x904   :  { %v3773_v38 = vperm.slane %v3767_v29, %v4501_v18  ;;  %v3784_v58 = vrot.slane %v3777_v49, 4  ;;  %v3829_v10 = vrot.slane %v3781_v59, 4  ;;  %v3828_v13 = vperm.slane %v3824_v26, %v4490_v5 }
 0x905   :  { %v3779_v7 = vsel %vm149_vm0, 0.0, %v3778_v9 }
 0x906   :  { %v3782_v39 = vrot.slane %v3773_v38, 4  ;;  %v3785_v35 = vsel %vm149_vm0, 0.0, %v3784_v58  ;;  %v3830_v46 = vsel %vm149_vm0, %v3829_v10, %v3779_v7  ;;  %v3835_v3 = vsel %vm149_vm0, %v3784_v58, %v3773_v38 }
 0x907   :  { %v3834_v52 = vperm.slane %v3830_v46, %v4490_v5  ;;  %v3840_v24 = vrot.slane %v3785_v35, 4  ;;  %v3839_v36 = vperm.slane %v3835_v3, %v4490_v5 }
 0x908   :  { %v3783_v48 = vsel %vm149_vm0, 0.0, %v3782_v39 }
 0x909   :  { %v3841_v21 = vsel %vm149_vm0, %v3840_v24, %v3783_v48  ;;  %v3846_v20 = vrot.slane %v3834_v52, 4 }
 0x90a   :  { %v3845_v22 = vperm.slane %v3841_v21, %v4490_v5 }
 0x90b   :  { %v3847_v30 = vsel %vm149_vm0, %v3846_v20, %v3828_v13 }
 0x90c   :  { %v3851_v50 = vperm.slane %v3847_v30, %v4501_v18  ;;  %v3852_v25 = vrot.slane %v3845_v22, 4 }
 0x90e   :  { %v3853_v41 = vsel %vm149_vm0, %v3852_v25, %v3839_v36  ;;  %v3860_v2 = vrot.slane %v3851_v50, 4 }
 0x90f   :  { %v3857_v1 = vperm.slane %v3853_v41, %v4501_v18 }
 0x911   :  { %v3861_v17 = vsel %vm149_vm0, %v3857_v1, %v3860_v2  ;;  %v3858_v47 = vrot.slane %v3857_v1, 4 }
 0x912   :  { %3866 = vrot.lane.b32.xlu0 %v3861_v17, %s4363_s17 }
 0x913   :  { %v3859_v34 = vsel %vm149_vm0, %v3858_v47, %v3851_v50 }
 0x965   :  { %v3865_v4 = vpop.permute.xlu1 %3864 }
 0x966   :  { %v3870_v53 = vsel %vm361_vm1, %v3821_v60, %v3865_v4 }
 0x967   :  { %3872 = vst.msk [vmem:[#allocation11] sm:$0xff] %vm3548_vm5, %v3870_v53 }
 0x984   :  { %v3867_v5 = vpop.permute.xlu0 %3866 }
 0x985   :  { %v3871_v18 = vsel %vm361_vm1, %v3859_v34, %v3867_v5 }
 0x986   :  { %3873 = vst.msk [vmem:[#allocation11 + $0x8] sm:$0xff] %vm3548_vm5, %v3871_v18 }
 0x987   :  { %3886 = dma.vmem_to_hbm [thread:$0]  %s3879_s8, 256, %s3881_s3, [#allocation4], %s4365_s11, %s4365_s11, %s4361_s29  }
 0x988   :  { %4344 = dma.done.wait [#allocation4], 256  }
 0x989   :  { %4345 = vsyncadd [#allocation4], 4294967040 }
 0x98a   :  { %3891 = vsyncpa [#allocation3], 1 }
 0x98b   :  { %3892 = vsyncpa [#allocation6], 1 }
 0x98c   :  { %3893 = vsyncpa [#allocation9], 1 }
 0x98d   :  { %3894 = vsyncpa [#allocation4], 1 }

// kernel: tpu_custom_call.1
= control target key start
LH: loop header
LB: loop body
LE: loop exit
PB: predicated region body
PF: predicated region fallthrough
CT: control target
= control target key end

     0   :  { %s6250_s0 = inlined_call_operand.vmem [shape: f32[2,8,64], index: 0, kind: input, shape index: {}]   ;;  %s6251_s1 = inlined_call_operand.hbm [shape: f32[2,32], index: 1, kind: input, shape index: {}]   ;;  %s6252_s2 = inlined_call_operand.hbm [shape: f32[2,32], index: 2, kind: input, shape index: {}]   ;;  %s6253_s3 = inlined_call_operand.vmem [shape: bf16[32,32], index: 3, kind: input, shape index: {}]   ;;  %s6254_s4 = inlined_call_operand.vmem [shape: f32[1,32], index: 4, kind: input, shape index: {}]   ;;  %s6255_s5 = inlined_call_operand.vmem [shape: bf16[32,32], index: 5, kind: input, shape index: {}]   ;;  %s6256_s6 = inlined_call_operand.vmem [shape: f32[1,32], index: 6, kind: input, shape index: {}]   ;;  %s6257_s7 = inlined_call_operand.hbm [shape: bf16[32,32], index: 7, kind: input, shape index: {}]   ;;  %s6258_s8 = inlined_call_operand.vmem [shape: f32[1,32], index: 8, kind: input, shape index: {}]   ;;  %s6259_s9 = inlined_call_operand.hbm [shape: bf16[32,32], index: 9, kind: input, shape index: {}]   ;;  %s6260_s10 = inlined_call_operand.vmem [shape: f32[1,32], index: 10, kind: input, shape index: {}]   ;;  %s6261_s11 = inlined_call_operand.hbm [shape: bf16[32,64], index: 11, kind: input, shape index: {}]   ;;  %s6262_s12 = inlined_call_operand.vmem [shape: f32[1,64], index: 12, kind: input, shape index: {}]   ;;  %s6263_s13 = inlined_call_operand.vmem [shape: bf16[64,32], index: 13, kind: input, shape index: {}]   ;;  %s6264_s14 = inlined_call_operand.vmem [shape: f32[1,32], index: 14, kind: input, shape index: {}]   ;;  %s6265_s15 = inlined_call_operand.vmem [shape: f32[1,32], index: 15, kind: input, shape index: {}]   ;;  %s6266_s16 = inlined_call_operand.vmem [shape: f32[1,32], index: 16, kind: input, shape index: {}]   ;;  %s6267_s17 = inlined_call_operand.vmem [shape: f32[1,32], index: 17, kind: input, shape index: {}]   ;;  %s6268_s18 = inlined_call_operand.vmem [shape: f32[1,32], index: 18, kind: input, shape index: {}]   ;;  %s6269_s19 = inlined_call_operand.hbm [shape: f32[2,8,64], index: 19, kind: output, shape index: {}]  }
   0x1   :  { %6273 = sst [smem:[#allocation16_spill]] %s6250_s0 }
   0x2   :  { %6274 = sst [smem:[#allocation17_spill]] %s6251_s1 }
   0x3   :  { %6275 = sst [smem:[#allocation18_spill]] %s6252_s2 }
   0x4   :  { %6276 = sst [smem:[#allocation19_spill]] %s6253_s3 }
   0x5   :  { %6277 = sst [smem:[#allocation20_spill]] %s6269_s19 }
   0x6   :  { %24 = vsyncpa [#allocation3], 0 }
   0x7   :  { %25 = vsyncpa [#allocation6], 0 }
   0x8   :  { %26 = vsyncpa [#allocation9], 0  ;;  %s6278_s20 = sld [smem:[#allocation18_spill]] }
   0xe   :  { %s46_s21 = sshll.u32 %s6278_s20, 4  ;;  %s47_s21 = int_to_ptr.hbm [resolvable:$true] %s46_s21 }
   0xf   :  { %27 = vsyncpa [#allocation4], 0  ;;  %s4346_s1 = smov [#allocation5]   ;;  %s79_s24 = sshll.u32 %s6259_s9, 4  ;;  %s80_s24 = int_to_ptr.hbm [resolvable:$true] %s79_s24 }
  0x10   :  { %s48_s22 = sshll.u32 %s4346_s1, 4  ;;  %s4347_s25 = smov [#allocation8]   ;;  %s49_s22 = int_to_ptr.vmem [resolvable:$true] %s48_s22 }
  0x11   :  { %51 = dma.hbm_to_vmem [thread:$0]  %s47_s21, 32, %s49_s22, [#allocation6]  }
  0x12   :  { %s81_s3 = sshll.u32 %s4347_s25, 4  ;;  %s6279_s28 = sld [smem:[#allocation17_spill]]  ;;  %s82_s3 = int_to_ptr.vmem [resolvable:$true] %s81_s3 }
  0x13   :  { %s4348_s0 = smov 64   ;;  %s4349_s30 = smov 4  }
  0x14   :  { %87 = dma.hbm_to_vmem [thread:$0]  %s80_s24, 256, %s82_s3, [#allocation9], %s4348_s0, %s4348_s0, %s4349_s30  }
  0x15   :  { %s64_s21 = sshll.u32 %s6257_s7, 4  ;;  %s4350_s22 = smov [#allocation2]   ;;  %s65_s21 = int_to_ptr.hbm [resolvable:$true] %s64_s21 }
  0x16   :  { %s37_s19 = sshll.u32 %s4350_s22, 4  ;;  %s4351_s9 = smov [#allocation7]   ;;  %s38_s19 = int_to_ptr.vmem [resolvable:$true] %s37_s19 }
  0x17   :  { %s66_s2 = sshll.u32 %s4351_s9, 4  ;;  %s94_s26 = sshll.u32 %s6261_s11, 4  ;;  %s67_s2 = int_to_ptr.vmem [resolvable:$true] %s66_s2  ;;  %s95_s26 = int_to_ptr.hbm [resolvable:$true] %s94_s26 }
  0x18   :  { %s35_s29 = sshll.u32 %s6279_s28, 4  ;;  %s4352_s27 = smov [#allocation10]   ;;  %s36_s29 = int_to_ptr.hbm [resolvable:$true] %s35_s29 }
  0x19   :  { %40 = dma.hbm_to_vmem [thread:$0]  %s36_s29, 32, %s38_s19, [#allocation3]  }
  0x1a   :  { %72 = dma.hbm_to_vmem [thread:$0]  %s65_s21, 256, %s67_s2, [#allocation6], %s4348_s0, %s4348_s0, %s4349_s30  }
  0x1b   :  { %s96_s24 = sshll.u32 %s4352_s27, 4  ;;  %s97_s24 = int_to_ptr.vmem [resolvable:$true] %s96_s24 }
  0x1c   :  { %102 = dma.hbm_to_vmem [thread:$0]  %s95_s26, 256, %s97_s24, [#allocation9], %s4348_s0, %s4348_s0, %s4349_s30  }
  0x1d   :  { %4338 = dma.done.wait [#allocation3], 32  }
  0x1e   :  { %4339 = vsyncadd [#allocation3], 4294967264 }
  0x1f   :  { %4340 = dma.done.wait [#allocation6], 288  }
  0x20   :  { %4341 = vsyncadd [#allocation6], 4294967008 }
  0x21   :  { %4342 = dma.done.wait [#allocation9], 512  }
  0x22   :  { %4343 = vsyncadd [#allocation9], 4294966784  ;;  %s6280_s3 = sld [smem:[#allocation16_spill]]  ;;  %s4353_s28 = smov 96   ;;  %v4354_v2 = vmov 1983009808  }
  0x23   :  { %v152_v3 = vunpack.c.l.s4 %v4354_v2  ;;  %s6281_s20 = sld [smem:[#allocation19_spill]]  ;;  %vm149_vm0 = vcmask 1047556   ;;  %v4000_v8 = vld [vmem:[#allocation7 + $0x8] sm:$0xff]  ;;  %v4355_v11 = vmov 1934713408   ;;  %v3999_v16 = vld [vmem:[#allocation7] sm:$0xff] }
  0x24   :  { %476 = vmatpush.bf16.msra.mxu2 %v4000_v8  ;;  %v174_v12 = vunpack.c.l.s4 %v4355_v11  ;;  %v3998_v15 = vld [vmem:[%s6255_s5 + $0x8] sm:$0xff]  ;;  %v3997_v36 = vld [vmem:[%s6255_s5] sm:$0xff]  ;;  %vm361_vm1 = vcmask 261120   ;;  %s4356_s26 = smov 112   ;;  %s4357_s7 = smov 104   ;;  %vm1977_vm2 = vcmask 64512  }
  0x25   :  { %v4490_v5 = vunpack.c.0.s8 %v152_v3  ;;  %v4520_v43 = vld [vmem:[#allocation2] sm:$0x3]  ;;  %vm2493_vm3 = vcmask 1043456   ;;  %s4360_s11 = smov 16   ;;  %s4361_s29 = smov 8   ;;  %vm3287_vm4 = vcmask 130048  }
  0x26   :  { %v4501_v18 = vunpack.c.0.s8 %v174_v12  ;;  %v331_v55 = vrot.slane %v4520_v43, 1  ;;  %vm3292_vm5 = vcmask 195584  }
  0x28   :  { %v139_v0 = vld [vmem:[%s6280_s3 + $0x8] sm:$0xff]  ;;  %v138_v1 = vld [vmem:[%s6280_s3] sm:$0xff]  ;;  %477 = vmatpush.bf16.msra.mxu2 %v3999_v16 }
  0x29   :  { %144 = vrot.lane.b32.xlu0 %v139_v0, %s4353_s28  ;;  %v3996_v4 = vld [vmem:[%s6281_s20 + $0x8] sm:$0xff]  ;;  %v201_v6 = vrot.slane %v139_v0, 4  ;;  %v3995_v7 = vld [vmem:[%s6281_s20] sm:$0xff]  ;;  %v206_v10 = vperm.slane %v139_v0, %v4490_v5  ;;  %v148_v14 = vrot.slane %v138_v1, 4  ;;  %v154_v27 = vperm.slane %v138_v1, %v4490_v5 }
  0x2a   :  { %4009 = vmatpush.bf16.msra.mxu1 %v3996_v4  ;;  %374 = vmatpush.bf16.msra.mxu0 %v3996_v4 }
  0x2b   :  { %v202_v9 = vsel %vm149_vm0, 0.0, %v201_v6  ;;  %v223_v17 = vrot.slane %v206_v10, 4  ;;  %v150_v23 = vsel %vm149_vm0, 0.0, %v148_v14  ;;  %v171_v38 = vrot.slane %v154_v27, 4 }
  0x2c   :  { %v210_v13 = vperm.slane %v202_v9, %v4490_v5  ;;  %v158_v30 = vperm.slane %v150_v23, %v4490_v5 }
  0x2e   :  { %4010 = vmatpush.bf16.msra.mxu1 %v3995_v7  ;;  %375 = vmatpush.bf16.msra.mxu0 %v3995_v7  ;;  %v235_v22 = vrot.slane %v210_v13, 4  ;;  %v183_v48 = vrot.slane %v158_v30, 4 }
  0x31   :  { %142 = vrot.lane.b32.xlu0 %v138_v1, %s4353_s28  ;;  %s4364_s28 = smov [#allocation11]  }
  0x32   :  { %437 = vmatpush.bf16.msrb.mxu1 %v3998_v15 }
  0x36   :  { %438 = vmatpush.bf16.msrb.mxu1 %v3997_v36 }
  0x9b   :  { %v145_v19 = vpop.permute.xlu0 %144 }
  0x9c   :  { %v211_v20 = vrot.slane %v145_v19, 4  ;;  %v216_v21 = vperm.slane %v145_v19, %v4490_v5 }
  0x9e   :  { %v212_v24 = vsel %vm149_vm0, 0.0, %v211_v20  ;;  %v221_v25 = vrot.slane %v216_v21, 4  ;;  %v224_v26 = vsel %vm149_vm0, %v216_v21, %v223_v17 }
  0x9f   :  { %v220_v28 = vperm.slane %v212_v24, %v4490_v5  ;;  %v232_v29 = vperm.slane %v224_v26, %v4501_v18 }
  0xa0   :  { %v222_v31 = vsel %vm149_vm0, %v221_v25, %v206_v10 }
  0xa1   :  { %v228_v32 = vperm.slane %v222_v31, %v4501_v18  ;;  %v233_v33 = vrot.slane %v220_v28, 4  ;;  %v236_v34 = vsel %vm149_vm0, %v220_v28, %v235_v22  ;;  %v247_v35 = vrot.slane %v232_v29, 4 }
  0xa2   :  { %v244_v37 = vperm.slane %v236_v34, %v4501_v18  ;;  %v336_v29 = vperm.slane %v331_v55, 0 }
  0xa3   :  { %v234_v39 = vsel %vm149_vm0, %v233_v33, %v210_v13  ;;  %v245_v40 = vrot.slane %v228_v32, 4  ;;  %v248_v41 = vsel %vm149_vm0, 0.0, %v247_v35  ;;  %v143_v42 = vpop.permute.xlu0 %142  ;;  %v291_v46 = vsel %vm149_vm0, %v247_v35, %v228_v32 }
  0xa4   :  { %v240_v44 = vperm.slane %v234_v39, %v4501_v18  ;;  %v251_v45 = vrot.slane %v244_v37, 4  ;;  %v296_v47 = vrot.slane %v248_v41, 4  ;;  %v159_v50 = vrot.slane %v143_v42, 4 }
  0xa5   :  { %v246_v49 = vsel %vm149_vm0, 0.0, %v245_v40  ;;  %v164_v51 = vperm.slane %v143_v42, %v4490_v5  ;;  %v295_v56 = vperm.slane %v291_v46, %v4490_v5  ;;  %v335_v37 = vperm.slane %v4520_v43, 0 }
  0xa6   :  { %v249_v52 = vrot.slane %v240_v44, 4  ;;  %v252_v53 = vsel %vm149_vm0, 0.0, %v251_v45  ;;  %v297_v54 = vsel %vm149_vm0, %v296_v47, %v246_v49  ;;  %v160_v59 = vsel %vm149_vm0, 0.0, %v159_v50 }
  0xa7   :  { %v301_v57 = vperm.slane %v297_v54, %v4490_v5  ;;  %v307_v58 = vrot.slane %v252_v53, 4  ;;  %v168_v61 = vperm.slane %v160_v59, %v4490_v5  ;;  %v169_v62 = vrot.slane %v164_v51, 4 }
  0xa8   :  { %v250_v60 = vsel %vm149_vm0, 0.0, %v249_v52  ;;  %v172_v63 = vsel %vm149_vm0, %v164_v51, %v171_v38  ;;  %v302_v0 = vsel %vm149_vm0, %v251_v45, %v240_v44 }
  0xa9   :  { %v308_v1 = vsel %vm149_vm0, %v307_v58, %v250_v60  ;;  %v313_v2 = vrot.slane %v301_v57, 4  ;;  %v180_v3 = vperm.slane %v172_v63, %v4501_v18  ;;  %v170_v6 = vsel %vm149_vm0, %v169_v62, %v154_v27  ;;  %v332_v63 = vld [vmem:[#allocation5] sm:$0x3] }
  0xaa   :  { %v312_v4 = vperm.slane %v308_v1, %v4490_v5  ;;  %v181_v7 = vrot.slane %v168_v61, 4  ;;  %v184_v8 = vsel %vm149_vm0, %v168_v61, %v183_v48  ;;  %v176_v9 = vperm.slane %v170_v6, %v4501_v18 }
  0xab   :  { %v192_v10 = vperm.slane %v184_v8, %v4501_v18  ;;  %v195_v11 = vrot.slane %v180_v3, 4  ;;  %v314_v12 = vsel %vm149_vm0, %v313_v2, %v295_v56  ;;  %v306_v13 = vperm.slane %v302_v0, %v4490_v5  ;;  %v4101_v3 = vld [vmem:[%s6254_s4] ss:$0 sm:$0xff]  ;;  %s4358_s4 = smov 120  }
  0xac   :  { %v182_v14 = vsel %vm149_vm0, %v181_v7, %v158_v30  ;;  %v318_v15 = vperm.slane %v314_v12, %v4501_v18  ;;  %v319_v16 = vrot.slane %v312_v4, 4  ;;  %v193_v19 = vrot.slane %v176_v9, 4  ;;  %v4103_v8 = vld [vmem:[%s6256_s6] ss:$0 sm:$0xff]  ;;  %s6303_s6 = sld [smem:[#allocation20_spill]] }
  0xad   :  { %v188_v17 = vperm.slane %v182_v14, %v4501_v18  ;;  %v196_v20 = vsel %vm149_vm0, 0.0, %v195_v11  ;;  %v199_v21 = vrot.slane %v192_v10, 4  ;;  %v253_v22 = vsel %vm149_vm0, %v195_v11, %v176_v9 }
  0xae   :  { %v258_v23 = vrot.slane %v196_v20, 4  ;;  %v320_v24 = vsel %vm149_vm0, %v319_v16, %v306_v13  ;;  %v327_v25 = vrot.slane %v318_v15, 4  ;;  %v194_v26 = vsel %vm149_vm0, 0.0, %v193_v19 }
  0xaf   :  { %v197_v27 = vrot.slane %v188_v17, 4  ;;  %v200_v28 = vsel %vm149_vm0, 0.0, %v199_v21  ;;  %v264_v31 = vsel %vm149_vm0, %v199_v21, %v188_v17  ;;  %v324_v33 = vperm.slane %v320_v24, %v4501_v18  ;;  %v4102_v17 = vld [vmem:[%s6258_s8] ss:$0 sm:$0xff] }
  0xb0   :  { %v259_v30 = vsel %vm149_vm0, %v258_v23, %v194_v26  ;;  %v269_v32 = vrot.slane %v200_v28, 4  ;;  %v257_v35 = vperm.slane %v253_v22, %v4490_v5  ;;  %v268_v42 = vperm.slane %v264_v31, %v4490_v5 }
  0xb1   :  { %v198_v34 = vsel %vm149_vm0, 0.0, %v197_v27  ;;  %v263_v36 = vperm.slane %v259_v30, %v4490_v5  ;;  %v325_v39 = vrot.slane %v324_v33, 4  ;;  %v4562_v40 = vsel %vm149_vm0, %v324_v33, %v327_v25 }
  0xb2   :  { %v270_v38 = vsel %vm149_vm0, %v269_v32, %v198_v34  ;;  %v342_v47 = vmul.f32 %v336_v29, %v4562_v40  ;;  %v387_v0 = vperm.slane %v332_v63, 0  ;;  %v334_v12 = vrot.slane %v332_v63, 1  ;;  %s3880_s3 = sshll.u32 %s6303_s6, 4  ;;  %s3881_s3 = int_to_ptr.hbm [resolvable:$true] %s3880_s3 }
  0xb3   :  { %v275_v41 = vrot.slane %v263_v36, 4  ;;  %v274_v44 = vperm.slane %v270_v38, %v4490_v5  ;;  %v4567_v45 = vsel %vm149_vm0, %v325_v39, %v318_v15 }
  0xb4   :  { %v341_v46 = vmul.f32 %v335_v37, %v4567_v45  ;;  %v404_v61 = vpack.c.bf16 %v4562_v40, %v4567_v45  ;;  %v388_v16 = vperm.slane %v334_v12, 0 }
  0xb5   :  { %v276_v43 = vsel %vm149_vm0, %v275_v41, %v257_v35  ;;  %v281_v48 = vrot.slane %v274_v44, 4 }
  0xb6   :  { %v280_v49 = vperm.slane %v276_v43, %v4501_v18  ;;  %v344_v50 = vpack.c.bf16 %v342_v47, %v341_v46 }
  0xb7   :  { %v282_v51 = vsel %vm149_vm0, %v281_v48, %v268_v42 }
  0xb8   :  { %v286_v52 = vperm.slane %v282_v51, %v4501_v18  ;;  %v289_v53 = vrot.slane %v280_v49, 4  ;;  %3904 = vmatmul.msk.bf16.vlgmr.msra.gmra.mxu1 %vm361_vm1, %v344_v50 }
  0xba   :  { %v287_v54 = vrot.slane %v286_v52, 4  ;;  %v4577_v55 = vsel %vm149_vm0, %v286_v52, %v289_v53 }
  0xbb   :  { %v340_v56 = vmul.f32 %v336_v29, %v4577_v55 }
  0xbc   :  { %v4581_v57 = vsel %vm149_vm0, %v287_v54, %v280_v49 }
  0xbd   :  { %v403_v58 = vpack.c.bf16 %v4577_v55, %v4581_v57  ;;  %v339_v59 = vmul.f32 %v335_v37, %v4581_v57 }
  0xbf   :  { %3923 = vmatmul.msk.bf16.vlgmr.msra.gmra.mxu2 %vm361_vm1, %v403_v58  ;;  %v343_v60 = vpack.c.bf16 %v340_v56, %v339_v59 }
  0xc1   :  { %3903 = vmatmul.msk.bf16.vlgmr.msra.gmra.mxu0 %vm361_vm1, %v343_v60 }
  0xc8   :  { %3913 = vmatmul.msk.bf16.vlgmr.msrb.gmra.mxu1 %vm361_vm1, %v403_v58 }
  0xcf   :  { %3924 = vmatmul.msk.bf16.gmra.mxu2 %vm361_vm1, %v404_v61 }
  0xd8   :  { %3914 = vmatmul.msk.bf16.gmra.mxu1 %vm361_vm1, %v404_v61 }
 0x135   :  { %v382_v62 = vpop.f32.mrf.mxu1 }
 0x136   :  { %v393_v26 = vmul.f32 %v387_v0, %v382_v62 }
 0x138   :  { %v4639_v28 = vadd.f32 %v4101_v3, %v393_v26 }
 0x13a   :  { %v643_v51 = vrot.slane %v4639_v28, 4 }
 0x13d   :  { %v384_v2 = vpop.f32.mrf.mxu1 }
 0x13e   :  { %v377_v1 = vpop.f32.mrf.mxu0  ;;  %v394_v31 = vmul.f32 %v388_v16, %v384_v2 }
 0x13f   :  { %v391_v4 = vmul.f32 %v387_v0, %v377_v1 }
 0x140   :  { %v4650_v32 = vadd.f32 %v4101_v3, %v394_v31 }
 0x141   :  { %v4596_v6 = vadd.f32 %v4101_v3, %v391_v4 }
 0x142   :  { %v479_v7 = vpop.f32.mrf.mxu2 }
 0x143   :  { %505 = vrot.lane.b32.xlu0 %v4596_v6, %s4356_s26  ;;  %v4660_v34 = vadd.f32 %v4102_v17, %v479_v7  ;;  %v531_v42 = vrot.slane %v4596_v6, 4 }
 0x145   :  { %v440_v9 = vpop.f32.mrf.mxu1 }
 0x146   :  { %v4603_v10 = vadd.f32 %v4103_v8, %v440_v9  ;;  %v379_v14 = vpop.f32.mrf.mxu0 }
 0x147   :  { %v392_v19 = vmul.f32 %v388_v16, %v379_v14 }
 0x148   :  { %1013 = vrot.lane.b32.xlu2 %v4603_v10, %s4357_s7  ;;  %989 = vrot.lane.b32.xlu1 %v4603_v10, %s4358_s4  ;;  %v1027_v50 = vrot.slane %v4603_v10, 4 }
 0x149   :  { %v4622_v22 = vadd.f32 %v4101_v3, %v392_v19 }
 0x14a   :  { %v481_v11 = vpop.f32.mrf.mxu2 }
 0x14b   :  { %v4658_v33 = vadd.f32 %v4102_v17, %v481_v11  ;;  %v587_v56 = vrot.slane %v4622_v22, 4 }
 0x14d   :  { %v442_v13 = vpop.f32.mrf.mxu1  ;;  %v4046_v35 = vpack.i.bf16 %v4658_v33, %v4660_v34 }
 0x14e   :  { %v4609_v15 = vadd.f32 %v4103_v8, %v442_v13 }
 0x150   :  { %1001 = vrot.lane.b32.xlu1 %v4603_v10, %s4356_s26  ;;  %1003 = vrot.lane.b32.xlu0 %v4609_v15, %s4356_s26  ;;  %v4031_v23 = vpack.i.bf16 %v4622_v22, %v4609_v15  ;;  %v1083_v63 = vrot.slane %v4609_v15, 4 }
 0x151   :  { %493 = vrot.lane.b32.xlu2 %v4596_v6, %s4358_s4 }
 0x152   :  { %v484_v20 = vpop.f32.mrf.mxu2 }
 0x153   :  { %v4620_v21 = vadd.f32 %v4102_v17, %v484_v20 }
 0x155   :  { %v445_v24 = vpop.f32.mrf.mxu1 }
 0x156   :  { %v4631_v25 = vadd.f32 %v4103_v8, %v445_v24 }
 0x158   :  { %517 = vrot.lane.b32.xlu1 %v4596_v6, %s4357_s7  ;;  %519 = vrot.lane.b32.xlu0 %v4622_v22, %s4357_s7  ;;  %v4036_v30 = vpack.i.bf16 %v4639_v28, %v4631_v25  ;;  %v1139_v0 = vrot.slane %v4631_v25, 4 }
 0x159   :  { %4032 = vrot.lane.b32.xlu2 %v4031_v23, %s4358_s4 }
 0x15d   :  { %v447_v27 = vpop.f32.mrf.mxu1 }
 0x15e   :  { %v4641_v29 = vadd.f32 %v4103_v8, %v447_v27 }
 0x160   :  { %1015 = vrot.lane.b32.xlu1 %v4609_v15, %s4357_s7  ;;  %1017 = vrot.lane.b32.xlu0 %v4631_v25, %s4357_s7  ;;  %v1195_v3 = vrot.slane %v4641_v29, 4 }
 0x161   :  { %507 = vrot.lane.b32.xlu2 %v4622_v22, %s4356_s26 }
 0x168   :  { %4037 = vrot.lane.b32.xlu1 %v4036_v30, %s4358_s4  ;;  %995 = vrot.lane.b32.xlu0 %v4641_v29, %s4358_s4 }
 0x169   :  { %1005 = vrot.lane.b32.xlu2 %v4631_v25, %s4356_s26 }
 0x170   :  { %509 = vrot.lane.b32.xlu1 %v4639_v28, %s4356_s26  ;;  %499 = vrot.lane.b32.xlu0 %v4650_v32, %s4358_s4 }
 0x171   :  { %521 = vrot.lane.b32.xlu2 %v4639_v28, %s4357_s7 }
 0x178   :  { %1007 = vrot.lane.b32.xlu1 %v4641_v29, %s4356_s26  ;;  %4047 = vrot.lane.b32.xlu0 %v4046_v35, %s4356_s26 }
 0x179   :  { %1019 = vrot.lane.b32.xlu2 %v4641_v29, %s4357_s7 }
 0x180   :  { %511 = vrot.lane.b32.xlu1 %v4650_v32, %s4356_s26 }
 0x181   :  { %523 = vrot.lane.b32.xlu2 %v4650_v32, %s4357_s7 }
 0x188   :  { %4052 = vrot.lane.b32.xlu1 %v4046_v35, %s4357_s7 }
 0x189   :  { %4042 = vrot.lane.b32.xlu2 %v4046_v35, %s4358_s4 }
 0x1a2   :  { %v1014_v36 = vpop.permute.xlu2 %1013 }
 0x1a3   :  { %v1037_v41 = vrot.slane %v1014_v36, 4 }
 0x1ab   :  { %v4675_v37 = vpop.permute.xlu2 %493 }
 0x1ac   :  { %v543_v7 = vrot.slane %v4675_v37, 4 }
 0x1b3   :  { %v4677_v38 = vpop.permute.xlu2 %4032 }
 0x1b4   :  { %v4035_v52 = vunpack.i.h.bf16 %v4677_v38  ;;  %v4034_v53 = vunpack.i.l.bf16 %v4677_v38 }
 0x1b5   :  { %v506_v39 = vpop.permute.xlu0 %505 }
 0x1b6   :  { %v529_v44 = vrot.slane %v506_v39, 4  ;;  %v532_v47 = vsel %vm149_vm0, %v506_v39, %v531_v42  ;;  %v4705_v8 = vrot.slane %v4035_v52, 4  ;;  %v4709_v9 = vrot.slane %v4034_v53, 4 }
 0x1b7   :  { %v4691_v59 = vperm.slane %v532_v47, %v4490_v5 }
 0x1b8   :  { %v530_v58 = vsel %vm149_vm0, %v529_v44, %v4596_v6 }
 0x1b9   :  { %v4712_v11 = vperm.slane %v530_v58, %v4490_v5  ;;  %v567_v12 = vrot.slane %v4691_v59, 4 }
 0x1ba   :  { %v990_v46 = vpop.permute.xlu1 %989 }
 0x1bb   :  { %v1038_v43 = vsel %vm149_vm0, %v1037_v41, %v990_v46  ;;  %v1039_v48 = vrot.slane %v990_v46, 4  ;;  %v508_v49 = vpop.permute.xlu2 %507 }
 0x1bc   :  { %v1044_v60 = vperm.slane %v1038_v43, %v4490_v5  ;;  %v585_v61 = vrot.slane %v508_v49, 4  ;;  %v588_v62 = vsel %vm149_vm0, %v508_v49, %v587_v56 }
 0x1bd   :  { %v1040_v54 = vsel %vm149_vm0, %v1014_v36, %v1039_v48  ;;  %v4718_v16 = vperm.slane %v588_v62, %v4490_v5  ;;  %v555_v48 = vrot.slane %v4712_v11, 4 }
 0x1be   :  { %v1048_v2 = vperm.slane %v1040_v54, %v4490_v5  ;;  %v1049_v13 = vrot.slane %v1044_v60, 4  ;;  %v586_v14 = vsel %vm149_vm0, %v585_v61, %v4622_v22 }
 0x1bf   :  { %v4725_v22 = vperm.slane %v586_v14, %v4490_v5 }
 0x1c0   :  { %v1061_v30 = vrot.slane %v1048_v2, 4 }
 0x1c1   :  { %v611_v61 = vrot.slane %v4725_v22, 4 }
 0x1c2   :  { %v1002_v17 = vpop.permute.xlu1 %1001  ;;  %v1004_v19 = vpop.permute.xlu0 %1003 }
 0x1c3   :  { %v1025_v20 = vrot.slane %v1002_v17, 4  ;;  %v1028_v23 = vsel %vm149_vm0, %v1002_v17, %v1027_v50  ;;  %v1081_v24 = vrot.slane %v1004_v19, 4  ;;  %v1084_v26 = vsel %vm149_vm0, %v1004_v19, %v1083_v63  ;;  %v1006_v27 = vpop.permute.xlu2 %1005 }
 0x1c4   :  { %v1036_v31 = vperm.slane %v1028_v23, %v4490_v5  ;;  %v1137_v35 = vrot.slane %v1006_v27, 4  ;;  %v1140_v36 = vsel %vm149_vm0, %v1006_v27, %v1139_v0  ;;  %v4732_v42 = vperm.slane %v1084_v26, %v4490_v5 }
 0x1c5   :  { %v1026_v39 = vsel %vm149_vm0, %v1025_v20, %v4603_v10  ;;  %v1082_v41 = vsel %vm149_vm0, %v1081_v24, %v4609_v15  ;;  %v4737_v43 = vperm.slane %v1140_v36, %v4490_v5  ;;  %v623_v50 = vrot.slane %v4718_v16, 4 }
 0x1c6   :  { %v1032_v44 = vperm.slane %v1026_v39, %v4490_v5  ;;  %v1062_v46 = vsel %vm149_vm0, %v1061_v30, %v1036_v31  ;;  %v1063_v47 = vrot.slane %v1036_v31, 4  ;;  %v4742_v10 = vperm.slane %v1082_v41, %v4490_v5 }
 0x1c7   :  { %v1068_v49 = vperm.slane %v1062_v46, %v4501_v18  ;;  %v1138_v15 = vsel %vm149_vm0, %v1137_v35, %v4631_v25  ;;  %v1119_v17 = vrot.slane %v4732_v42, 4 }
 0x1c8   :  { %v1050_v54 = vsel %vm149_vm0, %v1049_v13, %v1032_v44  ;;  %v1051_v56 = vrot.slane %v1032_v44, 4  ;;  %v1064_v58 = vsel %vm149_vm0, %v1048_v2, %v1063_v47  ;;  %v4757_v25 = vperm.slane %v1138_v15, %v4490_v5 }
 0x1c9   :  { %v4751_v62 = vperm.slane %v1050_v54, %v4501_v18  ;;  %v1072_v63 = vperm.slane %v1064_v58, %v4501_v18  ;;  %v1077_v0 = vrot.slane %v1068_v49, 4  ;;  %v1175_v13 = vrot.slane %v4737_v43, 4 }
 0x1ca   :  { %v1052_v14 = vsel %vm149_vm0, %v1044_v60, %v1051_v56  ;;  %v518_v19 = vpop.permute.xlu1 %517  ;;  %v520_v20 = vpop.permute.xlu0 %519  ;;  %v1107_v26 = vrot.slane %v4742_v10, 4  ;;  %v1163_v46 = vrot.slane %v4757_v25, 4 }
 0x1cb   :  { %v1060_v2 = vperm.slane %v1052_v14, %v4501_v18  ;;  %v1073_v23 = vrot.slane %v4751_v62, 4  ;;  %v1079_v24 = vrot.slane %v1072_v63, 4  ;;  %v1078_v27 = vsel %vm149_vm0, 0.0, %v1077_v0 }
 0x1cc   :  { %v541_v30 = vrot.slane %v518_v19, 4  ;;  %v544_v60 = vsel %vm149_vm0, %v518_v19, %v543_v7  ;;  %v597_v31 = vrot.slane %v520_v20, 4  ;;  %v600_v0 = vsel %vm149_vm0, %v520_v20, %v4705_v8 }
 0x1cd   :  { %v4765_v35 = vrot.slane %v1060_v2, 4  ;;  %v1080_v36 = vsel %vm149_vm0, 0.0, %v1079_v24  ;;  %v1260_v39 = vsel %vm149_vm0, %v1079_v24, %v1068_v49  ;;  %v552_v41 = vperm.slane %v544_v60, %v4490_v5  ;;  %v4793_v24 = vpop.permute.xlu2 %521 }
 0x1ce   :  { %v1265_v44 = vrot.slane %v1080_v36, 4  ;;  %v542_v47 = vsel %vm149_vm0, %v541_v30, %v4675_v37  ;;  %v598_v15 = vsel %vm149_vm0, %v597_v31, %v4035_v52  ;;  %v4784_v63 = vperm.slane %v1260_v39, %v4490_v5 }
 0x1cf   :  { %v4778_v7 = vsel %vm149_vm0, 0.0, %v4765_v35  ;;  %v548_v54 = vperm.slane %v542_v47, %v4490_v5  ;;  %v565_v56 = vrot.slane %v552_v41, 4  ;;  %v568_v49 = vsel %vm149_vm0, %v552_v41, %v567_v12 }
 0x1d0   :  { %v1254_v58 = vrot.slane %v4778_v7, 4  ;;  %v576_v37 = vperm.slane %v568_v49, %v4501_v18  ;;  %v604_v2 = vperm.slane %v598_v15, %v4490_v5  ;;  %v4796_v12 = vsel %vm149_vm0, %v1265_v44, %v1078_v27 }
 0x1d1   :  { %v553_v52 = vrot.slane %v548_v54, 4  ;;  %v556_v14 = vsel %vm149_vm0, %v548_v54, %v555_v48  ;;  %v566_v19 = vsel %vm149_vm0, %v565_v56, %v4691_v59  ;;  %v608_v48 = vperm.slane %v600_v0, %v4490_v5 }
 0x1d2   :  { %v564_v30 = vperm.slane %v556_v14, %v4501_v18  ;;  %v572_v60 = vperm.slane %v566_v19, %v4501_v18  ;;  %v583_v31 = vrot.slane %v576_v37, 4  ;;  %v609_v20 = vrot.slane %v604_v2, 4 }
 0x1d3   :  { %v554_v8 = vsel %vm149_vm0, %v553_v52, %v4712_v11  ;;  %v612_v59 = vsel %vm149_vm0, %v604_v2, %v611_v61  ;;  %v1016_v11 = vpop.permute.xlu1 %1015  ;;  %v1270_v7 = vperm.slane %v4796_v12, %v4490_v5 }
 0x1d4   :  { %v560_v36 = vperm.slane %v554_v8, %v4501_v18  ;;  %v579_v39 = vrot.slane %v564_v30, 4  ;;  %v581_v41 = vrot.slane %v572_v60, 4  ;;  %v584_v27 = vsel %vm149_vm0, 0.0, %v583_v31 }
 0x1d5   :  { %v764_v44 = vsel %vm149_vm0, %v583_v31, %v572_v60  ;;  %v769_v47 = vrot.slane %v584_v27, 4  ;;  %v610_v15 = vsel %vm149_vm0, %v609_v20, %v4725_v22  ;;  %v620_v54 = vperm.slane %v612_v59, %v4501_v18 }
 0x1d6   :  { %v577_v56 = vrot.slane %v560_v36, 4  ;;  %v4811_v49 = vsel %vm149_vm0, 0.0, %v579_v39  ;;  %v582_v61 = vsel %vm149_vm0, 0.0, %v581_v41  ;;  %v753_v37 = vsel %vm149_vm0, %v579_v39, %v560_v36 }
 0x1d7   :  { %v4816_v0 = vperm.slane %v753_v37, %v4490_v5  ;;  %v4819_v52 = vperm.slane %v764_v44, %v4490_v5  ;;  %v770_v14 = vsel %vm149_vm0, %v769_v47, %v582_v61  ;;  %v653_v22 = vrot.slane %v4793_v24, 4  ;;  %v4839_v44 = vpop.permute.xlu0 %1017 }
 0x1d8   :  { %v4824_v19 = vsel %vm149_vm0, 0.0, %v577_v56  ;;  %v758_v2 = vrot.slane %v4811_v49, 4  ;;  %v616_v30 = vperm.slane %v610_v15, %v4501_v18  ;;  %v621_v60 = vrot.slane %v608_v48, 4 }
 0x1d9   :  { %v4829_v31 = vperm.slane %v770_v14, %v4490_v5  ;;  %v624_v8 = vsel %vm149_vm0, %v608_v48, %v623_v50  ;;  %v635_v20 = vrot.slane %v620_v54, 4  ;;  %v1093_v59 = vrot.slane %v1016_v11, 4  ;;  %v4847_v48 = vpop.permute.xlu2 %1019 }
 0x1da   :  { %v622_v36 = vsel %vm149_vm0, %v621_v60, %v4718_v16  ;;  %v632_v39 = vperm.slane %v624_v8, %v4501_v18  ;;  %v633_v41 = vrot.slane %v616_v30, 4  ;;  %v1096_v27 = vsel %vm149_vm0, %v1016_v11, %v4709_v9 }
 0x1db   :  { %v789_v47 = vrot.slane %v4819_v52, 4  ;;  %v628_v15 = vperm.slane %v622_v36, %v4501_v18  ;;  %v636_v56 = vsel %vm149_vm0, 0.0, %v635_v20  ;;  %v1094_v50 = vsel %vm149_vm0, %v1093_v59, %v4034_v53 }
 0x1dc   :  { %v634_v16 = vsel %vm149_vm0, 0.0, %v633_v41  ;;  %v639_v54 = vrot.slane %v632_v39, 4  ;;  %v4851_v61 = vsel %vm149_vm0, %v635_v20, %v616_v30  ;;  %v1100_v9 = vperm.slane %v1094_v50, %v4490_v5  ;;  %v4038_v41 = vpop.permute.xlu1 %4037 }
 0x1dd   :  { %v637_v11 = vrot.slane %v628_v15, 4  ;;  %v812_v37 = vrot.slane %v636_v56, 4  ;;  %v1104_v14 = vperm.slane %v1096_v27, %v4490_v5  ;;  %v1149_v60 = vrot.slane %v4839_v44, 4 }
 0x1de   :  { %v640_v38 = vsel %vm149_vm0, 0.0, %v639_v54  ;;  %v818_v53 = vsel %vm149_vm0, %v639_v54, %v628_v15  ;;  %v1105_v8 = vrot.slane %v1100_v9, 4  ;;  %v1205_v59 = vrot.slane %v4847_v48, 4 }
 0x1df   :  { %v638_v36 = vsel %vm149_vm0, 0.0, %v637_v11  ;;  %v4861_v30 = vperm.slane %v818_v53, %v4490_v5  ;;  %v823_v20 = vrot.slane %v640_v38, 4  ;;  %v1108_v39 = vsel %vm149_vm0, %v1100_v9, %v1107_v26 }
 0x1e0   :  { %v1106_v27 = vsel %vm149_vm0, %v1105_v8, %v4742_v10  ;;  %v1116_v56 = vperm.slane %v1108_v39, %v4501_v18  ;;  %v1117_v15 = vrot.slane %v1104_v14, 4  ;;  %v1120_v50 = vsel %vm149_vm0, %v1104_v14, %v1119_v17 }
 0x1e1   :  { %v4873_v54 = vsel %vm149_vm0, %v812_v37, %v634_v16  ;;  %v824_v11 = vsel %vm149_vm0, %v823_v20, %v638_v36  ;;  %v1112_v38 = vperm.slane %v1106_v27, %v4501_v18  ;;  %v1128_v26 = vperm.slane %v1120_v50, %v4501_v18 }
 0x1e2   :  { %v4879_v9 = vperm.slane %v824_v11, %v4490_v5  ;;  %v1118_v10 = vsel %vm149_vm0, %v1117_v15, %v4732_v42  ;;  %v1131_v53 = vrot.slane %v1116_v56, 4  ;;  %v4040_v8 = vunpack.i.h.bf16 %v4038_v41  ;;  %v996_v15 = vpop.permute.xlu0 %995 }
 0x1e3   :  { %v1124_v17 = vperm.slane %v1118_v10, %v4501_v18  ;;  %v1129_v16 = vrot.slane %v1112_v38, 4  ;;  %v1135_v37 = vrot.slane %v1128_v26, 4  ;;  %v4039_v27 = vunpack.i.l.bf16 %v4038_v41 }
 0x1e4   :  { %v4887_v36 = vsel %vm149_vm0, 0.0, %v1131_v53  ;;  %v655_v20 = vrot.slane %v4040_v8, 4  ;;  %v4894_v56 = vsel %vm149_vm0, %v1131_v53, %v1112_v38  ;;  %v654_v39 = vsel %vm149_vm0, %v653_v22, %v4040_v8  ;;  %v4915_v8 = vpop.permute.xlu2 %523 }
 0x1e5   :  { %v4890_v50 = vsel %vm149_vm0, 0.0, %v1129_v16  ;;  %v1133_v11 = vrot.slane %v1124_v17, 4  ;;  %v1136_v42 = vsel %vm149_vm0, 0.0, %v1135_v37  ;;  %v1314_v10 = vsel %vm149_vm0, %v1135_v37, %v1124_v17 }
 0x1e6   :  { %v1319_v26 = vrot.slane %v1136_v42, 4  ;;  %v656_v41 = vsel %vm149_vm0, %v4793_v24, %v655_v20  ;;  %v4904_v14 = vperm.slane %v1314_v10, %v4490_v5  ;;  %v4907_v6 = vperm.slane %v654_v39, %v4490_v5 }
 0x1e7   :  { %v1134_v16 = vsel %vm149_vm0, 0.0, %v1133_v11  ;;  %v4910_v38 = vperm.slane %v656_v41, %v4490_v5  ;;  %v1150_v17 = vsel %vm149_vm0, %v1149_v60, %v4039_v27  ;;  %v1151_v37 = vrot.slane %v4039_v27, 4 }
 0x1e8   :  { %v1320_v53 = vsel %vm149_vm0, %v1319_v26, %v1134_v16  ;;  %v1206_v22 = vsel %vm149_vm0, %v1205_v59, %v996_v15  ;;  %v665_v11 = vrot.slane %v4907_v6, 4  ;;  %v1156_v60 = vperm.slane %v1150_v17, %v4490_v5 }
 0x1e9   :  { %v4919_v20 = vperm.slane %v1320_v53, %v4490_v5  ;;  %v677_v42 = vrot.slane %v4910_v38, 4  ;;  %v1152_v10 = vsel %vm149_vm0, %v4839_v44, %v1151_v37  ;;  %v1207_v27 = vrot.slane %v996_v15, 4 }
 0x1ea   :  { %v1160_v59 = vperm.slane %v1152_v10, %v4490_v5  ;;  %v4929_v26 = vperm.slane %v1206_v22, %v4490_v5  ;;  %v709_v41 = vrot.slane %v4915_v8, 4  ;;  %v1249_v16 = vsel %vm149_vm0, %v4765_v35, %v4751_v62  ;;  %v500_v12 = vpop.permute.xlu0 %499 }
 0x1eb   :  { %v1161_v53 = vrot.slane %v1156_v60, 4  ;;  %v1164_v39 = vsel %vm149_vm0, %v1156_v60, %v1163_v46  ;;  %v1208_v44 = vsel %vm149_vm0, %v4847_v48, %v1207_v27  ;;  %v1074_v15 = vsel %vm149_vm0, 0.0, %v1073_v23 }
 0x1ec   :  { %v1172_v17 = vperm.slane %v1164_v39, %v4501_v18  ;;  %v1173_v37 = vrot.slane %v1160_v59, 4  ;;  %v1176_v22 = vsel %vm149_vm0, %v1160_v59, %v1175_v13  ;;  %v4948_v35 = vperm.slane %v1208_v44, %v4490_v5 }
 0x1ed   :  { %v1162_v46 = vsel %vm149_vm0, %v1161_v53, %v4757_v25  ;;  %v1184_v10 = vperm.slane %v1176_v22, %v4501_v18  ;;  %v1253_v48 = vperm.slane %v1249_v16, %v4490_v5  ;;  %v1255_v62 = vsel %vm149_vm0, %v1254_v58, %v1074_v15  ;;  %v510_v22 = vpop.permute.xlu1 %509 }
 0x1ee   :  { %v1168_v23 = vperm.slane %v1162_v46, %v4501_v18  ;;  %v1174_v39 = vsel %vm149_vm0, %v1173_v37, %v4737_v43  ;;  %v1187_v13 = vrot.slane %v1172_v17, 4  ;;  %v1259_v59 = vperm.slane %v1255_v62, %v4490_v5 }
 0x1ef   :  { %v4962_v27 = vperm.slane %v1174_v39, %v4501_v18  ;;  %v4964_v25 = vrot.slane %v1184_v10, 4  ;;  %v1273_v43 = vrot.slane %v1253_v48, 4  ;;  %v1283_v44 = vrot.slane %v1270_v7, 4 }
 0x1f0   :  { %v1185_v16 = vrot.slane %v1168_v23, 4  ;;  %v4970_v58 = vsel %vm149_vm0, 0.0, %v1187_v13  ;;  %v1357_v53 = vsel %vm149_vm0, %v1187_v13, %v1168_v23  ;;  %v1285_v23 = vrot.slane %v4784_v63, 4 }
 0x1f1   :  { %v4976_v15 = vsel %vm149_vm0, 0.0, %v4964_v25  ;;  %v4979_v17 = vperm.slane %v1357_v53, %v4490_v5  ;;  %v1274_v62 = vsel %vm149_vm0, %v1259_v59, %v1273_v43  ;;  %v1271_v13 = vrot.slane %v1259_v59, 4 }
 0x1f2   :  { %v4983_v46 = vsel %vm149_vm0, 0.0, %v1185_v16  ;;  %v1282_v39 = vperm.slane %v1274_v62, %v4501_v18  ;;  %v1286_v53 = vsel %vm149_vm0, %v1270_v7, %v1285_v23  ;;  %v641_v24 = vrot.slane %v510_v22, 4 }
 0x1f3   :  { %v644_v1 = vsel %vm149_vm0, %v510_v22, %v643_v51  ;;  %v710_v16 = vsel %vm149_vm0, %v709_v41, %v500_v12  ;;  %v1294_v10 = vperm.slane %v1286_v53, %v4501_v18  ;;  %v1272_v43 = vsel %vm149_vm0, %v1271_v13, %v1253_v48 }
 0x1f4   :  { %v1301_v4 = vrot.slane %v1282_v39, 4  ;;  %v1284_v62 = vsel %vm149_vm0, %v1283_v44, %v4784_v63  ;;  %v1278_v59 = vperm.slane %v1272_v43, %v4501_v18  ;;  %v642_v7 = vsel %vm149_vm0, %v641_v24, %v4639_v28 }
 0x1f5   :  { %v1290_v37 = vperm.slane %v1284_v62, %v4501_v18  ;;  %v652_v23 = vperm.slane %v644_v1, %v4490_v5  ;;  %v1299_v51 = vrot.slane %v1294_v10, 4  ;;  %v648_v22 = vperm.slane %v642_v7, %v4490_v5 }
 0x1f6   :  { %v1302_v41 = vsel %vm149_vm0, %v1294_v10, %v1301_v4  ;;  %v711_v53 = vrot.slane %v500_v12, 4  ;;  %v1297_v13 = vrot.slane %v1278_v59, 4  ;;  %v790_v49 = vsel %vm149_vm0, %v4829_v31, %v789_v47 }
 0x1f7   :  { %v1295_v60 = vrot.slane %v1290_v37, 4  ;;  %v1468_v48 = vpack.c.bf16 %v1302_v41, %v1302_v41  ;;  %v678_v63 = vsel %vm149_vm0, %v677_v42, %v652_v23  ;;  %v1300_v44 = vsel %vm149_vm0, %v1299_v51, %v1282_v39 }
 0x1f8   :  { %v666_v28 = vsel %vm149_vm0, %v665_v11, %v648_v22  ;;  %v667_v1 = vrot.slane %v648_v22, 4  ;;  %v679_v24 = vrot.slane %v652_v23, 4  ;;  %v1467_v43 = vpack.c.bf16 %v1300_v44, %v1300_v44 }
 0x1f9   :  { %v1296_v4 = vsel %vm149_vm0, %v1295_v60, %v1278_v59  ;;  %v2039_v12 = vsel %vm1977_vm2, %v1468_v48, 0  ;;  %v1298_v10 = vsel %vm149_vm0, %v1290_v37, %v1297_v13  ;;  %v672_v39 = vperm.slane %v666_v28, %v4501_v18  ;;  %v5023_v59 = vpop.permute.xlu2 %4042 }
 0x1fa   :  { %v1465_v62 = vpack.c.bf16 %v1296_v4, %v1296_v4  ;;  %2048 = vmatpush.bf16.xpose.msra.mxu1 %v2039_v12  ;;  %v1466_v7 = vpack.c.bf16 %v1298_v10, %v1298_v10  ;;  %v668_v42 = vsel %vm149_vm0, %v4907_v6, %v667_v1  ;;  %v2020_v51 = vsel %vm1977_vm2, %v1467_v43, 0 }
 0x1fb   :  { %v676_v11 = vperm.slane %v668_v42, %v4501_v18  ;;  %v680_v23 = vsel %vm149_vm0, %v4910_v38, %v679_v24  ;;  %v684_v60 = vperm.slane %v678_v63, %v4501_v18  ;;  %2029 = vmatpush.bf16.xpose.msrb.mxu0 %v2020_v51  ;;  %v689_v22 = vrot.slane %v672_v39, 4 }
 0x1fc   :  { %v1982_v37 = vsel %vm1977_vm2, %v1465_v62, 0  ;;  %v2001_v41 = vsel %vm1977_vm2, %v1466_v7, 0  ;;  %v688_v6 = vperm.slane %v680_v23, %v4501_v18  ;;  %v712_v44 = vsel %vm149_vm0, %v4915_v8, %v711_v53 }
 0x1fd   :  { %1991 = vmatpush.bf16.xpose.msra.mxu3 %v1982_v37  ;;  %v691_v48 = vrot.slane %v676_v11, 4  ;;  %v693_v13 = vrot.slane %v684_v60, 4  ;;  %v5031_v38 = vperm.slane %v710_v16, %v4490_v5  ;;  %v1373_v63 = vrot.slane %v4976_v15, 4 }
 0x1fe   :  { %v695_v28 = vrot.slane %v688_v6, 4  ;;  %v5035_v1 = vperm.slane %v712_v44, %v4490_v5  ;;  %v4045_v24 = vunpack.i.h.bf16 %v5023_v59  ;;  %v690_v43 = vsel %vm149_vm0, 0.0, %v689_v22 }
 0x1ff   :  { %v692_v4 = vsel %vm149_vm0, 0.0, %v691_v48  ;;  %v694_v12 = vsel %vm149_vm0, 0.0, %v693_v13  ;;  %v861_v8 = vsel %vm149_vm0, %v691_v48, %v672_v39  ;;  %v721_v51 = vrot.slane %v5031_v38, 4  ;;  %v1008_v13 = vpop.permute.xlu1 %1007 }
 0x200   :  { %v696_v16 = vsel %vm149_vm0, 0.0, %v695_v28  ;;  %v5044_v53 = vperm.slane %v861_v8, %v4490_v5  ;;  %v866_v10 = vrot.slane %v692_v4, 4  ;;  %v872_v62 = vsel %vm149_vm0, %v695_v28, %v684_v60 }
 0x201   :  { %v5048_v7 = vperm.slane %v872_v62, %v4490_v5  ;;  %v877_v42 = vrot.slane %v696_v16, 4  ;;  %v733_v11 = vrot.slane %v5035_v1, 4  ;;  %v5055_v39 = vrot.slane %v4045_v24, 4 }
 0x202   :  { %v867_v23 = vsel %vm149_vm0, %v866_v10, %v690_v43  ;;  %v6272_v37 = vunpack.i.l.bf16 %v5023_v59  ;;  %v759_v60 = vsel %vm149_vm0, %v758_v2, %v4824_v19  ;;  %v777_v43 = vrot.slane %v4816_v0, 4 }
 0x203   :  { %v878_v6 = vsel %vm149_vm0, %v877_v42, %v694_v12  ;;  %v763_v48 = vperm.slane %v759_v60, %v4490_v5  ;;  %v798_v2 = vperm.slane %v790_v49, %v4501_v18  ;;  %v787_v12 = vrot.slane %v4829_v31, 4 }
 0x204   :  { %v5069_v44 = vperm.slane %v878_v6, %v4490_v5  ;;  %v5079_v19 = vrot.slane %v6272_v37, 4  ;;  %v1193_v10 = vrot.slane %v1008_v13, 4  ;;  %v1196_v62 = vsel %vm149_vm0, %v1008_v13, %v1195_v3  ;;  %v4048_v6 = vpop.permute.xlu0 %4047 }
 0x205   :  { %2010 = vmatpush.bf16.xpose.msrb.mxu3 %v2001_v41  ;;  %v5063_v41 = vperm.slane %v867_v23, %v4490_v5  ;;  %v775_v4 = vrot.slane %v763_v48, 4  ;;  %v778_v16 = vsel %vm149_vm0, %v763_v48, %v777_v43  ;;  %v803_v42 = vrot.slane %v798_v2, 4 }
 0x206   :  { %v895_v8 = vrot.slane %v5069_v44, 4  ;;  %v786_v47 = vperm.slane %v778_v16, %v4501_v18  ;;  %v788_v60 = vsel %vm149_vm0, %v787_v12, %v4819_v52  ;;  %v1194_v3 = vsel %vm149_vm0, %v1193_v10, %v4641_v29 }
 0x207   :  { %v776_v23 = vsel %vm149_vm0, %v775_v4, %v4816_v0  ;;  %v5098_v48 = vperm.slane %v788_v60, %v4501_v18  ;;  %v1200_v0 = vperm.slane %v1194_v3, %v4490_v5  ;;  %v1204_v4 = vperm.slane %v1196_v62, %v4490_v5 }
 0x208   :  { %v5095_v49 = vperm.slane %v776_v23, %v4501_v18  ;;  %v804_v13 = vsel %vm149_vm0, %v803_v42, %v786_v47  ;;  %v805_v43 = vrot.slane %v786_v47, 4  ;;  %v5107_v52 = vsel %vm149_vm0, %v895_v8, %v5048_v7 }
 0x209   :  { %v971_v12 = vpack.c.bf16 %v804_v13, %v804_v13  ;;  %v799_v16 = vrot.slane %v5098_v48, 4  ;;  %v4050_v23 = vunpack.i.h.bf16 %v4048_v6  ;;  %v6282_v28 = vrot.slane %v4929_v26, 4 }
 0x20a   :  { %v806_v60 = vsel %vm149_vm0, %v798_v2, %v805_v43  ;;  %v1219_v10 = vrot.slane %v1200_v0, 4  ;;  %v6283_v47 = vrot.slane %v4948_v35, 4  ;;  %v1231_v13 = vrot.slane %v1204_v4, 4 }
 0x20b   :  { %v1218_v29 = vsel %vm149_vm0, %v6282_v28, %v1200_v0  ;;  %3927 = vmatmul.msk.bf16.vlgmr.msrb.gmra.mxu0 %vm1977_vm2, %v971_v12  ;;  %v800_v8 = vsel %vm149_vm0, %v799_v16, %v5095_v49  ;;  %v972_v62 = vpack.c.bf16 %v806_v60, %v806_v60  ;;  %v1577_v43 = vrot.slane %v4050_v23, 4 }
 0x20c   :  { %v1230_v42 = vsel %vm149_vm0, %v6283_v47, %v1204_v4  ;;  %v1224_v3 = vperm.slane %v1218_v29, %v4501_v18  ;;  %v969_v22 = vpack.c.bf16 %v800_v8, %v800_v8  ;;  %v1220_v2 = vsel %vm149_vm0, %v4929_v26, %v1219_v10 }
 0x20d   :  { %v1236_v28 = vperm.slane %v1230_v42, %v4501_v18  ;;  %3928 = vmatmul.msk.bf16.vlgmr.msra.gmra.mxu1 %vm1977_vm2, %v972_v62  ;;  %v1228_v0 = vperm.slane %v1220_v2, %v4501_v18  ;;  %v1232_v12 = vsel %vm149_vm0, %v4948_v35, %v1231_v13  ;;  %v6284_v16 = vrot.slane %v4658_v33, 4 }
 0x20e   :  { %v1241_v47 = vrot.slane %v1224_v3, 4  ;;  %3925 = vmatmul.msk.bf16.vlgmr.msra.gmra.mxu3 %vm1977_vm2, %v969_v22  ;;  %v1240_v4 = vperm.slane %v1232_v12, %v4501_v18  ;;  %v1578_v29 = vsel %vm149_vm0, %v1577_v43, %v4658_v33  ;;  %v801_v42 = vrot.slane %v5095_v49, 4 }
 0x20f   :  { %v1580_v60 = vsel %vm149_vm0, %v4050_v23, %v6284_v16  ;;  %v1245_v26 = vrot.slane %v1236_v28, 4  ;;  %v1243_v8 = vrot.slane %v1228_v0, 4  ;;  %v5140_v35 = vperm.slane %v1578_v29, %v4490_v5 }
 0x210   :  { %v5136_v10 = vperm.slane %v1580_v60, %v4490_v5  ;;  %v4049_v62 = vunpack.i.l.bf16 %v4048_v6  ;;  %v5143_v23 = vsel %vm149_vm0, 0.0, %v1241_v47  ;;  %v1247_v13 = vrot.slane %v1240_v4, 4 }
 0x211   :  { %v1246_v22 = vsel %vm149_vm0, 0.0, %v1245_v26  ;;  %v1307_v2 = vperm.slane %v4894_v56, %v4490_v5  ;;  %v5149_v33 = vsel %vm149_vm0, 0.0, %v1243_v8  ;;  %v5152_v43 = vsel %vm149_vm0, %v1243_v8, %v1224_v3 }
 0x212   :  { %v1521_v12 = vrot.slane %v4049_v62, 4  ;;  %v1248_v6 = vsel %vm149_vm0, 0.0, %v1247_v13  ;;  %v1422_v47 = vsel %vm149_vm0, %v1247_v13, %v1236_v28  ;;  %v6285_v60 = vrot.slane %v4660_v34, 4 }
 0x213   :  { %v5162_v56 = vperm.slane %v1422_v47, %v4490_v5  ;;  %v1427_v26 = vrot.slane %v1248_v6, 4  ;;  %v6286_v28 = vrot.slane %v4887_v36, 4  ;;  %v1327_v31 = vrot.slane %v1307_v2, 4  ;;  %v512_v47 = vpop.permute.xlu1 %511 }
 0x214   :  { %v1524_v4 = vsel %vm149_vm0, %v4049_v62, %v6285_v60  ;;  %v1522_v3 = vsel %vm149_vm0, %v1521_v12, %v4660_v34  ;;  %v6287_v62 = vrot.slane %v4904_v14, 4  ;;  %v697_v16 = vrot.slane %v512_v47, 4 }
 0x215   :  { %v5167_v29 = vperm.slane %v1524_v4, %v4490_v5  ;;  %v5170_v8 = vperm.slane %v1522_v3, %v4490_v5  ;;  %v1309_v13 = vsel %vm149_vm0, %v6286_v28, %v4890_v50  ;;  %v1428_v12 = vsel %vm149_vm0, %v1427_v26, %v1246_v22 }
 0x216   :  { %v1340_v6 = vsel %vm149_vm0, %v4919_v20, %v6287_v62  ;;  %v1313_v4 = vperm.slane %v1309_v13, %v4490_v5  ;;  %v5185_v3 = vperm.slane %v1428_v12, %v4490_v5  ;;  %v1337_v28 = vrot.slane %v4919_v20, 4 }
 0x217   :  { %v1348_v50 = vperm.slane %v1340_v6, %v4501_v18  ;;  %v6288_v34 = vrot.slane %v4650_v32, 4 }
 0x218   :  { %v1328_v62 = vsel %vm149_vm0, %v1313_v4, %v1327_v31  ;;  %v1325_v0 = vrot.slane %v1313_v4, 4  ;;  %v1338_v60 = vsel %vm149_vm0, %v1337_v28, %v4904_v14  ;;  %v698_v31 = vsel %vm149_vm0, %v697_v16, %v4650_v32 }
 0x219   :  { %v700_v22 = vsel %vm149_vm0, %v512_v47, %v6288_v34  ;;  %v1336_v13 = vperm.slane %v1328_v62, %v4501_v18  ;;  %v1353_v12 = vrot.slane %v1348_v50, 4  ;;  %v1344_v20 = vperm.slane %v1338_v60, %v4501_v18 }
 0x21a   :  { %v1326_v6 = vsel %vm149_vm0, %v1325_v0, %v1307_v2  ;;  %v708_v4 = vperm.slane %v700_v22, %v4490_v5  ;;  %v704_v62 = vperm.slane %v698_v31, %v4490_v5 }
 0x21b   :  { %v1354_v36 = vsel %vm149_vm0, %v1353_v12, %v1336_v13  ;;  %v1332_v47 = vperm.slane %v1326_v6, %v4501_v18  ;;  %v1355_v34 = vrot.slane %v1336_v13, 4  ;;  %v1349_v37 = vrot.slane %v1344_v20, 4 }
 0x21c   :  { %v1471_v26 = vpack.c.bf16 %v1354_v36, %v1354_v36  ;;  %v734_v14 = vsel %vm149_vm0, %v733_v11, %v708_v4  ;;  %v735_v2 = vrot.slane %v708_v4, 4  ;;  %v722_v32 = vsel %vm149_vm0, %v721_v51, %v704_v62 }
 0x21d   :  { %v1351_v0 = vrot.slane %v1332_v47, 4  ;;  %v1356_v60 = vsel %vm149_vm0, %v1348_v50, %v1355_v34  ;;  %v723_v16 = vrot.slane %v704_v62, 4  ;;  %v1350_v22 = vsel %vm149_vm0, %v1349_v37, %v1332_v47 }
 0x21e   :  { %v2096_v28 = vsel %vm1977_vm2, %v1471_v26, 0  ;;  %v1472_v13 = vpack.c.bf16 %v1356_v60, %v1356_v60  ;;  %v728_v36 = vperm.slane %v722_v32, %v4501_v18  ;;  %v1469_v12 = vpack.c.bf16 %v1350_v22, %v1350_v22 }
 0x21f   :  { %2105 = vmatpush.bf16.xpose.msra.mxu0 %v2096_v28  ;;  %v1352_v11 = vsel %vm149_vm0, %v1344_v20, %v1351_v0  ;;  %v724_v6 = vsel %vm149_vm0, %v5031_v38, %v723_v16  ;;  %v736_v50 = vsel %vm149_vm0, %v5035_v1, %v735_v2  ;;  %v740_v37 = vperm.slane %v734_v14, %v4501_v18 }
 0x220   :  { %v2115_v51 = vsel %vm1977_vm2, %v1472_v13, 0  ;;  %v1470_v31 = vpack.c.bf16 %v1352_v11, %v1352_v11  ;;  %v732_v26 = vperm.slane %v724_v6, %v4501_v18  ;;  %v2058_v4 = vsel %vm1977_vm2, %v1469_v12, 0 }
 0x221   :  { %2124 = vmatpush.bf16.xpose.msrb.mxu1 %v2115_v51  ;;  %v744_v47 = vperm.slane %v736_v50, %v4501_v18  ;;  %v745_v34 = vrot.slane %v728_v36, 4  ;;  %v811_v20 = vperm.slane %v4851_v61, %v4490_v5  ;;  %v1445_v38 = vrot.slane %v5185_v3, 4  ;;  %2067 = vmatpush.bf16.xpose.msrb.mxu2 %v2058_v4 }
 0x222   :  { %v2077_v1 = vsel %vm1977_vm2, %v1470_v31, 0  ;;  %v747_v62 = vrot.slane %v732_v26, 4  ;;  %v817_v2 = vperm.slane %v4873_v54, %v4490_v5  ;;  %v749_v14 = vrot.slane %v740_v37, 4 }
 0x223   :  { %2086 = vmatpush.bf16.xpose.msra.mxu3 %v2077_v1  ;;  %v751_v0 = vrot.slane %v744_v47, 4  ;;  %v831_v60 = vrot.slane %v811_v20, 4  ;;  %v6289_v32 = vrot.slane %v4879_v9, 4  ;;  %v746_v61 = vsel %vm149_vm0, 0.0, %v745_v34 }
 0x224   :  { %v748_v28 = vsel %vm149_vm0, 0.0, %v747_v62  ;;  %v915_v22 = vsel %vm149_vm0, %v747_v62, %v728_v36  ;;  %v829_v13 = vrot.slane %v817_v2, 4  ;;  %v750_v36 = vsel %vm149_vm0, 0.0, %v749_v14 }
 0x225   :  { %v842_v16 = vsel %vm149_vm0, %v6289_v32, %v4861_v30  ;;  %v752_v12 = vsel %vm149_vm0, 0.0, %v751_v0  ;;  %v5241_v54 = vperm.slane %v915_v22, %v4490_v5  ;;  %v920_v11 = vrot.slane %v748_v28, 4 }
 0x226   :  { %v926_v6 = vsel %vm149_vm0, %v751_v0, %v740_v37  ;;  %v931_v51 = vrot.slane %v752_v12, 4  ;;  %v830_v31 = vsel %vm149_vm0, %v829_v13, %v811_v20  ;;  %v5249_v26 = vperm.slane %v842_v16, %v4501_v18 }
 0x227   :  { %v5245_v50 = vperm.slane %v926_v6, %v4490_v5  ;;  %v921_v4 = vsel %vm149_vm0, %v920_v11, %v746_v61  ;;  %v5254_v47 = vperm.slane %v830_v31, %v4501_v18  ;;  %v832_v34 = vsel %vm149_vm0, %v817_v2, %v831_v60 }
 0x228   :  { %v5258_v37 = vperm.slane %v921_v4, %v4490_v5  ;;  %v932_v1 = vsel %vm149_vm0, %v931_v51, %v750_v36  ;;  %v939_v62 = vrot.slane %v5241_v54, 4  ;;  %v853_v20 = vrot.slane %v5249_v26, 4 }
 0x229   :  { %v5264_v0 = vperm.slane %v932_v1, %v4490_v5  ;;  %v951_v14 = vrot.slane %v5245_v50, 4  ;;  %v855_v32 = vrot.slane %v5254_v47, 4  ;;  %v6290_v16 = vrot.slane %v4861_v30, 4 }
 0x22a   :  { %v854_v60 = vsel %vm149_vm0, %v853_v20, %v5254_v47  ;;  %v840_v61 = vperm.slane %v832_v34, %v4501_v18  ;;  %v6291_v22 = vrot.slane %v4962_v27, 4  ;;  %v937_v12 = vrot.slane %v5258_v37, 4 }
 0x22b   :  { %v844_v2 = vsel %vm149_vm0, %v4879_v9, %v6290_v16  ;;  %v973_v11 = vpack.c.bf16 %v854_v60, %v854_v60  ;;  %v6292_v30 = vrot.slane %v4970_v58, 4  ;;  %v1368_v9 = vsel %vm149_vm0, %v4964_v25, %v4962_v27  ;;  %v4053_v25 = vpop.permute.xlu1 %4052 }
 0x22c   :  { %v852_v28 = vperm.slane %v844_v2, %v4501_v18  ;;  %v1190_v13 = vsel %vm149_vm0, 0.0, %v6291_v22  ;;  %v1372_v36 = vperm.slane %v1368_v9, %v4490_v5  ;;  %v949_v34 = vrot.slane %v5264_v0, 4 }
 0x22d   :  { %v1363_v6 = vsel %vm149_vm0, %v6292_v30, %v4983_v46  ;;  %v1374_v4 = vsel %vm149_vm0, %v1373_v63, %v1190_v13  ;;  %3929 = vmatmul.msk.bf16.vlgmr.msrb.gmra.mxu2 %vm1977_vm2, %v973_v11  ;;  %v1381_v46 = vrot.slane %v4979_v17, 4  ;;  %v802_v27 = vsel %vm149_vm0, %v5098_v48, %v801_v42 }
 0x22e   :  { %v857_v51 = vrot.slane %v852_v28, 4  ;;  %v1367_v31 = vperm.slane %v1363_v6, %v4490_v5  ;;  %v1378_v58 = vperm.slane %v1374_v4, %v4490_v5  ;;  %v1393_v20 = vrot.slane %v1372_v36, 4 }
 0x22f   :  { %v970_v15 = vpack.c.bf16 %v802_v27, %v802_v27  ;;  %v859_v16 = vrot.slane %v840_v61, 4  ;;  %v4055_v48 = vunpack.i.h.bf16 %v4053_v25 }
 0x230   :  { %v858_v1 = vsel %vm149_vm0, %v857_v51, %v840_v61  ;;  %v1382_v2 = vsel %vm149_vm0, %v1367_v31, %v1381_v46  ;;  %v1379_v60 = vrot.slane %v1367_v31, 4  ;;  %v1391_v22 = vrot.slane %v1378_v58, 4 }
 0x231   :  { %v975_v63 = vpack.c.bf16 %v858_v1, %v858_v1  ;;  %v1390_v13 = vperm.slane %v1382_v2, %v4501_v18  ;;  %v1394_v11 = vsel %vm149_vm0, %v1378_v58, %v1393_v20  ;;  %3926 = vmatmul.msk.bf16.vlgmr.msrb.gmra.mxu3 %vm1977_vm2, %v970_v15  ;;  %v860_v49 = vsel %vm149_vm0, %v852_v28, %v859_v16 }
 0x232   :  { %v1402_v42 = vperm.slane %v1394_v11, %v4501_v18  ;;  %v976_v30 = vpack.c.bf16 %v860_v49, %v860_v49  ;;  %v1380_v61 = vsel %vm149_vm0, %v1379_v60, %v4979_v17  ;;  %v1392_v6 = vsel %vm149_vm0, %v1391_v22, %v1372_v36 }
 0x233   :  { %3931 = vmatmul.msk.bf16.vlgmr.msra.gmra.mxu0 %vm1977_vm2, %v975_v63  ;;  %v1409_v9 = vrot.slane %v1390_v13, 4  ;;  %v1386_v51 = vperm.slane %v1380_v61, %v4501_v18  ;;  %v1398_v31 = vperm.slane %v1392_v6, %v4501_v18  ;;  %v1589_v4 = vrot.slane %v4055_v48, 4 }
 0x234   :  { %v5315_v28 = vsel %vm149_vm0, %v949_v34, %v5245_v50  ;;  %3932 = vmatmul.msk.bf16.vlgmr.msrb.gmra.mxu1 %vm1977_vm2, %v976_v30  ;;  %v1407_v58 = vrot.slane %v1402_v42, 4  ;;  %v4054_v46 = vunpack.i.l.bf16 %v4053_v25  ;;  %v1592_v27 = vsel %vm149_vm0, %v4055_v48, %v5055_v39 }
 0x235   :  { %v1410_v17 = vsel %vm149_vm0, %v1402_v42, %v1409_v9  ;;  %v1405_v36 = vrot.slane %v1386_v51, 4  ;;  %v1403_v1 = vrot.slane %v1398_v31, 4  ;;  %v1590_v20 = vsel %vm149_vm0, %v1589_v4, %v4045_v24 }
 0x236   :  { %v1476_v15 = vpack.c.bf16 %v1410_v17, %v1410_v17  ;;  %v1408_v16 = vsel %vm149_vm0, %v1407_v58, %v1390_v13  ;;  %v1533_v34 = vrot.slane %v4054_v46, 4  ;;  %v1536_v63 = vsel %vm149_vm0, %v4054_v46, %v5079_v19 }
 0x237   :  { %v1406_v25 = vsel %vm149_vm0, %v1398_v31, %v1405_v36  ;;  %v1475_v2 = vpack.c.bf16 %v1408_v16, %v1408_v16  ;;  %v1404_v39 = vsel %vm149_vm0, %v1403_v1, %v1386_v51  ;;  %v1544_v60 = vperm.slane %v1536_v63, %v4490_v5 }
 0x238   :  { %v2191_v22 = vsel %vm1977_vm2, %v1476_v15, 0  ;;  %v1474_v11 = vpack.c.bf16 %v1406_v25, %v1406_v25  ;;  %v1473_v49 = vpack.c.bf16 %v1404_v39, %v1404_v39  ;;  %v6293_v24 = vunpack.i.l.bf16 %v5023_v59 }
 0x239   :  { %2200 = vmatpush.bf16.xpose.msra.mxu1 %v2191_v22  ;;  %v2172_v13 = vsel %vm1977_vm2, %v1475_v2, 0  ;;  %v1557_v42 = vrot.slane %v1544_v60, 4  ;;  %v6294_v30 = vrot.slane %v5167_v29, 4  ;;  %v1596_v59 = vperm.slane %v1590_v20, %v4490_v5 }
 0x23a   :  { %v1534_v48 = vsel %vm149_vm0, %v1533_v34, %v6293_v24  ;;  %v2153_v6 = vsel %vm1977_vm2, %v1474_v11, 0  ;;  %2181 = vmatpush.bf16.xpose.msrb.mxu0 %v2172_v13  ;;  %v2134_v9 = vsel %vm1977_vm2, %v1473_v49, 0  ;;  %v6295_v4 = vrot.slane %v5170_v8, 4 }
 0x23b   :  { %v1540_v19 = vperm.slane %v1534_v48, %v4490_v5  ;;  %v1560_v61 = vsel %vm149_vm0, %v1544_v60, %v6294_v30  ;;  %2162 = vmatpush.bf16.xpose.msrb.mxu3 %v2153_v6  ;;  %2143 = vmatpush.bf16.xpose.msra.mxu2 %v2134_v9  ;;  %v1558_v46 = vsel %vm149_vm0, %v1557_v42, %v5167_v29  ;;  %v1601_v16 = vrot.slane %v1596_v59, 4 }
 0x23c   :  { %v1568_v51 = vperm.slane %v1560_v61, %v4501_v18  ;;  %v1600_v17 = vperm.slane %v1592_v27, %v4490_v5  ;;  %v1564_v1 = vperm.slane %v1558_v46, %v4501_v18  ;;  %v6296_v34 = vrot.slane %v5140_v35, 4 }
 0x23d   :  { %v1545_v31 = vrot.slane %v1540_v19, 4  ;;  %v1548_v58 = vsel %vm149_vm0, %v1540_v19, %v6295_v4  ;;  %v6297_v2 = vrot.slane %v5136_v10, 4  ;;  %v6298_v42 = vrot.slane %v5063_v41, 4 }
 0x23e   :  { %v1556_v36 = vperm.slane %v1548_v58, %v4501_v18  ;;  %v1575_v15 = vrot.slane %v1568_v51, 4  ;;  %v1604_v63 = vsel %vm149_vm0, %v1596_v59, %v6296_v34  ;;  %v1613_v25 = vrot.slane %v1600_v17, 4 }
 0x23f   :  { %v1546_v20 = vsel %vm149_vm0, %v1545_v31, %v5170_v8  ;;  %v1616_v29 = vsel %vm149_vm0, %v1600_v17, %v6297_v2  ;;  %v1573_v60 = vrot.slane %v1564_v1, 4  ;;  %v1602_v8 = vsel %vm149_vm0, %v1601_v16, %v5140_v35 }
 0x240   :  { %v5360_v27 = vperm.slane %v1546_v20, %v4501_v18  ;;  %v5362_v39 = vrot.slane %v1556_v36, 4  ;;  %v5365_v22 = vsel %vm149_vm0, 0.0, %v1575_v15  ;;  %v1612_v11 = vperm.slane %v1604_v63, %v4501_v18 }
 0x241   :  { %v1614_v49 = vsel %vm149_vm0, %v1613_v25, %v5136_v10  ;;  %v1624_v24 = vperm.slane %v1616_v29, %v4501_v18  ;;  %v5379_v19 = vperm.slane %v1602_v8, %v4501_v18  ;;  %v884_v35 = vsel %vm149_vm0, %v6298_v42, %v5044_v53 }
 0x242   :  { %v1569_v48 = vrot.slane %v5360_v27, 4  ;;  %v5376_v13 = vsel %vm149_vm0, 0.0, %v5362_v39  ;;  %v5386_v30 = vsel %vm149_vm0, 0.0, %v1573_v60  ;;  %v1620_v10 = vperm.slane %v1614_v49, %v4501_v18 }
 0x243   :  { %v5389_v61 = vrot.slane %v1612_v11, 4  ;;  %v1631_v6 = vrot.slane %v1624_v24, 4  ;;  %v1625_v9 = vrot.slane %v5379_v19, 4  ;;  %v1750_v51 = vrot.slane %v5376_v13, 4 }
 0x244   :  { %v1756_v59 = vsel %vm149_vm0, %v1575_v15, %v1564_v1  ;;  %v1761_v31 = vrot.slane %v5365_v22, 4  ;;  %v1629_v58 = vrot.slane %v1620_v10, 4  ;;  %v5403_v17 = vperm.slane %v884_v35, %v4501_v18 }
 0x245   :  { %v5397_v4 = vsel %vm149_vm0, 0.0, %v5389_v61  ;;  %v5400_v46 = vsel %vm149_vm0, 0.0, %v1631_v6  ;;  %v5406_v36 = vperm.slane %v1756_v59, %v4490_v5  ;;  %v5410_v1 = vsel %vm149_vm0, %v1631_v6, %v1620_v10 }
 0x246   :  { %v1804_v16 = vrot.slane %v5397_v4, 4  ;;  %v5414_v15 = vperm.slane %v5107_v52, %v4501_v18  ;;  %v5417_v20 = vsel %vm149_vm0, 0.0, %v1629_v58  ;;  %v1815_v34 = vrot.slane %v5400_v46, 4 }
 0x247   :  { %v6299_v63 = vrot.slane %v5044_v53, 4  ;;  %v6300_v2 = vrot.slane %v5048_v7, 4  ;;  %v1415_v11 = vperm.slane %v5152_v43, %v4490_v5  ;;  %v6301_v53 = vrot.slane %v5149_v33, 4 }
 0x248   :  { %v907_v60 = vrot.slane %v5414_v15, 4  ;;  %v1446_v43 = vsel %vm149_vm0, %v1445_v38, %v5162_v56 }
 0x249   :  { %v886_v25 = vsel %vm149_vm0, %v5063_v41, %v6299_v63  ;;  %v898_v29 = vsel %vm149_vm0, %v5069_v44, %v6300_v2  ;;  %v1417_v49 = vsel %vm149_vm0, %v6301_v53, %v5143_v23  ;;  %v6302_v41 = vrot.slane %v5162_v56, 4 }
 0x24a   :  { %v894_v52 = vperm.slane %v886_v25, %v4501_v18  ;;  %v906_v8 = vperm.slane %v898_v29, %v4501_v18  ;;  %v856_v44 = vsel %vm149_vm0, %v5249_v26, %v855_v32  ;;  %v908_v33 = vsel %vm149_vm0, %v907_v60, %v5403_v17 }
 0x24b   :  { %v1448_v7 = vsel %vm149_vm0, %v5185_v3, %v6302_v41  ;;  %v1421_v23 = vperm.slane %v1417_v49, %v4490_v5  ;;  %v1435_v42 = vrot.slane %v1415_v11, 4  ;;  %v977_v35 = vpack.c.bf16 %v908_v33, %v908_v33 }
 0x24c   :  { %v911_v24 = vrot.slane %v906_v8, 4  ;;  %v1456_v10 = vperm.slane %v1448_v7, %v4501_v18  ;;  %v974_v6 = vpack.c.bf16 %v856_v44, %v856_v44  ;;  %v913_v47 = vrot.slane %v894_v52, 4 }
 0x24d   :  { %v1436_v26 = vsel %vm149_vm0, %v1421_v23, %v1435_v42  ;;  %v1433_v32 = vrot.slane %v1421_v23, 4  ;;  %v1452_v3 = vperm.slane %v1446_v43, %v4501_v18  ;;  %3933 = vmatmul.msk.bf16.vlgmr.msra.gmra.mxu2 %vm1977_vm2, %v977_v35  ;;  %v938_v60 = vsel %vm149_vm0, %v937_v12, %v5241_v54 }
 0x24e   :  { %v912_v59 = vsel %vm149_vm0, %v911_v24, %v894_v52  ;;  %v1444_v38 = vperm.slane %v1436_v26, %v4501_v18  ;;  %v1461_v58 = vrot.slane %v1456_v10, 4  ;;  %3930 = vmatmul.msk.bf16.vlgmr.msra.gmra.mxu3 %vm1977_vm2, %v974_v6  ;;  %v914_v63 = vsel %vm149_vm0, %v906_v8, %v913_v47 }
 0x24f   :  { %v979_v56 = vpack.c.bf16 %v912_v59, %v912_v59  ;;  %v980_v25 = vpack.c.bf16 %v914_v63, %v914_v63  ;;  %v1434_v2 = vsel %vm149_vm0, %v1433_v32, %v1415_v11  ;;  %v1457_v29 = vrot.slane %v1452_v3, 4 }
 0x250   :  { %v1462_v52 = vsel %vm149_vm0, %v1461_v58, %v1444_v38  ;;  %v1440_v53 = vperm.slane %v1434_v2, %v4501_v18  ;;  %v1463_v49 = vrot.slane %v1444_v38, 4  ;;  %v5469_v41 = vperm.slane %v938_v60, %v4501_v18 }
 0x251   :  { %3935 = vmatmul.msk.bf16.vlgmr.msrb.gmra.mxu0 %vm1977_vm2, %v979_v56  ;;  %v1479_v8 = vpack.c.bf16 %v1462_v52, %v1462_v52  ;;  %3936 = vmatmul.msk.bf16.vlgmr.msra.gmra.mxu1 %vm1977_vm2, %v980_v25  ;;  %v5474_v11 = vperm.slane %v5315_v28, %v4501_v18  ;;  %v940_v12 = vsel %vm149_vm0, %v5258_v37, %v939_v62  ;;  %v1570_v62 = vsel %vm149_vm0, 0.0, %v1569_v48 }
 0x252   :  { %v952_v7 = vsel %vm149_vm0, %v5264_v0, %v951_v14  ;;  %v1458_v44 = vsel %vm149_vm0, %v1457_v29, %v1440_v53  ;;  %v1464_v43 = vsel %vm149_vm0, %v1456_v10, %v1463_v49  ;;  %v1459_v33 = vrot.slane %v1440_v53, 4 }
 0x253   :  { %v948_v24 = vperm.slane %v940_v12, %v4501_v18  ;;  %v2248_v28 = vsel %vm1977_vm2, %v1479_v8, 0  ;;  %v1477_v23 = vpack.c.bf16 %v1458_v44, %v1458_v44  ;;  %v1480_v42 = vpack.c.bf16 %v1464_v43, %v1464_v43 }
 0x254   :  { %v961_v54 = vrot.slane %v5474_v11, 4  ;;  %2257 = vmatpush.bf16.xpose.msra.mxu0 %v2248_v28  ;;  %v1460_v37 = vsel %vm149_vm0, %v1452_v3, %v1459_v33  ;;  %v960_v50 = vperm.slane %v952_v7, %v4501_v18  ;;  %v1745_v0 = vsel %vm149_vm0, %v5362_v39, %v5360_v27 }
 0x255   :  { %v2210_v14 = vsel %vm1977_vm2, %v1477_v23, 0  ;;  %v2267_v35 = vsel %vm1977_vm2, %v1480_v42, 0  ;;  %v1478_v10 = vpack.c.bf16 %v1460_v37, %v1460_v37  ;;  %v5503_v47 = vperm.slane %v5410_v1, %v4490_v5 }
 0x256   :  { %v962_v6 = vsel %vm149_vm0, %v961_v54, %v5469_v41  ;;  %2219 = vmatpush.bf16.xpose.msrb.mxu2 %v2210_v14  ;;  %2276 = vmatpush.bf16.xpose.msrb.mxu1 %v2267_v35  ;;  %v965_v59 = vrot.slane %v960_v50, 4  ;;  %v1749_v48 = vperm.slane %v1745_v0, %v4490_v5  ;;  %v1751_v27 = vsel %vm149_vm0, %v1750_v51, %v1570_v62 }
 0x257   :  { %v2229_v39 = vsel %vm1977_vm2, %v1478_v10, 0  ;;  %v1755_v26 = vperm.slane %v1751_v27, %v4490_v5  ;;  %v1762_v32 = vsel %vm149_vm0, %v1761_v31, %v5386_v30  ;;  %v1781_v1 = vrot.slane %v5406_v36, 4 }
 0x258   :  { %2238 = vmatpush.bf16.xpose.msra.mxu3 %v2229_v39  ;;  %v981_v3 = vpack.c.bf16 %v962_v6, %v962_v6  ;;  %v966_v56 = vsel %vm149_vm0, %v965_v59, %v948_v24  ;;  %v1766_v38 = vperm.slane %v1762_v32, %v4490_v5  ;;  %v1769_v13 = vrot.slane %v1749_v48, 4 }
 0x259   :  { %v909_v51 = vrot.slane %v5403_v17, 4  ;;  %v967_v58 = vrot.slane %v948_v24, 4  ;;  %v1626_v63 = vsel %vm149_vm0, 0.0, %v1625_v9  ;;  %v1799_v31 = vsel %vm149_vm0, %v5389_v61, %v5379_v19 }
 0x25a   :  { %v1770_v22 = vsel %vm149_vm0, %v1755_v26, %v1769_v13  ;;  %v1782_v30 = vsel %vm149_vm0, %v1766_v38, %v1781_v1  ;;  %v1805_v25 = vsel %vm149_vm0, %v1804_v16, %v1626_v63  ;;  %v983_v2 = vpack.c.bf16 %v966_v56, %v966_v56 }
 0x25b   :  { %v1778_v17 = vperm.slane %v1770_v22, %v4501_v18  ;;  %v1790_v29 = vperm.slane %v1782_v30, %v4501_v18  ;;  %v910_v9 = vsel %vm149_vm0, %v5414_v15, %v909_v51  ;;  %v968_v52 = vsel %vm149_vm0, %v960_v50, %v967_v58 }
 0x25c   :  { %v978_v60 = vpack.c.bf16 %v910_v9, %v910_v9  ;;  %v1803_v53 = vperm.slane %v1799_v31, %v4490_v5  ;;  %v1809_v49 = vperm.slane %v1805_v25, %v4490_v5  ;;  %v1816_v61 = vsel %vm149_vm0, %v1815_v34, %v5417_v20 }
 0x25d   :  { %v1795_v19 = vrot.slane %v1790_v29, 4  ;;  %v1835_v4 = vrot.slane %v5503_v47, 4  ;;  %v1767_v16 = vrot.slane %v1755_v26, 4  ;;  %3937 = vmatmul.msk.bf16.vlgmr.msrb.gmra.mxu2 %vm1977_vm2, %v981_v3  ;;  %v1820_v15 = vperm.slane %v1816_v61, %v4490_v5 }
 0x25e   :  { %3934 = vmatmul.msk.bf16.vlgmr.msrb.gmra.mxu3 %vm1977_vm2, %v978_v60  ;;  %v1823_v8 = vrot.slane %v1803_v53, 4  ;;  %v1779_v12 = vrot.slane %v1766_v38, 4  ;;  %v1797_v7 = vrot.slane %v1778_v17, 4  ;;  %v984_v43 = vpack.c.bf16 %v968_v52, %v968_v52 }
 0x25f   :  { %v1796_v44 = vsel %vm149_vm0, %v1795_v19, %v1778_v17  ;;  %v1768_v33 = vsel %vm149_vm0, %v1767_v16, %v1749_v48  ;;  %v1821_v46 = vrot.slane %v1809_v49, 4  ;;  %v1836_v24 = vsel %vm149_vm0, %v1820_v15, %v1835_v4 }
 0x260   :  { %v1963_v20 = vpack.c.bf16 %v1796_v44, %v1796_v44  ;;  %v1824_v34 = vsel %vm149_vm0, %v1809_v49, %v1823_v8  ;;  %v1774_v28 = vperm.slane %v1768_v33, %v4501_v18  ;;  %v1844_v42 = vperm.slane %v1836_v24, %v4501_v18 }
 0x261   :  { %3939 = vmatmul.msk.bf16.vlgmr.msra.gmra.mxu0 %vm1977_vm2, %v983_v2  ;;  %3940 = vmatmul.msk.bf16.vlgmr.msrb.gmra.mxu1 %vm1977_vm2, %v984_v43  ;;  %v1832_v23 = vperm.slane %v1824_v34, %v4501_v18  ;;  %v1780_v54 = vsel %vm149_vm0, %v1779_v12, %v5406_v36  ;;  %v1798_v37 = vsel %vm149_vm0, %v1790_v29, %v1797_v7  ;;  %v1833_v6 = vrot.slane %v1820_v15, 4 }
 0x262   :  { %v2533_v50 = vsel %vm2493_vm3, %v1963_v20, 0  ;;  %v1786_v62 = vperm.slane %v1780_v54, %v4501_v18  ;;  %v1964_v0 = vpack.c.bf16 %v1798_v37, %v1798_v37  ;;  %v1822_v14 = vsel %vm149_vm0, %v1821_v46, %v1803_v53  ;;  %v5593_v46 = vpop.f32.mrf.mxu2 }
 0x263   :  { %2542 = vmatpush.bf16.msrb.mxu0 %v2533_v50  ;;  %v1849_v35 = vrot.slane %v1844_v42, 4  ;;  %v1828_v10 = vperm.slane %v1822_v14, %v4501_v18  ;;  %v1851_v59 = vrot.slane %v1832_v23, 4  ;;  %v1793_v39 = vrot.slane %v1774_v28, 4 }
 0x264   :  { %v1791_v48 = vrot.slane %v1786_v62, 4  ;;  %v2552_v27 = vsel %vm2493_vm3, %v1964_v0, 0  ;;  %v1834_v26 = vsel %vm149_vm0, %v1833_v6, %v5503_v47  ;;  %v963_v1 = vrot.slane %v5469_v41, 4 }
 0x265   :  { %v1850_v36 = vsel %vm149_vm0, %v1849_v35, %v1832_v23  ;;  %2561 = vmatpush.bf16.msra.mxu1 %v2552_v27  ;;  %v1852_v32 = vsel %vm149_vm0, %v1844_v42, %v1851_v59  ;;  %v1840_v38 = vperm.slane %v1834_v26, %v4501_v18  ;;  %v1794_v58 = vsel %vm149_vm0, %v1786_v62, %v1793_v39 }
 0x266   :  { %v1967_v3 = vpack.c.bf16 %v1850_v36, %v1850_v36  ;;  %v1792_v56 = vsel %vm149_vm0, %v1791_v48, %v1774_v28  ;;  %v1968_v13 = vpack.c.bf16 %v1852_v32, %v1852_v32  ;;  %v1847_v63 = vrot.slane %v1828_v10, 4 }
 0x267   :  { %v1961_v51 = vpack.c.bf16 %v1792_v56, %v1792_v56  ;;  %v1845_v30 = vrot.slane %v1840_v38, 4  ;;  %v1962_v47 = vpack.c.bf16 %v1794_v58, %v1794_v58  ;;  %v964_v41 = vsel %vm149_vm0, %v5474_v11, %v963_v1 }
 0x268   :  { %v2609_v22 = vsel %vm2493_vm3, %v1967_v3, 0  ;;  %v2628_v31 = vsel %vm2493_vm3, %v1968_v13, 0  ;;  %v1848_v2 = vsel %vm149_vm0, %v1840_v38, %v1847_v63  ;;  %v982_v52 = vpack.c.bf16 %v964_v41, %v964_v41 }
 0x269   :  { %2618 = vmatpush.bf16.msra.mxu0 %v2609_v22  ;;  %v2495_v25 = vsel %vm2493_vm3, %v1961_v51, 0  ;;  %2637 = vmatpush.bf16.msrb.mxu1 %v2628_v31  ;;  %v1846_v17 = vsel %vm149_vm0, %v1845_v30, %v1828_v10  ;;  %v2514_v29 = vsel %vm2493_vm3, %v1962_v47, 0  ;;  %v1966_v9 = vpack.c.bf16 %v1848_v2, %v1848_v2 }
 0x26a   :  { %2504 = vmatpush.bf16.msra.mxu2 %v2495_v25  ;;  %v1965_v60 = vpack.c.bf16 %v1846_v17, %v1846_v17  ;;  %2523 = vmatpush.bf16.msrb.mxu3 %v2514_v29 }
 0x26b   :  { %v2590_v49 = vsel %vm2493_vm3, %v1966_v9, 0 }
 0x26c   :  { %v2571_v53 = vsel %vm2493_vm3, %v1965_v60, 0 }
 0x26e   :  { %2580 = vmatpush.bf16.msrb.mxu2 %v2571_v53  ;;  %3938 = vmatmul.msk.bf16.vlgmr.msra.gmra.mxu3 %vm1977_vm2, %v982_v52 }
 0x26f   :  { %2599 = vmatpush.bf16.msra.mxu3 %v2590_v49 }
 0x288   :  { %v2031_v11 = vpop.f32.mrf.mxu0 }
 0x289   :  { %v5581_v19 = vmul.f32 0.35355338, %v2031_v11 }
 0x28a   :  { %v2050_v61 = vpop.f32.mrf.mxu1 }
 0x28b   :  { %v2304_v4 = vsel %vm1977_vm2, %v5581_v19, -inf  ;;  %v5585_v16 = vmul.f32 0.35355338, %v2050_v61 }
 0x28c   :  { %2305 = vmax.xlane.f32.xlu2 %v2304_v4 }
 0x28d   :  { %v2307_v44 = vsel %vm1977_vm2, %v5585_v16, -inf }
 0x290   :  { %v2033_v15 = vpop.f32.mrf.mxu0 }
 0x291   :  { %v1993_v8 = vpop.f32.mrf.mxu3 }
 0x292   :  { %v5587_v12 = vmul.f32 0.35355338, %v1993_v8  ;;  %v2052_v7 = vpop.f32.mrf.mxu1 }
 0x294   :  { %v2298_v43 = vsel %vm1977_vm2, %v5587_v12, -inf  ;;  %2308 = vmax.xlane.f32.xlu2 %v2307_v44 }
 0x295   :  { %2299 = vmax.xlane.f32.xlu0 %v2298_v43 }
 0x299   :  { %v1995_v33 = vpop.f32.mrf.mxu3 }
 0x2b0   :  { %v2107_v20 = vpop.f32.mrf.mxu0  ;;  %v2069_v28 = vpop.f32.mrf.mxu2 }
 0x2b1   :  { %v5595_v34 = vmul.f32 0.35355338, %v2107_v20  ;;  %v2126_v24 = vpop.f32.mrf.mxu1  ;;  %v5599_v42 = vmul.f32 0.35355338, %v2069_v28 }
 0x2b2   :  { %v5607_v14 = vmul.f32 0.35355338, %v2126_v24 }
 0x2b3   :  { %v2316_v23 = vsel %vm1977_vm2, %v5595_v34, -inf  ;;  %v2310_v37 = vsel %vm1977_vm2, %v5599_v42, -inf }
 0x2b4   :  { %2317 = vmax.xlane.f32.xlu2 %v2316_v23  ;;  %v2012_v54 = vpop.f32.mrf.mxu3  ;;  %2311 = vmax.xlane.f32.xlu0 %v2310_v37  ;;  %v2319_v59 = vsel %vm1977_vm2, %v5607_v14, -inf }
 0x2b5   :  { %v5603_v50 = vmul.f32 0.35355338, %v2012_v54 }
 0x2b7   :  { %v2301_v0 = vsel %vm1977_vm2, %v5603_v50, -inf }
 0x2b8   :  { %v2109_v62 = vpop.f32.mrf.mxu0  ;;  %2302 = vmax.xlane.f32.xlu1 %v2301_v0  ;;  %v2071_v10 = vpop.f32.mrf.mxu2 }
 0x2b9   :  { %v2128_v35 = vpop.f32.mrf.mxu1 }
 0x2bc   :  { %v2014_v6 = vpop.f32.mrf.mxu3  ;;  %2320 = vmax.xlane.f32.xlu0 %v2319_v59 }
 0x2ce   :  { %v2183_v48 = vpop.f32.mrf.mxu0  ;;  %v2202_v39 = vpop.f32.mrf.mxu1 }
 0x2cf   :  { %v5611_v27 = vmul.f32 0.35355338, %v2183_v48  ;;  %v5613_v36 = vmul.f32 0.35355338, %v2202_v39 }
 0x2d0   :  { %v2145_v1 = vpop.f32.mrf.mxu2 }
 0x2d1   :  { %v2328_v26 = vsel %vm1977_vm2, %v5611_v27, -inf  ;;  %v2331_v32 = vsel %vm1977_vm2, %v5613_v36, -inf  ;;  %v2088_v3 = vpop.f32.mrf.mxu3  ;;  %v5619_v56 = vmul.f32 0.35355338, %v2145_v1 }
 0x2d2   :  { %2329 = vmax.xlane.f32.xlu0 %v2328_v26  ;;  %2332 = vmax.xlane.f32.xlu2 %v2331_v32  ;;  %v5623_v58 = vmul.f32 0.35355338, %v2088_v3 }
 0x2d3   :  { %v2322_v38 = vsel %vm1977_vm2, %v5619_v56, -inf }
 0x2d4   :  { %2323 = vmax.xlane.f32.xlu1 %v2322_v38  ;;  %v2313_v30 = vsel %vm1977_vm2, %v5623_v58, -inf }
 0x2d6   :  { %v2185_v13 = vpop.f32.mrf.mxu0  ;;  %v2204_v51 = vpop.f32.mrf.mxu1 }
 0x2d8   :  { %v2147_v63 = vpop.f32.mrf.mxu2 }
 0x2d9   :  { %v2090_v22 = vpop.f32.mrf.mxu3 }
 0x2dc   :  { %2314 = vmax.xlane.f32.xlu1 %v2313_v30 }
 0x2de   :  { %v2259_v31 = vpop.f32.mrf.mxu0  ;;  %v2278_v25 = vpop.f32.mrf.mxu1 }
 0x2df   :  { %v5627_v47 = vmul.f32 0.35355338, %v2259_v31  ;;  %v5633_v9 = vmul.f32 0.35355338, %v2278_v25 }
 0x2e0   :  { %v2221_v2 = vpop.f32.mrf.mxu2 }
 0x2e1   :  { %v2340_v41 = vsel %vm1977_vm2, %v5627_v47, -inf  ;;  %v2164_v17 = vpop.f32.mrf.mxu3  ;;  %v5631_v29 = vmul.f32 0.35355338, %v2221_v2  ;;  %v2343_v11 = vsel %vm1977_vm2, %v5633_v9, -inf }
 0x2e2   :  { %2341 = vmax.xlane.f32.xlu2 %v2340_v41  ;;  %v5637_v49 = vmul.f32 0.35355338, %v2164_v17 }
 0x2e3   :  { %v2334_v60 = vsel %vm1977_vm2, %v5631_v29, -inf }
 0x2e4   :  { %2335 = vmax.xlane.f32.xlu1 %v2334_v60  ;;  %v2325_v15 = vsel %vm1977_vm2, %v5637_v49, -inf }
 0x2e6   :  { %v2261_v52 = vpop.f32.mrf.mxu0  ;;  %v2280_v53 = vpop.f32.mrf.mxu1 }
 0x2e8   :  { %v2223_v61 = vpop.f32.mrf.mxu2 }
 0x2e9   :  { %v2166_v4 = vpop.f32.mrf.mxu3 }
 0x2ea   :  { %2344 = vmax.xlane.f32.xlu2 %v2343_v11 }
 0x2ec   :  { %2326 = vmax.xlane.f32.xlu1 %v2325_v15 }
 0x2f1   :  { %v2240_v8 = vpop.f32.mrf.mxu3 }
 0x2f2   :  { %v5643_v7 = vmul.f32 0.35355338, %v2240_v8 }
 0x2f4   :  { %v2337_v44 = vsel %vm1977_vm2, %v5643_v7, -inf }
 0x2f5   :  { %2338 = vmax.xlane.f32.xlu0 %v2337_v44 }
 0x2f9   :  { %v2242_v43 = vpop.f32.mrf.mxu3 }
 0x2ff   :  { %v2306_v33 = vpop.xlane.xlu2 %2305 }
 0x300   :  { %v2348_v20 = vsub.f32 %v5581_v19, %v2306_v33 }
 0x302   :  { %v2366_v24 = vmul.f32 1.442695, %v2348_v20 }
 0x304   :  { %4111 = vpow2.f32 %v2366_v24 }
 0x307   :  { %v2309_v28 = vpop.xlane.xlu2 %2308 }
 0x308   :  { %v2300_v23 = vpop.xlane.xlu0 %2299  ;;  %v2349_v54 = vsub.f32 %v5585_v16, %v2309_v28 }
 0x309   :  { %v2346_v37 = vsub.f32 %v5587_v12, %v2300_v23  ;;  %v4193_v12 = vld [vmem:[%s6258_s8] ss:$0 sm:$0xff]  ;;  %s4359_s8 = smov 24  }
 0x30a   :  { %v5650_v62 = vpop.eup %4111  ;;  %v2368_v0 = vmul.f32 1.442695, %v2349_v54  ;;  %v5666_v48 = vadd.f32 %v4193_v12, %v5593_v46 }
 0x30b   :  { %v2362_v35 = vmul.f32 1.442695, %v2346_v37  ;;  %v2400_v10 = vsel %vm1977_vm2, %v5650_v62, 0.0 }
 0x30c   :  { %4113 = vpow2.f32 %v2368_v0  ;;  %2401 = vadd.xlane.f32.xlu0 %v2400_v10  ;;  %v4061_v39 = vpack.i.bf16 %v5666_v48, %v4620_v21 }
 0x30d   :  { %4115 = vpow2.f32 %v2362_v35 }
 0x312   :  { %v5654_v6 = vpop.eup %4113 }
 0x313   :  { %v5656_v19 = vpop.eup %4115  ;;  %v2403_v59 = vsel %vm1977_vm2, %v5654_v6, 0.0 }
 0x314   :  { %2404 = vadd.xlane.f32.xlu2 %v2403_v59  ;;  %v2394_v16 = vsel %vm1977_vm2, %v5656_v19, 0.0 }
 0x315   :  { %2395 = vadd.xlane.f32.xlu0 %v2394_v16 }
 0x327   :  { %v2312_v46 = vpop.xlane.xlu0 %2311  ;;  %v2318_v13 = vpop.xlane.xlu2 %2317 }
 0x328   :  { %v2350_v51 = vsub.f32 %v5599_v42, %v2312_v46  ;;  %v2352_v63 = vsub.f32 %v5595_v34, %v2318_v13 }
 0x329   :  { %4062 = vrot.lane.b32.xlu0 %v4061_v39, %s4356_s26 }
 0x32a   :  { %v2370_v31 = vmul.f32 1.442695, %v2350_v51 }
 0x32b   :  { %v2303_v26 = vpop.xlane.xlu1 %2302 }
 0x32c   :  { %v2347_v32 = vsub.f32 %v5603_v50, %v2303_v26  ;;  %4067 = vrot.lane.b32.xlu2 %v4061_v39, %s4357_s7  ;;  %v2374_v50 = vmul.f32 1.442695, %v2352_v63 }
 0x32e   :  { %v2364_v1 = vmul.f32 1.442695, %v2347_v32 }
 0x32f   :  { %v2321_v30 = vpop.xlane.xlu0 %2320 }
 0x330   :  { %4117 = vpow2.f32 %v2364_v1  ;;  %v2353_v25 = vsub.f32 %v5607_v14, %v2321_v30 }
 0x331   :  { %4119 = vpow2.f32 %v2370_v31 }
 0x332   :  { %4121 = vpow2.f32 %v2374_v50  ;;  %v2376_v2 = vmul.f32 1.442695, %v2353_v25 }
 0x334   :  { %4123 = vpow2.f32 %v2376_v2 }
 0x336   :  { %v5673_v3 = vpop.eup %4117 }
 0x337   :  { %v2397_v38 = vsel %vm1977_vm2, %v5673_v3, 0.0  ;;  %v5680_v60 = vpop.eup %4119 }
 0x338   :  { %2398 = vadd.xlane.f32.xlu1 %v2397_v38  ;;  %v5683_v52 = vpop.eup %4121  ;;  %v2406_v53 = vsel %vm1977_vm2, %v5680_v60, 0.0 }
 0x339   :  { %v2412_v14 = vsel %vm1977_vm2, %v5683_v52, 0.0 }
 0x33a   :  { %v5690_v4 = vpop.eup %4123 }
 0x33b   :  { %v2415_v8 = vsel %vm1977_vm2, %v5690_v4, 0.0 }
 0x345   :  { %v2330_v17 = vpop.xlane.xlu0 %2329  ;;  %v2333_v42 = vpop.xlane.xlu2 %2332 }
 0x346   :  { %v2356_v34 = vsub.f32 %v5611_v27, %v2330_v17  ;;  %v2357_v38 = vsub.f32 %v5613_v36, %v2333_v42 }
 0x347   :  { %v2324_v22 = vpop.xlane.xlu1 %2323 }
 0x348   :  { %v2382_v61 = vmul.f32 1.442695, %v2356_v34  ;;  %v2384_v13 = vmul.f32 1.442695, %v2357_v38 }
 0x34a   :  { %4125 = vpow2.f32 %v2382_v61 }
 0x34f   :  { %v2315_v41 = vpop.xlane.xlu1 %2314 }
 0x350   :  { %v5696_v20 = vpop.eup %4125 }
 0x351   :  { %4057 = vrot.lane.b32.xlu1 %v4061_v39, %s4358_s4  ;;  %v2424_v28 = vsel %vm1977_vm2, %v5696_v20, 0.0 }
 0x353   :  { %2407 = vadd.xlane.f32.xlu0 %v2406_v53 }
 0x355   :  { %2413 = vadd.xlane.f32.xlu2 %v2412_v14  ;;  %v2342_v15 = vpop.xlane.xlu2 %2341 }
 0x356   :  { %v2360_v63 = vsub.f32 %v5627_v47, %v2342_v15 }
 0x357   :  { %v2336_v11 = vpop.xlane.xlu1 %2335 }
 0x358   :  { %v2358_v43 = vsub.f32 %v5631_v29, %v2336_v11  ;;  %v2351_v29 = vsub.f32 %v5623_v58, %v2315_v41  ;;  %v2390_v36 = vmul.f32 1.442695, %v2360_v63 }
 0x35a   :  { %v2386_v24 = vmul.f32 1.442695, %v2358_v43  ;;  %v2372_v16 = vmul.f32 1.442695, %v2351_v29 }
 0x35b   :  { %2416 = vadd.xlane.f32.xlu0 %v2415_v8 }
 0x35d   :  { %v2345_v23 = vpop.xlane.xlu2 %2344 }
 0x35f   :  { %v2327_v44 = vpop.xlane.xlu1 %2326 }
 0x360   :  { %v2355_v27 = vsub.f32 %v5637_v49, %v2327_v44  ;;  %v2361_v49 = vsub.f32 %v5633_v9, %v2345_v23 }
 0x362   :  { %v2380_v33 = vmul.f32 1.442695, %v2355_v27  ;;  %v2392_v59 = vmul.f32 1.442695, %v2361_v49 }
 0x363   :  { %2425 = vadd.xlane.f32.xlu0 %v2424_v28 }
 0x364   :  { %4127 = vpow2.f32 %v2380_v33 }
 0x365   :  { %4129 = vpow2.f32 %v2386_v24 }
 0x368   :  { %v2339_v54 = vpop.xlane.xlu0 %2338 }
 0x369   :  { %v2359_v37 = vsub.f32 %v5643_v7, %v2339_v54  ;;  %v2354_v7 = vsub.f32 %v5619_v56, %v2324_v22  ;;  %v1691_v54 = vrot.slane %v5666_v48, 4 }
 0x36a   :  { %v5701_v0 = vpop.eup %4127 }
 0x36b   :  { %v2388_v35 = vmul.f32 1.442695, %v2359_v37  ;;  %v2421_v10 = vsel %vm1977_vm2, %v5701_v0, 0.0  ;;  %v5707_v12 = vpop.eup %4129  ;;  %v2378_v26 = vmul.f32 1.442695, %v2354_v7 }
 0x36c   :  { %2422 = vadd.xlane.f32.xlu2 %v2421_v10  ;;  %v2430_v9 = vsel %vm1977_vm2, %v5707_v12, 0.0 }
 0x36d   :  { %4131 = vpow2.f32 %v2388_v35  ;;  %v1635_v35 = vrot.slane %v4620_v21, 4 }
 0x36e   :  { %4133 = vpow2.f32 %v2392_v59 }
 0x36f   :  { %4135 = vpow2.f32 %v2372_v16 }
 0x370   :  { %4137 = vpow2.f32 %v2378_v26 }
 0x371   :  { %4139 = vpow2.f32 %v2384_v13 }
 0x373   :  { %v5709_v39 = vpop.eup %4131 }
 0x374   :  { %v2433_v58 = vsel %vm1977_vm2, %v5709_v39, 0.0  ;;  %2431 = vadd.xlane.f32.xlu2 %v2430_v9  ;;  %v5716_v32 = vpop.eup %4133 }
 0x375   :  { %2434 = vadd.xlane.f32.xlu0 %v2433_v58  ;;  %v5718_v1 = vpop.eup %4135  ;;  %v2439_v56 = vsel %vm1977_vm2, %v5716_v32, 0.0 }
 0x376   :  { %v2409_v46 = vsel %vm1977_vm2, %v5718_v1, 0.0  ;;  %v5725_v51 = vpop.eup %4137 }
 0x377   :  { %v2418_v30 = vsel %vm1977_vm2, %v5725_v51, 0.0  ;;  %v5730_v31 = vpop.eup %4139 }
 0x378   :  { %v2427_v2 = vsel %vm1977_vm2, %v5730_v31, 0.0 }
 0x37b   :  { %2410 = vadd.xlane.f32.xlu1 %v2409_v46 }
 0x37c   :  { %2440 = vadd.xlane.f32.xlu2 %v2439_v56 }
 0x37f   :  { %v2402_v22 = vpop.xlane.xlu0 %2401 }
 0x380   :  { %4141 = vrcp.f32 %v2402_v22 }
 0x381   :  { %4143 = vpow2.f32 %v2390_v36 }
 0x383   :  { %2419 = vadd.xlane.f32.xlu1 %v2418_v30 }
 0x386   :  { %v4142_v50 = vpop.eup %4141 }
 0x387   :  { %v2460_v25 = vmul.f32 %v4142_v50, %v5650_v62  ;;  %v2405_v41 = vpop.xlane.xlu2 %2404  ;;  %v5736_v42 = vpop.eup %4143 }
 0x388   :  { %4145 = vrcp.f32 %v2405_v41  ;;  %v2396_v17 = vpop.xlane.xlu0 %2395  ;;  %v2436_v62 = vsel %vm1977_vm2, %v5736_v42, 0.0 }
 0x389   :  { %v2476_v47 = vpack.c.bf16 %v2460_v25, %v2460_v25  ;;  %4147 = vrcp.f32 %v2396_v17 }
 0x38b   :  { %2428 = vadd.xlane.f32.xlu1 %v2427_v2  ;;  %3943 = vmatmul.msk.bf16.vlgmr.msrb.gmra.mxu0 %vm1977_vm2, %v2476_v47 }
 0x38e   :  { %v4146_v34 = vpop.eup %4145 }
 0x38f   :  { %v4148_v53 = vpop.eup %4147  ;;  %v2461_v11 = vmul.f32 %v4146_v34, %v5654_v6  ;;  %v4068_v28 = vpop.permute.xlu2 %4067 }
 0x390   :  { %v2458_v14 = vmul.f32 %v4148_v53, %v5656_v19  ;;  %v4070_v37 = vunpack.i.h.bf16 %v4068_v28  ;;  %v4069_v49 = vunpack.i.l.bf16 %v4068_v28 }
 0x391   :  { %v2477_v61 = vpack.c.bf16 %v2461_v11, %v2461_v11 }
 0x392   :  { %v2474_v15 = vpack.c.bf16 %v2458_v14, %v2458_v14  ;;  %v1701_v16 = vrot.slane %v4070_v37, 4  ;;  %v1645_v7 = vrot.slane %v4069_v49, 4 }
 0x393   :  { %2437 = vadd.xlane.f32.xlu1 %v2436_v62  ;;  %3944 = vmatmul.msk.bf16.vlgmr.msra.gmra.mxu1 %vm1977_vm2, %v2477_v61 }
 0x394   :  { %3941 = vmatmul.msk.bf16.vlgmr.msra.gmra.mxu2 %vm1977_vm2, %v2474_v15 }
 0x39b   :  { %v4063_v33 = vpop.permute.xlu0 %4062 }
 0x39c   :  { %v4065_v6 = vunpack.i.h.bf16 %v4063_v33  ;;  %v4064_v24 = vunpack.i.l.bf16 %v4063_v33 }
 0x39e   :  { %v1689_v19 = vrot.slane %v4065_v6, 4  ;;  %v1633_v23 = vrot.slane %v4064_v24, 4  ;;  %v1636_v59 = vsel %vm149_vm0, %v4064_v24, %v1635_v35 }
 0x39f   :  { %v1644_v56 = vperm.slane %v1636_v59, %v4490_v5 }
 0x3a0   :  { %v1690_v29 = vsel %vm149_vm0, %v1689_v19, %v5666_v48  ;;  %v1634_v10 = vsel %vm149_vm0, %v1633_v23, %v4620_v21 }
 0x3a1   :  { %v1696_v9 = vperm.slane %v1690_v29, %v4490_v5  ;;  %v1640_v38 = vperm.slane %v1634_v10, %v4490_v5  ;;  %v1671_v2 = vrot.slane %v1644_v56, 4 }
 0x3a3   :  { %v1715_v30 = vrot.slane %v1696_v9, 4  ;;  %v1659_v41 = vrot.slane %v1640_v38, 4 }
 0x3ab   :  { %v2399_v8 = vpop.xlane.xlu1 %2398 }
 0x3ac   :  { %4149 = vrcp.f32 %v2399_v8 }
 0x3b2   :  { %v4150_v44 = vpop.eup %4149 }
 0x3b3   :  { %v2459_v27 = vmul.f32 %v4150_v44, %v5673_v3  ;;  %v1692_v3 = vsel %vm149_vm0, %v4065_v6, %v1691_v54 }
 0x3b4   :  { %v1700_v58 = vperm.slane %v1692_v3, %v4490_v5 }
 0x3b5   :  { %v2475_v43 = vpack.c.bf16 %v2459_v27, %v2459_v27 }
 0x3b6   :  { %v1727_v36 = vrot.slane %v1700_v58, 4 }
 0x3b7   :  { %3942 = vmatmul.msk.bf16.vlgmr.msrb.gmra.mxu3 %vm1977_vm2, %v2475_v43 }
 0x3c3   :  { %v4058_v26 = vpop.permute.xlu1 %4057 }
 0x3c4   :  { %v4060_v46 = vunpack.i.h.bf16 %v4058_v26  ;;  %v4059_v48 = vunpack.i.l.bf16 %v4058_v26 }
 0x3c6   :  { %v1702_v13 = vsel %vm149_vm0, %v1701_v16, %v4060_v46  ;;  %v1703_v63 = vrot.slane %v4060_v46, 4  ;;  %v1646_v21 = vsel %vm149_vm0, %v1645_v7, %v4059_v48  ;;  %v1647_v22 = vrot.slane %v4059_v48, 4  ;;  %v2408_v34 = vpop.xlane.xlu0 %2407 }
 0x3c7   :  { %v1708_v50 = vperm.slane %v1702_v13, %v4490_v5  ;;  %v1652_v25 = vperm.slane %v1646_v21, %v4490_v5  ;;  %4151 = vrcp.f32 %v2408_v34 }
 0x3c8   :  { %v1704_v17 = vsel %vm149_vm0, %v4070_v37, %v1703_v63  ;;  %v1648_v47 = vsel %vm149_vm0, %v4069_v49, %v1647_v22  ;;  %v2414_v26 = vpop.xlane.xlu2 %2413 }
 0x3c9   :  { %v1712_v53 = vperm.slane %v1704_v17, %v4490_v5  ;;  %v1713_v11 = vrot.slane %v1708_v50, 4  ;;  %v1716_v62 = vsel %vm149_vm0, %v1708_v50, %v1715_v30  ;;  %v1656_v14 = vperm.slane %v1648_v47, %v4490_v5 }
 0x3ca   :  { %v1724_v61 = vperm.slane %v1716_v62, %v4501_v18  ;;  %v1657_v15 = vrot.slane %v1652_v25, 4  ;;  %v1660_v8 = vsel %vm149_vm0, %v1652_v25, %v1659_v41  ;;  %4153 = vrcp.f32 %v2414_v26 }
 0x3cb   :  { %v1714_v44 = vsel %vm149_vm0, %v1713_v11, %v1696_v9  ;;  %v1725_v27 = vrot.slane %v1712_v53, 4  ;;  %v1728_v43 = vsel %vm149_vm0, %v1712_v53, %v1727_v36  ;;  %v1668_v33 = vperm.slane %v1660_v8, %v4501_v18 }
 0x3cc   :  { %v1720_v6 = vperm.slane %v1714_v44, %v4501_v18  ;;  %v1736_v24 = vperm.slane %v1728_v43, %v4501_v18  ;;  %v1739_v28 = vrot.slane %v1724_v61, 4  ;;  %v1658_v19 = vsel %vm149_vm0, %v1657_v15, %v1640_v38 }
 0x3cd   :  { %v1726_v23 = vsel %vm149_vm0, %v1725_v27, %v1700_v58  ;;  %v1664_v54 = vperm.slane %v1658_v19, %v4501_v18  ;;  %v1669_v37 = vrot.slane %v1656_v14, 4  ;;  %v1672_v49 = vsel %vm149_vm0, %v1656_v14, %v1671_v2  ;;  %v4152_v38 = vpop.eup %4151 }
 0x3ce   :  { %v1732_v35 = vperm.slane %v1726_v23, %v4501_v18  ;;  %v1737_v29 = vrot.slane %v1720_v6, 4  ;;  %v1740_v3 = vsel %vm149_vm0, 0.0, %v1739_v28  ;;  %v1743_v10 = vrot.slane %v1736_v24, 4  ;;  %v2417_v25 = vpop.xlane.xlu0 %2416 }
 0x3cf   :  { %v1912_v59 = vrot.slane %v1740_v3, 4  ;;  %v1670_v16 = vsel %vm149_vm0, %v1669_v37, %v1644_v56  ;;  %v1680_v7 = vperm.slane %v1672_v49, %v4501_v18  ;;  %v1681_v9 = vrot.slane %v1664_v54, 4 }
 0x3d0   :  { %v1738_v58 = vsel %vm149_vm0, 0.0, %v1737_v29  ;;  %v1741_v46 = vrot.slane %v1732_v35, 4  ;;  %v1744_v48 = vsel %vm149_vm0, 0.0, %v1743_v10  ;;  %v1676_v13 = vperm.slane %v1670_v16, %v4501_v18  ;;  %v4154_v23 = vpop.eup %4153 }
 0x3d1   :  { %v1923_v63 = vrot.slane %v1744_v48, 4  ;;  %v1682_v21 = vsel %vm149_vm0, 0.0, %v1681_v9  ;;  %v1683_v22 = vrot.slane %v1668_v33, 4  ;;  %v1687_v30 = vrot.slane %v1680_v7, 4 }
 0x3d2   :  { %v1742_v36 = vsel %vm149_vm0, 0.0, %v1741_v46  ;;  %v1685_v56 = vrot.slane %v1676_v13, 4  ;;  %v2462_v50 = vmul.f32 %v4152_v38, %v5680_v60  ;;  %4155 = vrcp.f32 %v2417_v25 }
 0x3d3   :  { %v1684_v41 = vsel %vm149_vm0, 0.0, %v1683_v22  ;;  %v1688_v2 = vsel %vm149_vm0, 0.0, %v1687_v30  ;;  %v1853_v17 = vsel %vm149_vm0, %v1683_v22, %v1664_v54  ;;  %v1864_v47 = vsel %vm149_vm0, %v1687_v30, %v1676_v13 }
 0x3d4   :  { %v1857_v34 = vperm.slane %v1853_v17, %v4490_v5  ;;  %v1858_v53 = vrot.slane %v1684_v41, 4  ;;  %v1869_v11 = vrot.slane %v1688_v2, 4  ;;  %v2478_v62 = vpack.c.bf16 %v2462_v50, %v2462_v50 }
 0x3d5   :  { %v1686_v14 = vsel %vm149_vm0, 0.0, %v1685_v56  ;;  %v1868_v61 = vperm.slane %v1864_v47, %v4490_v5  ;;  %v1907_v60 = vsel %vm149_vm0, %v1739_v28, %v1720_v6  ;;  %v1913_v19 = vsel %vm149_vm0, %v1912_v59, %v1738_v58 }
 0x3d6   :  { %v1859_v15 = vsel %vm149_vm0, %v1858_v53, %v1682_v21  ;;  %v1870_v8 = vsel %vm149_vm0, %v1869_v11, %v1686_v14  ;;  %v1877_v44 = vrot.slane %v1857_v34, 4  ;;  %3945 = vmatmul.msk.bf16.vlgmr.msrb.gmra.mxu2 %vm1977_vm2, %v2478_v62  ;;  %v1911_v27 = vperm.slane %v1907_v60, %v4490_v5  ;;  %v2426_v11 = vpop.xlane.xlu0 %2425 }
 0x3d7   :  { %v1863_v43 = vperm.slane %v1859_v15, %v4490_v5  ;;  %v1874_v33 = vperm.slane %v1870_v8, %v4490_v5  ;;  %v1889_v24 = vrot.slane %v1868_v61, 4  ;;  %v1917_v54 = vperm.slane %v1913_v19, %v4490_v5 }
 0x3d8   :  { %v1918_v6 = vsel %vm149_vm0, %v1743_v10, %v1732_v35  ;;  %v1924_v28 = vsel %vm149_vm0, %v1923_v63, %v1742_v36  ;;  %v2464_v37 = vmul.f32 %v4154_v23, %v5683_v52  ;;  %v1931_v59 = vrot.slane %v1911_v27, 4  ;;  %v4156_v26 = vpop.eup %4155 }
 0x3d9   :  { %v1878_v49 = vsel %vm149_vm0, %v1863_v43, %v1877_v44  ;;  %v1890_v29 = vsel %vm149_vm0, %v1874_v33, %v1889_v24  ;;  %v1875_v3 = vrot.slane %v1863_v43, 4  ;;  %v1887_v9 = vrot.slane %v1874_v33, 4 }
 0x3da   :  { %v1886_v16 = vperm.slane %v1878_v49, %v4501_v18  ;;  %v1898_v7 = vperm.slane %v1890_v29, %v4501_v18  ;;  %v2480_v38 = vpack.c.bf16 %v2464_v37, %v2464_v37  ;;  %v1928_v35 = vperm.slane %v1924_v28, %v4490_v5 }
 0x3db   :  { %v1876_v58 = vsel %vm149_vm0, %v1875_v3, %v1857_v34  ;;  %v1929_v10 = vrot.slane %v1917_v54, 4  ;;  %v1888_v48 = vsel %vm149_vm0, %v1887_v9, %v1868_v61  ;;  %v2465_v21 = vmul.f32 %v4156_v26, %v5690_v4 }
 0x3dc   :  { %v1905_v46 = vrot.slane %v1886_v16, 4  ;;  %v1882_v52 = vperm.slane %v1876_v58, %v4501_v18  ;;  %v1903_v13 = vrot.slane %v1898_v7, 4  ;;  %v1894_v63 = vperm.slane %v1888_v48, %v4501_v18  ;;  %3947 = vmatmul.msk.bf16.vlgmr.msra.gmra.mxu0 %vm1977_vm2, %v2480_v38 }
 0x3dd   :  { %v1941_v22 = vrot.slane %v1928_v35, 4  ;;  %v1922_v50 = vperm.slane %v1918_v6, %v4490_v5  ;;  %v2481_v2 = vpack.c.bf16 %v2465_v21, %v2465_v21  ;;  %v1930_v34 = vsel %vm149_vm0, %v1929_v10, %v1911_v27 }
 0x3de   :  { %v1906_v30 = vsel %vm149_vm0, %v1898_v7, %v1905_v46  ;;  %v1901_v36 = vrot.slane %v1882_v52, 4  ;;  %v1904_v56 = vsel %vm149_vm0, %v1903_v13, %v1886_v16  ;;  %v1899_v17 = vrot.slane %v1894_v63, 4 }
 0x3df   :  { %v1972_v25 = vpack.c.bf16 %v1906_v30, %v1906_v30  ;;  %v1971_v41 = vpack.c.bf16 %v1904_v56, %v1904_v56  ;;  %v1942_v4 = vsel %vm149_vm0, %v1941_v22, %v1922_v50  ;;  %v1932_v53 = vsel %vm149_vm0, %v1917_v54, %v1931_v59  ;;  %3948 = vmatmul.msk.bf16.vlgmr.msrb.gmra.mxu1 %vm1977_vm2, %v2481_v2  ;;  %v2423_v48 = vpop.xlane.xlu2 %2422 }
 0x3e0   :  { %v1902_v47 = vsel %vm149_vm0, %v1894_v63, %v1901_v36  ;;  %v1900_v60 = vsel %vm149_vm0, %v1899_v17, %v1882_v52  ;;  %v1948_v8 = vperm.slane %v1942_v4, %v4501_v18  ;;  %v1940_v44 = vperm.slane %v1932_v53, %v4501_v18 }
 0x3e1   :  { %v2704_v62 = vsel %vm2493_vm3, %v1972_v25, 0  ;;  %v1970_v14 = vpack.c.bf16 %v1902_v47, %v1902_v47  ;;  %v2685_v61 = vsel %vm2493_vm3, %v1971_v41, 0  ;;  %v1969_v15 = vpack.c.bf16 %v1900_v60, %v1900_v60 }
 0x3e2   :  { %2713 = vmatpush.bf16.msra.mxu1 %v2704_v62  ;;  %2694 = vmatpush.bf16.msrb.mxu0 %v2685_v61  ;;  %v1943_v27 = vrot.slane %v1922_v50, 4  ;;  %v1936_v33 = vperm.slane %v1930_v34, %v4501_v18  ;;  %4157 = vrcp.f32 %v2426_v11  ;;  %v1953_v19 = vrot.slane %v1948_v8, 4 }
 0x3e3   :  { %v2666_v43 = vsel %vm2493_vm3, %v1970_v14, 0  ;;  %v2647_v24 = vsel %vm2493_vm3, %v1969_v15, 0  ;;  %v1959_v54 = vrot.slane %v1940_v44, 4 }
 0x3e4   :  { %2675 = vmatpush.bf16.msrb.mxu3 %v2666_v43  ;;  %v1944_v23 = vsel %vm149_vm0, %v1928_v35, %v1943_v27  ;;  %2656 = vmatpush.bf16.msra.mxu2 %v2647_v24  ;;  %v1954_v28 = vsel %vm149_vm0, %v1953_v19, %v1936_v33  ;;  %v1955_v46 = vrot.slane %v1936_v33, 4 }
 0x3e5   :  { %v1952_v6 = vperm.slane %v1944_v23, %v4501_v18  ;;  %v1973_v37 = vpack.c.bf16 %v1954_v28, %v1954_v28 }
 0x3e6   :  { %v1956_v52 = vsel %vm149_vm0, %v1948_v8, %v1955_v46 }
 0x3e7   :  { %v1957_v49 = vrot.slane %v1952_v6, 4  ;;  %v1960_v29 = vsel %vm149_vm0, %v1952_v6, %v1959_v54  ;;  %v2723_v7 = vsel %vm2493_vm3, %v1973_v37, 0  ;;  %v2432_v56 = vpop.xlane.xlu2 %2431 }
 0x3e8   :  { %v1976_v3 = vpack.c.bf16 %v1960_v29, %v1960_v29  ;;  %v4158_v16 = vpop.eup %4157  ;;  %2732 = vmatpush.bf16.msrb.mxu2 %v2723_v7  ;;  %v2435_v4 = vpop.xlane.xlu0 %2434 }
 0x3e9   :  { %v1958_v9 = vsel %vm149_vm0, %v1957_v49, %v1940_v44  ;;  %v2468_v26 = vmul.f32 %v4158_v16, %v5696_v20  ;;  %v1974_v20 = vpack.c.bf16 %v1956_v52, %v1956_v52 }
 0x3ea   :  { %v1975_v59 = vpack.c.bf16 %v1958_v9, %v1958_v9  ;;  %v2780_v38 = vsel %vm2493_vm3, %v1976_v3, 0 }
 0x3eb   :  { %2789 = vmatpush.bf16.msrb.mxu1 %v2780_v38  ;;  %v2484_v35 = vpack.c.bf16 %v2468_v26, %v2468_v26  ;;  %v2742_v30 = vsel %vm2493_vm3, %v1974_v20, 0 }
 0x3ec   :  { %v2761_v58 = vsel %vm2493_vm3, %v1975_v59, 0 }
 0x3ed   :  { %2770 = vmatpush.bf16.msra.mxu0 %v2761_v58 }
 0x3ee   :  { %v2411_v10 = vpop.xlane.xlu1 %2410  ;;  %3951 = vmatmul.msk.bf16.vlgmr.msrb.gmra.mxu0 %vm1977_vm2, %v2484_v35 }
 0x3ef   :  { %4159 = vrcp.f32 %v2411_v10  ;;  %v2441_v11 = vpop.xlane.xlu2 %2440 }
 0x3f5   :  { %v4160_v13 = vpop.eup %4159 }
 0x3f6   :  { %v2463_v63 = vmul.f32 %v4160_v13, %v5718_v1  ;;  %v2420_v21 = vpop.xlane.xlu1 %2419 }
 0x3f7   :  { %4161 = vrcp.f32 %v2420_v21 }
 0x3f8   :  { %v2479_v22 = vpack.c.bf16 %v2463_v63, %v2463_v63  ;;  %4163 = vrcp.f32 %v2423_v48 }
 0x3fa   :  { %3946 = vmatmul.msk.bf16.vlgmr.msra.gmra.mxu3 %vm1977_vm2, %v2479_v22 }
 0x3fb   :  { %2751 = vmatpush.bf16.msra.mxu3 %v2742_v30 }
 0x3fd   :  { %v4162_v36 = vpop.eup %4161 }
 0x3fe   :  { %v2466_v50 = vmul.f32 %v4162_v36, %v5725_v51  ;;  %v2429_v25 = vpop.xlane.xlu1 %2428  ;;  %v4164_v2 = vpop.eup %4163 }
 0x3ff   :  { %4165 = vrcp.f32 %v2429_v25  ;;  %v2467_v1 = vmul.f32 %v4164_v2, %v5701_v0 }
 0x400   :  { %v2482_v41 = vpack.c.bf16 %v2466_v50, %v2466_v50  ;;  %4167 = vrcp.f32 %v2432_v56 }
 0x401   :  { %v2483_v53 = vpack.c.bf16 %v2467_v1, %v2467_v1 }
 0x402   :  { %3949 = vmatmul.msk.bf16.vlgmr.msra.gmra.mxu2 %vm1977_vm2, %v2482_v41 }
 0x405   :  { %v4166_v17 = vpop.eup %4165 }
 0x406   :  { %v2469_v47 = vmul.f32 %v4166_v17, %v5730_v31  ;;  %v2438_v34 = vpop.xlane.xlu1 %2437  ;;  %v4168_v14 = vpop.eup %4167 }
 0x407   :  { %4169 = vrcp.f32 %v2438_v34  ;;  %v2470_v61 = vmul.f32 %v4168_v14, %v5707_v12 }
 0x408   :  { %v2485_v62 = vpack.c.bf16 %v2469_v47, %v2469_v47  ;;  %4171 = vrcp.f32 %v2435_v4  ;;  %v2544_v51 = vpop.f32.mrf.mxu0 }
 0x409   :  { %4173 = vrcp.f32 %v2441_v11  ;;  %v2486_v15 = vpack.c.bf16 %v2470_v61, %v2470_v61  ;;  %v2795_v12 = vrot.slane %v2544_v51, 4 }
 0x40a   :  { %3950 = vmatmul.msk.bf16.vlgmr.msrb.gmra.mxu3 %vm1977_vm2, %v2483_v53  ;;  %3952 = vmatmul.msk.bf16.vlgmr.msra.gmra.mxu1 %vm1977_vm2, %v2485_v62 }
 0x40d   :  { %v4170_v0 = vpop.eup %4169 }
 0x40e   :  { %v2472_v60 = vmul.f32 %v4170_v0, %v5736_v42  ;;  %v4172_v31 = vpop.eup %4171 }
 0x40f   :  { %v4174_v44 = vpop.eup %4173  ;;  %v2471_v33 = vmul.f32 %v4172_v31, %v5709_v39 }
 0x410   :  { %v2488_v8 = vpack.c.bf16 %v2472_v60, %v2472_v60  ;;  %v2546_v27 = vpop.f32.mrf.mxu0  ;;  %v2563_v43 = vpop.f32.mrf.mxu1  ;;  %v2473_v24 = vmul.f32 %v4174_v44, %v5716_v32 }
 0x411   :  { %v2487_v19 = vpack.c.bf16 %v2471_v33, %v2471_v33  ;;  %v2807_v39 = vrot.slane %v2563_v43, 4 }
 0x412   :  { %3953 = vmatmul.msk.bf16.vlgmr.msrb.gmra.mxu2 %vm1977_vm2, %v2486_v15  ;;  %3955 = vmatmul.msk.bf16.vlgmr.msra.gmra.mxu0 %vm1977_vm2, %v2488_v8  ;;  %v2489_v23 = vpack.c.bf16 %v2473_v24, %v2473_v24 }
 0x417   :  { %v2506_v54 = vpop.f32.mrf.mxu2 }
 0x418   :  { %v2796_v42 = vsel %vm149_vm0, %v2795_v12, %v2506_v54  ;;  %v2797_v6 = vrot.slane %v2506_v54, 4  ;;  %v2565_v28 = vpop.f32.mrf.mxu1 }
 0x419   :  { %v2802_v29 = vperm.slane %v2796_v42, %v4490_v5 }
 0x41a   :  { %3954 = vmatmul.msk.bf16.vlgmr.msra.gmra.mxu3 %vm1977_vm2, %v2487_v19  ;;  %3956 = vmatmul.msk.bf16.vlgmr.msrb.gmra.mxu1 %vm1977_vm2, %v2489_v23  ;;  %v2798_v37 = vsel %vm149_vm0, %v2544_v51, %v2797_v6 }
 0x41b   :  { %v2806_v32 = vperm.slane %v2798_v37, %v4490_v5  ;;  %v2821_v9 = vrot.slane %v2802_v29, 4 }
 0x41d   :  { %v2833_v38 = vrot.slane %v2806_v32, 4 }
 0x41f   :  { %v2508_v49 = vpop.f32.mrf.mxu2 }
 0x43a   :  { %v2525_v3 = vpop.f32.mrf.mxu3 }
 0x43b   :  { %v2808_v16 = vsel %vm149_vm0, %v2807_v39, %v2525_v3  ;;  %v2809_v7 = vrot.slane %v2525_v3, 4 }
 0x43c   :  { %v2814_v59 = vperm.slane %v2808_v16, %v4490_v5 }
 0x43d   :  { %v2810_v26 = vsel %vm149_vm0, %v2563_v43, %v2809_v7 }
 0x43e   :  { %v2818_v58 = vperm.slane %v2810_v26, %v4490_v5  ;;  %v2819_v35 = vrot.slane %v2814_v59, 4  ;;  %v2822_v10 = vsel %vm149_vm0, %v2814_v59, %v2821_v9 }
 0x43f   :  { %v2830_v46 = vperm.slane %v2822_v10, %v4501_v18 }
 0x440   :  { %v2820_v52 = vsel %vm149_vm0, %v2819_v35, %v2802_v29  ;;  %v2831_v48 = vrot.slane %v2818_v58, 4  ;;  %v2834_v13 = vsel %vm149_vm0, %v2818_v58, %v2833_v38 }
 0x441   :  { %v2826_v63 = vperm.slane %v2820_v52, %v4501_v18  ;;  %v2842_v21 = vperm.slane %v2834_v13, %v4501_v18  ;;  %v2845_v20 = vrot.slane %v2830_v46, 4 }
 0x442   :  { %v2832_v22 = vsel %vm149_vm0, %v2831_v48, %v2806_v32  ;;  %v2527_v30 = vpop.f32.mrf.mxu3 }
 0x443   :  { %v2838_v36 = vperm.slane %v2832_v22, %v4501_v18  ;;  %v2843_v56 = vrot.slane %v2826_v63, 4  ;;  %v2846_v50 = vsel %vm149_vm0, 0.0, %v2845_v20  ;;  %v2849_v25 = vrot.slane %v2842_v21, 4 }
 0x444   :  { %v3019_v41 = vsel %vm149_vm0, %v2845_v20, %v2826_v63  ;;  %v3024_v2 = vrot.slane %v2846_v50, 4 }
 0x445   :  { %v2844_v1 = vsel %vm149_vm0, 0.0, %v2843_v56  ;;  %v3030_v47 = vsel %vm149_vm0, %v2849_v25, %v2838_v36  ;;  %v2850_v34 = vsel %vm149_vm0, 0.0, %v2849_v25  ;;  %v3023_v4 = vperm.slane %v3019_v41, %v4490_v5 }
 0x446   :  { %v3025_v17 = vsel %vm149_vm0, %v3024_v2, %v2844_v1  ;;  %v2847_v53 = vrot.slane %v2838_v36, 4  ;;  %v3035_v11 = vrot.slane %v2850_v34, 4  ;;  %v3034_v51 = vperm.slane %v3030_v47, %v4490_v5 }
 0x447   :  { %v3029_v62 = vperm.slane %v3025_v17, %v4490_v5  ;;  %v3043_v14 = vrot.slane %v3023_v4, 4 }
 0x448   :  { %v2848_v61 = vsel %vm149_vm0, 0.0, %v2847_v53  ;;  %v3055_v60 = vrot.slane %v3034_v51, 4 }
 0x449   :  { %v3036_v0 = vsel %vm149_vm0, %v3035_v11, %v2848_v61  ;;  %v3044_v15 = vsel %vm149_vm0, %v3029_v62, %v3043_v14  ;;  %v3041_v8 = vrot.slane %v3029_v62, 4 }
 0x44a   :  { %v3040_v31 = vperm.slane %v3036_v0, %v4490_v5  ;;  %v3052_v44 = vperm.slane %v3044_v15, %v4501_v18 }
 0x44b   :  { %v3042_v43 = vsel %vm149_vm0, %v3041_v8, %v3023_v4 }
 0x44c   :  { %v3056_v27 = vsel %vm149_vm0, %v3040_v31, %v3055_v60  ;;  %v3053_v33 = vrot.slane %v3040_v31, 4  ;;  %v3071_v19 = vrot.slane %v3052_v44, 4  ;;  %v3048_v23 = vperm.slane %v3042_v43, %v4501_v18 }
 0x44d   :  { %v3064_v24 = vperm.slane %v3056_v27, %v4501_v18 }
 0x44e   :  { %v3054_v12 = vsel %vm149_vm0, %v3053_v33, %v3034_v51  ;;  %v3067_v28 = vrot.slane %v3048_v23, 4 }
 0x44f   :  { %v5898_v54 = vsel %vm149_vm0, %v3064_v24, %v3071_v19  ;;  %v3069_v42 = vrot.slane %v3064_v24, 4  ;;  %v3060_v6 = vperm.slane %v3054_v12, %v4501_v18 }
 0x451   :  { %v5902_v29 = vsel %vm149_vm0, %v3069_v42, %v3052_v44  ;;  %v3065_v39 = vrot.slane %v3060_v6, 4  ;;  %v5905_v32 = vsel %vm149_vm0, %v3060_v6, %v3067_v28 }
 0x453   :  { %v5908_v3 = vsel %vm149_vm0, %v3065_v39, %v3048_v23 }
 0x459   :  { %v2582_v37 = vpop.f32.mrf.mxu2  ;;  %v2620_v49 = vpop.f32.mrf.mxu0 }
 0x45a   :  { %v2851_v58 = vrot.slane %v2620_v49, 4  ;;  %v2853_v35 = vrot.slane %v2582_v37, 4 }
 0x45c   :  { %v2639_v16 = vpop.f32.mrf.mxu1  ;;  %v2852_v10 = vsel %vm149_vm0, %v2851_v58, %v2582_v37  ;;  %v2854_v46 = vsel %vm149_vm0, %v2620_v49, %v2853_v35 }
 0x45d   :  { %v2858_v52 = vperm.slane %v2852_v10, %v4490_v5  ;;  %v2863_v48 = vrot.slane %v2639_v16, 4  ;;  %v2862_v13 = vperm.slane %v2854_v46, %v4490_v5 }
 0x45f   :  { %v2877_v22 = vrot.slane %v2858_v52, 4  ;;  %v2889_v56 = vrot.slane %v2862_v13, 4 }
 0x461   :  { %v2584_v7 = vpop.f32.mrf.mxu2  ;;  %v2622_v9 = vpop.f32.mrf.mxu0 }
 0x464   :  { %v2641_v59 = vpop.f32.mrf.mxu1 }
 0x46b   :  { %v2696_v26 = vpop.f32.mrf.mxu0 }
 0x46c   :  { %v2907_v11 = vrot.slane %v2696_v26, 4 }
 0x473   :  { %v2698_v38 = vpop.f32.mrf.mxu0 }
 0x47d   :  { %v2601_v63 = vpop.f32.mrf.mxu3 }
 0x47e   :  { %v2864_v21 = vsel %vm149_vm0, %v2863_v48, %v2601_v63  ;;  %v2865_v20 = vrot.slane %v2601_v63, 4 }
 0x47f   :  { %v2870_v30 = vperm.slane %v2864_v21, %v4490_v5 }
 0x480   :  { %v2866_v36 = vsel %vm149_vm0, %v2639_v16, %v2865_v20 }
 0x481   :  { %v2874_v50 = vperm.slane %v2866_v36, %v4490_v5  ;;  %v2875_v25 = vrot.slane %v2870_v30, 4  ;;  %v2878_v41 = vsel %vm149_vm0, %v2870_v30, %v2877_v22 }
 0x482   :  { %v2886_v2 = vperm.slane %v2878_v41, %v4501_v18 }
 0x483   :  { %v2876_v1 = vsel %vm149_vm0, %v2875_v25, %v2858_v52  ;;  %v2887_v17 = vrot.slane %v2874_v50, 4  ;;  %v2890_v47 = vsel %vm149_vm0, %v2874_v50, %v2889_v56 }
 0x484   :  { %v2882_v34 = vperm.slane %v2876_v1, %v4501_v18  ;;  %v2898_v4 = vperm.slane %v2890_v47, %v4501_v18  ;;  %v2901_v53 = vrot.slane %v2886_v2, 4 }
 0x485   :  { %v2888_v62 = vsel %vm149_vm0, %v2887_v17, %v2862_v13  ;;  %v2603_v14 = vpop.f32.mrf.mxu3  ;;  %v2658_v51 = vpop.f32.mrf.mxu2 }
 0x486   :  { %v2894_v61 = vperm.slane %v2888_v62, %v4501_v18  ;;  %v2899_v0 = vrot.slane %v2882_v34, 4  ;;  %v2902_v60 = vsel %vm149_vm0, 0.0, %v2901_v53  ;;  %v2905_v31 = vrot.slane %v2898_v4, 4 }
 0x487   :  { %v3073_v15 = vsel %vm149_vm0, %v2901_v53, %v2882_v34  ;;  %v3078_v8 = vrot.slane %v2902_v60, 4  ;;  %v2908_v44 = vsel %vm149_vm0, %v2907_v11, %v2658_v51  ;;  %v2909_v27 = vrot.slane %v2658_v51, 4  ;;  %v2715_v43 = vpop.f32.mrf.mxu1 }
 0x488   :  { %v2900_v33 = vsel %vm149_vm0, 0.0, %v2899_v0  ;;  %v2903_v24 = vrot.slane %v2894_v61, 4  ;;  %v2906_v19 = vsel %vm149_vm0, 0.0, %v2905_v31  ;;  %v3077_v23 = vperm.slane %v3073_v15, %v4490_v5 }
 0x489   :  { %v3079_v12 = vsel %vm149_vm0, %v3078_v8, %v2900_v33  ;;  %v3084_v42 = vsel %vm149_vm0, %v2905_v31, %v2894_v61  ;;  %v3089_v6 = vrot.slane %v2906_v19, 4  ;;  %v2910_v28 = vsel %vm149_vm0, %v2696_v26, %v2909_v27 }
 0x48a   :  { %v3083_v37 = vperm.slane %v3079_v12, %v4490_v5  ;;  %v3097_v49 = vrot.slane %v3077_v23, 4  ;;  %v2914_v39 = vperm.slane %v2908_v44, %v4490_v5  ;;  %v2904_v16 = vsel %vm149_vm0, 0.0, %v2903_v24 }
 0x48b   :  { %v3088_v7 = vperm.slane %v3084_v42, %v4490_v5  ;;  %v2918_v9 = vperm.slane %v2910_v28, %v4490_v5  ;;  %v2919_v59 = vrot.slane %v2715_v43, 4  ;;  %v3090_v38 = vsel %vm149_vm0, %v3089_v6, %v2904_v16 }
 0x48c   :  { %v3098_v58 = vsel %vm149_vm0, %v3083_v37, %v3097_v49  ;;  %v3094_v26 = vperm.slane %v3090_v38, %v4490_v5  ;;  %v3095_v48 = vrot.slane %v3083_v37, 4  ;;  %v2933_v21 = vrot.slane %v2914_v39, 4 }
 0x48d   :  { %v2660_v35 = vpop.f32.mrf.mxu2  ;;  %v2677_v10 = vpop.f32.mrf.mxu3  ;;  %v3106_v46 = vperm.slane %v3098_v58, %v4501_v18  ;;  %v3109_v52 = vrot.slane %v3088_v7, 4  ;;  %v2945_v50 = vrot.slane %v2918_v9, 4 }
 0x48e   :  { %v2920_v13 = vsel %vm149_vm0, %v2919_v59, %v2677_v10  ;;  %v2921_v63 = vrot.slane %v2677_v10, 4  ;;  %v3096_v47 = vsel %vm149_vm0, %v3095_v48, %v3077_v23  ;;  %v3107_v11 = vrot.slane %v3094_v26, 4 }
 0x48f   :  { %v2926_v20 = vperm.slane %v2920_v13, %v4490_v5  ;;  %v2717_v22 = vpop.f32.mrf.mxu1  ;;  %v2772_v30 = vpop.f32.mrf.mxu0  ;;  %v3110_v36 = vsel %vm149_vm0, %v3094_v26, %v3109_v52  ;;  %v3125_v56 = vrot.slane %v3106_v46, 4  ;;  %v5964_v24 = vperm.slane %v3096_v47, %v4501_v18 }
 0x490   :  { %v2922_v25 = vsel %vm149_vm0, %v2715_v43, %v2921_v63  ;;  %v3118_v41 = vperm.slane %v3110_v36, %v4501_v18  ;;  %v2963_v44 = vrot.slane %v2772_v30, 4  ;;  %v3108_v28 = vsel %vm149_vm0, %v3107_v11, %v3088_v7 }
 0x491   :  { %v2930_v2 = vperm.slane %v2922_v25, %v4490_v5  ;;  %v2931_v1 = vrot.slane %v2926_v20, 4  ;;  %v2934_v17 = vsel %vm149_vm0, %v2926_v20, %v2933_v21  ;;  %v3121_v35 = vrot.slane %v5964_v24, 4 }
 0x492   :  { %v2942_v34 = vperm.slane %v2934_v17, %v4501_v18  ;;  %v3126_v4 = vsel %vm149_vm0, %v3118_v41, %v3125_v56  ;;  %v3123_v53 = vrot.slane %v3118_v41, 4  ;;  %v3114_v52 = vperm.slane %v3108_v28, %v4501_v18 }
 0x493   :  { %v2932_v62 = vsel %vm149_vm0, %v2931_v1, %v2914_v39  ;;  %v2943_v14 = vrot.slane %v2930_v2, 4  ;;  %v2946_v51 = vsel %vm149_vm0, %v2930_v2, %v2945_v50  ;;  %v4081_v61 = vpack.i.bf16 %v3126_v4, %v5898_v54 }
 0x494   :  { %v2938_v0 = vperm.slane %v2932_v62, %v4501_v18  ;;  %v2954_v60 = vperm.slane %v2946_v51, %v4501_v18  ;;  %v2957_v31 = vrot.slane %v2942_v34, 4  ;;  %v3124_v15 = vsel %vm149_vm0, %v3123_v53, %v3106_v46 }
 0x495   :  { %v2944_v8 = vsel %vm149_vm0, %v2943_v14, %v2918_v9  ;;  %4082 = vrot.lane.b32.xlu2 %v4081_v61, %s4359_s8  ;;  %v2679_v27 = vpop.f32.mrf.mxu3  ;;  %v2734_v43 = vpop.f32.mrf.mxu2  ;;  %v4076_v33 = vpack.i.bf16 %v3124_v15, %v5902_v29  ;;  %v3122_v22 = vsel %vm149_vm0, %v3114_v52, %v3121_v35 }
 0x496   :  { %v2950_v54 = vperm.slane %v2944_v8, %v4501_v18  ;;  %v2955_v19 = vrot.slane %v2938_v0, 4  ;;  %v2958_v23 = vsel %vm149_vm0, 0.0, %v2957_v31  ;;  %v2961_v12 = vrot.slane %v2954_v60, 4 }
 0x497   :  { %v3132_v42 = vrot.slane %v2958_v23, 4  ;;  %v2965_v6 = vrot.slane %v2734_v43, 4  ;;  %4077 = vrot.lane.b32.xlu1 %v4076_v33, %s4360_s11  ;;  %v2774_v37 = vpop.f32.mrf.mxu0  ;;  %v2791_v49 = vpop.f32.mrf.mxu1  ;;  %v2964_v9 = vsel %vm149_vm0, %v2963_v44, %v2734_v43  ;;  %v3127_v26 = vsel %vm149_vm0, %v2957_v31, %v2938_v0 }
 0x498   :  { %v2956_v29 = vsel %vm149_vm0, 0.0, %v2955_v19  ;;  %v2959_v39 = vrot.slane %v2950_v54, 4  ;;  %v2962_v16 = vsel %vm149_vm0, 0.0, %v2961_v12  ;;  %v3138_v59 = vsel %vm149_vm0, %v2961_v12, %v2950_v54 }
 0x499   :  { %v3143_v38 = vrot.slane %v2962_v16, 4  ;;  %v2966_v58 = vsel %vm149_vm0, %v2772_v30, %v2965_v6  ;;  %v3133_v7 = vsel %vm149_vm0, %v3132_v42, %v2956_v29  ;;  %v2970_v46 = vperm.slane %v2964_v9, %v4490_v5 }
 0x49a   :  { %v2960_v10 = vsel %vm149_vm0, 0.0, %v2959_v39  ;;  %v3142_v13 = vperm.slane %v3138_v59, %v4490_v5  ;;  %v2974_v63 = vperm.slane %v2966_v58, %v4490_v5  ;;  %v2975_v21 = vrot.slane %v2791_v49, 4 }
 0x49b   :  { %v3144_v48 = vsel %vm149_vm0, %v3143_v38, %v2960_v10  ;;  %v3137_v56 = vperm.slane %v3133_v7, %v4490_v5  ;;  %v4071_v50 = vpack.i.bf16 %v3122_v22, %v5905_v32  ;;  %v3131_v2 = vperm.slane %v3127_v26, %v4490_v5 }
 0x49c   :  { %v3148_v20 = vperm.slane %v3144_v48, %v4490_v5  ;;  %v2989_v1 = vrot.slane %v2970_v46, 4  ;;  %v3001_v34 = vrot.slane %v2974_v63, 4  ;;  %v3163_v53 = vrot.slane %v3142_v13, 4 }
 0x49d   :  { %v2736_v30 = vpop.f32.mrf.mxu2  ;;  %v2753_v36 = vpop.f32.mrf.mxu3  ;;  %4072 = vrot.lane.b32.xlu0 %v4071_v50, %s4361_s29  ;;  %v3149_v51 = vrot.slane %v3137_v56, 4  ;;  %v3119_v0 = vrot.slane %v3114_v52, 4  ;;  %v3151_v19 = vrot.slane %v3131_v2, 4 }
 0x49e   :  { %v2976_v25 = vsel %vm149_vm0, %v2975_v21, %v2753_v36  ;;  %v2977_v41 = vrot.slane %v2753_v36, 4  ;;  %v3161_v11 = vrot.slane %v3148_v20, 4  ;;  %v3164_v23 = vsel %vm149_vm0, %v3148_v20, %v3163_v53 }
 0x49f   :  { %v2982_v17 = vperm.slane %v2976_v25, %v4490_v5  ;;  %v2793_v47 = vpop.f32.mrf.mxu1  ;;  %v3150_v12 = vsel %vm149_vm0, %v3149_v51, %v3131_v2  ;;  %v6010_v16 = vsel %vm149_vm0, %v3119_v0, %v5964_v24  ;;  %v3172_v26 = vperm.slane %v3164_v23, %v4501_v18  ;;  %v4002_v23 = vld [vmem:[#allocation8 + $0x8] sm:$0xff] }
 0x4a0   :  { %v2978_v4 = vsel %vm149_vm0, %v2791_v49, %v2977_v41  ;;  %v3162_v43 = vsel %vm149_vm0, %v3161_v11, %v3142_v13  ;;  %v3152_v36 = vsel %vm149_vm0, %v3137_v56, %v3151_v19  ;;  %3331 = vmatpush.bf16.msra.mxu2 %v4002_v23 }
 0x4a1   :  { %v2986_v62 = vperm.slane %v2978_v4, %v4490_v5  ;;  %v2987_v32 = vrot.slane %v2982_v17, 4  ;;  %v2990_v14 = vsel %vm149_vm0, %v2982_v17, %v2989_v1  ;;  %v3168_v39 = vperm.slane %v3162_v43, %v4501_v18 }
 0x4a2   :  { %v2998_v61 = vperm.slane %v2990_v14, %v4501_v18  ;;  %v3177_v50 = vrot.slane %v3172_v26, 4  ;;  %v3160_v53 = vperm.slane %v3152_v36, %v4501_v18 }
 0x4a3   :  { %v2988_v60 = vsel %vm149_vm0, %v2987_v32, %v2970_v46  ;;  %v2999_v31 = vrot.slane %v2986_v62, 4  ;;  %v3002_v15 = vsel %vm149_vm0, %v2986_v62, %v3001_v34  ;;  %v3173_v21 = vrot.slane %v3168_v39, 4 }
 0x4a4   :  { %v2994_v8 = vperm.slane %v2988_v60, %v4501_v18  ;;  %v3010_v44 = vperm.slane %v3002_v15, %v4501_v18  ;;  %v3013_v27 = vrot.slane %v2998_v61, 4  ;;  %v3178_v51 = vsel %vm149_vm0, %v3177_v50, %v3160_v53 }
 0x4a5   :  { %v3000_v33 = vsel %vm149_vm0, %v2999_v31, %v2974_v63  ;;  %v2755_v54 = vpop.f32.mrf.mxu3  ;;  %v3156_v63 = vperm.slane %v3150_v12, %v4501_v18  ;;  %v4001_v12 = vld [vmem:[#allocation8] sm:$0xff] }
 0x4a6   :  { %v3006_v42 = vperm.slane %v3000_v33, %v4501_v18  ;;  %v3011_v6 = vrot.slane %v2994_v8, 4  ;;  %v3014_v28 = vsel %vm149_vm0, 0.0, %v3013_v27  ;;  %v3017_v37 = vrot.slane %v3010_v44, 4  ;;  %3332 = vmatpush.bf16.msra.mxu2 %v4001_v12 }
 0x4a7   :  { %v3181_v49 = vsel %vm149_vm0, %v3013_v27, %v2994_v8  ;;  %v3186_v29 = vrot.slane %v3014_v28, 4  ;;  %v3175_v47 = vrot.slane %v3156_v63, 4  ;;  %v3174_v4 = vsel %vm149_vm0, %v3173_v21, %v3156_v63 }
 0x4a8   :  { %v3012_v9 = vsel %vm149_vm0, 0.0, %v3011_v6  ;;  %v3015_v59 = vrot.slane %v3006_v42, 4  ;;  %v3018_v38 = vsel %vm149_vm0, 0.0, %v3017_v37  ;;  %v3185_v58 = vperm.slane %v3181_v49, %v4490_v5 }
 0x4a9   :  { %v3187_v35 = vsel %vm149_vm0, %v3186_v29, %v3012_v9  ;;  %v3192_v10 = vsel %vm149_vm0, %v3017_v37, %v3006_v42  ;;  %v3197_v7 = vrot.slane %v3018_v38, 4  ;;  %v3176_v0 = vsel %vm149_vm0, %v3168_v39, %v3175_v47 }
 0x4aa   :  { %v3016_v46 = vsel %vm149_vm0, 0.0, %v3015_v59  ;;  %v3196_v52 = vperm.slane %v3192_v10, %v4490_v5  ;;  %v3191_v24 = vperm.slane %v3187_v35, %v4490_v5  ;;  %v3205_v48 = vrot.slane %v3185_v58, 4 }
 0x4ab   :  { %v3198_v13 = vsel %vm149_vm0, %v3197_v7, %v3016_v46  ;;  %v3179_v44 = vrot.slane %v3160_v53, 4 }
 0x4ac   :  { %v3202_v20 = vperm.slane %v3198_v13, %v4490_v5  ;;  %v3217_v22 = vrot.slane %v3196_v52, 4  ;;  %v3203_v30 = vrot.slane %v3191_v24, 4  ;;  %v3206_v25 = vsel %vm149_vm0, %v3191_v24, %v3205_v48 }
 0x4ad   :  { %v3214_v56 = vperm.slane %v3206_v25, %v4501_v18  ;;  %v3180_v33 = vsel %vm149_vm0, %v3172_v26, %v3179_v44 }
 0x4ae   :  { %v3218_v41 = vsel %vm149_vm0, %v3202_v20, %v3217_v22  ;;  %v3204_v2 = vsel %vm149_vm0, %v3203_v30, %v3185_v58  ;;  %v3215_v1 = vrot.slane %v3202_v20, 4 }
 0x4af   :  { %v3226_v17 = vperm.slane %v3218_v41, %v4501_v18  ;;  %v3210_v34 = vperm.slane %v3204_v2, %v4501_v18  ;;  %v3233_v8 = vrot.slane %v3214_v56, 4 }
 0x4b0   :  { %v3216_v11 = vsel %vm149_vm0, %v3215_v1, %v3196_v52  ;;  %v4104_v1 = vld [vmem:[%s6260_s10] ss:$0 sm:$0xff] }
 0x4b1   :  { %v3231_v62 = vrot.slane %v3226_v17, 4  ;;  %v3222_v32 = vperm.slane %v3216_v11, %v4501_v18  ;;  %v3229_v14 = vrot.slane %v3210_v34, 4  ;;  %v3234_v27 = vsel %vm149_vm0, %v3226_v17, %v3233_v8 }
 0x4b2   :  { %v4096_v54 = vpack.i.bf16 %v3234_v27, %v3180_v33 }
 0x4b3   :  { %v3232_v61 = vsel %vm149_vm0, %v3231_v62, %v3214_v56  ;;  %v3230_v60 = vsel %vm149_vm0, %v3222_v32, %v3229_v14  ;;  %v3227_v43 = vrot.slane %v3222_v32, 4 }
 0x4b4   :  { %v4091_v31 = vpack.i.bf16 %v3232_v61, %v3178_v51  ;;  %v4086_v15 = vpack.i.bf16 %v3230_v60, %v3176_v0 }
 0x4b5   :  { %v3228_v19 = vsel %vm149_vm0, %v3227_v43, %v3210_v34 }
 0x4b6   :  { %4092 = vrot.lane.b32.xlu1 %v4091_v31, %s4360_s11  ;;  %4087 = vrot.lane.b32.xlu0 %v4086_v15, %s4361_s29  ;;  %v4362_v15 = vmov 32.0   ;;  %s4365_s11 = smov 128  }
 0x4b7   :  { %4175 = vrcp.f32 %v4362_v15 }
 0x4be   :  { %4097 = vrot.lane.b32.xlu0 %v4096_v54, %s4359_s8  ;;  %s3878_s8 = sshll.u32 %s4364_s28, 4  ;;  %s3879_s8 = int_to_ptr.vmem [resolvable:$true] %s3878_s8 }
 0x4ef   :  { %v4083_v6 = vpop.permute.xlu2 %4082 }
 0x4f0   :  { %v4085_v9 = vunpack.i.h.bf16 %v4083_v6  ;;  %v4084_v59 = vunpack.i.l.bf16 %v4083_v6 }
 0x509   :  { %v4078_v42 = vpop.permute.xlu1 %4077 }
 0x50a   :  { %v4080_v28 = vunpack.i.h.bf16 %v4078_v42  ;;  %v4079_v37 = vunpack.i.l.bf16 %v4078_v42 }
 0x50f   :  { %v4073_v49 = vpop.permute.xlu0 %4072 }
 0x510   :  { %v4075_v29 = vunpack.i.h.bf16 %v4073_v49  ;;  %v4074_v39 = vunpack.i.l.bf16 %v4073_v49 }
 0x512   :  { %v3283_v38 = vsel %vm1977_vm2, %v5908_v3, %v4074_v39  ;;  %v3284_v58 = vsel %vm1977_vm2, %v6010_v16, %v4075_v29 }
 0x513   :  { %v3288_v35 = vsel %vm3287_vm4, %v3283_v38, %v4079_v37  ;;  %v3289_v10 = vsel %vm3287_vm4, %v3284_v58, %v4080_v28 }
 0x514   :  { %v3293_v7 = vsel %vm3292_vm5, %v3288_v35, %v4084_v59  ;;  %v3294_v26 = vsel %vm3292_vm5, %v3289_v10, %v4085_v9 }
 0x515   :  { %v3297_v46 = vpack.c.bf16 %v3294_v26, %v3293_v7 }
 0x517   :  { %3965 = vmatmul.msk.bf16.vlgmr.msra.gmra.mxu2 %vm361_vm1, %v3297_v46 }
 0x528   :  { %v4088_v52 = vpop.permute.xlu0 %4087  ;;  %v4093_v24 = vpop.permute.xlu1 %4092 }
 0x529   :  { %v4090_v48 = vunpack.i.h.bf16 %v4088_v52  ;;  %v4089_v13 = vunpack.i.l.bf16 %v4088_v52  ;;  %v4095_v63 = vunpack.i.h.bf16 %v4093_v24  ;;  %v4094_v3 = vunpack.i.l.bf16 %v4093_v24  ;;  %v4004_v24 = vld [vmem:[#allocation10 + $0x8] sm:$0xff] }
 0x52a   :  { %3493 = vmatpush.bf16.msrb.mxu3 %v4004_v24 }
 0x52b   :  { %v3285_v21 = vsel %vm1977_vm2, %v3174_v4, %v4089_v13  ;;  %v3286_v16 = vsel %vm1977_vm2, %v3228_v19, %v4090_v48  ;;  %v4003_v48 = vld [vmem:[#allocation10] sm:$0xff] }
 0x52c   :  { %v3290_v36 = vsel %vm3287_vm4, %v3285_v21, %v4094_v3  ;;  %v3291_v50 = vsel %vm3287_vm4, %v3286_v16, %v4095_v63 }
 0x52e   :  { %3494 = vmatpush.bf16.msrb.mxu3 %v4003_v48 }
 0x530   :  { %v4098_v20 = vpop.permute.xlu0 %4097 }
 0x531   :  { %v4100_v22 = vunpack.i.h.bf16 %v4098_v20  ;;  %v4099_v30 = vunpack.i.l.bf16 %v4098_v20 }
 0x533   :  { %v3295_v25 = vsel %vm3292_vm5, %v3290_v36, %v4099_v30  ;;  %v3296_v41 = vsel %vm3292_vm5, %v3291_v50, %v4100_v22  ;;  %vm3548_vm5 = vcmask 523264  }
 0x534   :  { %v3298_v2 = vpack.c.bf16 %v3296_v41, %v3295_v25 }
 0x536   :  { %3966 = vmatmul.msk.bf16.gmra.mxu2 %vm361_vm1, %v3298_v2 }
 0x59a   :  { %v3334_v17 = vpop.f32.mrf.mxu2 }
 0x59b   :  { %v3335_v47 = vadd.f32 %v4104_v1, %v3334_v17 }
 0x59d   :  { %v3344_v34 = vadd.f32 %v3335_v47, %v4581_v57  ;;  %v4105_v47 = vld [vmem:[%s6265_s15] ss:$0 sm:$0xff] }
 0x59f   :  { %v3350_v4 = vsel %vm361_vm1, %v3344_v34, 0.0 }
 0x5a0   :  { %3351 = vadd.xlane.f32.xlu2 %v3350_v4 }
 0x5a2   :  { %v3336_v53 = vpop.f32.mrf.mxu2 }
 0x5a3   :  { %v3337_v11 = vadd.f32 %v4104_v1, %v3336_v53 }
 0x5a5   :  { %v3345_v56 = vadd.f32 %v3337_v11, %v4577_v55  ;;  %v4176_v55 = vpop.eup %4175 }
 0x5a6   :  { %v3363_v8 = vmul.f32 32.0, %v4176_v55  ;;  %vm3367_vm6 = vweird.f32 %v4176_v55 }
 0x5a7   :  { %v3353_v62 = vsel %vm361_vm1, %v3345_v56, 0.0 }
 0x5a8   :  { %3354 = vadd.xlane.f32.xlu1 %v3353_v62  ;;  %v3364_v44 = vsub.f32 1.0, %v3363_v8  ;;  %v4106_v62 = vld [vmem:[%s6266_s16] ss:$0 sm:$0xff] }
 0x5aa   :  { %v3365_v27 = vmul.f32 %v4176_v55, %v3364_v44 }
 0x5ac   :  { %v3366_v43 = vadd.f32 %v4176_v55, %v3365_v27 }
 0x5ae   :  { %v6072_v33 = vsel %vm3367_vm6, %v4176_v55, %v3366_v43 }
 0x5b9   :  { %v3339_v32 = vpop.f32.mrf.mxu2 }
 0x5ba   :  { %v3340_v14 = vadd.f32 %v4104_v1, %v3339_v32 }
 0x5bc   :  { %v3346_v51 = vadd.f32 %v3340_v14, %v4567_v45 }
 0x5be   :  { %v3356_v61 = vsel %vm361_vm1, %v3346_v51, 0.0 }
 0x5bf   :  { %3357 = vadd.xlane.f32.xlu0 %v3356_v61 }
 0x5c1   :  { %v3341_v0 = vpop.f32.mrf.mxu2 }
 0x5c2   :  { %v3342_v60 = vadd.f32 %v4104_v1, %v3341_v0 }
 0x5c4   :  { %v3347_v57 = vadd.f32 %v3342_v60, %v4562_v40 }
 0x5c6   :  { %v3359_v31 = vsel %vm361_vm1, %v3347_v57, 0.0 }
 0x5c7   :  { %3360 = vadd.xlane.f32.xlu2 %v3359_v31 }
 0x613   :  { %v3352_v45 = vpop.xlane.xlu2 %3351 }
 0x614   :  { %v3369_v54 = vmul.f32 %v6072_v33, %v3352_v45 }
 0x616   :  { %v3373_v19 = vsub.f32 %v3344_v34, %v3369_v54 }
 0x618   :  { %v3377_v23 = vmul.f32 %v3373_v19, %v3373_v19 }
 0x61a   :  { %v3381_v40 = vsel %vm361_vm1, %v3377_v23, 0.0 }
 0x61b   :  { %v3355_v12 = vpop.xlane.xlu1 %3354  ;;  %3382 = vadd.xlane.f32.xlu1 %v3381_v40 }
 0x61c   :  { %v3370_v42 = vmul.f32 %v6072_v33, %v3355_v12 }
 0x61e   :  { %v3374_v6 = vsub.f32 %v3345_v56, %v3370_v42 }
 0x620   :  { %v3378_v28 = vmul.f32 %v3374_v6, %v3374_v6 }
 0x622   :  { %v3384_v37 = vsel %vm361_vm1, %v3378_v28, 0.0 }
 0x623   :  { %3385 = vadd.xlane.f32.xlu0 %v3384_v37 }
 0x632   :  { %v3358_v49 = vpop.xlane.xlu0 %3357 }
 0x633   :  { %v3371_v29 = vmul.f32 %v6072_v33, %v3358_v49 }
 0x635   :  { %v6079_v39 = vsub.f32 %v3346_v51, %v3371_v29 }
 0x637   :  { %v3379_v9 = vmul.f32 %v6079_v39, %v6079_v39 }
 0x639   :  { %v3387_v59 = vsel %vm361_vm1, %v3379_v9, 0.0 }
 0x63a   :  { %3388 = vadd.xlane.f32.xlu2 %v3387_v59  ;;  %v3361_v38 = vpop.xlane.xlu2 %3360 }
 0x63b   :  { %v3372_v58 = vmul.f32 %v6072_v33, %v3361_v38 }
 0x63d   :  { %v6085_v35 = vsub.f32 %v3347_v57, %v3372_v58 }
 0x63f   :  { %v3380_v10 = vmul.f32 %v6085_v35, %v6085_v35 }
 0x641   :  { %v3390_v7 = vsel %vm361_vm1, %v3380_v10, 0.0 }
 0x642   :  { %3391 = vadd.xlane.f32.xlu1 %v3390_v7  ;;  %v4008_v7 = vld [vmem:[%s6263_s13 + $0x18] sm:$0xff] }
 0x643   :  { %3559 = vmatpush.bf16.msrb.mxu0 %v4008_v7 }
 0x68e   :  { %v3383_v26 = vpop.xlane.xlu1 %3382 }
 0x68f   :  { %v3393_v46 = vmul.f32 %v3383_v26, %v6072_v33  ;;  %v4005_v26 = vld [vmem:[%s6263_s13] sm:$0xff] }
 0x691   :  { %v3397_v52 = vadd.f32 1e-05, %v3393_v46 }
 0x693   :  { %4177 = vrsqrt.f32 %v3397_v52  ;;  %vm3407_vm8 = vweird.f32 %v3397_v52 }
 0x696   :  { %v3386_v13 = vpop.xlane.xlu0 %3385 }
 0x697   :  { %v3394_v63 = vmul.f32 %v3386_v13, %v6072_v33 }
 0x699   :  { %v4178_v3 = vpop.eup %4177  ;;  %v3398_v21 = vadd.f32 1e-05, %v3394_v63 }
 0x69a   :  { %v3402_v16 = vmul.f32 %v4178_v3, %v3397_v52  ;;  %vm3408_vm7 = vweird.f32 %v4178_v3  ;;  %v4107_v52 = vld [vmem:[%s6262_s12] ss:$0 sm:$0xff] }
 0x69b   :  { %4179 = vrsqrt.f32 %v3398_v21  ;;  %vm3409_vm9 = vmor %vm3407_vm8, %vm3408_vm7  ;;  %vm3417_vm11 = vweird.f32 %v3398_v21 }
 0x69c   :  { %v3403_v20 = vmul.f32 %v4178_v3, %v3402_v16 }
 0x69e   :  { %v3404_v22 = vmul.f32 0.5, %v3403_v20 }
 0x6a0   :  { %v3405_v30 = vsub.f32 1.5, %v3404_v22 }
 0x6a1   :  { %v4180_v36 = vpop.eup %4179 }
 0x6a2   :  { %v3406_v50 = vmul.f32 %v4178_v3, %v3405_v30  ;;  %v3412_v25 = vmul.f32 %v4180_v36, %v3398_v21  ;;  %vm3418_vm10 = vweird.f32 %v4180_v36 }
 0x6a3   :  { %vm3419_vm12 = vmor %vm3417_vm11, %vm3418_vm10 }
 0x6a4   :  { %v3413_v41 = vmul.f32 %v4180_v36, %v3412_v25  ;;  %v3410_v2 = vsel %vm3409_vm9, %v4178_v3, %v3406_v50 }
 0x6a5   :  { %v3441_v34 = vmul.f32 %v3410_v2, %v3373_v19 }
 0x6a6   :  { %v3414_v1 = vmul.f32 0.5, %v3413_v41  ;;  %v4108_v41 = vld [vmem:[%s6264_s14] ss:$0 sm:$0xff] }
 0x6a7   :  { %v3448_v32 = vmul.f32 %v4105_v47, %v3441_v34 }
 0x6a8   :  { %v3415_v17 = vsub.f32 1.5, %v3414_v1 }
 0x6a9   :  { %v6099_v0 = vadd.f32 %v4106_v62, %v3448_v32 }
 0x6aa   :  { %v3416_v4 = vmul.f32 %v4180_v36, %v3415_v17 }
 0x6ac   :  { %v3420_v56 = vsel %vm3419_vm12, %v4180_v36, %v3416_v4 }
 0x6ad   :  { %v3389_v53 = vpop.xlane.xlu2 %3388  ;;  %v3442_v14 = vmul.f32 %v3420_v56, %v3374_v6 }
 0x6ae   :  { %v3395_v11 = vmul.f32 %v3389_v53, %v6072_v33 }
 0x6af   :  { %v3449_v61 = vmul.f32 %v4105_v47, %v3442_v14 }
 0x6b0   :  { %v3399_v51 = vadd.f32 1e-05, %v3395_v11 }
 0x6b1   :  { %v6101_v60 = vadd.f32 %v4106_v62, %v3449_v61 }
 0x6b2   :  { %4181 = vrsqrt.f32 %v3399_v51  ;;  %vm3427_vm14 = vweird.f32 %v3399_v51 }
 0x6b3   :  { %v3459_v31 = vpack.c.bf16 %v6101_v60, %v6099_v0 }
 0x6b5   :  { %v3392_v57 = vpop.xlane.xlu1 %3391  ;;  %3975 = vmatmul.msk.bf16.vlgmr.msrb.gmra.mxu3 %vm361_vm1, %v3459_v31 }
 0x6b6   :  { %v3396_v15 = vmul.f32 %v3392_v57, %v6072_v33 }
 0x6b8   :  { %v4182_v55 = vpop.eup %4181  ;;  %v3400_v8 = vadd.f32 1e-05, %v3396_v15 }
 0x6b9   :  { %v3422_v44 = vmul.f32 %v4182_v55, %v3399_v51  ;;  %vm3428_vm13 = vweird.f32 %v4182_v55 }
 0x6ba   :  { %4183 = vrsqrt.f32 %v3400_v8  ;;  %vm3429_vm15 = vmor %vm3427_vm14, %vm3428_vm13  ;;  %vm3437_vm3 = vweird.f32 %v3400_v8 }
 0x6bb   :  { %v3423_v27 = vmul.f32 %v4182_v55, %v3422_v44 }
 0x6bd   :  { %v3424_v43 = vmul.f32 0.5, %v3423_v27 }
 0x6bf   :  { %v3425_v45 = vsub.f32 1.5, %v3424_v43 }
 0x6c0   :  { %v4184_v54 = vpop.eup %4183 }
 0x6c1   :  { %v3426_v19 = vmul.f32 %v4182_v55, %v3425_v45  ;;  %v3432_v23 = vmul.f32 %v4184_v54, %v3400_v8  ;;  %vm3438_vm2 = vweird.f32 %v4184_v54 }
 0x6c2   :  { %vm3439_vm4 = vmor %vm3437_vm3, %vm3438_vm2 }
 0x6c3   :  { %v3433_v40 = vmul.f32 %v4184_v54, %v3432_v23  ;;  %v3430_v12 = vsel %vm3429_vm15, %v4182_v55, %v3426_v19 }
 0x6c4   :  { %v3443_v28 = vmul.f32 %v3430_v12, %v6079_v39  ;;  %v4007_v39 = vld [vmem:[%s6263_s13 + $0x10] sm:$0xff] }
 0x6c5   :  { %v3434_v42 = vmul.f32 0.5, %v3433_v40  ;;  %3560 = vmatpush.bf16.msrb.mxu0 %v4007_v39 }
 0x6c6   :  { %v3450_v9 = vmul.f32 %v4105_v47, %v3443_v28 }
 0x6c7   :  { %v3435_v6 = vsub.f32 1.5, %v3434_v42 }
 0x6c8   :  { %v3457_v38 = vadd.f32 %v4106_v62, %v3450_v9 }
 0x6c9   :  { %v3436_v37 = vmul.f32 %v4184_v54, %v3435_v6 }
 0x6cb   :  { %v3440_v49 = vsel %vm3439_vm4, %v4184_v54, %v3436_v37 }
 0x6cc   :  { %v3444_v29 = vmul.f32 %v3440_v49, %v6085_v35  ;;  %v4006_v35 = vld [vmem:[%s6263_s13 + $0x8] sm:$0xff] }
 0x6cd   :  { %3561 = vmatpush.bf16.msrb.mxu0 %v4006_v35 }
 0x6ce   :  { %v3451_v59 = vmul.f32 %v4105_v47, %v3444_v29 }
 0x6d0   :  { %v3458_v58 = vadd.f32 %v4106_v62, %v3451_v59 }
 0x6d1   :  { %3562 = vmatpush.bf16.msrb.mxu0 %v4005_v26 }
 0x6d2   :  { %v3460_v10 = vpack.c.bf16 %v3458_v58, %v3457_v38 }
 0x6d4   :  { %3976 = vmatmul.msk.bf16.gmra.mxu3 %vm361_vm1, %v3460_v10 }
 0x738   :  { %v3496_v46 = vpop.f32.mrf.mxu3 }
 0x739   :  { %v3497_v24 = vadd.f32 %v4107_v52, %v3496_v46 }
 0x73b   :  { %v3506_v63 = vmax.f32 %v3497_v24, 0.0 }
 0x740   :  { %v3498_v48 = vpop.f32.mrf.mxu3 }
 0x741   :  { %v3499_v13 = vadd.f32 %v4107_v52, %v3498_v48 }
 0x743   :  { %v3507_v3 = vmax.f32 %v3499_v13, 0.0 }
 0x745   :  { %v3510_v21 = vpack.c.bf16 %v3507_v3, %v3506_v63  ;;  %v6157_v63 = vld [vmem:[%s6267_s17] ss:$0 sm:$0xff]  ;;  %s4363_s17 = smov 32  }
 0x747   :  { %3993 = vmatmul.msk.bf16.vlgmr.msrb.gmra.mxu0 %vm3548_vm5, %v3510_v21 }
 0x757   :  { %v3501_v16 = vpop.f32.mrf.mxu3 }
 0x758   :  { %v3502_v20 = vadd.f32 %v4107_v52, %v3501_v16  ;;  %v6162_v16 = vld [vmem:[%s6268_s18] ss:$0 sm:$0xff] }
 0x75a   :  { %v3508_v36 = vmax.f32 %v3502_v20, 0.0 }
 0x75f   :  { %v3503_v22 = vpop.f32.mrf.mxu3 }
 0x760   :  { %v3504_v30 = vadd.f32 %v4107_v52, %v3503_v22 }
 0x762   :  { %v3509_v50 = vmax.f32 %v3504_v30, 0.0 }
 0x764   :  { %v3511_v25 = vpack.c.bf16 %v3509_v50, %v3508_v36 }
 0x766   :  { %3994 = vmatmul.msk.bf16.gmra.mxu0 %vm3548_vm5, %v3511_v25 }
 0x7c4   :  { %v3564_v2 = vpop.f32.mrf.mxu0 }
 0x7c5   :  { %v3565_v1 = vadd.f32 %v4108_v41, %v3564_v2 }
 0x7c7   :  { %v3574_v17 = vadd.f32 %v3565_v1, %v6099_v0 }
 0x7c9   :  { %v3580_v47 = vsel %vm361_vm1, %v3574_v17, 0.0 }
 0x7ca   :  { %3581 = vadd.xlane.f32.xlu0 %v3580_v47 }
 0x7cc   :  { %v3566_v34 = vpop.f32.mrf.mxu0 }
 0x7cd   :  { %v3567_v4 = vadd.f32 %v4108_v41, %v3566_v34 }
 0x7cf   :  { %v3575_v53 = vadd.f32 %v3567_v4, %v6101_v60 }
 0x7d1   :  { %v3583_v11 = vsel %vm361_vm1, %v3575_v53, 0.0 }
 0x7d2   :  { %3584 = vadd.xlane.f32.xlu1 %v3583_v11 }
 0x7e3   :  { %v3569_v56 = vpop.f32.mrf.mxu0 }
 0x7e4   :  { %v3570_v62 = vadd.f32 %v4108_v41, %v3569_v56 }
 0x7e6   :  { %v3576_v32 = vadd.f32 %v3570_v62, %v3457_v38 }
 0x7e8   :  { %v3586_v14 = vsel %vm361_vm1, %v3576_v32, 0.0 }
 0x7e9   :  { %3587 = vadd.xlane.f32.xlu2 %v3586_v14 }
 0x7eb   :  { %v3571_v51 = vpop.f32.mrf.mxu0 }
 0x7ec   :  { %v3572_v61 = vadd.f32 %v4108_v41, %v3571_v51 }
 0x7ee   :  { %v3577_v57 = vadd.f32 %v3572_v61, %v3458_v58 }
 0x7f0   :  { %v3589_v0 = vsel %vm361_vm1, %v3577_v57, 0.0 }
 0x7f1   :  { %3590 = vadd.xlane.f32.xlu0 %v3589_v0 }
 0x83d   :  { %v3582_v31 = vpop.xlane.xlu0 %3581 }
 0x83e   :  { %v3592_v15 = vmul.f32 %v3582_v31, %v6072_v33 }
 0x840   :  { %v3596_v55 = vsub.f32 %v3574_v17, %v3592_v15 }
 0x842   :  { %v3600_v60 = vmul.f32 %v3596_v55, %v3596_v55 }
 0x844   :  { %v3604_v8 = vsel %vm361_vm1, %v3600_v60, 0.0 }
 0x845   :  { %v3585_v44 = vpop.xlane.xlu1 %3584  ;;  %3605 = vadd.xlane.f32.xlu2 %v3604_v8 }
 0x846   :  { %v3593_v27 = vmul.f32 %v3585_v44, %v6072_v33 }
 0x848   :  { %v3597_v43 = vsub.f32 %v3575_v53, %v3593_v27 }
 0x84a   :  { %v3601_v45 = vmul.f32 %v3597_v43, %v3597_v43 }
 0x84c   :  { %v3607_v54 = vsel %vm361_vm1, %v3601_v45, 0.0 }
 0x84d   :  { %3608 = vadd.xlane.f32.xlu0 %v3607_v54 }
 0x85c   :  { %v3588_v19 = vpop.xlane.xlu2 %3587 }
 0x85d   :  { %v3594_v23 = vmul.f32 %v3588_v19, %v6072_v33 }
 0x85f   :  { %v6141_v40 = vsub.f32 %v3576_v32, %v3594_v23 }
 0x861   :  { %v3602_v12 = vmul.f32 %v6141_v40, %v6141_v40 }
 0x863   :  { %v3610_v42 = vsel %vm361_vm1, %v3602_v12, 0.0 }
 0x864   :  { %v3591_v6 = vpop.xlane.xlu0 %3590  ;;  %3611 = vadd.xlane.f32.xlu1 %v3610_v42 }
 0x865   :  { %v3595_v28 = vmul.f32 %v3591_v6, %v6072_v33 }
 0x867   :  { %v6147_v37 = vsub.f32 %v3577_v57, %v3595_v28 }
 0x869   :  { %v3603_v49 = vmul.f32 %v6147_v37, %v6147_v37 }
 0x86b   :  { %v3613_v29 = vsel %vm361_vm1, %v3603_v49, 0.0 }
 0x86c   :  { %3614 = vadd.xlane.f32.xlu2 %v3613_v29 }
 0x8b8   :  { %v3606_v9 = vpop.xlane.xlu2 %3605 }
 0x8b9   :  { %v3616_v59 = vmul.f32 %v3606_v9, %v6072_v33 }
 0x8bb   :  { %v3620_v38 = vadd.f32 1e-05, %v3616_v59 }
 0x8bd   :  { %4185 = vrsqrt.f32 %v3620_v38  ;;  %vm3630_vm7 = vweird.f32 %v3620_v38 }
 0x8c0   :  { %v3609_v58 = vpop.xlane.xlu0 %3608 }
 0x8c1   :  { %v3617_v10 = vmul.f32 %v3609_v58, %v6072_v33 }
 0x8c3   :  { %v4186_v7 = vpop.eup %4185  ;;  %v3621_v39 = vadd.f32 1e-05, %v3617_v10 }
 0x8c4   :  { %v3625_v35 = vmul.f32 %v4186_v7, %v3620_v38  ;;  %vm3631_vm6 = vweird.f32 %v4186_v7 }
 0x8c5   :  { %4187 = vrsqrt.f32 %v3621_v39  ;;  %vm3632_vm8 = vmor %vm3630_vm7, %vm3631_vm6  ;;  %vm3640_vm10 = vweird.f32 %v3621_v39 }
 0x8c6   :  { %v3626_v26 = vmul.f32 %v4186_v7, %v3625_v35 }
 0x8c8   :  { %v3627_v46 = vmul.f32 0.5, %v3626_v26 }
 0x8ca   :  { %v3628_v52 = vsub.f32 1.5, %v3627_v46 }
 0x8cb   :  { %v4188_v24 = vpop.eup %4187 }
 0x8cc   :  { %v3629_v48 = vmul.f32 %v4186_v7, %v3628_v52  ;;  %v3635_v13 = vmul.f32 %v4188_v24, %v3621_v39  ;;  %vm3641_vm9 = vweird.f32 %v4188_v24 }
 0x8cd   :  { %vm3642_vm11 = vmor %vm3640_vm10, %vm3641_vm9 }
 0x8ce   :  { %v3633_v3 = vsel %vm3632_vm8, %v4186_v7, %v3629_v48  ;;  %v3636_v21 = vmul.f32 %v4188_v24, %v3635_v13 }
 0x8cf   :  { %v3664_v20 = vmul.f32 %v3633_v3, %v3596_v55 }
 0x8d0   :  { %v3637_v22 = vmul.f32 0.5, %v3636_v21 }
 0x8d1   :  { %v3671_v30 = vmul.f32 %v6157_v63, %v3664_v20 }
 0x8d2   :  { %v3638_v36 = vsub.f32 1.5, %v3637_v22 }
 0x8d3   :  { %v3678_v50 = vadd.f32 %v6162_v16, %v3671_v30 }
 0x8d4   :  { %v3639_v25 = vmul.f32 %v4188_v24, %v3638_v36 }
 0x8d5   :  { %v3682_v2 = vrot.slane %v3678_v50, 4  ;;  %v3687_v53 = vperm.slane %v3678_v50, %v4490_v5 }
 0x8d6   :  { %v3643_v17 = vsel %vm3642_vm11, %v4188_v24, %v3639_v25 }
 0x8d7   :  { %v3612_v41 = vpop.xlane.xlu1 %3611  ;;  %v3665_v47 = vmul.f32 %v3643_v17, %v3597_v43  ;;  %v3683_v4 = vsel %vm149_vm0, 0.0, %v3682_v2  ;;  %v3704_v14 = vrot.slane %v3687_v53, 4 }
 0x8d8   :  { %v3618_v1 = vmul.f32 %v3612_v41, %v6072_v33  ;;  %v3691_v62 = vperm.slane %v3683_v4, %v4490_v5 }
 0x8d9   :  { %v3672_v11 = vmul.f32 %v6157_v63, %v3665_v47 }
 0x8da   :  { %v3622_v34 = vadd.f32 1e-05, %v3618_v1  ;;  %v3716_v8 = vrot.slane %v3691_v62, 4 }
 0x8db   :  { %v3679_v56 = vadd.f32 %v6162_v16, %v3672_v11 }
 0x8dc   :  { %4189 = vrsqrt.f32 %v3622_v34  ;;  %vm3650_vm13 = vweird.f32 %v3622_v34 }
 0x8dd   :  { %v3692_v51 = vrot.slane %v3679_v56, 4  ;;  %v3697_v61 = vperm.slane %v3679_v56, %v4490_v5 }
 0x8df   :  { %v3615_v32 = vpop.xlane.xlu2 %3614  ;;  %v3693_v31 = vsel %vm149_vm0, 0.0, %v3692_v51  ;;  %v3702_v15 = vrot.slane %v3697_v61, 4  ;;  %v3705_v55 = vsel %vm149_vm0, %v3697_v61, %v3704_v14 }
 0x8e0   :  { %v3619_v57 = vmul.f32 %v3615_v32, %v6072_v33  ;;  %v3701_v44 = vperm.slane %v3693_v31, %v4490_v5  ;;  %v3713_v43 = vperm.slane %v3705_v55, %v4501_v18 }
 0x8e1   :  { %v3703_v45 = vsel %vm149_vm0, %v3702_v15, %v3687_v53 }
 0x8e2   :  { %v4190_v0 = vpop.eup %4189  ;;  %v3623_v60 = vadd.f32 1e-05, %v3619_v57  ;;  %v3714_v54 = vrot.slane %v3701_v44, 4  ;;  %v3709_v33 = vperm.slane %v3703_v45, %v4501_v18  ;;  %v3717_v23 = vsel %vm149_vm0, %v3701_v44, %v3716_v8 }
 0x8e3   :  { %v3645_v27 = vmul.f32 %v4190_v0, %v3622_v34  ;;  %v3725_v12 = vperm.slane %v3717_v23, %v4501_v18  ;;  %v3728_v42 = vrot.slane %v3713_v43, 4  ;;  %vm3651_vm12 = vweird.f32 %v4190_v0 }
 0x8e4   :  { %4191 = vrsqrt.f32 %v3623_v60  ;;  %v3715_v28 = vsel %vm149_vm0, %v3714_v54, %v3691_v62  ;;  %v3726_v49 = vrot.slane %v3709_v33, 4  ;;  %vm3652_vm14 = vmor %vm3650_vm13, %vm3651_vm12  ;;  %vm3660_vm2 = vweird.f32 %v3623_v60 }
 0x8e5   :  { %v3646_v19 = vmul.f32 %v4190_v0, %v3645_v27  ;;  %v3721_v29 = vperm.slane %v3715_v28, %v4501_v18  ;;  %v3729_v9 = vsel %vm149_vm0, 0.0, %v3728_v42  ;;  %v3732_v59 = vrot.slane %v3725_v12, 4 }
 0x8e6   :  { %v3727_v58 = vsel %vm149_vm0, 0.0, %v3726_v49  ;;  %v3791_v10 = vrot.slane %v3729_v9, 4  ;;  %v3786_v26 = vsel %vm149_vm0, %v3728_v42, %v3709_v33 }
 0x8e7   :  { %v3647_v6 = vmul.f32 0.5, %v3646_v19  ;;  %v3730_v39 = vrot.slane %v3721_v29, 4  ;;  %v3733_v35 = vsel %vm149_vm0, 0.0, %v3732_v59  ;;  %v3790_v22 = vperm.slane %v3786_v26, %v4490_v5 }
 0x8e8   :  { %v3792_v24 = vsel %vm149_vm0, %v3791_v10, %v3727_v58  ;;  %v3802_v3 = vrot.slane %v3733_v35, 4  ;;  %v3797_v36 = vsel %vm149_vm0, %v3732_v59, %v3721_v29 }
 0x8e9   :  { %v3648_v38 = vsub.f32 1.5, %v3647_v6  ;;  %v3731_v48 = vsel %vm149_vm0, 0.0, %v3730_v39  ;;  %v3796_v13 = vperm.slane %v3792_v24, %v4490_v5  ;;  %v3801_v34 = vperm.slane %v3797_v36, %v4490_v5 }
 0x8ea   :  { %v4192_v7 = vpop.eup %4191  ;;  %v3803_v50 = vsel %vm149_vm0, %v3802_v3, %v3731_v48 }
 0x8eb   :  { %v3649_v46 = vmul.f32 %v4190_v0, %v3648_v38  ;;  %v3655_v52 = vmul.f32 %v4192_v7, %v3623_v60  ;;  %v3808_v25 = vrot.slane %v3796_v13, 4  ;;  %v3807_v2 = vperm.slane %v3803_v50, %v4490_v5 }
 0x8ec   :  { %vm3661_vm15 = vweird.f32 %v4192_v7 }
 0x8ed   :  { %v3653_v21 = vsel %vm3652_vm14, %v4190_v0, %v3649_v46  ;;  %v3656_v20 = vmul.f32 %v4192_v7, %v3655_v52  ;;  %v3809_v17 = vsel %vm149_vm0, %v3808_v25, %v3790_v22  ;;  %v3814_v53 = vrot.slane %v3807_v2, 4  ;;  %vm3662_vm3 = vmor %vm3660_vm2, %vm3661_vm15 }
 0x8ee   :  { %v3666_v30 = vmul.f32 %v3653_v21, %v6141_v40  ;;  %v3813_v4 = vperm.slane %v3809_v17, %v4501_v18 }
 0x8ef   :  { %v3657_v41 = vmul.f32 0.5, %v3656_v20  ;;  %v3815_v56 = vsel %vm149_vm0, %v3814_v53, %v3801_v34 }
 0x8f0   :  { %v3673_v1 = vmul.f32 %v6157_v63, %v3666_v30  ;;  %v3822_v62 = vrot.slane %v3813_v4, 4  ;;  %v3819_v14 = vperm.slane %v3815_v56, %v4501_v18 }
 0x8f1   :  { %v3658_v47 = vsub.f32 1.5, %v3657_v41 }
 0x8f2   :  { %v3680_v40 = vadd.f32 %v6162_v16, %v3673_v1  ;;  %v3823_v57 = vsel %vm149_vm0, %v3819_v14, %v3822_v62  ;;  %v3820_v0 = vrot.slane %v3819_v14, 4 }
 0x8f3   :  { %v3659_v11 = vmul.f32 %v4192_v7, %v3658_v47  ;;  %3864 = vrot.lane.b32.xlu1 %v3823_v57, %s4363_s17 }
 0x8f4   :  { %v3734_v32 = vrot.slane %v3680_v40, 4  ;;  %v3739_v15 = vperm.slane %v3680_v40, %v4490_v5  ;;  %v3821_v60 = vsel %vm149_vm0, %v3820_v0, %v3813_v4 }
 0x8f5   :  { %v3663_v51 = vsel %vm3662_vm3, %v4192_v7, %v3659_v11 }
 0x8f6   :  { %v3667_v61 = vmul.f32 %v3663_v51, %v6147_v37  ;;  %v3735_v31 = vsel %vm149_vm0, 0.0, %v3734_v32  ;;  %v3756_v27 = vrot.slane %v3739_v15, 4 }
 0x8f7   :  { %v3743_v44 = vperm.slane %v3735_v31, %v4490_v5 }
 0x8f8   :  { %v3674_v55 = vmul.f32 %v6157_v63, %v3667_v61 }
 0x8f9   :  { %v3768_v33 = vrot.slane %v3743_v44, 4 }
 0x8fa   :  { %v3681_v8 = vadd.f32 %v6162_v16, %v3674_v55 }
 0x8fc   :  { %v3744_v37 = vrot.slane %v3681_v8, 4  ;;  %v3749_v43 = vperm.slane %v3681_v8, %v4490_v5 }
 0x8fe   :  { %v3745_v45 = vsel %vm149_vm0, 0.0, %v3744_v37  ;;  %v3754_v54 = vrot.slane %v3749_v43, 4  ;;  %v3757_v19 = vsel %vm149_vm0, %v3749_v43, %v3756_v27 }
 0x8ff   :  { %v3753_v23 = vperm.slane %v3745_v45, %v4490_v5  ;;  %v3765_v63 = vperm.slane %v3757_v19, %v4501_v18 }
 0x900   :  { %v3755_v12 = vsel %vm149_vm0, %v3754_v54, %v3739_v15 }
 0x901   :  { %v3766_v42 = vrot.slane %v3753_v23, 4  ;;  %v3761_v16 = vperm.slane %v3755_v12, %v4501_v18  ;;  %v3769_v6 = vsel %vm149_vm0, %v3753_v23, %v3768_v33  ;;  %v3780_v28 = vrot.slane %v3765_v63, 4 }
 0x902   :  { %v3777_v49 = vperm.slane %v3769_v6, %v4501_v18 }
 0x903   :  { %v3767_v29 = vsel %vm149_vm0, %v3766_v42, %v3743_v44  ;;  %v3778_v9 = vrot.slane %v3761_v16, 4  ;;  %v3781_v59 = vsel %vm149_vm0, 0.0, %v3780_v28  ;;  %v3824_v26 = vsel %vm149_vm0, %v3780_v28, %v3761_v16 }
 0x904   :  { %v3773_v38 = vperm.slane %v3767_v29, %v4501_v18  ;;  %v3784_v58 = vrot.slane %v3777_v49, 4  ;;  %v3829_v10 = vrot.slane %v3781_v59, 4  ;;  %v3828_v13 = vperm.slane %v3824_v26, %v4490_v5 }
 0x905   :  { %v3779_v7 = vsel %vm149_vm0, 0.0, %v3778_v9 }
 0x906   :  { %v3782_v39 = vrot.slane %v3773_v38, 4  ;;  %v3785_v35 = vsel %vm149_vm0, 0.0, %v3784_v58  ;;  %v3830_v46 = vsel %vm149_vm0, %v3829_v10, %v3779_v7  ;;  %v3835_v3 = vsel %vm149_vm0, %v3784_v58, %v3773_v38 }
 0x907   :  { %v3834_v52 = vperm.slane %v3830_v46, %v4490_v5  ;;  %v3840_v24 = vrot.slane %v3785_v35, 4  ;;  %v3839_v36 = vperm.slane %v3835_v3, %v4490_v5 }
 0x908   :  { %v3783_v48 = vsel %vm149_vm0, 0.0, %v3782_v39 }
 0x909   :  { %v3841_v21 = vsel %vm149_vm0, %v3840_v24, %v3783_v48  ;;  %v3846_v20 = vrot.slane %v3834_v52, 4 }
 0x90a   :  { %v3845_v22 = vperm.slane %v3841_v21, %v4490_v5 }
 0x90b   :  { %v3847_v30 = vsel %vm149_vm0, %v3846_v20, %v3828_v13 }
 0x90c   :  { %v3851_v50 = vperm.slane %v3847_v30, %v4501_v18  ;;  %v3852_v25 = vrot.slane %v3845_v22, 4 }
 0x90e   :  { %v3853_v41 = vsel %vm149_vm0, %v3852_v25, %v3839_v36  ;;  %v3860_v2 = vrot.slane %v3851_v50, 4 }
 0x90f   :  { %v3857_v1 = vperm.slane %v3853_v41, %v4501_v18 }
 0x911   :  { %v3861_v17 = vsel %vm149_vm0, %v3857_v1, %v3860_v2  ;;  %v3858_v47 = vrot.slane %v3857_v1, 4 }
 0x912   :  { %3866 = vrot.lane.b32.xlu0 %v3861_v17, %s4363_s17 }
 0x913   :  { %v3859_v34 = vsel %vm149_vm0, %v3858_v47, %v3851_v50 }
 0x965   :  { %v3865_v4 = vpop.permute.xlu1 %3864 }
 0x966   :  { %v3870_v53 = vsel %vm361_vm1, %v3821_v60, %v3865_v4 }
 0x967   :  { %3872 = vst.msk [vmem:[#allocation11] sm:$0xff] %vm3548_vm5, %v3870_v53 }
 0x984   :  { %v3867_v5 = vpop.permute.xlu0 %3866 }
 0x985   :  { %v3871_v18 = vsel %vm361_vm1, %v3859_v34, %v3867_v5 }
 0x986   :  { %3873 = vst.msk [vmem:[#allocation11 + $0x8] sm:$0xff] %vm3548_vm5, %v3871_v18 }
 0x987   :  { %3886 = dma.vmem_to_hbm [thread:$0]  %s3879_s8, 256, %s3881_s3, [#allocation4], %s4365_s11, %s4365_s11, %s4361_s29  }
 0x988   :  { %4344 = dma.done.wait [#allocation4], 256  }
 0x989   :  { %4345 = vsyncadd [#allocation4], 4294967040 }
 0x98a   :  { %3891 = vsyncpa [#allocation3], 1 }
 0x98b   :  { %3892 = vsyncpa [#allocation6], 1 }
 0x98c   :  { %3893 = vsyncpa [#allocation9], 1 }
 0x98d   :  { %3894 = vsyncpa [#allocation4], 1 }

</bundles_post_ra>
